<compile_context>
chip_gen: v7x
topology: tpu7x:2x2x1
jax: 0.10.0
libtpu: 0.0.40
codegen_flags: <defaults>
</compile_context>

<pallas_src>
import functools

import jax
import jax.numpy as jnp
from jax.experimental import pallas as pl
from jax.experimental.pallas import tpu as pltpu

EPS = 1e-5


# ----------------------------------------------------------------------------
# Small helpers: VMEM budget + M-tile selection
# ----------------------------------------------------------------------------
def _vmem_limit_bytes():
    # Derive a portable scoped-VMEM limit (v5e/v6e: 128 MiB, v7x: 64 MiB phys).
    default = 48 * 1024 * 1024
    try:
        cap = int(pltpu.get_tpu_info().vmem_capacity_bytes)
    except Exception:
        return default
    return max(16 * 1024 * 1024, min(int(cap * 0.7), 64 * 1024 * 1024))


def _largest_tile(m, cap):
    """Largest divisor of m that is <= cap and a multiple of 8 (or m itself)."""
    if m <= cap:
        return m
    t = (cap // 8) * 8
    while t >= 8:
        if m % t == 0:
            return t
        t -= 8
    return m  # fallback: single tile


# ----------------------------------------------------------------------------
# Pallas kernels
# ----------------------------------------------------------------------------
def _bn_matmul_kernel(p_ref, w_ref, g_ref, b_ref, o_ref,
                      sum_ref, sq_ref, scale_ref, shift_ref,
                      *, n_groups, n_chan, count, eps):
    """Two-pass fused (patches @ W) + BatchNorm(batch stats) + ReLU.

    grid = (2, num_m_tiles).  Pass 0 accumulates per-column sum / sum-of-squares
    into VMEM scratch; at the end of pass 0 the n_groups column-groups (spatial
    phases) are combined into per-channel mean/var and folded with gamma/beta
    into per-column scale/shift.  Pass 1 recomputes the matmul tile and writes
    the normalized + ReLU'd output.
    """
    pass_id = pl.program_id(0)   # 0: statistics, 1: normalize + write
    mi = pl.program_id(1)

    y = jnp.dot(p_ref[...], w_ref[...], preferred_element_type=jnp.float32)

    @pl.when(jnp.logical_and(pass_id == 0, mi == 0))
    def _init():
        sum_ref[...] = jnp.zeros_like(sum_ref)
        sq_ref[...] = jnp.zeros_like(sq_ref)

    @pl.when(pass_id == 0)
    def _accumulate():
        sum_ref[...] += jnp.sum(y, axis=0, keepdims=True)
        sq_ref[...] += jnp.sum(y * y, axis=0, keepdims=True)

    @pl.when(jnp.logical_and(pass_id == 0, mi == pl.num_programs(1) - 1))
    def _finalize_stats():
        s = sum_ref[...]
        q = sq_ref[...]
        # combine the n_groups spatial-phase column groups -> per-channel stats
        s_c = s[:, 0:n_chan]
        q_c = q[:, 0:n_chan]
        for grp in range(1, n_groups):
            s_c = s_c + s[:, grp * n_chan:(grp + 1) * n_chan]
            q_c = q_c + q[:, grp * n_chan:(grp + 1) * n_chan]
        inv = 1.0 / float(count)
        mean = s_c * inv
        var = q_c * inv - mean * mean           # biased variance (torch training)
        rstd = jax.lax.rsqrt(var + eps)
        sc = g_ref[...] * rstd                   # (1, n_chan)
        sh = b_ref[...] - mean * sc
        scale_ref[...] = jnp.tile(sc, (1, n_groups))
        shift_ref[...] = jnp.tile(sh, (1, n_groups))

    @pl.when(pass_id == 1)
    def _normalize():
        o_ref[...] = jnp.maximum(y * scale_ref[...] + shift_ref[...], 0.0)


def _bias_tanh_kernel(p_ref, w_ref, b_ref, o_ref):
    y = jnp.dot(p_ref[...], w_ref[...], preferred_element_type=jnp.float32)
    o_ref[...] = jnp.tanh(y + b_ref[...])


# ----------------------------------------------------------------------------
# pallas_call wrappers
# ----------------------------------------------------------------------------
def fused_matmul_bn_relu(patches, wmat, gamma, beta, n_groups, vmem_limit):
    M, K = patches.shape
    cols = wmat.shape[1]
    assert cols % n_groups == 0
    n_chan = cols // n_groups

    per_row = 2 * K + 4 * cols                  # bf16 patch row + f32 out row
    cap = max(8, (vmem_limit // 8) // max(per_row, 1))
    tm = _largest_tile(M, cap)
    num_m = M // tm

    kern = functools.partial(_bn_matmul_kernel, n_groups=n_groups,
                             n_chan=n_chan, count=M * n_groups, eps=EPS)
    grid_spec = pltpu.PrefetchScalarGridSpec(
        num_scalar_prefetch=0,
        grid=(2, num_m),
        in_specs=[
            pl.BlockSpec((tm, K), lambda p, i: (i, 0)),
            # TODO(synk): for large ngf the resident weight should use
            # pl.Buffered(1) (or be K-tiled) to avoid double-buffering it.
            pl.BlockSpec((K, cols), lambda p, i: (0, 0)),
            pl.BlockSpec((1, n_chan), lambda p, i: (0, 0)),
            pl.BlockSpec((1, n_chan), lambda p, i: (0, 0)),
        ],
        # During pass 0 (p==0) all steps map to output block 0, which stays
        # resident and is only written back after pass 1 fills it -> no junk
        # HBM writes during the statistics pass.
        out_specs=pl.BlockSpec((tm, cols), lambda p, i: (p * i, 0)),
        scratch_shapes=[
            pltpu.VMEM((1, cols), jnp.float32),   # sum
            pltpu.VMEM((1, cols), jnp.float32),   # sum of squares
            pltpu.VMEM((1, cols), jnp.float32),   # scale
            pltpu.VMEM((1, cols), jnp.float32),   # shift
        ],
    )
    # TODO(synk): v7x could split the M axis across both TensorCores with
    # per-core partial stats + a combine step; kept single-core here.
    return pl.pallas_call(
        kern,
        out_shape=jax.ShapeDtypeStruct((M, cols), jnp.float32),
        grid_spec=grid_spec,
        compiler_params=pltpu.CompilerParams(
            dimension_semantics=("arbitrary", "arbitrary"),
            vmem_limit_bytes=vmem_limit,
        ),
    )(patches.astype(jnp.bfloat16),
      wmat.astype(jnp.bfloat16),
      gamma.reshape(1, n_chan).astype(jnp.float32),
      beta.reshape(1, n_chan).astype(jnp.float32))


def fused_matmul_bias_tanh(patches, wmat, bias_cols, vmem_limit):
    M, K = patches.shape
    cols = wmat.shape[1]

    per_row = 2 * K + 4 * cols
    cap = max(8, (vmem_limit // 8) // max(per_row, 1))
    tm = _largest_tile(M, cap)

    grid_spec = pltpu.PrefetchScalarGridSpec(
        num_scalar_prefetch=0,
        grid=(M // tm,),
        in_specs=[
            pl.BlockSpec((tm, K), lambda i: (i, 0)),
            pl.BlockSpec((K, cols), lambda i: (0, 0)),
            pl.BlockSpec((1, cols), lambda i: (0, 0)),
        ],
        out_specs=pl.BlockSpec((tm, cols), lambda i: (i, 0)),
    )
    return pl.pallas_call(
        _bias_tanh_kernel,
        out_shape=jax.ShapeDtypeStruct((M, cols), jnp.float32),
        grid_spec=grid_spec,
        compiler_params=pltpu.CompilerParams(
            dimension_semantics=("parallel",),
            vmem_limit_bytes=vmem_limit,
        ),
    )(patches.astype(jnp.bfloat16),
      wmat.astype(jnp.bfloat16),
      bias_cols.reshape(1, cols).astype(jnp.float32))


# ----------------------------------------------------------------------------
# Layout glue (plain JAX): phase weights, 3x3 im2col, depth-to-space
# ----------------------------------------------------------------------------
def _phase_weight_matrix(w_t):
    """Block weight for K=4, s=2, p=1 ConvTranspose via phase decomposition.

    w_t: (Cin, Cout, 4, 4) torch ConvTranspose2d layout.
    Returns (9*Cin, 4*Cout): rows ordered (dh, dw, ci) over a 3x3 window of the
    1-padded input, columns ordered (rh, rw, co) over the 2x2 output phases.
    Output position (2q+rh, 2q'+rw) only uses taps dh in {rh, rh+1},
    dw in {rw, rw+1} with kernel index kh = 3+rh-2*dh, kw = 3+rw-2*dw.
    """
    cin, cout = w_t.shape[0], w_t.shape[1]
    wb = jnp.zeros((3, 3, cin, 2, 2, cout), w_t.dtype)
    for rh in range(2):
        for rw in range(2):
            for dh in (rh, rh + 1):
                for dw in (rw, rw + 1):
                    kh = 3 + rh - 2 * dh
                    kw = 3 + rw - 2 * dw
                    wb = wb.at[dh, dw, :, rh, rw, :].set(w_t[:, :, kh, kw])
    return wb.reshape(9 * cin, 4 * cout)


def _im2col_3x3(x_nhwc):
    # TODO(synk): gather these 3x3 taps inside the kernel (grid axis over taps
    # with accumulation) to avoid materializing the 9x-inflated patch matrix.
    n, h, w, c = x_nhwc.shape
    xp = jnp.pad(x_nhwc, ((0, 0), (1, 1), (1, 1), (0, 0)))
    cols = [xp[:, dh:dh + h, dw:dw + w, :] for dh in range(3) for dw in range(3)]
    p = jnp.stack(cols, axis=3)                 # (n, h, w, 9, c)
    return p.reshape(n * h * w, 9 * c)


def _depth_to_space(y, n, h, w, c):
    # y: (n*h*w, 4*c) with columns ordered (rh, rw, co) -> NHWC (n, 2h, 2w, c)
    y = y.reshape(n, h, w, 2, 2, c)
    y = jnp.transpose(y, (0, 1, 3, 2, 4, 5))    # (n, h, rh, w, rw, c)
    return y.reshape(n, 2 * h, 2 * w, c)


# ----------------------------------------------------------------------------
# Full generator forward
# ----------------------------------------------------------------------------
def generator_forward(z, params, vmem_limit=None):
    if vmem_limit is None:
        vmem_limit = _vmem_limit_bytes()
    n, nz = z.shape

    # ---- layer 1: 1x1 input, stride 1, pad 0  ->  dense matmul (nz -> 16*C1)
    w1 = params["w1"]                            # (nz, C1, 4, 4)
    c1 = w1.shape[1]
    w1mat = jnp.transpose(w1, (0, 2, 3, 1)).reshape(nz, 16 * c1)  # (ci,(kh,kw,co))
    y = fused_matmul_bn_relu(z.astype(jnp.float32), w1mat,
                             params["g1"], params["b1"],
                             n_groups=16, vmem_limit=vmem_limit)
    x = y.reshape(n, 4, 4, c1)                   # NHWC

    # ---- layers 2-4: stride-2 deconv + BN + ReLU via phase decomposition
    for idx in (2, 3, 4):
        w = params[f"w{idx}"]
        cout = w.shape[1]
        nb, hb, wb_, _ = x.shape
        patches = _im2col_3x3(x)                                  # (N*H*W, 9*Cin)
        wblk = _phase_weight_matrix(w)                            # (9*Cin, 4*Cout)
        y = fused_matmul_bn_relu(patches, wblk, params[f"g{idx}"], params[f"b{idx}"],
                                 n_groups=4, vmem_limit=vmem_limit)
        x = _depth_to_space(y, nb, hb, wb_, cout)                 # (N, 2H, 2W, Cout)

    # ---- layer 5: stride-2 deconv + bias + tanh, emit NCHW directly
    w5 = params["w5"]
    c5 = w5.shape[1]
    nb, hb, wb_, _ = x.shape
    patches = _im2col_3x3(x)
    wblk5 = _phase_weight_matrix(w5)                              # (9*Cin, 4*C5)
    bias_cols = jnp.tile(params["bias5"], 4)                      # (rh, rw, co) order
    y = fused_matmul_bias_tanh(patches, wblk5, bias_cols, vmem_limit=vmem_limit)
    y = y.reshape(nb, hb, wb_, 2, 2, c5)
    out = jnp.transpose(y, (0, 5, 1, 3, 2, 4)).reshape(nb, c5, 2 * hb, 2 * wb_)
    return out                                                    # (N, C, 64, 64)


# ----------------------------------------------------------------------------
# Pure-JAX f32 reference (correctness check only)
# ----------------------------------------------------------------------------
def _ref_deconv(x_nchw, w_t, stride, padding):
    _, _, K, _ = w_t.shape
    w_flip = jnp.transpose(w_t[:, :, ::-1, ::-1], (1, 0, 2, 3))   # (Cout,Cin,K,K)
    p = K - 1 - padding
    return jax.lax.conv_general_dilated(
        x_nchw, w_flip, window_strides=(1, 1), padding=[(p, p), (p, p)],
        lhs_dilation=(stride, stride),
        dimension_numbers=("NCHW", "OIHW", "NCHW"))


def _ref_bn_relu(x, gamma, beta):
    mean = x.mean(axis=(0, 2, 3), keepdims=True)
    var = ((x - mean) ** 2).mean(axis=(0, 2, 3), keepdims=True)
    xh = (x - mean) * jax.lax.rsqrt(var + EPS)
    return jnp.maximum(xh * gamma[None, :, None, None] + beta[None, :, None, None], 0.0)


def _ref_forward(z, params):
    x = z[:, :, None, None].astype(jnp.float32)
    x = _ref_bn_relu(_ref_deconv(x, params["w1"], 1, 0), params["g1"], params["b1"])
    x = _ref_bn_relu(_ref_deconv(x, params["w2"], 2, 1), params["g2"], params["b2"])
    x = _ref_bn_relu(_ref_deconv(x, params["w3"], 2, 1), params["g3"], params["b3"])
    x = _ref_bn_relu(_ref_deconv(x, params["w4"], 2, 1), params["g4"], params["b4"])
    x = jnp.tanh(_ref_deconv(x, params["w5"], 2, 1)
                 + params["bias5"][None, :, None, None])
    return x


# ----------------------------------------------------------------------------
def init_params(key, nz=100, ngf=16, num_channel=3):
    ks = jax.random.split(key, 16)
    std = 0.02  # matches the module's _init_weights convention
    p = {
        "w1": jax.random.normal(ks[0], (nz, ngf * 8, 4, 4), jnp.float32) * std,
        "w2": jax.random.normal(ks[1], (ngf * 8, ngf * 4, 4, 4), jnp.float32) * std,
        "w3": jax.random.normal(ks[2], (ngf * 4, ngf * 2, 4, 4), jnp.float32) * std,
        "w4": jax.random.normal(ks[3], (ngf * 2, ngf, 4, 4), jnp.float32) * std,
        "w5": jax.random.normal(ks[4], (ngf, num_channel, 4, 4), jnp.float32) * std,
        "bias5": jax.random.normal(ks[5], (num_channel,), jnp.float32) * 0.02,
    }
    for i, c in enumerate([ngf * 8, ngf * 4, ngf * 2, ngf], start=1):
        p[f"g{i}"] = 1.0 + 0.1 * jax.random.normal(ks[5 + 2 * i], (c,), jnp.float32)
        p[f"b{i}"] = 0.1 * jax.random.normal(ks[6 + 2 * i], (c,), jnp.float32)
    return p


if __name__ == "__main__":
    key = jax.random.PRNGKey(0)
    k_z, k_p = jax.random.split(key)

    N, NZ, NGF, NC = 2, 100, 16, 3   # small ngf keeps the synthetic model small
    params = init_params(k_p, nz=NZ, ngf=NGF, num_channel=NC)
    z = jax.random.normal(k_z, (N, NZ), jnp.float32)

    out = jax.block_until_ready(jax.jit(generator_forward)(z, params))
    assert out.shape == (N, NC, 64, 64), out.shape

    ref = jax.block_until_ready(jax.jit(_ref_forward)(z, params))
    max_err = float(jnp.max(jnp.abs(out - ref)))
    # bf16 matmul operands -> loosened tolerance vs. the f32 reference
    assert jnp.allclose(out, ref, rtol=5e-2, atol=5e-2), max_err

    print("KERNEL_OK")
</pallas_src>

<mosaic_0001>
module attributes {stable_mosaic.version = 11 : i64} {
  func.func @_bn_matmul_kernel(%arg0: i32, %arg1: i32, %arg2: memref<2x100xbf16, #tpu.memory_space<vmem>>, %arg3: memref<100x2048xbf16, #tpu.memory_space<vmem>>, %arg4: memref<1x128xf32, #tpu.memory_space<vmem>>, %arg5: memref<1x128xf32, #tpu.memory_space<vmem>>, %arg6: memref<2x2048xf32, #tpu.memory_space<vmem>>, %arg7: memref<1x2048xf32, #tpu.memory_space<vmem>>, %arg8: memref<1x2048xf32, #tpu.memory_space<vmem>>, %arg9: memref<1x2048xf32, #tpu.memory_space<vmem>>, %arg10: memref<1x2048xf32, #tpu.memory_space<vmem>>) attributes {dimension_semantics = [#tpu.dimension_semantics<arbitrary>, #tpu.dimension_semantics<arbitrary>], iteration_bounds = array<i64: 2, 1>, scalar_prefetch = 0 : i64, scratch_operands = 4 : i64, tpu.core_type = #tpu.core_type<tc>, window_params = [{transform_indices = @transform_0, window_bounds = array<i64: 2, 100>}, {pipeline_mode = #tpu.pipeline_mode<synchronous>, transform_indices = @transform_1, window_bounds = array<i64: 100, 2048>}, {pipeline_mode = #tpu.pipeline_mode<synchronous>, transform_indices = @transform_2, window_bounds = array<i64: 1, 128>}, {pipeline_mode = #tpu.pipeline_mode<synchronous>, transform_indices = @transform_3, window_bounds = array<i64: 1, 128>}, {transform_indices = @transform_4, window_bounds = array<i64: 2, 2048>}]} {
    %c0 = arith.constant 0 : index
    %c0_0 = arith.constant 0 : index
    %0 = vector.load %arg2[%c0, %c0_0] : memref<2x100xbf16, #tpu.memory_space<vmem>>, vector<2x100xbf16>
    %c0_1 = arith.constant 0 : index
    %c0_2 = arith.constant 0 : index
    %1 = vector.load %arg3[%c0_1, %c0_2] : memref<100x2048xbf16, #tpu.memory_space<vmem>>, vector<100x2048xbf16>
    %cst = arith.constant dense<0.000000e+00> : vector<2x2048xf32>
    %2 = tpu.matmul %0, %1, %cst {dimension_numbers = #tpu.dot_dimension_numbers<[1], [0], [0], [1], [0, 0, 1, 1], [], []>} : vector<2x100xbf16>, vector<100x2048xbf16>, vector<2x2048xf32> -> vector<2x2048xf32>
    %c0_i32 = arith.constant 0 : i32
    %3 = arith.cmpi eq, %arg0, %c0_i32 : i32
    %c0_i32_3 = arith.constant 0 : i32
    %4 = arith.cmpi eq, %arg1, %c0_i32_3 : i32
    %5 = arith.andi %3, %4 : i1
    %6 = arith.extui %5 : i1 to i32
    %c0_i32_4 = arith.constant 0 : i32
    %7 = arith.cmpi ne, %6, %c0_i32_4 : i32
    scf.if %7 {
      %cst_11 = arith.constant 0.000000e+00 : f32
      %19 = vector.broadcast %cst_11 : f32 to vector<1x2048xf32>
      %c0_12 = arith.constant 0 : index
      %c0_13 = arith.constant 0 : index
      %20 = vector.load %arg7[%c0_12, %c0_13] : memref<1x2048xf32, #tpu.memory_space<vmem>>, vector<1x2048xf32>
      tpu.vector_store %arg7[%c0_12, %c0_13], %19 {strides = array<i32>} : memref<1x2048xf32, #tpu.memory_space<vmem>>, vector<1x2048xf32>,
      %cst_14 = arith.constant 0.000000e+00 : f32
      %21 = vector.broadcast %cst_14 : f32 to vector<1x2048xf32>
      %c0_15 = arith.constant 0 : index
      %c0_16 = arith.constant 0 : index
      %22 = vector.load %arg8[%c0_15, %c0_16] : memref<1x2048xf32, #tpu.memory_space<vmem>>, vector<1x2048xf32>
      tpu.vector_store %arg8[%c0_15, %c0_16], %21 {strides = array<i32>} : memref<1x2048xf32, #tpu.memory_space<vmem>>, vector<1x2048xf32>,
    } else {
    }
    %c0_i32_5 = arith.constant 0 : i32
    %8 = arith.cmpi eq, %arg0, %c0_i32_5 : i32
    %9 = arith.extui %8 : i1 to i32
    %c0_i32_6 = arith.constant 0 : i32
    %10 = arith.cmpi ne, %9, %c0_i32_6 : i32
    scf.if %10 {
      %c0_11 = arith.constant 0 : index
      %c0_12 = arith.constant 0 : index
      %19 = vector.load %arg7[%c0_11, %c0_12] : memref<1x2048xf32, #tpu.memory_space<vmem>>, vector<1x2048xf32>
      %cst_13 = arith.constant dense<0.000000e+00> : vector<2048xf32>
      %20 = vector.multi_reduction <add>, %2, %cst_13 [0] : vector<2x2048xf32> to vector<2048xf32>
      %21 = vector.shape_cast %20 : vector<2048xf32> to vector<1x2048xf32>
      %22 = arith.addf %19, %21 : vector<1x2048xf32>
      %c0_14 = arith.constant 0 : index
      %c0_15 = arith.constant 0 : index
      %23 = vector.load %arg7[%c0_14, %c0_15] : memref<1x2048xf32, #tpu.memory_space<vmem>>, vector<1x2048xf32>
      tpu.vector_store %arg7[%c0_14, %c0_15], %22 {strides = array<i32>} : memref<1x2048xf32, #tpu.memory_space<vmem>>, vector<1x2048xf32>,
      %c0_16 = arith.constant 0 : index
      %c0_17 = arith.constant 0 : index
      %24 = vector.load %arg8[%c0_16, %c0_17] : memref<1x2048xf32, #tpu.memory_space<vmem>>, vector<1x2048xf32>
      %25 = arith.mulf %2, %2 : vector<2x2048xf32>
      %cst_18 = arith.constant dense<0.000000e+00> : vector<2048xf32>
      %26 = vector.multi_reduction <add>, %25, %cst_18 [0] : vector<2x2048xf32> to vector<2048xf32>
      %27 = vector.shape_cast %26 : vector<2048xf32> to vector<1x2048xf32>
      %28 = arith.addf %24, %27 : vector<1x2048xf32>
      %c0_19 = arith.constant 0 : index
      %c0_20 = arith.constant 0 : index
      %29 = vector.load %arg8[%c0_19, %c0_20] : memref<1x2048xf32, #tpu.memory_space<vmem>>, vector<1x2048xf32>
      tpu.vector_store %arg8[%c0_19, %c0_20], %28 {strides = array<i32>} : memref<1x2048xf32, #tpu.memory_space<vmem>>, vector<1x2048xf32>,
    } else {
    }
    %c0_i32_7 = arith.constant 0 : i32
    %11 = arith.cmpi eq, %arg0, %c0_i32_7 : i32
    %c0_i32_8 = arith.constant 0 : i32
    %12 = arith.cmpi eq, %arg1, %c0_i32_8 : i32
    %13 = arith.andi %11, %12 : i1
    %14 = arith.extui %13 : i1 to i32
    %c0_i32_9 = arith.constant 0 : i32
    %15 = arith.cmpi ne, %14, %c0_i32_9 : i32
    scf.if %15 {
      %c0_11 = arith.constant 0 : index
      %c0_12 = arith.constant 0 : index
      %19 = vector.load %arg7[%c0_11, %c0_12] : memref<1x2048xf32, #tpu.memory_space<vmem>>, vector<1x2048xf32>
      %c0_13 = arith.constant 0 : index
      %c0_14 = arith.constant 0 : index
      %20 = vector.load %arg8[%c0_13, %c0_14] : memref<1x2048xf32, #tpu.memory_space<vmem>>, vector<1x2048xf32>
      %21 = vector.extract_strided_slice %19 {offsets = [0, 0], sizes = [1, 128], strides = [1, 1]} : vector<1x2048xf32> to vector<1x128xf32>
      %22 = vector.extract_strided_slice %20 {offsets = [0, 0], sizes = [1, 128], strides = [1, 1]} : vector<1x2048xf32> to vector<1x128xf32>
      %23 = vector.extract_strided_slice %19 {offsets = [0, 128], sizes = [1, 128], strides = [1, 1]} : vector<1x2048xf32> to vector<1x128xf32>
      %24 = arith.addf %21, %23 : vector<1x128xf32>
      %25 = vector.extract_strided_slice %20 {offsets = [0, 128], sizes = [1, 128], strides = [1, 1]} : vector<1x2048xf32> to vector<1x128xf32>
      %26 = arith.addf %22, %25 : vector<1x128xf32>
      %27 = vector.extract_strided_slice %19 {offsets = [0, 256], sizes = [1, 128], strides = [1, 1]} : vector<1x2048xf32> to vector<1x128xf32>
      %28 = arith.addf %24, %27 : vector<1x128xf32>
      %29 = vector.extract_strided_slice %20 {offsets = [0, 256], sizes = [1, 128], strides = [1, 1]} : vector<1x2048xf32> to vector<1x128xf32>
      %30 = arith.addf %26, %29 : vector<1x128xf32>
      %31 = vector.extract_strided_slice %19 {offsets = [0, 384], sizes = [1, 128], strides = [1, 1]} : vector<1x2048xf32> to vector<1x128xf32>
      %32 = arith.addf %28, %31 : vector<1x128xf32>
      %33 = vector.extract_strided_slice %20 {offsets = [0, 384], sizes = [1, 128], strides = [1, 1]} : vector<1x2048xf32> to vector<1x128xf32>
      %34 = arith.addf %30, %33 : vector<1x128xf32>
      %35 = vector.extract_strided_slice %19 {offsets = [0, 512], sizes = [1, 128], strides = [1, 1]} : vector<1x2048xf32> to vector<1x128xf32>
      %36 = arith.addf %32, %35 : vector<1x128xf32>
      %37 = vector.extract_strided_slice %20 {offsets = [0, 512], sizes = [1, 128], strides = [1, 1]} : vector<1x2048xf32> to vector<1x128xf32>
      %38 = arith.addf %34, %37 : vector<1x128xf32>
      %39 = vector.extract_strided_slice %19 {offsets = [0, 640], sizes = [1, 128], strides = [1, 1]} : vector<1x2048xf32> to vector<1x128xf32>
      %40 = arith.addf %36, %39 : vector<1x128xf32>
      %41 = vector.extract_strided_slice %20 {offsets = [0, 640], sizes = [1, 128], strides = [1, 1]} : vector<1x2048xf32> to vector<1x128xf32>
      %42 = arith.addf %38, %41 : vector<1x128xf32>
      %43 = vector.extract_strided_slice %19 {offsets = [0, 768], sizes = [1, 128], strides = [1, 1]} : vector<1x2048xf32> to vector<1x128xf32>
      %44 = arith.addf %40, %43 : vector<1x128xf32>
      %45 = vector.extract_strided_slice %20 {offsets = [0, 768], sizes = [1, 128], strides = [1, 1]} : vector<1x2048xf32> to vector<1x128xf32>
      %46 = arith.addf %42, %45 : vector<1x128xf32>
      %47 = vector.extract_strided_slice %19 {offsets = [0, 896], sizes = [1, 128], strides = [1, 1]} : vector<1x2048xf32> to vector<1x128xf32>
      %48 = arith.addf %44, %47 : vector<1x128xf32>
      %49 = vector.extract_strided_slice %20 {offsets = [0, 896], sizes = [1, 128], strides = [1, 1]} : vector<1x2048xf32> to vector<1x128xf32>
      %50 = arith.addf %46, %49 : vector<1x128xf32>
      %51 = vector.extract_strided_slice %19 {offsets = [0, 1024], sizes = [1, 128], strides = [1, 1]} : vector<1x2048xf32> to vector<1x128xf32>
      %52 = arith.addf %48, %51 : vector<1x128xf32>
      %53 = vector.extract_strided_slice %20 {offsets = [0, 1024], sizes = [1, 128], strides = [1, 1]} : vector<1x2048xf32> to vector<1x128xf32>
      %54 = arith.addf %50, %53 : vector<1x128xf32>
      %55 = vector.extract_strided_slice %19 {offsets = [0, 1152], sizes = [1, 128], strides = [1, 1]} : vector<1x2048xf32> to vector<1x128xf32>
      %56 = arith.addf %52, %55 : vector<1x128xf32>
      %57 = vector.extract_strided_slice %20 {offsets = [0, 1152], sizes = [1, 128], strides = [1, 1]} : vector<1x2048xf32> to vector<1x128xf32>
      %58 = arith.addf %54, %57 : vector<1x128xf32>
      %59 = vector.extract_strided_slice %19 {offsets = [0, 1280], sizes = [1, 128], strides = [1, 1]} : vector<1x2048xf32> to vector<1x128xf32>
      %60 = arith.addf %56, %59 : vector<1x128xf32>
      %61 = vector.extract_strided_slice %20 {offsets = [0, 1280], sizes = [1, 128], strides = [1, 1]} : vector<1x2048xf32> to vector<1x128xf32>
      %62 = arith.addf %58, %61 : vector<1x128xf32>
      %63 = vector.extract_strided_slice %19 {offsets = [0, 1408], sizes = [1, 128], strides = [1, 1]} : vector<1x2048xf32> to vector<1x128xf32>
      %64 = arith.addf %60, %63 : vector<1x128xf32>
      %65 = vector.extract_strided_slice %20 {offsets = [0, 1408], sizes = [1, 128], strides = [1, 1]} : vector<1x2048xf32> to vector<1x128xf32>
      %66 = arith.addf %62, %65 : vector<1x128xf32>
      %67 = vector.extract_strided_slice %19 {offsets = [0, 1536], sizes = [1, 128], strides = [1, 1]} : vector<1x2048xf32> to vector<1x128xf32>
      %68 = arith.addf %64, %67 : vector<1x128xf32>
      %69 = vector.extract_strided_slice %20 {offsets = [0, 1536], sizes = [1, 128], strides = [1, 1]} : vector<1x2048xf32> to vector<1x128xf32>
      %70 = arith.addf %66, %69 : vector<1x128xf32>
      %71 = vector.extract_strided_slice %19 {offsets = [0, 1664], sizes = [1, 128], strides = [1, 1]} : vector<1x2048xf32> to vector<1x128xf32>
      %72 = arith.addf %68, %71 : vector<1x128xf32>
      %73 = vector.extract_strided_slice %20 {offsets = [0, 1664], sizes = [1, 128], strides = [1, 1]} : vector<1x2048xf32> to vector<1x128xf32>
      %74 = arith.addf %70, %73 : vector<1x128xf32>
      %75 = vector.extract_strided_slice %19 {offsets = [0, 1792], sizes = [1, 128], strides = [1, 1]} : vector<1x2048xf32> to vector<1x128xf32>
      %76 = arith.addf %72, %75 : vector<1x128xf32>
      %77 = vector.extract_strided_slice %20 {offsets = [0, 1792], sizes = [1, 128], strides = [1, 1]} : vector<1x2048xf32> to vector<1x128xf32>
      %78 = arith.addf %74, %77 : vector<1x128xf32>
      %79 = vector.extract_strided_slice %19 {offsets = [0, 1920], sizes = [1, 128], strides = [1, 1]} : vector<1x2048xf32> to vector<1x128xf32>
      %80 = arith.addf %76, %79 : vector<1x128xf32>
      %81 = vector.extract_strided_slice %20 {offsets = [0, 1920], sizes = [1, 128], strides = [1, 1]} : vector<1x2048xf32> to vector<1x128xf32>
      %82 = arith.addf %78, %81 : vector<1x128xf32>
      %cst_15 = arith.constant 3.125000e-02 : f32
      %83 = vector.broadcast %cst_15 : f32 to vector<1x128xf32>
      %84 = arith.mulf %80, %83 : vector<1x128xf32>
      %cst_16 = arith.constant 3.125000e-02 : f32
      %85 = vector.broadcast %cst_16 : f32 to vector<1x128xf32>
      %86 = arith.mulf %82, %85 : vector<1x128xf32>
      %87 = arith.mulf %84, %84 : vector<1x128xf32>
      %88 = arith.subf %86, %87 : vector<1x128xf32>
      %cst_17 = arith.constant 9.99999974E-6 : f32
      %89 = vector.broadcast %cst_17 : f32 to vector<1x128xf32>
      %90 = arith.addf %88, %89 : vector<1x128xf32>
      %91 = math.rsqrt %90 : vector<1x128xf32>
      %c0_18 = arith.constant 0 : index
      %c0_19 = arith.constant 0 : index
      %92 = vector.load %arg4[%c0_18, %c0_19] : memref<1x128xf32, #tpu.memory_space<vmem>>, vector<1x128xf32>
      %93 = arith.mulf %92, %91 : vector<1x128xf32>
      %c0_20 = arith.constant 0 : index
      %c0_21 = arith.constant 0 : index
      %94 = vector.load %arg5[%c0_20, %c0_21] : memref<1x128xf32, #tpu.memory_space<vmem>>, vector<1x128xf32>
      %95 = arith.mulf %84, %93 : vector<1x128xf32>
      %96 = arith.subf %94, %95 : vector<1x128xf32>
      %97 = tpu.concatenate %93, %93, %93, %93, %93, %93, %93, %93, %93, %93, %93, %93, %93, %93, %93, %93 in 1 : vector<1x128xf32>, vector<1x128xf32>, vector<1x128xf32>, vector<1x128xf32>, vector<1x128xf32>, vector<1x128xf32>, vector<1x128xf32>, vector<1x128xf32>, vector<1x128xf32>, vector<1x128xf32>, vector<1x128xf32>, vector<1x128xf32>, vector<1x128xf32>, vector<1x128xf32>, vector<1x128xf32>, vector<1x128xf32> -> vector<1x2048xf32>
      %c0_22 = arith.constant 0 : index
      %c0_23 = arith.constant 0 : index
      %98 = vector.load %arg9[%c0_22, %c0_23] : memref<1x2048xf32, #tpu.memory_space<vmem>>, vector<1x2048xf32>
      tpu.vector_store %arg9[%c0_22, %c0_23], %97 {strides = array<i32>} : memref<1x2048xf32, #tpu.memory_space<vmem>>, vector<1x2048xf32>,
      %99 = tpu.concatenate %96, %96, %96, %96, %96, %96, %96, %96, %96, %96, %96, %96, %96, %96, %96, %96 in 1 : vector<1x128xf32>, vector<1x128xf32>, vector<1x128xf32>, vector<1x128xf32>, vector<1x128xf32>, vector<1x128xf32>, vector<1x128xf32>, vector<1x128xf32>, vector<1x128xf32>, vector<1x128xf32>, vector<1x128xf32>, vector<1x128xf32>, vector<1x128xf32>, vector<1x128xf32>, vector<1x128xf32>, vector<1x128xf32> -> vector<1x2048xf32>
      %c0_24 = arith.constant 0 : index
      %c0_25 = arith.constant 0 : index
      %100 = vector.load %arg10[%c0_24, %c0_25] : memref<1x2048xf32, #tpu.memory_space<vmem>>, vector<1x2048xf32>
      tpu.vector_store %arg10[%c0_24, %c0_25], %99 {strides = array<i32>} : memref<1x2048xf32, #tpu.memory_space<vmem>>, vector<1x2048xf32>,
    } else {
    }
    %c1_i32 = arith.constant 1 : i32
    %16 = arith.cmpi eq, %arg0, %c1_i32 : i32
    %17 = arith.extui %16 : i1 to i32
    %c0_i32_10 = arith.constant 0 : i32
    %18 = arith.cmpi ne, %17, %c0_i32_10 : i32
    scf.if %18 {
      %c0_11 = arith.constant 0 : index
      %c0_12 = arith.constant 0 : index
      %19 = vector.load %arg9[%c0_11, %c0_12] : memref<1x2048xf32, #tpu.memory_space<vmem>>, vector<1x2048xf32>
      %20 = vector.broadcast %19 : vector<1x2048xf32> to vector<2x2048xf32>
      %21 = arith.mulf %2, %20 : vector<2x2048xf32>
      %c0_13 = arith.constant 0 : index
      %c0_14 = arith.constant 0 : index
      %22 = vector.load %arg10[%c0_13, %c0_14] : memref<1x2048xf32, #tpu.memory_space<vmem>>, vector<1x2048xf32>
      %23 = vector.broadcast %22 : vector<1x2048xf32> to vector<2x2048xf32>
      %24 = arith.addf %21, %23 : vector<2x2048xf32>
      %cst_15 = arith.constant 0.000000e+00 : f32
      %25 = vector.broadcast %cst_15 : f32 to vector<2x2048xf32>
      %26 = arith.maximumf %24, %25 : vector<2x2048xf32>
      %c0_16 = arith.constant 0 : index
      %c0_17 = arith.constant 0 : index
      %27 = vector.load %arg6[%c0_16, %c0_17] : memref<2x2048xf32, #tpu.memory_space<vmem>>, vector<2x2048xf32>
      tpu.vector_store %arg6[%c0_16, %c0_17], %26 {strides = array<i32>} : memref<2x2048xf32, #tpu.memory_space<vmem>>, vector<2x2048xf32>,
    } else {
    }
    return
  }
  func.func @transform_0(%arg0: i32, %arg1: i32) -> (i32, i32) {
    %c0_i32 = arith.constant 0 : i32
    %c0_i32_0 = arith.constant 0 : i32
    return %arg1, %c0_i32 : i32, i32
  }
  func.func @transform_1(%arg0: i32, %arg1: i32) -> (i32, i32) {
    %c0_i32 = arith.constant 0 : i32
    %c0_i32_0 = arith.constant 0 : i32
    %c0_i32_1 = arith.constant 0 : i32
    return %c0_i32, %c0_i32_0 : i32, i32
  }
  func.func @transform_2(%arg0: i32, %arg1: i32) -> (i32, i32) {
    %c0_i32 = arith.constant 0 : i32
    %c0_i32_0 = arith.constant 0 : i32
    %c0_i32_1 = arith.constant 0 : i32
    return %c0_i32, %c0_i32_0 : i32, i32
  }
  func.func @transform_3(%arg0: i32, %arg1: i32) -> (i32, i32) {
    %c0_i32 = arith.constant 0 : i32
    %c0_i32_0 = arith.constant 0 : i32
    %c0_i32_1 = arith.constant 0 : i32
    return %c0_i32, %c0_i32_0 : i32, i32
  }
  func.func @transform_4(%arg0: i32, %arg1: i32) -> (i32, i32) {
    %0 = arith.muli %arg0, %arg1 : i32
    %c0_i32 = arith.constant 0 : i32
    %c0_i32_0 = arith.constant 0 : i32
    return %0, %c0_i32 : i32, i32
  }
}

module attributes {stable_mosaic.version = 11 : i64} {
  func.func @_bn_matmul_kernel(%arg0: i32, %arg1: i32, %arg2: memref<32x1152xbf16, #tpu.memory_space<vmem>>, %arg3: memref<1152x256xbf16, #tpu.memory_space<vmem>>, %arg4: memref<1x64xf32, #tpu.memory_space<vmem>>, %arg5: memref<1x64xf32, #tpu.memory_space<vmem>>, %arg6: memref<32x256xf32, #tpu.memory_space<vmem>>, %arg7: memref<1x256xf32, #tpu.memory_space<vmem>>, %arg8: memref<1x256xf32, #tpu.memory_space<vmem>>, %arg9: memref<1x256xf32, #tpu.memory_space<vmem>>, %arg10: memref<1x256xf32, #tpu.memory_space<vmem>>) attributes {dimension_semantics = [#tpu.dimension_semantics<arbitrary>, #tpu.dimension_semantics<arbitrary>], iteration_bounds = array<i64: 2, 1>, scalar_prefetch = 0 : i64, scratch_operands = 4 : i64, tpu.core_type = #tpu.core_type<tc>, window_params = [{transform_indices = @transform_0, window_bounds = array<i64: 32, 1152>}, {pipeline_mode = #tpu.pipeline_mode<synchronous>, transform_indices = @transform_1, window_bounds = array<i64: 1152, 256>}, {pipeline_mode = #tpu.pipeline_mode<synchronous>, transform_indices = @transform_2, window_bounds = array<i64: 1, 64>}, {pipeline_mode = #tpu.pipeline_mode<synchronous>, transform_indices = @transform_3, window_bounds = array<i64: 1, 64>}, {transform_indices = @transform_4, window_bounds = array<i64: 32, 256>}]} {
    %c0 = arith.constant 0 : index
    %c0_0 = arith.constant 0 : index
    %0 = vector.load %arg2[%c0, %c0_0] : memref<32x1152xbf16, #tpu.memory_space<vmem>>, vector<32x1152xbf16>
    %c0_1 = arith.constant 0 : index
    %c0_2 = arith.constant 0 : index
    %1 = vector.load %arg3[%c0_1, %c0_2] : memref<1152x256xbf16, #tpu.memory_space<vmem>>, vector<1152x256xbf16>
    %cst = arith.constant dense<0.000000e+00> : vector<32x256xf32>
    %2 = tpu.matmul %0, %1, %cst {dimension_numbers = #tpu.dot_dimension_numbers<[1], [0], [0], [1], [0, 0, 1, 1], [], []>} : vector<32x1152xbf16>, vector<1152x256xbf16>, vector<32x256xf32> -> vector<32x256xf32>
    %c0_i32 = arith.constant 0 : i32
    %3 = arith.cmpi eq, %arg0, %c0_i32 : i32
    %c0_i32_3 = arith.constant 0 : i32
    %4 = arith.cmpi eq, %arg1, %c0_i32_3 : i32
    %5 = arith.andi %3, %4 : i1
    %6 = arith.extui %5 : i1 to i32
    %c0_i32_4 = arith.constant 0 : i32
    %7 = arith.cmpi ne, %6, %c0_i32_4 : i32
    scf.if %7 {
      %cst_11 = arith.constant 0.000000e+00 : f32
      %19 = vector.broadcast %cst_11 : f32 to vector<1x256xf32>
      %c0_12 = arith.constant 0 : index
      %c0_13 = arith.constant 0 : index
      %20 = vector.load %arg7[%c0_12, %c0_13] : memref<1x256xf32, #tpu.memory_space<vmem>>, vector<1x256xf32>
      tpu.vector_store %arg7[%c0_12, %c0_13], %19 {strides = array<i32>} : memref<1x256xf32, #tpu.memory_space<vmem>>, vector<1x256xf32>,
      %cst_14 = arith.constant 0.000000e+00 : f32
      %21 = vector.broadcast %cst_14 : f32 to vector<1x256xf32>
      %c0_15 = arith.constant 0 : index
      %c0_16 = arith.constant 0 : index
      %22 = vector.load %arg8[%c0_15, %c0_16] : memref<1x256xf32, #tpu.memory_space<vmem>>, vector<1x256xf32>
      tpu.vector_store %arg8[%c0_15, %c0_16], %21 {strides = array<i32>} : memref<1x256xf32, #tpu.memory_space<vmem>>, vector<1x256xf32>,
    } else {
    }
    %c0_i32_5 = arith.constant 0 : i32
    %8 = arith.cmpi eq, %arg0, %c0_i32_5 : i32
    %9 = arith.extui %8 : i1 to i32
    %c0_i32_6 = arith.constant 0 : i32
    %10 = arith.cmpi ne, %9, %c0_i32_6 : i32
    scf.if %10 {
      %c0_11 = arith.constant 0 : index
      %c0_12 = arith.constant 0 : index
      %19 = vector.load %arg7[%c0_11, %c0_12] : memref<1x256xf32, #tpu.memory_space<vmem>>, vector<1x256xf32>
      %cst_13 = arith.constant dense<0.000000e+00> : vector<256xf32>
      %20 = vector.multi_reduction <add>, %2, %cst_13 [0] : vector<32x256xf32> to vector<256xf32>
      %21 = vector.shape_cast %20 : vector<256xf32> to vector<1x256xf32>
      %22 = arith.addf %19, %21 : vector<1x256xf32>
      %c0_14 = arith.constant 0 : index
      %c0_15 = arith.constant 0 : index
      %23 = vector.load %arg7[%c0_14, %c0_15] : memref<1x256xf32, #tpu.memory_space<vmem>>, vector<1x256xf32>
      tpu.vector_store %arg7[%c0_14, %c0_15], %22 {strides = array<i32>} : memref<1x256xf32, #tpu.memory_space<vmem>>, vector<1x256xf32>,
      %c0_16 = arith.constant 0 : index
      %c0_17 = arith.constant 0 : index
      %24 = vector.load %arg8[%c0_16, %c0_17] : memref<1x256xf32, #tpu.memory_space<vmem>>, vector<1x256xf32>
      %25 = arith.mulf %2, %2 : vector<32x256xf32>
      %cst_18 = arith.constant dense<0.000000e+00> : vector<256xf32>
      %26 = vector.multi_reduction <add>, %25, %cst_18 [0] : vector<32x256xf32> to vector<256xf32>
      %27 = vector.shape_cast %26 : vector<256xf32> to vector<1x256xf32>
      %28 = arith.addf %24, %27 : vector<1x256xf32>
      %c0_19 = arith.constant 0 : index
      %c0_20 = arith.constant 0 : index
      %29 = vector.load %arg8[%c0_19, %c0_20] : memref<1x256xf32, #tpu.memory_space<vmem>>, vector<1x256xf32>
      tpu.vector_store %arg8[%c0_19, %c0_20], %28 {strides = array<i32>} : memref<1x256xf32, #tpu.memory_space<vmem>>, vector<1x256xf32>,
    } else {
    }
    %c0_i32_7 = arith.constant 0 : i32
    %11 = arith.cmpi eq, %arg0, %c0_i32_7 : i32
    %c0_i32_8 = arith.constant 0 : i32
    %12 = arith.cmpi eq, %arg1, %c0_i32_8 : i32
    %13 = arith.andi %11, %12 : i1
    %14 = arith.extui %13 : i1 to i32
    %c0_i32_9 = arith.constant 0 : i32
    %15 = arith.cmpi ne, %14, %c0_i32_9 : i32
    scf.if %15 {
      %c0_11 = arith.constant 0 : index
      %c0_12 = arith.constant 0 : index
      %19 = vector.load %arg7[%c0_11, %c0_12] : memref<1x256xf32, #tpu.memory_space<vmem>>, vector<1x256xf32>
      %c0_13 = arith.constant 0 : index
      %c0_14 = arith.constant 0 : index
      %20 = vector.load %arg8[%c0_13, %c0_14] : memref<1x256xf32, #tpu.memory_space<vmem>>, vector<1x256xf32>
      %21 = vector.extract_strided_slice %19 {offsets = [0, 0], sizes = [1, 64], strides = [1, 1]} : vector<1x256xf32> to vector<1x64xf32>
      %22 = vector.extract_strided_slice %20 {offsets = [0, 0], sizes = [1, 64], strides = [1, 1]} : vector<1x256xf32> to vector<1x64xf32>
      %23 = vector.extract_strided_slice %19 {offsets = [0, 64], sizes = [1, 64], strides = [1, 1]} : vector<1x256xf32> to vector<1x64xf32>
      %24 = arith.addf %21, %23 : vector<1x64xf32>
      %25 = vector.extract_strided_slice %20 {offsets = [0, 64], sizes = [1, 64], strides = [1, 1]} : vector<1x256xf32> to vector<1x64xf32>
      %26 = arith.addf %22, %25 : vector<1x64xf32>
      %27 = vector.extract_strided_slice %19 {offsets = [0, 128], sizes = [1, 64], strides = [1, 1]} : vector<1x256xf32> to vector<1x64xf32>
      %28 = arith.addf %24, %27 : vector<1x64xf32>
      %29 = vector.extract_strided_slice %20 {offsets = [0, 128], sizes = [1, 64], strides = [1, 1]} : vector<1x256xf32> to vector<1x64xf32>
      %30 = arith.addf %26, %29 : vector<1x64xf32>
      %31 = vector.extract_strided_slice %19 {offsets = [0, 192], sizes = [1, 64], strides = [1, 1]} : vector<1x256xf32> to vector<1x64xf32>
      %32 = arith.addf %28, %31 : vector<1x64xf32>
      %33 = vector.extract_strided_slice %20 {offsets = [0, 192], sizes = [1, 64], strides = [1, 1]} : vector<1x256xf32> to vector<1x64xf32>
      %34 = arith.addf %30, %33 : vector<1x64xf32>
      %cst_15 = arith.constant 7.812500e-03 : f32
      %35 = vector.broadcast %cst_15 : f32 to vector<1x64xf32>
      %36 = arith.mulf %32, %35 : vector<1x64xf32>
      %cst_16 = arith.constant 7.812500e-03 : f32
      %37 = vector.broadcast %cst_16 : f32 to vector<1x64xf32>
      %38 = arith.mulf %34, %37 : vector<1x64xf32>
      %39 = arith.mulf %36, %36 : vector<1x64xf32>
      %40 = arith.subf %38, %39 : vector<1x64xf32>
      %cst_17 = arith.constant 9.99999974E-6 : f32
      %41 = vector.broadcast %cst_17 : f32 to vector<1x64xf32>
      %42 = arith.addf %40, %41 : vector<1x64xf32>
      %43 = math.rsqrt %42 : vector<1x64xf32>
      %c0_18 = arith.constant 0 : index
      %c0_19 = arith.constant 0 : index
      %44 = vector.load %arg4[%c0_18, %c0_19] : memref<1x64xf32, #tpu.memory_space<vmem>>, vector<1x64xf32>
      %45 = arith.mulf %44, %43 : vector<1x64xf32>
      %c0_20 = arith.constant 0 : index
      %c0_21 = arith.constant 0 : index
      %46 = vector.load %arg5[%c0_20, %c0_21] : memref<1x64xf32, #tpu.memory_space<vmem>>, vector<1x64xf32>
      %47 = arith.mulf %36, %45 : vector<1x64xf32>
      %48 = arith.subf %46, %47 : vector<1x64xf32>
      %49 = tpu.concatenate %45, %45, %45, %45 in 1 : vector<1x64xf32>, vector<1x64xf32>, vector<1x64xf32>, vector<1x64xf32> -> vector<1x256xf32>
      %c0_22 = arith.constant 0 : index
      %c0_23 = arith.constant 0 : index
      %50 = vector.load %arg9[%c0_22, %c0_23] : memref<1x256xf32, #tpu.memory_space<vmem>>, vector<1x256xf32>
      tpu.vector_store %arg9[%c0_22, %c0_23], %49 {strides = array<i32>} : memref<1x256xf32, #tpu.memory_space<vmem>>, vector<1x256xf32>,
      %51 = tpu.concatenate %48, %48, %48, %48 in 1 : vector<1x64xf32>, vector<1x64xf32>, vector<1x64xf32>, vector<1x64xf32> -> vector<1x256xf32>
      %c0_24 = arith.constant 0 : index
      %c0_25 = arith.constant 0 : index
      %52 = vector.load %arg10[%c0_24, %c0_25] : memref<1x256xf32, #tpu.memory_space<vmem>>, vector<1x256xf32>
      tpu.vector_store %arg10[%c0_24, %c0_25], %51 {strides = array<i32>} : memref<1x256xf32, #tpu.memory_space<vmem>>, vector<1x256xf32>,
    } else {
    }
    %c1_i32 = arith.constant 1 : i32
    %16 = arith.cmpi eq, %arg0, %c1_i32 : i32
    %17 = arith.extui %16 : i1 to i32
    %c0_i32_10 = arith.constant 0 : i32
    %18 = arith.cmpi ne, %17, %c0_i32_10 : i32
    scf.if %18 {
      %c0_11 = arith.constant 0 : index
      %c0_12 = arith.constant 0 : index
      %19 = vector.load %arg9[%c0_11, %c0_12] : memref<1x256xf32, #tpu.memory_space<vmem>>, vector<1x256xf32>
      %20 = vector.broadcast %19 : vector<1x256xf32> to vector<32x256xf32>
      %21 = arith.mulf %2, %20 : vector<32x256xf32>
      %c0_13 = arith.constant 0 : index
      %c0_14 = arith.constant 0 : index
      %22 = vector.load %arg10[%c0_13, %c0_14] : memref<1x256xf32, #tpu.memory_space<vmem>>, vector<1x256xf32>
      %23 = vector.broadcast %22 : vector<1x256xf32> to vector<32x256xf32>
      %24 = arith.addf %21, %23 : vector<32x256xf32>
      %cst_15 = arith.constant 0.000000e+00 : f32
      %25 = vector.broadcast %cst_15 : f32 to vector<32x256xf32>
      %26 = arith.maximumf %24, %25 : vector<32x256xf32>
      %c0_16 = arith.constant 0 : index
      %c0_17 = arith.constant 0 : index
      %27 = vector.load %arg6[%c0_16, %c0_17] : memref<32x256xf32, #tpu.memory_space<vmem>>, vector<32x256xf32>
      tpu.vector_store %arg6[%c0_16, %c0_17], %26 {strides = array<i32>} : memref<32x256xf32, #tpu.memory_space<vmem>>, vector<32x256xf32>,
    } else {
    }
    return
  }
  func.func @transform_0(%arg0: i32, %arg1: i32) -> (i32, i32) {
    %c0_i32 = arith.constant 0 : i32
    %c0_i32_0 = arith.constant 0 : i32
    return %arg1, %c0_i32 : i32, i32
  }
  func.func @transform_1(%arg0: i32, %arg1: i32) -> (i32, i32) {
    %c0_i32 = arith.constant 0 : i32
    %c0_i32_0 = arith.constant 0 : i32
    %c0_i32_1 = arith.constant 0 : i32
    return %c0_i32, %c0_i32_0 : i32, i32
  }
  func.func @transform_2(%arg0: i32, %arg1: i32) -> (i32, i32) {
    %c0_i32 = arith.constant 0 : i32
    %c0_i32_0 = arith.constant 0 : i32
    %c0_i32_1 = arith.constant 0 : i32
    return %c0_i32, %c0_i32_0 : i32, i32
  }
  func.func @transform_3(%arg0: i32, %arg1: i32) -> (i32, i32) {
    %c0_i32 = arith.constant 0 : i32
    %c0_i32_0 = arith.constant 0 : i32
    %c0_i32_1 = arith.constant 0 : i32
    return %c0_i32, %c0_i32_0 : i32, i32
  }
  func.func @transform_4(%arg0: i32, %arg1: i32) -> (i32, i32) {
    %0 = arith.muli %arg0, %arg1 : i32
    %c0_i32 = arith.constant 0 : i32
    %c0_i32_0 = arith.constant 0 : i32
    return %0, %c0_i32 : i32, i32
  }
}

module attributes {stable_mosaic.version = 11 : i64} {
  func.func @_bn_matmul_kernel(%arg0: i32, %arg1: i32, %arg2: memref<128x576xbf16, #tpu.memory_space<vmem>>, %arg3: memref<576x128xbf16, #tpu.memory_space<vmem>>, %arg4: memref<1x32xf32, #tpu.memory_space<vmem>>, %arg5: memref<1x32xf32, #tpu.memory_space<vmem>>, %arg6: memref<128x128xf32, #tpu.memory_space<vmem>>, %arg7: memref<1x128xf32, #tpu.memory_space<vmem>>, %arg8: memref<1x128xf32, #tpu.memory_space<vmem>>, %arg9: memref<1x128xf32, #tpu.memory_space<vmem>>, %arg10: memref<1x128xf32, #tpu.memory_space<vmem>>) attributes {dimension_semantics = [#tpu.dimension_semantics<arbitrary>, #tpu.dimension_semantics<arbitrary>], iteration_bounds = array<i64: 2, 1>, scalar_prefetch = 0 : i64, scratch_operands = 4 : i64, tpu.core_type = #tpu.core_type<tc>, window_params = [{transform_indices = @transform_0, window_bounds = array<i64: 128, 576>}, {pipeline_mode = #tpu.pipeline_mode<synchronous>, transform_indices = @transform_1, window_bounds = array<i64: 576, 128>}, {pipeline_mode = #tpu.pipeline_mode<synchronous>, transform_indices = @transform_2, window_bounds = array<i64: 1, 32>}, {pipeline_mode = #tpu.pipeline_mode<synchronous>, transform_indices = @transform_3, window_bounds = array<i64: 1, 32>}, {transform_indices = @transform_4, window_bounds = array<i64: 128, 128>}]} {
    %c0 = arith.constant 0 : index
    %c0_0 = arith.constant 0 : index
    %0 = vector.load %arg2[%c0, %c0_0] : memref<128x576xbf16, #tpu.memory_space<vmem>>, vector<128x576xbf16>
    %c0_1 = arith.constant 0 : index
    %c0_2 = arith.constant 0 : index
    %1 = vector.load %arg3[%c0_1, %c0_2] : memref<576x128xbf16, #tpu.memory_space<vmem>>, vector<576x128xbf16>
    %cst = arith.constant dense<0.000000e+00> : vector<128x128xf32>
    %2 = tpu.matmul %0, %1, %cst {dimension_numbers = #tpu.dot_dimension_numbers<[1], [0], [0], [1], [0, 0, 1, 1], [], []>} : vector<128x576xbf16>, vector<576x128xbf16>, vector<128x128xf32> -> vector<128x128xf32>
    %c0_i32 = arith.constant 0 : i32
    %3 = arith.cmpi eq, %arg0, %c0_i32 : i32
    %c0_i32_3 = arith.constant 0 : i32
    %4 = arith.cmpi eq, %arg1, %c0_i32_3 : i32
    %5 = arith.andi %3, %4 : i1
    %6 = arith.extui %5 : i1 to i32
    %c0_i32_4 = arith.constant 0 : i32
    %7 = arith.cmpi ne, %6, %c0_i32_4 : i32
    scf.if %7 {
      %cst_11 = arith.constant 0.000000e+00 : f32
      %19 = vector.broadcast %cst_11 : f32 to vector<1x128xf32>
      %c0_12 = arith.constant 0 : index
      %c0_13 = arith.constant 0 : index
      %20 = vector.load %arg7[%c0_12, %c0_13] : memref<1x128xf32, #tpu.memory_space<vmem>>, vector<1x128xf32>
      tpu.vector_store %arg7[%c0_12, %c0_13], %19 {strides = array<i32>} : memref<1x128xf32, #tpu.memory_space<vmem>>, vector<1x128xf32>,
      %cst_14 = arith.constant 0.000000e+00 : f32
      %21 = vector.broadcast %cst_14 : f32 to vector<1x128xf32>
      %c0_15 = arith.constant 0 : index
      %c0_16 = arith.constant 0 : index
      %22 = vector.load %arg8[%c0_15, %c0_16] : memref<1x128xf32, #tpu.memory_space<vmem>>, vector<1x128xf32>
      tpu.vector_store %arg8[%c0_15, %c0_16], %21 {strides = array<i32>} : memref<1x128xf32, #tpu.memory_space<vmem>>, vector<1x128xf32>,
    } else {
    }
    %c0_i32_5 = arith.constant 0 : i32
    %8 = arith.cmpi eq, %arg0, %c0_i32_5 : i32
    %9 = arith.extui %8 : i1 to i32
    %c0_i32_6 = arith.constant 0 : i32
    %10 = arith.cmpi ne, %9, %c0_i32_6 : i32
    scf.if %10 {
      %c0_11 = arith.constant 0 : index
      %c0_12 = arith.constant 0 : index
      %19 = vector.load %arg7[%c0_11, %c0_12] : memref<1x128xf32, #tpu.memory_space<vmem>>, vector<1x128xf32>
      %cst_13 = arith.constant dense<0.000000e+00> : vector<128xf32>
      %20 = vector.multi_reduction <add>, %2, %cst_13 [0] : vector<128x128xf32> to vector<128xf32>
      %21 = vector.shape_cast %20 : vector<128xf32> to vector<1x128xf32>
      %22 = arith.addf %19, %21 : vector<1x128xf32>
      %c0_14 = arith.constant 0 : index
      %c0_15 = arith.constant 0 : index
      %23 = vector.load %arg7[%c0_14, %c0_15] : memref<1x128xf32, #tpu.memory_space<vmem>>, vector<1x128xf32>
      tpu.vector_store %arg7[%c0_14, %c0_15], %22 {strides = array<i32>} : memref<1x128xf32, #tpu.memory_space<vmem>>, vector<1x128xf32>,
      %c0_16 = arith.constant 0 : index
      %c0_17 = arith.constant 0 : index
      %24 = vector.load %arg8[%c0_16, %c0_17] : memref<1x128xf32, #tpu.memory_space<vmem>>, vector<1x128xf32>
      %25 = arith.mulf %2, %2 : vector<128x128xf32>
      %cst_18 = arith.constant dense<0.000000e+00> : vector<128xf32>
      %26 = vector.multi_reduction <add>, %25, %cst_18 [0] : vector<128x128xf32> to vector<128xf32>
      %27 = vector.shape_cast %26 : vector<128xf32> to vector<1x128xf32>
      %28 = arith.addf %24, %27 : vector<1x128xf32>
      %c0_19 = arith.constant 0 : index
      %c0_20 = arith.constant 0 : index
      %29 = vector.load %arg8[%c0_19, %c0_20] : memref<1x128xf32, #tpu.memory_space<vmem>>, vector<1x128xf32>
      tpu.vector_store %arg8[%c0_19, %c0_20], %28 {strides = array<i32>} : memref<1x128xf32, #tpu.memory_space<vmem>>, vector<1x128xf32>,
    } else {
    }
    %c0_i32_7 = arith.constant 0 : i32
    %11 = arith.cmpi eq, %arg0, %c0_i32_7 : i32
    %c0_i32_8 = arith.constant 0 : i32
    %12 = arith.cmpi eq, %arg1, %c0_i32_8 : i32
    %13 = arith.andi %11, %12 : i1
    %14 = arith.extui %13 : i1 to i32
    %c0_i32_9 = arith.constant 0 : i32
    %15 = arith.cmpi ne, %14, %c0_i32_9 : i32
    scf.if %15 {
      %c0_11 = arith.constant 0 : index
      %c0_12 = arith.constant 0 : index
      %19 = vector.load %arg7[%c0_11, %c0_12] : memref<1x128xf32, #tpu.memory_space<vmem>>, vector<1x128xf32>
      %c0_13 = arith.constant 0 : index
      %c0_14 = arith.constant 0 : index
      %20 = vector.load %arg8[%c0_13, %c0_14] : memref<1x128xf32, #tpu.memory_space<vmem>>, vector<1x128xf32>
      %21 = vector.extract_strided_slice %19 {offsets = [0, 0], sizes = [1, 32], strides = [1, 1]} : vector<1x128xf32> to vector<1x32xf32>
      %22 = vector.extract_strided_slice %20 {offsets = [0, 0], sizes = [1, 32], strides = [1, 1]} : vector<1x128xf32> to vector<1x32xf32>
      %23 = vector.extract_strided_slice %19 {offsets = [0, 32], sizes = [1, 32], strides = [1, 1]} : vector<1x128xf32> to vector<1x32xf32>
      %24 = arith.addf %21, %23 : vector<1x32xf32>
      %25 = vector.extract_strided_slice %20 {offsets = [0, 32], sizes = [1, 32], strides = [1, 1]} : vector<1x128xf32> to vector<1x32xf32>
      %26 = arith.addf %22, %25 : vector<1x32xf32>
      %27 = vector.extract_strided_slice %19 {offsets = [0, 64], sizes = [1, 32], strides = [1, 1]} : vector<1x128xf32> to vector<1x32xf32>
      %28 = arith.addf %24, %27 : vector<1x32xf32>
      %29 = vector.extract_strided_slice %20 {offsets = [0, 64], sizes = [1, 32], strides = [1, 1]} : vector<1x128xf32> to vector<1x32xf32>
      %30 = arith.addf %26, %29 : vector<1x32xf32>
      %31 = vector.extract_strided_slice %19 {offsets = [0, 96], sizes = [1, 32], strides = [1, 1]} : vector<1x128xf32> to vector<1x32xf32>
      %32 = arith.addf %28, %31 : vector<1x32xf32>
      %33 = vector.extract_strided_slice %20 {offsets = [0, 96], sizes = [1, 32], strides = [1, 1]} : vector<1x128xf32> to vector<1x32xf32>
      %34 = arith.addf %30, %33 : vector<1x32xf32>
      %cst_15 = arith.constant 0.001953125 : f32
      %35 = vector.broadcast %cst_15 : f32 to vector<1x32xf32>
      %36 = arith.mulf %32, %35 : vector<1x32xf32>
      %cst_16 = arith.constant 0.001953125 : f32
      %37 = vector.broadcast %cst_16 : f32 to vector<1x32xf32>
      %38 = arith.mulf %34, %37 : vector<1x32xf32>
      %39 = arith.mulf %36, %36 : vector<1x32xf32>
      %40 = arith.subf %38, %39 : vector<1x32xf32>
      %cst_17 = arith.constant 9.99999974E-6 : f32
      %41 = vector.broadcast %cst_17 : f32 to vector<1x32xf32>
      %42 = arith.addf %40, %41 : vector<1x32xf32>
      %43 = math.rsqrt %42 : vector<1x32xf32>
      %c0_18 = arith.constant 0 : index
      %c0_19 = arith.constant 0 : index
      %44 = vector.load %arg4[%c0_18, %c0_19] : memref<1x32xf32, #tpu.memory_space<vmem>>, vector<1x32xf32>
      %45 = arith.mulf %44, %43 : vector<1x32xf32>
      %c0_20 = arith.constant 0 : index
      %c0_21 = arith.constant 0 : index
      %46 = vector.load %arg5[%c0_20, %c0_21] : memref<1x32xf32, #tpu.memory_space<vmem>>, vector<1x32xf32>
      %47 = arith.mulf %36, %45 : vector<1x32xf32>
      %48 = arith.subf %46, %47 : vector<1x32xf32>
      %49 = tpu.concatenate %45, %45, %45, %45 in 1 : vector<1x32xf32>, vector<1x32xf32>, vector<1x32xf32>, vector<1x32xf32> -> vector<1x128xf32>
      %c0_22 = arith.constant 0 : index
      %c0_23 = arith.constant 0 : index
      %50 = vector.load %arg9[%c0_22, %c0_23] : memref<1x128xf32, #tpu.memory_space<vmem>>, vector<1x128xf32>
      tpu.vector_store %arg9[%c0_22, %c0_23], %49 {strides = array<i32>} : memref<1x128xf32, #tpu.memory_space<vmem>>, vector<1x128xf32>,
      %51 = tpu.concatenate %48, %48, %48, %48 in 1 : vector<1x32xf32>, vector<1x32xf32>, vector<1x32xf32>, vector<1x32xf32> -> vector<1x128xf32>
      %c0_24 = arith.constant 0 : index
      %c0_25 = arith.constant 0 : index
      %52 = vector.load %arg10[%c0_24, %c0_25] : memref<1x128xf32, #tpu.memory_space<vmem>>, vector<1x128xf32>
      tpu.vector_store %arg10[%c0_24, %c0_25], %51 {strides = array<i32>} : memref<1x128xf32, #tpu.memory_space<vmem>>, vector<1x128xf32>,
    } else {
    }
    %c1_i32 = arith.constant 1 : i32
    %16 = arith.cmpi eq, %arg0, %c1_i32 : i32
    %17 = arith.extui %16 : i1 to i32
    %c0_i32_10 = arith.constant 0 : i32
    %18 = arith.cmpi ne, %17, %c0_i32_10 : i32
    scf.if %18 {
      %c0_11 = arith.constant 0 : index
      %c0_12 = arith.constant 0 : index
      %19 = vector.load %arg9[%c0_11, %c0_12] : memref<1x128xf32, #tpu.memory_space<vmem>>, vector<1x128xf32>
      %20 = vector.broadcast %19 : vector<1x128xf32> to vector<128x128xf32>
      %21 = arith.mulf %2, %20 : vector<128x128xf32>
      %c0_13 = arith.constant 0 : index
      %c0_14 = arith.constant 0 : index
      %22 = vector.load %arg10[%c0_13, %c0_14] : memref<1x128xf32, #tpu.memory_space<vmem>>, vector<1x128xf32>
      %23 = vector.broadcast %22 : vector<1x128xf32> to vector<128x128xf32>
      %24 = arith.addf %21, %23 : vector<128x128xf32>
      %cst_15 = arith.constant 0.000000e+00 : f32
      %25 = vector.broadcast %cst_15 : f32 to vector<128x128xf32>
      %26 = arith.maximumf %24, %25 : vector<128x128xf32>
      %c0_16 = arith.constant 0 : index
      %c0_17 = arith.constant 0 : index
      %27 = vector.load %arg6[%c0_16, %c0_17] : memref<128x128xf32, #tpu.memory_space<vmem>>, vector<128x128xf32>
      tpu.vector_store %arg6[%c0_16, %c0_17], %26 {strides = array<i32>} : memref<128x128xf32, #tpu.memory_space<vmem>>, vector<128x128xf32>,
    } else {
    }
    return
  }
  func.func @transform_0(%arg0: i32, %arg1: i32) -> (i32, i32) {
    %c0_i32 = arith.constant 0 : i32
    %c0_i32_0 = arith.constant 0 : i32
    return %arg1, %c0_i32 : i32, i32
  }
  func.func @transform_1(%arg0: i32, %arg1: i32) -> (i32, i32) {
    %c0_i32 = arith.constant 0 : i32
    %c0_i32_0 = arith.constant 0 : i32
    %c0_i32_1 = arith.constant 0 : i32
    return %c0_i32, %c0_i32_0 : i32, i32
  }
  func.func @transform_2(%arg0: i32, %arg1: i32) -> (i32, i32) {
    %c0_i32 = arith.constant 0 : i32
    %c0_i32_0 = arith.constant 0 : i32
    %c0_i32_1 = arith.constant 0 : i32
    return %c0_i32, %c0_i32_0 : i32, i32
  }
  func.func @transform_3(%arg0: i32, %arg1: i32) -> (i32, i32) {
    %c0_i32 = arith.constant 0 : i32
    %c0_i32_0 = arith.constant 0 : i32
    %c0_i32_1 = arith.constant 0 : i32
    return %c0_i32, %c0_i32_0 : i32, i32
  }
  func.func @transform_4(%arg0: i32, %arg1: i32) -> (i32, i32) {
    %0 = arith.muli %arg0, %arg1 : i32
    %c0_i32 = arith.constant 0 : i32
    %c0_i32_0 = arith.constant 0 : i32
    return %0, %c0_i32 : i32, i32
  }
}

module attributes {stable_mosaic.version = 11 : i64} {
  func.func @_bn_matmul_kernel(%arg0: i32, %arg1: i32, %arg2: memref<512x288xbf16, #tpu.memory_space<vmem>>, %arg3: memref<288x64xbf16, #tpu.memory_space<vmem>>, %arg4: memref<1x16xf32, #tpu.memory_space<vmem>>, %arg5: memref<1x16xf32, #tpu.memory_space<vmem>>, %arg6: memref<512x64xf32, #tpu.memory_space<vmem>>, %arg7: memref<1x64xf32, #tpu.memory_space<vmem>>, %arg8: memref<1x64xf32, #tpu.memory_space<vmem>>, %arg9: memref<1x64xf32, #tpu.memory_space<vmem>>, %arg10: memref<1x64xf32, #tpu.memory_space<vmem>>) attributes {dimension_semantics = [#tpu.dimension_semantics<arbitrary>, #tpu.dimension_semantics<arbitrary>], iteration_bounds = array<i64: 2, 1>, scalar_prefetch = 0 : i64, scratch_operands = 4 : i64, tpu.core_type = #tpu.core_type<tc>, window_params = [{transform_indices = @transform_0, window_bounds = array<i64: 512, 288>}, {pipeline_mode = #tpu.pipeline_mode<synchronous>, transform_indices = @transform_1, window_bounds = array<i64: 288, 64>}, {pipeline_mode = #tpu.pipeline_mode<synchronous>, transform_indices = @transform_2, window_bounds = array<i64: 1, 16>}, {pipeline_mode = #tpu.pipeline_mode<synchronous>, transform_indices = @transform_3, window_bounds = array<i64: 1, 16>}, {transform_indices = @transform_4, window_bounds = array<i64: 512, 64>}]} {
    %c0 = arith.constant 0 : index
    %c0_0 = arith.constant 0 : index
    %0 = vector.load %arg2[%c0, %c0_0] : memref<512x288xbf16, #tpu.memory_space<vmem>>, vector<512x288xbf16>
    %c0_1 = arith.constant 0 : index
    %c0_2 = arith.constant 0 : index
    %1 = vector.load %arg3[%c0_1, %c0_2] : memref<288x64xbf16, #tpu.memory_space<vmem>>, vector<288x64xbf16>
    %cst = arith.constant dense<0.000000e+00> : vector<512x64xf32>
    %2 = tpu.matmul %0, %1, %cst {dimension_numbers = #tpu.dot_dimension_numbers<[1], [0], [0], [1], [0, 0, 1, 1], [], []>} : vector<512x288xbf16>, vector<288x64xbf16>, vector<512x64xf32> -> vector<512x64xf32>
    %c0_i32 = arith.constant 0 : i32
    %3 = arith.cmpi eq, %arg0, %c0_i32 : i32
    %c0_i32_3 = arith.constant 0 : i32
    %4 = arith.cmpi eq, %arg1, %c0_i32_3 : i32
    %5 = arith.andi %3, %4 : i1
    %6 = arith.extui %5 : i1 to i32
    %c0_i32_4 = arith.constant 0 : i32
    %7 = arith.cmpi ne, %6, %c0_i32_4 : i32
    scf.if %7 {
      %cst_11 = arith.constant 0.000000e+00 : f32
      %19 = vector.broadcast %cst_11 : f32 to vector<1x64xf32>
      %c0_12 = arith.constant 0 : index
      %c0_13 = arith.constant 0 : index
      %20 = vector.load %arg7[%c0_12, %c0_13] : memref<1x64xf32, #tpu.memory_space<vmem>>, vector<1x64xf32>
      tpu.vector_store %arg7[%c0_12, %c0_13], %19 {strides = array<i32>} : memref<1x64xf32, #tpu.memory_space<vmem>>, vector<1x64xf32>,
      %cst_14 = arith.constant 0.000000e+00 : f32
      %21 = vector.broadcast %cst_14 : f32 to vector<1x64xf32>
      %c0_15 = arith.constant 0 : index
      %c0_16 = arith.constant 0 : index
      %22 = vector.load %arg8[%c0_15, %c0_16] : memref<1x64xf32, #tpu.memory_space<vmem>>, vector<1x64xf32>
      tpu.vector_store %arg8[%c0_15, %c0_16], %21 {strides = array<i32>} : memref<1x64xf32, #tpu.memory_space<vmem>>, vector<1x64xf32>,
    } else {
    }
    %c0_i32_5 = arith.constant 0 : i32
    %8 = arith.cmpi eq, %arg0, %c0_i32_5 : i32
    %9 = arith.extui %8 : i1 to i32
    %c0_i32_6 = arith.constant 0 : i32
    %10 = arith.cmpi ne, %9, %c0_i32_6 : i32
    scf.if %10 {
      %c0_11 = arith.constant 0 : index
      %c0_12 = arith.constant 0 : index
      %19 = vector.load %arg7[%c0_11, %c0_12] : memref<1x64xf32, #tpu.memory_space<vmem>>, vector<1x64xf32>
      %cst_13 = arith.constant dense<0.000000e+00> : vector<64xf32>
      %20 = vector.multi_reduction <add>, %2, %cst_13 [0] : vector<512x64xf32> to vector<64xf32>
      %21 = vector.shape_cast %20 : vector<64xf32> to vector<1x64xf32>
      %22 = arith.addf %19, %21 : vector<1x64xf32>
      %c0_14 = arith.constant 0 : index
      %c0_15 = arith.constant 0 : index
      %23 = vector.load %arg7[%c0_14, %c0_15] : memref<1x64xf32, #tpu.memory_space<vmem>>, vector<1x64xf32>
      tpu.vector_store %arg7[%c0_14, %c0_15], %22 {strides = array<i32>} : memref<1x64xf32, #tpu.memory_space<vmem>>, vector<1x64xf32>,
      %c0_16 = arith.constant 0 : index
      %c0_17 = arith.constant 0 : index
      %24 = vector.load %arg8[%c0_16, %c0_17] : memref<1x64xf32, #tpu.memory_space<vmem>>, vector<1x64xf32>
      %25 = arith.mulf %2, %2 : vector<512x64xf32>
      %cst_18 = arith.constant dense<0.000000e+00> : vector<64xf32>
      %26 = vector.multi_reduction <add>, %25, %cst_18 [0] : vector<512x64xf32> to vector<64xf32>
      %27 = vector.shape_cast %26 : vector<64xf32> to vector<1x64xf32>
      %28 = arith.addf %24, %27 : vector<1x64xf32>
      %c0_19 = arith.constant 0 : index
      %c0_20 = arith.constant 0 : index
      %29 = vector.load %arg8[%c0_19, %c0_20] : memref<1x64xf32, #tpu.memory_space<vmem>>, vector<1x64xf32>
      tpu.vector_store %arg8[%c0_19, %c0_20], %28 {strides = array<i32>} : memref<1x64xf32, #tpu.memory_space<vmem>>, vector<1x64xf32>,
    } else {
    }
    %c0_i32_7 = arith.constant 0 : i32
    %11 = arith.cmpi eq, %arg0, %c0_i32_7 : i32
    %c0_i32_8 = arith.constant 0 : i32
    %12 = arith.cmpi eq, %arg1, %c0_i32_8 : i32
    %13 = arith.andi %11, %12 : i1
    %14 = arith.extui %13 : i1 to i32
    %c0_i32_9 = arith.constant 0 : i32
    %15 = arith.cmpi ne, %14, %c0_i32_9 : i32
    scf.if %15 {
      %c0_11 = arith.constant 0 : index
      %c0_12 = arith.constant 0 : index
      %19 = vector.load %arg7[%c0_11, %c0_12] : memref<1x64xf32, #tpu.memory_space<vmem>>, vector<1x64xf32>
      %c0_13 = arith.constant 0 : index
      %c0_14 = arith.constant 0 : index
      %20 = vector.load %arg8[%c0_13, %c0_14] : memref<1x64xf32, #tpu.memory_space<vmem>>, vector<1x64xf32>
      %21 = vector.extract_strided_slice %19 {offsets = [0, 0], sizes = [1, 16], strides = [1, 1]} : vector<1x64xf32> to vector<1x16xf32>
      %22 = vector.extract_strided_slice %20 {offsets = [0, 0], sizes = [1, 16], strides = [1, 1]} : vector<1x64xf32> to vector<1x16xf32>
      %23 = vector.extract_strided_slice %19 {offsets = [0, 16], sizes = [1, 16], strides = [1, 1]} : vector<1x64xf32> to vector<1x16xf32>
      %24 = arith.addf %21, %23 : vector<1x16xf32>
      %25 = vector.extract_strided_slice %20 {offsets = [0, 16], sizes = [1, 16], strides = [1, 1]} : vector<1x64xf32> to vector<1x16xf32>
      %26 = arith.addf %22, %25 : vector<1x16xf32>
      %27 = vector.extract_strided_slice %19 {offsets = [0, 32], sizes = [1, 16], strides = [1, 1]} : vector<1x64xf32> to vector<1x16xf32>
      %28 = arith.addf %24, %27 : vector<1x16xf32>
      %29 = vector.extract_strided_slice %20 {offsets = [0, 32], sizes = [1, 16], strides = [1, 1]} : vector<1x64xf32> to vector<1x16xf32>
      %30 = arith.addf %26, %29 : vector<1x16xf32>
      %31 = vector.extract_strided_slice %19 {offsets = [0, 48], sizes = [1, 16], strides = [1, 1]} : vector<1x64xf32> to vector<1x16xf32>
      %32 = arith.addf %28, %31 : vector<1x16xf32>
      %33 = vector.extract_strided_slice %20 {offsets = [0, 48], sizes = [1, 16], strides = [1, 1]} : vector<1x64xf32> to vector<1x16xf32>
      %34 = arith.addf %30, %33 : vector<1x16xf32>
      %cst_15 = arith.constant 4.8828125E-4 : f32
      %35 = vector.broadcast %cst_15 : f32 to vector<1x16xf32>
      %36 = arith.mulf %32, %35 : vector<1x16xf32>
      %cst_16 = arith.constant 4.8828125E-4 : f32
      %37 = vector.broadcast %cst_16 : f32 to vector<1x16xf32>
      %38 = arith.mulf %34, %37 : vector<1x16xf32>
      %39 = arith.mulf %36, %36 : vector<1x16xf32>
      %40 = arith.subf %38, %39 : vector<1x16xf32>
      %cst_17 = arith.constant 9.99999974E-6 : f32
      %41 = vector.broadcast %cst_17 : f32 to vector<1x16xf32>
      %42 = arith.addf %40, %41 : vector<1x16xf32>
      %43 = math.rsqrt %42 : vector<1x16xf32>
      %c0_18 = arith.constant 0 : index
      %c0_19 = arith.constant 0 : index
      %44 = vector.load %arg4[%c0_18, %c0_19] : memref<1x16xf32, #tpu.memory_space<vmem>>, vector<1x16xf32>
      %45 = arith.mulf %44, %43 : vector<1x16xf32>
      %c0_20 = arith.constant 0 : index
      %c0_21 = arith.constant 0 : index
      %46 = vector.load %arg5[%c0_20, %c0_21] : memref<1x16xf32, #tpu.memory_space<vmem>>, vector<1x16xf32>
      %47 = arith.mulf %36, %45 : vector<1x16xf32>
      %48 = arith.subf %46, %47 : vector<1x16xf32>
      %49 = tpu.concatenate %45, %45, %45, %45 in 1 : vector<1x16xf32>, vector<1x16xf32>, vector<1x16xf32>, vector<1x16xf32> -> vector<1x64xf32>
      %c0_22 = arith.constant 0 : index
      %c0_23 = arith.constant 0 : index
      %50 = vector.load %arg9[%c0_22, %c0_23] : memref<1x64xf32, #tpu.memory_space<vmem>>, vector<1x64xf32>
      tpu.vector_store %arg9[%c0_22, %c0_23], %49 {strides = array<i32>} : memref<1x64xf32, #tpu.memory_space<vmem>>, vector<1x64xf32>,
      %51 = tpu.concatenate %48, %48, %48, %48 in 1 : vector<1x16xf32>, vector<1x16xf32>, vector<1x16xf32>, vector<1x16xf32> -> vector<1x64xf32>
      %c0_24 = arith.constant 0 : index
      %c0_25 = arith.constant 0 : index
      %52 = vector.load %arg10[%c0_24, %c0_25] : memref<1x64xf32, #tpu.memory_space<vmem>>, vector<1x64xf32>
      tpu.vector_store %arg10[%c0_24, %c0_25], %51 {strides = array<i32>} : memref<1x64xf32, #tpu.memory_space<vmem>>, vector<1x64xf32>,
    } else {
    }
    %c1_i32 = arith.constant 1 : i32
    %16 = arith.cmpi eq, %arg0, %c1_i32 : i32
    %17 = arith.extui %16 : i1 to i32
    %c0_i32_10 = arith.constant 0 : i32
    %18 = arith.cmpi ne, %17, %c0_i32_10 : i32
    scf.if %18 {
      %c0_11 = arith.constant 0 : index
      %c0_12 = arith.constant 0 : index
      %19 = vector.load %arg9[%c0_11, %c0_12] : memref<1x64xf32, #tpu.memory_space<vmem>>, vector<1x64xf32>
      %20 = vector.broadcast %19 : vector<1x64xf32> to vector<512x64xf32>
      %21 = arith.mulf %2, %20 : vector<512x64xf32>
      %c0_13 = arith.constant 0 : index
      %c0_14 = arith.constant 0 : index
      %22 = vector.load %arg10[%c0_13, %c0_14] : memref<1x64xf32, #tpu.memory_space<vmem>>, vector<1x64xf32>
      %23 = vector.broadcast %22 : vector<1x64xf32> to vector<512x64xf32>
      %24 = arith.addf %21, %23 : vector<512x64xf32>
      %cst_15 = arith.constant 0.000000e+00 : f32
      %25 = vector.broadcast %cst_15 : f32 to vector<512x64xf32>
      %26 = arith.maximumf %24, %25 : vector<512x64xf32>
      %c0_16 = arith.constant 0 : index
      %c0_17 = arith.constant 0 : index
      %27 = vector.load %arg6[%c0_16, %c0_17] : memref<512x64xf32, #tpu.memory_space<vmem>>, vector<512x64xf32>
      tpu.vector_store %arg6[%c0_16, %c0_17], %26 {strides = array<i32>} : memref<512x64xf32, #tpu.memory_space<vmem>>, vector<512x64xf32>,
    } else {
    }
    return
  }
  func.func @transform_0(%arg0: i32, %arg1: i32) -> (i32, i32) {
    %c0_i32 = arith.constant 0 : i32
    %c0_i32_0 = arith.constant 0 : i32
    return %arg1, %c0_i32 : i32, i32
  }
  func.func @transform_1(%arg0: i32, %arg1: i32) -> (i32, i32) {
    %c0_i32 = arith.constant 0 : i32
    %c0_i32_0 = arith.constant 0 : i32
    %c0_i32_1 = arith.constant 0 : i32
    return %c0_i32, %c0_i32_0 : i32, i32
  }
  func.func @transform_2(%arg0: i32, %arg1: i32) -> (i32, i32) {
    %c0_i32 = arith.constant 0 : i32
    %c0_i32_0 = arith.constant 0 : i32
    %c0_i32_1 = arith.constant 0 : i32
    return %c0_i32, %c0_i32_0 : i32, i32
  }
  func.func @transform_3(%arg0: i32, %arg1: i32) -> (i32, i32) {
    %c0_i32 = arith.constant 0 : i32
    %c0_i32_0 = arith.constant 0 : i32
    %c0_i32_1 = arith.constant 0 : i32
    return %c0_i32, %c0_i32_0 : i32, i32
  }
  func.func @transform_4(%arg0: i32, %arg1: i32) -> (i32, i32) {
    %0 = arith.muli %arg0, %arg1 : i32
    %c0_i32 = arith.constant 0 : i32
    %c0_i32_0 = arith.constant 0 : i32
    return %0, %c0_i32 : i32, i32
  }
}

module attributes {stable_mosaic.version = 11 : i64} {
  func.func @_bias_tanh_kernel(%arg0: i32, %arg1: memref<2048x144xbf16, #tpu.memory_space<vmem>>, %arg2: memref<144x12xbf16, #tpu.memory_space<vmem>>, %arg3: memref<1x12xf32, #tpu.memory_space<vmem>>, %arg4: memref<2048x12xf32, #tpu.memory_space<vmem>>) attributes {dimension_semantics = [#tpu.dimension_semantics<parallel>], iteration_bounds = array<i64: 1>, scalar_prefetch = 0 : i64, scratch_operands = 0 : i64, tpu.core_type = #tpu.core_type<tc>, window_params = [{transform_indices = @transform_0, window_bounds = array<i64: 2048, 144>}, {pipeline_mode = #tpu.pipeline_mode<synchronous>, transform_indices = @transform_1, window_bounds = array<i64: 144, 12>}, {pipeline_mode = #tpu.pipeline_mode<synchronous>, transform_indices = @transform_2, window_bounds = array<i64: 1, 12>}, {transform_indices = @transform_3, window_bounds = array<i64: 2048, 12>}]} {
    %c0 = arith.constant 0 : index
    %c0_0 = arith.constant 0 : index
    %0 = vector.load %arg1[%c0, %c0_0] : memref<2048x144xbf16, #tpu.memory_space<vmem>>, vector<2048x144xbf16>
    %c0_1 = arith.constant 0 : index
    %c0_2 = arith.constant 0 : index
    %1 = vector.load %arg2[%c0_1, %c0_2] : memref<144x12xbf16, #tpu.memory_space<vmem>>, vector<144x12xbf16>
    %cst = arith.constant dense<0.000000e+00> : vector<2048x12xf32>
    %2 = tpu.matmul %0, %1, %cst {dimension_numbers = #tpu.dot_dimension_numbers<[1], [0], [0], [1], [0, 0, 1, 1], [], []>} : vector<2048x144xbf16>, vector<144x12xbf16>, vector<2048x12xf32> -> vector<2048x12xf32>
    %c0_3 = arith.constant 0 : index
    %c0_4 = arith.constant 0 : index
    %3 = vector.load %arg3[%c0_3, %c0_4] : memref<1x12xf32, #tpu.memory_space<vmem>>, vector<1x12xf32>
    %4 = vector.broadcast %3 : vector<1x12xf32> to vector<2048x12xf32>
    %5 = arith.addf %2, %4 : vector<2048x12xf32>
    %6 = math.tanh %5 : vector<2048x12xf32>
    %c0_5 = arith.constant 0 : index
    %c0_6 = arith.constant 0 : index
    %7 = vector.load %arg4[%c0_5, %c0_6] : memref<2048x12xf32, #tpu.memory_space<vmem>>, vector<2048x12xf32>
    tpu.vector_store %arg4[%c0_5, %c0_6], %6 {strides = array<i32>} : memref<2048x12xf32, #tpu.memory_space<vmem>>, vector<2048x12xf32>,
    return
  }
  func.func @transform_0(%arg0: i32) -> (i32, i32) {
    %c0_i32 = arith.constant 0 : i32
    %c0_i32_0 = arith.constant 0 : i32
    return %arg0, %c0_i32 : i32, i32
  }
  func.func @transform_1(%arg0: i32) -> (i32, i32) {
    %c0_i32 = arith.constant 0 : i32
    %c0_i32_0 = arith.constant 0 : i32
    %c0_i32_1 = arith.constant 0 : i32
    return %c0_i32, %c0_i32_0 : i32, i32
  }
  func.func @transform_2(%arg0: i32) -> (i32, i32) {
    %c0_i32 = arith.constant 0 : i32
    %c0_i32_0 = arith.constant 0 : i32
    %c0_i32_1 = arith.constant 0 : i32
    return %c0_i32, %c0_i32_0 : i32, i32
  }
  func.func @transform_3(%arg0: i32) -> (i32, i32) {
    %c0_i32 = arith.constant 0 : i32
    %c0_i32_0 = arith.constant 0 : i32
    return %arg0, %c0_i32 : i32, i32
  }
}

</mosaic_0001>

<bundles_post_ra>
// kernel: generator_forward.5
= control target key start
LH: loop header
LB: loop body
LE: loop exit
PB: predicated region body
PF: predicated region fallthrough
CT: control target
= control target key end

     0   :  { %s2483_s15 = smov 0   ;;  %s2485_s16 = smov 0   ;;  %s3172_s0 = inlined_call_operand.vmem [shape: bf16[2,100], index: 0, kind: input, shape index: {}]   ;;  %s3173_s1 = inlined_call_operand.vmem [shape: bf16[100,2048], index: 1, kind: input, shape index: {}]   ;;  %s3174_s2 = inlined_call_operand.vmem [shape: f32[1,128], index: 2, kind: input, shape index: {}]   ;;  %s3175_s3 = inlined_call_operand.vmem [shape: f32[1,128], index: 3, kind: input, shape index: {}]   ;;  %s3176_s4 = inlined_call_operand.vmem [shape: f32[2,2048], index: 4, kind: output, shape index: {}]  }
   0x1   :  { %s2487_s17 = smov 0  }
   0x2 LB: > { %s26_s18 = sadd.s32 1, %s2447_s16  ;;  %p2245_p0 = scmp.ge.s32.totalorder %s2451_s17, 1  ;;  %s2451_s17 = sphi %s2487_s17, %s14_s17   ;;  %s2447_s16 = sphi %s2485_s16, %s3178_s16   ;;  %s2443_s15 = sphi %s2483_s15, %s3177_s15  }
   0x3   : > { %p28_p1 = scmp.ge.s32.totalorder %s26_s18, 2  ;;  %p174_p2 = scmp.lt.s32.totalorder %s2451_s17, 3 }
   0x5   : > { %s3180_s18 = smov (%p28_p1, %s26_s18), 0  ;;  %p175_p3 = pnand %p2245_p0, %p174_p2 }
   0x6   : > { %v211_v0 = vld [vmem:[%s3173_s1] sm:$0xff] (!%p175_p3)  ;;  %v212_v2 = vld [vmem:[%s3173_s1 + $0x8] sm:$0xff] (!%p175_p3)  ;;  %v2453_v8 = vmov (!%p175_p3), 0   ;;  %vm839_vm0 = vcmask (!%p175_p3), 1041408   ;;  %v213_v55 = vld [vmem:[%s3173_s1 + $0x10] sm:$0xff] (!%p175_p3)  ;;  %vm835_vm1 = vcmask (!%p175_p3), 818176  }
   0x7   : > { %178 = sbr.rel (%p175_p3) target bundleno = 537 (0x219), region = 36  ;;  %v219_v1 = vld [vmem:[%s3173_s1 + $0x40] sm:$0xff] (!%p175_p3)  ;;  %v220_v4 = vld [vmem:[%s3173_s1 + $0x48] sm:$0xff] (!%p175_p3)  ;;  %920 = vmatprep.mubr.bf16.mxu0 (!%p175_p3), %v2453_v8  ;;  %961 = vmatprep.mubr.bf16.mxu1 (!%p175_p3), %v2453_v8  ;;  %v221_v56 = vld [vmem:[%s3173_s1 + $0x50] sm:$0xff] (!%p175_p3)  ;;  %p1216_p4 = scmp.eq.s32.totalorder (!%p175_p3), %s2443_s15, 0 }
   0x8   : > { %v2247_v3 = vcombine.high (!%p175_p3), %v211_v0, %v219_v1  ;;  %v2246_v5 = vcombine.low (!%p175_p3), %v211_v0, %v219_v1  ;;  %v227_v6 = vld [vmem:[%s3173_s1 + $0x80] sm:$0xff] (!%p175_p3)  ;;  %v2249_v9 = vcombine.high (!%p175_p3), %v212_v2, %v220_v4  ;;  %v2248_v10 = vcombine.low (!%p175_p3), %v212_v2, %v220_v4  ;;  %v228_v12 = vld [vmem:[%s3173_s1 + $0x88] sm:$0xff] (!%p175_p3)  ;;  %v214_v57 = vld [vmem:[%s3173_s1 + $0x18] sm:$0xff] (!%p175_p3) }
   0x9   : > { %v235_v7 = vld [vmem:[%s3173_s1 + $0xc0] sm:$0xff] (!%p175_p3)  ;;  %v236_v13 = vld [vmem:[%s3173_s1 + $0xc8] sm:$0xff] (!%p175_p3)  ;;  %v222_v58 = vld [vmem:[%s3173_s1 + $0x58] sm:$0xff] (!%p175_p3)  ;;  %v2251_v60 = vcombine.high (!%p175_p3), %v213_v55, %v221_v56  ;;  %v2250_v4 = vcombine.low (!%p175_p3), %v213_v55, %v221_v56 }
   0xa   : > { %v2263_v11 = vcombine.high (!%p175_p3), %v227_v6, %v235_v7  ;;  %v243_v14 = vld [vmem:[%s3173_s1 + $0x100] sm:$0xff] (!%p175_p3)  ;;  %888 = vmatprep.subr.bf16.mxu0 (!%p175_p3), %v2247_v3  ;;  %v2265_v15 = vcombine.high (!%p175_p3), %v228_v12, %v236_v13  ;;  %v244_v17 = vld [vmem:[%s3173_s1 + $0x108] sm:$0xff] (!%p175_p3)  ;;  %929 = vmatprep.subr.bf16.mxu1 (!%p175_p3), %v2249_v9  ;;  %v2262_v19 = vcombine.low (!%p175_p3), %v227_v6, %v235_v7  ;;  %v229_v63 = vld [vmem:[%s3173_s1 + $0x90] sm:$0xff] (!%p175_p3) }
   0xb   : > { %v251_v16 = vld [vmem:[%s3173_s1 + $0x140] sm:$0xff] (!%p175_p3)  ;;  %v252_v18 = vld [vmem:[%s3173_s1 + $0x148] sm:$0xff] (!%p175_p3)  ;;  %889 = vmatpush1.bf16.msra.mxu0 (!%p175_p3), %v2246_v5  ;;  %930 = vmatpush1.bf16.msra.mxu1 (!%p175_p3), %v2248_v10  ;;  %v2264_v20 = vcombine.low (!%p175_p3), %v228_v12, %v236_v13  ;;  %v2253_v62 = vcombine.high (!%p175_p3), %v214_v57, %v222_v58  ;;  %v237_v0 = vld [vmem:[%s3173_s1 + $0xd0] sm:$0xff] (!%p175_p3)  ;;  %v2252_v5 = vcombine.low (!%p175_p3), %v214_v57, %v222_v58 }
   0xc   : > { %890 = vmatprep.subr.bf16.mxu0 (!%p175_p3), %v2263_v11  ;;  %v2279_v21 = vcombine.high (!%p175_p3), %v243_v14, %v251_v16  ;;  %931 = vmatprep.subr.bf16.mxu1 (!%p175_p3), %v2265_v15  ;;  %v2281_v22 = vcombine.high (!%p175_p3), %v244_v17, %v252_v18  ;;  %v259_v23 = vld [vmem:[%s3173_s1 + $0x180] sm:$0xff] (!%p175_p3)  ;;  %v260_v25 = vld [vmem:[%s3173_s1 + $0x188] sm:$0xff] (!%p175_p3)  ;;  %v2278_v27 = vcombine.low (!%p175_p3), %v243_v14, %v251_v16  ;;  %v230_v1 = vld [vmem:[%s3173_s1 + $0x98] sm:$0xff] (!%p175_p3) }
   0xd   : > { %v267_v24 = vld [vmem:[%s3173_s1 + $0x1c0] sm:$0xff] (!%p175_p3)  ;;  %v268_v26 = vld [vmem:[%s3173_s1 + $0x1c8] sm:$0xff] (!%p175_p3)  ;;  %v2280_v28 = vcombine.low (!%p175_p3), %v244_v17, %v252_v18  ;;  %v238_v2 = vld [vmem:[%s3173_s1 + $0xd8] sm:$0xff] (!%p175_p3)  ;;  %v2267_v6 = vcombine.high (!%p175_p3), %v229_v63, %v237_v0  ;;  %v2266_v13 = vcombine.low (!%p175_p3), %v229_v63, %v237_v0 }
   0xe   : > { %v2295_v29 = vcombine.high %v259_v23, %v267_v24  ;;  %v2297_v30 = vcombine.high %v260_v25, %v268_v26  ;;  %v275_v31 = vld [vmem:[%s3173_s1 + $0x200] sm:$0xff]  ;;  %v276_v33 = vld [vmem:[%s3173_s1 + $0x208] sm:$0xff]  ;;  %v2294_v35 = vcombine.low %v259_v23, %v267_v24  ;;  %v2296_v36 = vcombine.low %v260_v25, %v268_v26  ;;  %v245_v9 = vld [vmem:[%s3173_s1 + $0x110] sm:$0xff] }
   0xf   : > { %891 = vmatpush1.bf16.msra.mxu0 %v2262_v19  ;;  %932 = vmatpush1.bf16.msra.mxu1 %v2264_v20  ;;  %v283_v32 = vld [vmem:[%s3173_s1 + $0x240] sm:$0xff]  ;;  %v284_v34 = vld [vmem:[%s3173_s1 + $0x248] sm:$0xff]  ;;  %v2269_v7 = vcombine.high %v230_v1, %v238_v2  ;;  %v253_v10 = vld [vmem:[%s3173_s1 + $0x150] sm:$0xff]  ;;  %v2268_v14 = vcombine.low %v230_v1, %v238_v2 }
  0x10   : > { %892 = vmatprep.subr.bf16.mxu0 %v2279_v21  ;;  %933 = vmatprep.subr.bf16.mxu1 %v2281_v22  ;;  %v2311_v37 = vcombine.high %v275_v31, %v283_v32  ;;  %v2313_v38 = vcombine.high %v276_v33, %v284_v34  ;;  %v291_v39 = vld [vmem:[%s3173_s1 + $0x280] sm:$0xff]  ;;  %v292_v41 = vld [vmem:[%s3173_s1 + $0x288] sm:$0xff]  ;;  %v2310_v43 = vcombine.low %v275_v31, %v283_v32  ;;  %v246_v11 = vld [vmem:[%s3173_s1 + $0x118] sm:$0xff] }
  0x11   : > { %v299_v40 = vld [vmem:[%s3173_s1 + $0x2c0] sm:$0xff]  ;;  %v300_v42 = vld [vmem:[%s3173_s1 + $0x2c8] sm:$0xff]  ;;  %v2312_v44 = vcombine.low %v276_v33, %v284_v34  ;;  %v254_v12 = vld [vmem:[%s3173_s1 + $0x158] sm:$0xff]  ;;  %v2283_v15 = vcombine.high %v245_v9, %v253_v10  ;;  %v2282_v21 = vcombine.low %v245_v9, %v253_v10 }
  0x12   : > { %v2327_v45 = vcombine.high %v291_v39, %v299_v40  ;;  %v2329_v46 = vcombine.high %v292_v41, %v300_v42  ;;  %v307_v47 = vld [vmem:[%s3173_s1 + $0x300] sm:$0x33]  ;;  %v308_v48 = vld [vmem:[%s3173_s1 + $0x308] sm:$0x33]  ;;  %v2326_v49 = vcombine.low %v291_v39, %v299_v40  ;;  %v2328_v50 = vcombine.low %v292_v41, %v300_v42  ;;  %v261_v17 = vld [vmem:[%s3173_s1 + $0x190] sm:$0xff] }
  0x13   : > { %893 = vmatpush1.bf16.msra.mxu0 %v2278_v27  ;;  %934 = vmatpush1.bf16.msra.mxu1 %v2280_v28  ;;  %v2343_v51 = vcombine.high %v307_v47, %v307_v47  ;;  %v2342_v52 = vcombine.low %v307_v47, %v307_v47  ;;  %v2345_v53 = vcombine.high %v308_v48, %v308_v48  ;;  %v2614_v3 = vld [vmem:[%s3172_s0] sm:$0x1]  ;;  %v269_v18 = vld [vmem:[%s3173_s1 + $0x1d0] sm:$0xff]  ;;  %v262_v19 = vld [vmem:[%s3173_s1 + $0x198] sm:$0xff] }
  0x14   : > { %894 = vmatprep.subr.bf16.mxu0 %v2295_v29  ;;  %935 = vmatprep.subr.bf16.mxu1 %v2297_v30  ;;  %v2344_v54 = vcombine.low %v308_v48, %v308_v48  ;;  %v2285_v16 = vcombine.high %v246_v11, %v254_v12  ;;  %v270_v20 = vld [vmem:[%s3173_s1 + $0x1d8] sm:$0xff]  ;;  %v2284_v22 = vcombine.low %v246_v11, %v254_v12  ;;  %v277_v25 = vld [vmem:[%s3173_s1 + $0x210] sm:$0xff]  ;;  %v231_v57 = vld [vmem:[%s3173_s1 + $0xa0] sm:$0xff] }
  0x15   : > { %v841_v59 = vsel %vm839_vm0, %v2342_v52, 0  ;;  %v2299_v23 = vcombine.high %v261_v17, %v269_v18  ;;  %v2301_v24 = vcombine.high %v262_v19, %v270_v20  ;;  %v285_v26 = vld [vmem:[%s3173_s1 + $0x250] sm:$0xff]  ;;  %v278_v27 = vld [vmem:[%s3173_s1 + $0x218] sm:$0xff]  ;;  %v2298_v29 = vcombine.low %v261_v17, %v269_v18  ;;  %v224_v52 = vld [vmem:[%s3173_s1 + $0x68] sm:$0xff] }
  0x16   : > { %v847_v61 = vsel %vm839_vm0, %v2344_v54, 0  ;;  %v286_v28 = vld [vmem:[%s3173_s1 + $0x258] sm:$0xff]  ;;  %v2300_v30 = vcombine.low %v262_v19, %v270_v20  ;;  %v2315_v31 = vcombine.high %v277_v25, %v285_v26  ;;  %v293_v33 = vld [vmem:[%s3173_s1 + $0x290] sm:$0xff]  ;;  %v239_v58 = vld [vmem:[%s3173_s1 + $0xe0] sm:$0xff] }
  0x17   : > { %895 = vmatpush1.bf16.msra.mxu0 %v2294_v35  ;;  %936 = vmatpush1.bf16.msra.mxu1 %v2296_v36  ;;  %v2317_v32 = vcombine.high %v278_v27, %v286_v28  ;;  %v301_v34 = vld [vmem:[%s3173_s1 + $0x2d0] sm:$0xff]  ;;  %v294_v35 = vld [vmem:[%s3173_s1 + $0x298] sm:$0xff]  ;;  %v2271_v63 = vcombine.high %v231_v57, %v239_v58  ;;  %v247_v1 = vld [vmem:[%s3173_s1 + $0x120] sm:$0xff] }
  0x18   : > { %896 = vmatprep.subr.bf16.mxu0 %v2311_v37  ;;  %937 = vmatprep.subr.bf16.mxu1 %v2313_v38  ;;  %v302_v36 = vld [vmem:[%s3173_s1 + $0x2d8] sm:$0xff]  ;;  %v2314_v37 = vcombine.low %v277_v25, %v285_v26  ;;  %v2316_v38 = vcombine.low %v278_v27, %v286_v28  ;;  %v2331_v39 = vcombine.high %v293_v33, %v301_v34  ;;  %v309_v41 = vld [vmem:[%s3173_s1 + $0x310] sm:$0x33]  ;;  %v255_v2 = vld [vmem:[%s3173_s1 + $0x160] sm:$0xff] }
  0x19   : > { %v2333_v40 = vcombine.high %v294_v35, %v302_v36  ;;  %v310_v42 = vld [vmem:[%s3173_s1 + $0x318] sm:$0x33]  ;;  %v2287_v9 = vcombine.high %v247_v1, %v255_v2  ;;  %v263_v11 = vld [vmem:[%s3173_s1 + $0x1a0] sm:$0xff] }
  0x1a   : > { %v2349_v47 = vcombine.high %v310_v42, %v310_v42  ;;  %v2348_v48 = vcombine.low %v310_v42, %v310_v42  ;;  %v271_v12 = vld [vmem:[%s3173_s1 + $0x1e0] sm:$0xff] }
  0x1b   : > { %897 = vmatpush1.bf16.msra.mxu0 %v2310_v43  ;;  %938 = vmatpush1.bf16.msra.mxu1 %v2312_v44  ;;  %v2330_v43 = vcombine.low %v293_v33, %v301_v34  ;;  %v2332_v44 = vcombine.low %v294_v35, %v302_v36  ;;  %v2303_v17 = vcombine.high %v263_v11, %v271_v12  ;;  %v279_v19 = vld [vmem:[%s3173_s1 + $0x220] sm:$0xff]  ;;  %v312_v36 = vld [vmem:[%s3173_s1 + $0x328] sm:$0x33] }
  0x1c   : > { %898 = vmatprep.subr.bf16.mxu0 %v2327_v45  ;;  %939 = vmatprep.subr.bf16.mxu1 %v2329_v46  ;;  %v2347_v45 = vcombine.high %v309_v41, %v309_v41  ;;  %v2346_v46 = vcombine.low %v309_v41, %v309_v41  ;;  %v859_v55 = vsel %vm839_vm0, %v2348_v48, 0  ;;  %v287_v20 = vld [vmem:[%s3173_s1 + $0x260] sm:$0xff]  ;;  %v2353_v41 = vcombine.high %v312_v36, %v312_v36 }
  0x1d   : > { %v2319_v25 = vcombine.high %v279_v19, %v287_v20  ;;  %v295_v27 = vld [vmem:[%s3173_s1 + $0x2a0] sm:$0xff]  ;;  %v2352_v42 = vcombine.low %v312_v36, %v312_v36 }
  0x1e   : > { %v303_v28 = vld [vmem:[%s3173_s1 + $0x2e0] sm:$0xff] }
  0x1f   : > { %899 = vmatpush1.bf16.msra.mxu0 %v2326_v49  ;;  %940 = vmatpush1.bf16.msra.mxu1 %v2328_v50  ;;  %v215_v49 = vld [vmem:[%s3173_s1 + $0x20] sm:$0xff]  ;;  %v2335_v33 = vcombine.high %v295_v27, %v303_v28 }
  0x20   : > { %2358 = vmatprep.subr.msk.bf16.mxu0 %vm839_vm0, %v2343_v51  ;;  %2360 = vmatprep.subr.msk.bf16.mxu1 %vm839_vm0, %v2345_v53  ;;  %v223_v50 = vld [vmem:[%s3173_s1 + $0x60] sm:$0xff]  ;;  %v216_v51 = vld [vmem:[%s3173_s1 + $0x28] sm:$0xff]  ;;  %v853_v53 = vsel %vm839_vm0, %v2346_v46, 0  ;;  %v226_v46 = vld [vmem:[%s3173_s1 + $0x78] sm:$0xff] }
  0x21   : > { %v2255_v54 = vcombine.high %v215_v49, %v223_v50  ;;  %v2257_v56 = vcombine.high %v216_v51, %v224_v52  ;;  %v311_v35 = vld [vmem:[%s3173_s1 + $0x320] sm:$0x33] }
  0x23   : > { %901 = vmatpush1.bf16.msra.mxu0 %v841_v59  ;;  %942 = vmatpush1.bf16.msra.mxu1 %v847_v61  ;;  %v232_v59 = vld [vmem:[%s3173_s1 + $0xa8] sm:$0xff]  ;;  %v2254_v61 = vcombine.low %v215_v49, %v223_v50  ;;  %v871_v49 = vsel %vm839_vm0, %v2352_v42, 0 }
  0x24   : > { %970 = vmatprep.subr.bf16.mxu0 %v2251_v60  ;;  %1011 = vmatprep.subr.bf16.mxu1 %v2253_v62  ;;  %v240_v60 = vld [vmem:[%s3173_s1 + $0xe8] sm:$0xff]  ;;  %v2256_v62 = vcombine.low %v216_v51, %v224_v52  ;;  %v233_v51 = vld [vmem:[%s3173_s1 + $0xb0] sm:$0xff] }
  0x25   : > { %v2273_v0 = vcombine.high %v232_v59, %v240_v60  ;;  %v241_v52 = vld [vmem:[%s3173_s1 + $0xf0] sm:$0xff] }
  0x26   : > { %2359 = vmatmul.mubr.msk.bf16.vlgmr.msra.gmra.mrb[0].mxu0 %vm835_vm1, %v2614_v3  ;;  %2361 = vmatmul.mubr.msk.bf16.vlgmr.msra.gmra.mrb[0].mxu1 %vm835_vm1, %v2614_v3 }
  0x27   : > { %971 = vmatpush1.bf16.msra.mxu0 %v2250_v4  ;;  %1012 = vmatpush1.bf16.msra.mxu1 %v2252_v5  ;;  %v248_v4 = vld [vmem:[%s3173_s1 + $0x128] sm:$0xff] }
  0x28   : > { %972 = vmatprep.subr.bf16.mxu0 %v2267_v6  ;;  %1013 = vmatprep.subr.bf16.mxu1 %v2269_v7  ;;  %v256_v5 = vld [vmem:[%s3173_s1 + $0x168] sm:$0xff]  ;;  %v2270_v6 = vcombine.low %v231_v57, %v239_v58  ;;  %v2272_v7 = vcombine.low %v232_v59, %v240_v60  ;;  %v2275_v57 = vcombine.high %v233_v51, %v241_v52  ;;  %v249_v59 = vld [vmem:[%s3173_s1 + $0x130] sm:$0xff] }
  0x29   : > { %1002 = vmatprep.mubr.bf16.mxu0 %v2453_v8  ;;  %1043 = vmatprep.mubr.bf16.mxu1 %v2453_v8  ;;  %v2289_v10 = vcombine.high %v248_v4, %v256_v5  ;;  %v257_v60 = vld [vmem:[%s3173_s1 + $0x170] sm:$0xff] }
  0x2b   : > { %973 = vmatpush1.bf16.msra.mxu0 %v2266_v13  ;;  %1014 = vmatpush1.bf16.msra.mxu1 %v2268_v14  ;;  %v264_v13 = vld [vmem:[%s3173_s1 + $0x1a8] sm:$0xff] }
  0x2c   : > { %974 = vmatprep.subr.bf16.mxu0 %v2283_v15  ;;  %1015 = vmatprep.subr.bf16.mxu1 %v2285_v16  ;;  %v272_v14 = vld [vmem:[%s3173_s1 + $0x1e8] sm:$0xff]  ;;  %v2286_v15 = vcombine.low %v247_v1, %v255_v2  ;;  %v2288_v16 = vcombine.low %v248_v4, %v256_v5  ;;  %v2291_v1 = vcombine.high %v249_v59, %v257_v60  ;;  %v265_v4 = vld [vmem:[%s3173_s1 + $0x1b0] sm:$0xff] }
  0x2d   : > { %v2305_v18 = vcombine.high %v264_v13, %v272_v14  ;;  %v273_v5 = vld [vmem:[%s3173_s1 + $0x1f0] sm:$0xff] }
  0x2f   : > { %975 = vmatpush1.bf16.msra.mxu0 %v2282_v21  ;;  %1016 = vmatpush1.bf16.msra.mxu1 %v2284_v22  ;;  %v280_v21 = vld [vmem:[%s3173_s1 + $0x228] sm:$0xff] }
  0x30   : > { %976 = vmatprep.subr.bf16.mxu0 %v2299_v23  ;;  %1017 = vmatprep.subr.bf16.mxu1 %v2301_v24  ;;  %v288_v22 = vld [vmem:[%s3173_s1 + $0x268] sm:$0xff]  ;;  %v2302_v23 = vcombine.low %v263_v11, %v271_v12  ;;  %v2304_v24 = vcombine.low %v264_v13, %v272_v14  ;;  %v2307_v11 = vcombine.high %v265_v4, %v273_v5  ;;  %v281_v13 = vld [vmem:[%s3173_s1 + $0x230] sm:$0xff] }
  0x31   : > { %v2321_v26 = vcombine.high %v280_v21, %v288_v22  ;;  %v289_v14 = vld [vmem:[%s3173_s1 + $0x270] sm:$0xff] }
  0x33   : > { %977 = vmatpush1.bf16.msra.mxu0 %v2298_v29  ;;  %1018 = vmatpush1.bf16.msra.mxu1 %v2300_v30  ;;  %v296_v29 = vld [vmem:[%s3173_s1 + $0x2a8] sm:$0xff] }
  0x34   : > { %978 = vmatprep.subr.bf16.mxu0 %v2315_v31  ;;  %1019 = vmatprep.subr.bf16.mxu1 %v2317_v32  ;;  %v304_v30 = vld [vmem:[%s3173_s1 + $0x2e8] sm:$0xff]  ;;  %v2318_v31 = vcombine.low %v279_v19, %v287_v20  ;;  %v2320_v32 = vcombine.low %v280_v21, %v288_v22  ;;  %v297_v20 = vld [vmem:[%s3173_s1 + $0x2b0] sm:$0xff]  ;;  %v298_v22 = vld [vmem:[%s3173_s1 + $0x2b8] sm:$0xff] }
  0x35   : > { %v2337_v34 = vcombine.high %v296_v29, %v304_v30  ;;  %v305_v21 = vld [vmem:[%s3173_s1 + $0x2f0] sm:$0xff] }
  0x37   : > { %979 = vmatpush1.bf16.msra.mxu0 %v2314_v37  ;;  %1020 = vmatpush1.bf16.msra.mxu1 %v2316_v38  ;;  %v2334_v37 = vcombine.low %v295_v27, %v303_v28  ;;  %v2336_v38 = vcombine.low %v296_v29, %v304_v30  ;;  %v313_v28 = vld [vmem:[%s3173_s1 + $0x330] sm:$0x33]  ;;  %v314_v29 = vld [vmem:[%s3173_s1 + $0x338] sm:$0x33]  ;;  %v2338_v30 = vcombine.low %v297_v20, %v305_v21 }
  0x38   : > { %980 = vmatprep.subr.bf16.mxu0 %v2331_v39  ;;  %1021 = vmatprep.subr.bf16.mxu1 %v2333_v40  ;;  %v2351_v39 = vcombine.high %v311_v35, %v311_v35  ;;  %v2350_v40 = vcombine.low %v311_v35, %v311_v35  ;;  %v2356_v35 = vcombine.low %v314_v29, %v314_v29 }
  0x3b   : > { %981 = vmatpush1.bf16.msra.mxu0 %v2330_v43  ;;  %1022 = vmatpush1.bf16.msra.mxu1 %v2332_v44  ;;  %v217_v43 = vld [vmem:[%s3173_s1 + $0x30] sm:$0xff] }
  0x3c   : > { %2362 = vmatprep.subr.msk.bf16.mxu0 %vm839_vm0, %v2347_v45  ;;  %2364 = vmatprep.subr.msk.bf16.mxu1 %vm839_vm0, %v2349_v47  ;;  %v225_v44 = vld [vmem:[%s3173_s1 + $0x70] sm:$0xff]  ;;  %v218_v45 = vld [vmem:[%s3173_s1 + $0x38] sm:$0xff]  ;;  %v865_v47 = vsel %vm839_vm0, %v2350_v40, 0 }
  0x3d   : > { %v2259_v48 = vcombine.high %v217_v43, %v225_v44  ;;  %v2261_v50 = vcombine.high %v218_v45, %v226_v46 }
  0x3f   : > { %983 = vmatpush1.bf16.msra.mxu0 %v853_v53  ;;  %1024 = vmatpush1.bf16.msra.mxu1 %v859_v55  ;;  %v234_v53 = vld [vmem:[%s3173_s1 + $0xb8] sm:$0xff]  ;;  %v2258_v55 = vcombine.low %v217_v43, %v225_v44 }
  0x40   : > { %1052 = vmatprep.subr.bf16.mxu0 %v2255_v54  ;;  %1093 = vmatprep.subr.bf16.mxu1 %v2257_v56  ;;  %v242_v54 = vld [vmem:[%s3173_s1 + $0xf8] sm:$0xff]  ;;  %v2260_v56 = vcombine.low %v218_v45, %v226_v46 }
  0x41   : > { %v2277_v58 = vcombine.high %v234_v53, %v242_v54 }
  0x42   : > { %2363 = vmatmul.mubr.msk.bf16.vlgmr.msra.gmra.mrb[4].mxu0 %vm835_vm1, %v2614_v3  ;;  %2365 = vmatmul.mubr.msk.bf16.vlgmr.msra.gmra.mrb[4].mxu1 %vm835_vm1, %v2614_v3 }
  0x43   : > { %1053 = vmatpush1.bf16.msra.mxu0 %v2254_v61  ;;  %1094 = vmatpush1.bf16.msra.mxu1 %v2256_v62  ;;  %v250_v61 = vld [vmem:[%s3173_s1 + $0x138] sm:$0xff] }
  0x44   : > { %1054 = vmatprep.subr.bf16.mxu0 %v2271_v63  ;;  %1095 = vmatprep.subr.bf16.mxu1 %v2273_v0  ;;  %v258_v62 = vld [vmem:[%s3173_s1 + $0x178] sm:$0xff]  ;;  %v2274_v63 = vcombine.low %v233_v51, %v241_v52  ;;  %v2276_v0 = vcombine.low %v234_v53, %v242_v54 }
  0x45   : > { %1084 = vmatprep.mubr.bf16.mxu0 %v2453_v8  ;;  %1125 = vmatprep.mubr.bf16.mxu1 %v2453_v8  ;;  %v2293_v2 = vcombine.high %v250_v61, %v258_v62 }
  0x47   : > { %1055 = vmatpush1.bf16.msra.mxu0 %v2270_v6  ;;  %1096 = vmatpush1.bf16.msra.mxu1 %v2272_v7  ;;  %v266_v6 = vld [vmem:[%s3173_s1 + $0x1b8] sm:$0xff] }
  0x48   : > { %1056 = vmatprep.subr.bf16.mxu0 %v2287_v9  ;;  %1097 = vmatprep.subr.bf16.mxu1 %v2289_v10  ;;  %v274_v7 = vld [vmem:[%s3173_s1 + $0x1f8] sm:$0xff]  ;;  %v2290_v9 = vcombine.low %v249_v59, %v257_v60  ;;  %v2292_v10 = vcombine.low %v250_v61, %v258_v62 }
  0x49   : > { %v2309_v12 = vcombine.high %v266_v6, %v274_v7 }
  0x4b   : > { %1057 = vmatpush1.bf16.msra.mxu0 %v2286_v15  ;;  %1098 = vmatpush1.bf16.msra.mxu1 %v2288_v16  ;;  %v290_v15 = vld [vmem:[%s3173_s1 + $0x278] sm:$0xff]  ;;  %v2306_v16 = vcombine.low %v265_v4, %v273_v5 }
  0x4c   : > { %1058 = vmatprep.subr.bf16.mxu0 %v2303_v17  ;;  %1099 = vmatprep.subr.bf16.mxu1 %v2305_v18  ;;  %v2308_v17 = vcombine.low %v266_v6, %v274_v7  ;;  %v2323_v18 = vcombine.high %v281_v13, %v289_v14  ;;  %v2454_v6 = vmov (%p1216_p4), 0.0  }
  0x4d   : > { %1222 = vst [vmem:[#allocation2] sm:$0xff] (%p1216_p4), %v2454_v6  ;;  %1223 = vst [vmem:[#allocation2 + $0x8] sm:$0xff] (%p1216_p4), %v2454_v6 }
  0x4e   : > { %1224 = vst [vmem:[#allocation3] sm:$0xff] (%p1216_p4), %v2454_v6  ;;  %1225 = vst [vmem:[#allocation3 + $0x8] sm:$0xff] (%p1216_p4), %v2454_v6 }
  0x4f   : > { %1059 = vmatpush1.bf16.msra.mxu0 %v2302_v23  ;;  %1100 = vmatpush1.bf16.msra.mxu1 %v2304_v24  ;;  %v306_v23 = vld [vmem:[%s3173_s1 + $0x2f8] sm:$0xff]  ;;  %v2322_v24 = vcombine.low %v281_v13, %v289_v14 }
  0x50   : > { %1060 = vmatprep.subr.bf16.mxu0 %v2319_v25  ;;  %1101 = vmatprep.subr.bf16.mxu1 %v2321_v26  ;;  %v2339_v26 = vcombine.high %v297_v20, %v305_v21  ;;  %v2341_v27 = vcombine.high %v298_v22, %v306_v23 }
  0x53   : > { %1061 = vmatpush1.bf16.msra.mxu0 %v2318_v31  ;;  %1102 = vmatpush1.bf16.msra.mxu1 %v2320_v32  ;;  %v2340_v31 = vcombine.low %v298_v22, %v306_v23  ;;  %v2355_v32 = vcombine.high %v313_v28, %v313_v28 }
  0x54   : > { %1062 = vmatprep.subr.bf16.mxu0 %v2335_v33  ;;  %1103 = vmatprep.subr.bf16.mxu1 %v2337_v34  ;;  %v2354_v33 = vcombine.low %v313_v28, %v313_v28  ;;  %v2357_v34 = vcombine.high %v314_v29, %v314_v29 }
  0x56   : > { %v877_v36 = vsel %vm839_vm0, %v2354_v33, 0 }
  0x57   : > { %1063 = vmatpush1.bf16.msra.mxu0 %v2334_v37  ;;  %1104 = vmatpush1.bf16.msra.mxu1 %v2336_v38  ;;  %v883_v37 = vsel %vm839_vm0, %v2356_v35, 0 }
  0x58   : > { %2366 = vmatprep.subr.msk.bf16.mxu0 %vm839_vm0, %v2351_v39  ;;  %2368 = vmatprep.subr.msk.bf16.mxu1 %vm839_vm0, %v2353_v41 }
  0x5b   : > { %1065 = vmatpush1.bf16.msra.mxu0 %v865_v47  ;;  %1106 = vmatpush1.bf16.msra.mxu1 %v871_v49 }
  0x5c   : > { %1134 = vmatprep.subr.bf16.mxu0 %v2259_v48  ;;  %1175 = vmatprep.subr.bf16.mxu1 %v2261_v50 }
  0x5e   : > { %2367 = vmatmul.mubr.msk.bf16.vlgmr.msra.gmra.mrb[8].mxu0 %vm835_vm1, %v2614_v3  ;;  %2369 = vmatmul.mubr.msk.bf16.vlgmr.msra.gmra.mrb[8].mxu1 %vm835_vm1, %v2614_v3 }
  0x5f   : > { %1135 = vmatpush1.bf16.msra.mxu0 %v2258_v55  ;;  %1176 = vmatpush1.bf16.msra.mxu1 %v2260_v56 }
  0x60   : > { %1136 = vmatprep.subr.bf16.mxu0 %v2275_v57  ;;  %1177 = vmatprep.subr.bf16.mxu1 %v2277_v58 }
  0x61   : > { %1166 = vmatprep.mubr.bf16.mxu0 %v2453_v8  ;;  %1207 = vmatprep.mubr.bf16.mxu1 %v2453_v8  ;;  %v282_v8 = vld [vmem:[%s3173_s1 + $0x238] sm:$0xff] }
  0x62   : > { %v2325_v19 = vcombine.high %v282_v8, %v290_v15  ;;  %v2324_v25 = vcombine.low %v282_v8, %v290_v15 }
  0x63   : > { %1137 = vmatpush1.bf16.msra.mxu0 %v2274_v63  ;;  %1178 = vmatpush1.bf16.msra.mxu1 %v2276_v0 }
  0x64   : > { %1138 = vmatprep.subr.bf16.mxu0 %v2291_v1  ;;  %1179 = vmatprep.subr.bf16.mxu1 %v2293_v2 }
  0x67   : > { %1139 = vmatpush1.bf16.msra.mxu0 %v2290_v9  ;;  %1180 = vmatpush1.bf16.msra.mxu1 %v2292_v10 }
  0x68   : > { %1140 = vmatprep.subr.bf16.mxu0 %v2307_v11  ;;  %1181 = vmatprep.subr.bf16.mxu1 %v2309_v12 }
  0x6b   : > { %1141 = vmatpush1.bf16.msra.mxu0 %v2306_v16  ;;  %1182 = vmatpush1.bf16.msra.mxu1 %v2308_v17 }
  0x6c   : > { %1142 = vmatprep.subr.bf16.mxu0 %v2323_v18  ;;  %1183 = vmatprep.subr.bf16.mxu1 %v2325_v19 }
  0x6f   : > { %1143 = vmatpush1.bf16.msra.mxu0 %v2322_v24  ;;  %1184 = vmatpush1.bf16.msra.mxu1 %v2324_v25 }
  0x70   : > { %1144 = vmatprep.subr.bf16.mxu0 %v2339_v26  ;;  %1185 = vmatprep.subr.bf16.mxu1 %v2341_v27 }
  0x73   : > { %1145 = vmatpush1.bf16.msra.mxu0 %v2338_v30  ;;  %1186 = vmatpush1.bf16.msra.mxu1 %v2340_v31 }
  0x74   : > { %2370 = vmatprep.subr.msk.bf16.mxu0 %vm839_vm0, %v2355_v32  ;;  %2372 = vmatprep.subr.msk.bf16.mxu1 %vm839_vm0, %v2357_v34 }
  0x77   : > { %1147 = vmatpush1.bf16.msra.mxu0 %v877_v36  ;;  %1188 = vmatpush1.bf16.msra.mxu1 %v883_v37 }
  0x7a   : > { %2371 = vmatmul.mubr.msk.bf16.vlgmr.msra.gmra.mrb[12].mxu0 %vm835_vm1, %v2614_v3  ;;  %2373 = vmatmul.mubr.msk.bf16.vlgmr.msra.gmra.mrb[12].mxu1 %vm835_vm1, %v2614_v3 }
  0xf9   : > { %v2861_v38 = vpop.f32.mrb[0].mxu0  ;;  %v2863_v39 = vpop.f32.mrb[0].mxu1 }
  0xfa   : > { %v2865_v40 = vpop.f32.mrb[1].mxu0  ;;  %v2867_v41 = vpop.f32.mrb[1].mxu1 }
  0xfb   : > { %v926_v42 = vpop.f32.mrb[2].mxu0  ;;  %v967_v43 = vpop.f32.mrb[2].mxu1 }
  0xfc   : > { %v927_v44 = vpop.f32.mrb[3].mxu0  ;;  %v968_v45 = vpop.f32.mrb[3].mxu1 }
 0x115   : > { %v2869_v46 = vpop.f32.mrb[4].mxu0  ;;  %v2871_v47 = vpop.f32.mrb[4].mxu1 }
 0x116   : > { %v2873_v48 = vpop.f32.mrb[5].mxu0  ;;  %v2875_v3 = vpop.f32.mrb[5].mxu1 }
 0x117   : > { %v1008_v49 = vpop.f32.mrb[6].mxu0  ;;  %v1049_v50 = vpop.f32.mrb[6].mxu1 }
 0x118   : > { %v1009_v51 = vpop.f32.mrb[7].mxu0  ;;  %v1050_v52 = vpop.f32.mrb[7].mxu1 }
 0x131   : > { %v2877_v53 = vpop.f32.mrb[8].mxu0  ;;  %v2879_v54 = vpop.f32.mrb[8].mxu1 }
 0x132   : > { %v2881_v55 = vpop.f32.mrb[9].mxu0  ;;  %v2883_v56 = vpop.f32.mrb[9].mxu1 }
 0x133   : > { %v1090_v57 = vpop.f32.mrb[10].mxu0  ;;  %v1131_v58 = vpop.f32.mrb[10].mxu1 }
 0x134   : > { %v1091_v59 = vpop.f32.mrb[11].mxu0  ;;  %v1132_v60 = vpop.f32.mrb[11].mxu1 }
 0x14a   : > { %1221 = sbr.rel (!%p1216_p4) target bundleno = 337 (0x151), region = 40 }
 0x14d   : > { %v2885_v61 = vpop.f32.mrb[12].mxu0  ;;  %v2887_v62 = vpop.f32.mrb[12].mxu1 }
 0x14e   : > { %v2889_v63 = vpop.f32.mrb[13].mxu0  ;;  %v2891_v0 = vpop.f32.mrb[13].mxu1 }
 0x14f   : > { %v1172_v1 = vpop.f32.mrb[14].mxu0  ;;  %v1213_v2 = vpop.f32.mrb[14].mxu1 }
 0x150   : > { %v1173_v4 = vpop.f32.mrb[15].mxu0  ;;  %v1214_v5 = vpop.f32.mrb[15].mxu1 }
 0x151 PF: > { %p2375_p5 = scmp.ne.s32.totalorder %s2443_s15, 0 }
 0x152   : > { %v1231_v7 = vsel (!%p2375_p5), %vm839_vm0, %v2861_v38, 0.0  ;;  %v1238_v9 = vsel (!%p2375_p5), %vm839_vm0, %v2865_v40, 0.0  ;;  %v1245_v10 = vsel (!%p2375_p5), %vm839_vm0, %v2863_v39, 0.0  ;;  %v1252_v11 = vsel (!%p2375_p5), %vm839_vm0, %v2867_v41, 0.0 }
 0x153   : > { %1228 = sbr.rel (%p2375_p5) target bundleno = 427 (0x1ab), region = 44  ;;  %v1232_v12 = vrot.slane (!%p2375_p5), %v1231_v7, 4  ;;  %v1239_v13 = vrot.slane (!%p2375_p5), %v1238_v9, 4  ;;  %v1246_v14 = vrot.slane (!%p2375_p5), %v1245_v10, 4  ;;  %v1253_v8 = vrot.slane (!%p2375_p5), %v1252_v11, 4 }
 0x154   : > { %v1259_v15 = vsel (!%p2375_p5), %vm839_vm0, %v2869_v46, 0.0  ;;  %v1266_v16 = vsel (!%p2375_p5), %vm839_vm0, %v2873_v48, 0.0  ;;  %v1273_v17 = vsel (!%p2375_p5), %vm839_vm0, %v2871_v47, 0.0  ;;  %v1280_v18 = vsel (!%p2375_p5), %vm839_vm0, %v2875_v3, 0.0 }
 0x155   : > { %v1233_v19 = vadd.f32 (!%p2375_p5), %v1232_v12, %v1231_v7  ;;  %v1240_v20 = vadd.f32 (!%p2375_p5), %v1239_v13, %v1238_v9  ;;  %v1247_v21 = vadd.f32 (!%p2375_p5), %v1246_v14, %v1245_v10  ;;  %v1254_v22 = vadd.f32 (!%p2375_p5), %v1253_v8, %v1252_v11 }
 0x156   : > { %v1260_v23 = vrot.slane (!%p2375_p5), %v1259_v15, 4  ;;  %v1267_v24 = vrot.slane (!%p2375_p5), %v1266_v16, 4  ;;  %v1274_v25 = vrot.slane (!%p2375_p5), %v1273_v17, 4  ;;  %v1281_v26 = vrot.slane (!%p2375_p5), %v1280_v18, 4 }
 0x157   : > { %v1234_v27 = vrot.slane (!%p2375_p5), %v1233_v19, 2  ;;  %v1241_v28 = vrot.slane (!%p2375_p5), %v1240_v20, 2  ;;  %v1248_v29 = vrot.slane (!%p2375_p5), %v1247_v21, 2  ;;  %v1255_v30 = vrot.slane (!%p2375_p5), %v1254_v22, 2 }
 0x158   : > { %v1261_v31 = vadd.f32 (!%p2375_p5), %v1260_v23, %v1259_v15  ;;  %v1268_v32 = vadd.f32 (!%p2375_p5), %v1267_v24, %v1266_v16  ;;  %v1275_v33 = vadd.f32 (!%p2375_p5), %v1274_v25, %v1273_v17  ;;  %v1282_v34 = vadd.f32 (!%p2375_p5), %v1281_v26, %v1280_v18 }
 0x159   : > { %v1235_v35 = vadd.f32 (!%p2375_p5), %v1234_v27, %v1233_v19  ;;  %v1242_v36 = vadd.f32 (!%p2375_p5), %v1241_v28, %v1240_v20  ;;  %v1249_v37 = vadd.f32 (!%p2375_p5), %v1248_v29, %v1247_v21  ;;  %v1256_v42 = vadd.f32 (!%p2375_p5), %v1255_v30, %v1254_v22 }
 0x15a   : > { %v1262_v43 = vrot.slane %v1261_v31, 2  ;;  %v1269_v44 = vrot.slane %v1268_v32, 2  ;;  %v1276_v45 = vrot.slane %v1275_v33, 2  ;;  %v1283_v49 = vrot.slane %v1282_v34, 2 }
 0x15b   : > { %v1236_v50 = vrot.slane %v1235_v35, 1  ;;  %v1243_v51 = vrot.slane %v1242_v36, 1  ;;  %v1250_v52 = vrot.slane %v1249_v37, 1  ;;  %v1257_v57 = vrot.slane %v1256_v42, 1 }
 0x15c   : > { %v1263_v58 = vadd.f32 %v1262_v43, %v1261_v31  ;;  %v1270_v59 = vadd.f32 %v1269_v44, %v1268_v32  ;;  %v1277_v60 = vadd.f32 %v1276_v45, %v1275_v33  ;;  %v1284_v1 = vadd.f32 %v1283_v49, %v1282_v34 }
 0x15d   : > { %v2912_v2 = vadd.f32 %v1236_v50, %v1235_v35  ;;  %v2914_v4 = vadd.f32 %v1243_v51, %v1242_v36  ;;  %v2916_v5 = vadd.f32 %v1250_v52, %v1249_v37  ;;  %v2918_v6 = vadd.f32 %v1257_v57, %v1256_v42 }
 0x15e   : > { %v1264_v7 = vrot.slane %v1263_v58, 1  ;;  %v1271_v9 = vrot.slane %v1270_v59, 1  ;;  %v1278_v10 = vrot.slane %v1277_v60, 1  ;;  %v1285_v11 = vrot.slane %v1284_v1, 1 }
 0x15f   : > { %v1287_v12 = vsel %vm839_vm0, %v2877_v53, 0.0  ;;  %v1294_v13 = vsel %vm839_vm0, %v2881_v55, 0.0  ;;  %v1301_v14 = vsel %vm839_vm0, %v2879_v54, 0.0  ;;  %v1308_v8 = vsel %vm839_vm0, %v2883_v56, 0.0 }
 0x160   : > { %v2928_v15 = vadd.f32 %v1264_v7, %v1263_v58  ;;  %v2930_v16 = vadd.f32 %v1271_v9, %v1270_v59  ;;  %v2932_v17 = vadd.f32 %v1278_v10, %v1277_v60  ;;  %v2934_v18 = vadd.f32 %v1285_v11, %v1284_v1 }
 0x161   : > { %v1288_v19 = vrot.slane %v1287_v12, 4  ;;  %v1295_v20 = vrot.slane %v1294_v13, 4  ;;  %v1302_v21 = vrot.slane %v1301_v14, 4  ;;  %v1309_v22 = vrot.slane %v1308_v8, 4 }
 0x162   : > { %v1315_v23 = vsel %vm839_vm0, %v2885_v61, 0.0  ;;  %v1322_v24 = vsel %vm839_vm0, %v2889_v63, 0.0  ;;  %v1329_v25 = vsel %vm839_vm0, %v2887_v62, 0.0  ;;  %v1336_v26 = vsel %vm839_vm0, %v2891_v0, 0.0 }
 0x163   : > { %v1289_v27 = vadd.f32 %v1288_v19, %v1287_v12  ;;  %v1296_v28 = vadd.f32 %v1295_v20, %v1294_v13  ;;  %v1303_v29 = vadd.f32 %v1302_v21, %v1301_v14  ;;  %v1310_v30 = vadd.f32 %v1309_v22, %v1308_v8 }
 0x164   : > { %v1316_v31 = vrot.slane %v1315_v23, 4  ;;  %v1323_v32 = vrot.slane %v1322_v24, 4  ;;  %v1330_v33 = vrot.slane %v1329_v25, 4  ;;  %v1337_v34 = vrot.slane %v1336_v26, 4 }
 0x165   : > { %v1290_v35 = vrot.slane %v1289_v27, 2  ;;  %v1297_v36 = vrot.slane %v1296_v28, 2  ;;  %v1304_v37 = vrot.slane %v1303_v29, 2  ;;  %v1311_v42 = vrot.slane %v1310_v30, 2 }
 0x166   : > { %v1317_v43 = vadd.f32 %v1316_v31, %v1315_v23  ;;  %v1324_v44 = vadd.f32 %v1323_v32, %v1322_v24  ;;  %v1331_v45 = vadd.f32 %v1330_v33, %v1329_v25  ;;  %v1338_v49 = vadd.f32 %v1337_v34, %v1336_v26 }
 0x167   : > { %v1291_v50 = vadd.f32 %v1290_v35, %v1289_v27  ;;  %v1298_v51 = vadd.f32 %v1297_v36, %v1296_v28  ;;  %v1305_v52 = vadd.f32 %v1304_v37, %v1303_v29  ;;  %v1312_v57 = vadd.f32 %v1311_v42, %v1310_v30 }
 0x168   : > { %v1318_v58 = vrot.slane %v1317_v43, 2  ;;  %v1325_v59 = vrot.slane %v1324_v44, 2  ;;  %v1332_v60 = vrot.slane %v1331_v45, 2  ;;  %v1339_v1 = vrot.slane %v1338_v49, 2 }
 0x169   : > { %v1292_v7 = vrot.slane %v1291_v50, 1  ;;  %v1299_v9 = vrot.slane %v1298_v51, 1  ;;  %v1306_v10 = vrot.slane %v1305_v52, 1  ;;  %v1313_v11 = vrot.slane %v1312_v57, 1 }
 0x16a   : > { %v1319_v12 = vadd.f32 %v1318_v58, %v1317_v43  ;;  %v1326_v13 = vadd.f32 %v1325_v59, %v1324_v44  ;;  %v1333_v14 = vadd.f32 %v1332_v60, %v1331_v45  ;;  %v1340_v8 = vadd.f32 %v1339_v1, %v1338_v49 }
 0x16b   : > { %v1293_v19 = vadd.f32 %v1292_v7, %v1291_v50  ;;  %v1300_v20 = vadd.f32 %v1299_v9, %v1298_v51  ;;  %v1307_v21 = vadd.f32 %v1306_v10, %v1305_v52  ;;  %v1314_v22 = vadd.f32 %v1313_v11, %v1312_v57 }
 0x16c   : > { %v1320_v23 = vrot.slane %v1319_v12, 1  ;;  %v1327_v24 = vrot.slane %v1326_v13, 1  ;;  %v1334_v25 = vrot.slane %v1333_v14, 1  ;;  %v1341_v26 = vrot.slane %v1340_v8, 1 }
 0x16d   : > { %v1359_v27 = vcombine.low %v2912_v2, %v2914_v4  ;;  %v1360_v28 = vcombine.low %v2916_v5, %v2918_v6  ;;  %v1361_v29 = vcombine.low %v2928_v15, %v2930_v16  ;;  %v1362_v30 = vcombine.low %v2932_v17, %v2934_v18 }
 0x16e   : > { %v1321_v31 = vadd.f32 %v1320_v23, %v1319_v12  ;;  %v1328_v32 = vadd.f32 %v1327_v24, %v1326_v13  ;;  %v1335_v33 = vadd.f32 %v1334_v25, %v1333_v14  ;;  %v1342_v34 = vadd.f32 %v1341_v26, %v1340_v8 }
 0x16f   : > { %v1366_v35 = vlaneseq  ;;  %v1408_v36 = vcombine.low %v1293_v19, %v1300_v20  ;;  %v1409_v37 = vcombine.low %v1307_v21, %v1314_v22  ;;  %v2455_v42 = vmov 1966171168  }
 0x170   : > { %v1364_v43 = vunpack.c.l.s4 %v2455_v42  ;;  %v1410_v44 = vcombine.low %v1321_v31, %v1328_v32  ;;  %v1411_v2 = vcombine.low %v1335_v33, %v1342_v34  ;;  %v1465_v4 = vmul.f32 %v2861_v38, %v2861_v38 }
 0x171   : > { %v1367_v5 = vshrl.u32 %v1366_v35, 7  ;;  %v1466_v6 = vmul.f32 %v2865_v40, %v2865_v40  ;;  %v1467_v15 = vmul.f32 %v2863_v39, %v2863_v39  ;;  %v1468_v16 = vmul.f32 %v2867_v41, %v2867_v41  ;;  %v1229_v35 = vld [vmem:[#allocation2] sm:$0xff] }
 0x172   : > { %v1365_v17 = vunpack.c.0.s8 %v1364_v43  ;;  %v1469_v18 = vmul.f32 %v2869_v46, %v2869_v46  ;;  %v1470_v45 = vmul.f32 %v2873_v48, %v2873_v48  ;;  %v1471_v49 = vmul.f32 %v2871_v47, %v2871_v47 }
 0x173   : > { %v2968_v50 = vmul.f32 %v2875_v3, %v2875_v3  ;;  %v2972_v51 = vmul.f32 %v2877_v53, %v2877_v53  ;;  %v2976_v52 = vmul.f32 %v2881_v55, %v2881_v55  ;;  %v2980_v57 = vmul.f32 %v2879_v54, %v2879_v54 }
 0x174   : > { %v2982_v58 = vsub.s32 %v1365_v17, %v1367_v5  ;;  %v2986_v59 = vmul.f32 %v2883_v56, %v2883_v56  ;;  %v2990_v60 = vmul.f32 %v2885_v61, %v2885_v61  ;;  %v2994_v1 = vmul.f32 %v2889_v63, %v2889_v63 }
 0x175   : > { %v2998_v7 = vmul.f32 %v2887_v62, %v2887_v62  ;;  %v3002_v9 = vmul.f32 %v2891_v0, %v2891_v0  ;;  %v1481_v10 = vsel %vm839_vm0, %v1465_v4, 0.0  ;;  %v1488_v11 = vsel %vm839_vm0, %v1466_v6, 0.0 }
 0x176   : > { %v1369_v12 = vrot.slane %v1359_v27, %v2982_v58  ;;  %v1376_v13 = vrot.slane %v1360_v28, %v2982_v58  ;;  %v1383_v14 = vrot.slane %v1361_v29, %v2982_v58  ;;  %v1390_v8 = vrot.slane %v1362_v30, %v2982_v58 }
 0x177   : > { %v1418_v19 = vrot.slane %v1408_v36, %v2982_v58  ;;  %v1425_v20 = vrot.slane %v1409_v37, %v2982_v58  ;;  %v1432_v21 = vrot.slane %v1410_v44, %v2982_v58  ;;  %v1439_v22 = vrot.slane %v1411_v2, %v2982_v58  ;;  %v1230_v44 = vld [vmem:[#allocation2 + $0x8] sm:$0xff] }
 0x178   : > { %v1391_v23 = vcombine.low %v1369_v12, %v1376_v13  ;;  %v1392_v24 = vcombine.low %v1383_v14, %v1390_v8  ;;  %v1482_v25 = vrot.slane %v1481_v10, 4  ;;  %v1489_v26 = vrot.slane %v1488_v11, 4 }
 0x179   : > { %v1440_v31 = vcombine.low %v1418_v19, %v1425_v20  ;;  %v1441_v27 = vcombine.low %v1432_v21, %v1439_v22  ;;  %v1495_v28 = vsel %vm839_vm0, %v1467_v15, 0.0  ;;  %v1502_v29 = vsel %vm839_vm0, %v1468_v16, 0.0 }
 0x17a   : > { %v1399_v30 = vrot.slane %v1391_v23, %v2982_v58  ;;  %v1406_v32 = vrot.slane %v1392_v24, %v2982_v58  ;;  %v1483_v33 = vadd.f32 %v1482_v25, %v1481_v10  ;;  %v1490_v34 = vadd.f32 %v1489_v26, %v1488_v11 }
 0x17b   : > { %v1448_v36 = vrot.slane %v1440_v31, %v2982_v58  ;;  %v1455_v37 = vrot.slane %v1441_v27, %v2982_v58  ;;  %v1496_v42 = vrot.slane %v1495_v28, 4  ;;  %v1503_v43 = vrot.slane %v1502_v29, 4 }
 0x17c   : > { %v1407_v2 = vcombine.low %v1399_v30, %v1406_v32  ;;  %v1484_v4 = vrot.slane %v1483_v33, 2  ;;  %v1491_v5 = vrot.slane %v1490_v34, 2  ;;  %v1509_v6 = vsel %vm839_vm0, %v1469_v18, 0.0 }
 0x17d   : > { %v1456_v15 = vcombine.low %v1448_v36, %v1455_v37  ;;  %v1497_v16 = vadd.f32 %v1496_v42, %v1495_v28  ;;  %v1504_v17 = vadd.f32 %v1503_v43, %v1502_v29  ;;  %v1510_v12 = vrot.slane %v1509_v6, 4 }
 0x17e   : > { %v1459_v13 = vadd.f32 %v1407_v2, %v1229_v35  ;;  %v1485_v10 = vadd.f32 %v1484_v4, %v1483_v33  ;;  %v1492_v11 = vadd.f32 %v1491_v5, %v1490_v34  ;;  %v1516_v14 = vsel %vm839_vm0, %v1470_v45, 0.0 }
 0x17f   : > { %v1460_v8 = vadd.f32 %v1456_v15, %v1230_v44  ;;  %v1498_v19 = vrot.slane %v1497_v16, 2  ;;  %v1505_v20 = vrot.slane %v1504_v17, 2  ;;  %v1511_v21 = vadd.f32 %v1510_v12, %v1509_v6 }
 0x180   : > { %1461 = vst [vmem:[#allocation2] sm:$0xff] %v1459_v13  ;;  %v1486_v22 = vrot.slane %v1485_v10, 1  ;;  %v1493_v23 = vrot.slane %v1492_v11, 1  ;;  %v1517_v24 = vrot.slane %v1516_v14, 4  ;;  %v1523_v25 = vsel %vm839_vm0, %v1471_v49, 0.0 }
 0x181   : > { %1462 = vst [vmem:[#allocation2 + $0x8] sm:$0xff] %v1460_v8  ;;  %v1499_v18 = vadd.f32 %v1498_v19, %v1497_v16  ;;  %v1506_v26 = vadd.f32 %v1505_v20, %v1504_v17  ;;  %v1512_v31 = vrot.slane %v1511_v21, 2  ;;  %v1524_v27 = vrot.slane %v1523_v25, 4 }
 0x182   : > { %v3023_v28 = vadd.f32 %v1486_v22, %v1485_v10  ;;  %v3025_v29 = vadd.f32 %v1493_v23, %v1492_v11  ;;  %v1518_v45 = vadd.f32 %v1517_v24, %v1516_v14  ;;  %v1530_v30 = vsel %vm839_vm0, %v2968_v50, 0.0 }
 0x183   : > { %v1500_v32 = vrot.slane %v1499_v18, 1  ;;  %v1507_v33 = vrot.slane %v1506_v26, 1  ;;  %v1513_v34 = vadd.f32 %v1512_v31, %v1511_v21  ;;  %v1525_v35 = vadd.f32 %v1524_v27, %v1523_v25 }
 0x184   : > { %v1519_v36 = vrot.slane %v1518_v45, 2  ;;  %v1531_v37 = vrot.slane %v1530_v30, 4  ;;  %v1537_v49 = vsel %vm839_vm0, %v2972_v51, 0.0  ;;  %v1544_v42 = vsel %vm839_vm0, %v2976_v52, 0.0 }
 0x185   : > { %v3033_v43 = vadd.f32 %v1500_v32, %v1499_v18  ;;  %v3035_v44 = vadd.f32 %v1507_v33, %v1506_v26  ;;  %v1514_v2 = vrot.slane %v1513_v34, 1  ;;  %v1526_v4 = vrot.slane %v1525_v35, 2 }
 0x186   : > { %v1520_v5 = vadd.f32 %v1519_v36, %v1518_v45  ;;  %v1532_v50 = vadd.f32 %v1531_v37, %v1530_v30  ;;  %v1538_v6 = vrot.slane %v1537_v49, 4  ;;  %v1545_v15 = vrot.slane %v1544_v42, 4 }
 0x187   : > { %v3037_v16 = vadd.f32 %v1514_v2, %v1513_v34  ;;  %v1527_v17 = vadd.f32 %v1526_v4, %v1525_v35  ;;  %v1551_v12 = vsel %vm839_vm0, %v2980_v57, 0.0  ;;  %v1558_v51 = vsel %vm839_vm0, %v2986_v59, 0.0 }
 0x188   : > { %v1521_v52 = vrot.slane %v1520_v5, 1  ;;  %v1533_v13 = vrot.slane %v1532_v50, 2  ;;  %v1539_v10 = vadd.f32 %v1538_v6, %v1537_v49  ;;  %v1546_v11 = vadd.f32 %v1545_v15, %v1544_v42 }
 0x189   : > { %v1528_v14 = vrot.slane %v1527_v17, 1  ;;  %v1552_v8 = vrot.slane %v1551_v12, 4  ;;  %v1559_v19 = vrot.slane %v1558_v51, 4  ;;  %v1565_v20 = vsel %vm839_vm0, %v2990_v60, 0.0 }
 0x18a   : > { %v1522_v21 = vadd.f32 %v1521_v52, %v1520_v5  ;;  %v1534_v22 = vadd.f32 %v1533_v13, %v1532_v50  ;;  %v1540_v23 = vrot.slane %v1539_v10, 2  ;;  %v1547_v24 = vrot.slane %v1546_v11, 2 }
 0x18b   : > { %v1529_v25 = vadd.f32 %v1528_v14, %v1527_v17  ;;  %v1553_v18 = vadd.f32 %v1552_v8, %v1551_v12  ;;  %v1560_v57 = vadd.f32 %v1559_v19, %v1558_v51  ;;  %v1566_v26 = vrot.slane %v1565_v20, 4 }
 0x18c   : > { %v1535_v31 = vrot.slane %v1534_v22, 1  ;;  %v1541_v59 = vadd.f32 %v1540_v23, %v1539_v10  ;;  %v1548_v27 = vadd.f32 %v1547_v24, %v1546_v11  ;;  %v1572_v45 = vsel %vm839_vm0, %v2994_v1, 0.0 }
 0x18d   : > { %v1554_v30 = vrot.slane %v1553_v18, 2  ;;  %v1561_v32 = vrot.slane %v1560_v57, 2  ;;  %v1567_v33 = vadd.f32 %v1566_v26, %v1565_v20  ;;  %v1573_v34 = vrot.slane %v1572_v45, 4 }
 0x18e   : > { %v1536_v35 = vadd.f32 %v1535_v31, %v1534_v22  ;;  %v1542_v60 = vrot.slane %v1541_v59, 1  ;;  %v1549_v36 = vrot.slane %v1548_v27, 1  ;;  %v1579_v37 = vsel %vm839_vm0, %v2998_v7, 0.0 }
 0x18f   : > { %v1555_v49 = vadd.f32 %v1554_v30, %v1553_v18  ;;  %v1562_v42 = vadd.f32 %v1561_v32, %v1560_v57  ;;  %v1568_v2 = vrot.slane %v1567_v33, 2  ;;  %v1574_v4 = vadd.f32 %v1573_v34, %v1572_v45 }
 0x190   : > { %v1543_v5 = vadd.f32 %v1542_v60, %v1541_v59  ;;  %v1550_v50 = vadd.f32 %v1549_v36, %v1548_v27  ;;  %v1580_v6 = vrot.slane %v1579_v37, 4  ;;  %v1586_v1 = vsel %vm839_vm0, %v3002_v9, 0.0 }
 0x191   : > { %v1556_v15 = vrot.slane %v1555_v49, 1  ;;  %v1563_v17 = vrot.slane %v1562_v42, 1  ;;  %v1569_v12 = vadd.f32 %v1568_v2, %v1567_v33  ;;  %v1575_v51 = vrot.slane %v1574_v4, 2 }
 0x192   : > { %v1581_v52 = vadd.f32 %v1580_v6, %v1579_v37  ;;  %v1587_v13 = vrot.slane %v1586_v1, 4  ;;  %v1609_v10 = vcombine.low %v3023_v28, %v3025_v29  ;;  %v1610_v7 = vcombine.low %v3033_v43, %v3035_v44  ;;  %v1463_v37 = vld [vmem:[#allocation3] sm:$0xff] }
 0x193   : > { %v1557_v11 = vadd.f32 %v1556_v15, %v1555_v49  ;;  %v1564_v14 = vadd.f32 %v1563_v17, %v1562_v42  ;;  %v1570_v8 = vrot.slane %v1569_v12, 1  ;;  %v1576_v19 = vadd.f32 %v1575_v51, %v1574_v4 }
 0x194   : > { %v1582_v20 = vrot.slane %v1581_v52, 2  ;;  %v1588_v22 = vadd.f32 %v1587_v13, %v1586_v1  ;;  %v1611_v9 = vcombine.low %v3037_v16, %v1522_v21  ;;  %v1612_v23 = vcombine.low %v1529_v25, %v1536_v35 }
 0x195   : > { %v1571_v24 = vadd.f32 %v1570_v8, %v1569_v12  ;;  %v1577_v18 = vrot.slane %v1576_v19, 1  ;;  %v1619_v57 = vrot.slane %v1609_v10, %v2982_v58  ;;  %v1626_v26 = vrot.slane %v1610_v7, %v2982_v58  ;;  %v1464_v12 = vld [vmem:[#allocation3 + $0x8] sm:$0xff] }
 0x196   : > { %v1583_v31 = vadd.f32 %v1582_v20, %v1581_v52  ;;  %v1589_v28 = vrot.slane %v1588_v22, 2  ;;  %v1633_v29 = vrot.slane %v1611_v9, %v2982_v58  ;;  %v1640_v43 = vrot.slane %v1612_v23, %v2982_v58 }
 0x197   : > { %v1578_v44 = vadd.f32 %v1577_v18, %v1576_v19  ;;  %v1641_v59 = vcombine.low %v1619_v57, %v1626_v26  ;;  %v1658_v27 = vcombine.low %v1543_v5, %v1550_v50  ;;  %v1659_v45 = vcombine.low %v1557_v11, %v1564_v14 }
 0x198   : > { %v1584_v30 = vrot.slane %v1583_v31, 1  ;;  %v1590_v32 = vadd.f32 %v1589_v28, %v1588_v22  ;;  %v1642_v16 = vcombine.low %v1633_v29, %v1640_v43 }
 0x199   : > { %v1649_v21 = vrot.slane %v1641_v59, %v2982_v58  ;;  %v1660_v25 = vcombine.low %v1571_v24, %v1578_v44  ;;  %v1668_v33 = vrot.slane %v1658_v27, %v2982_v58  ;;  %v1675_v36 = vrot.slane %v1659_v45, %v2982_v58 }
 0x19a   : > { %v1585_v34 = vadd.f32 %v1584_v30, %v1583_v31  ;;  %v1591_v35 = vrot.slane %v1590_v32, 1  ;;  %v1656_v60 = vrot.slane %v1642_v16, %v2982_v58 }
 0x19b   : > { %v1682_v4 = vrot.slane %v1660_v25, %v2982_v58  ;;  %v1690_v5 = vcombine.low %v1668_v33, %v1675_v36 }
 0x19c   : > { %v1592_v49 = vadd.f32 %v1591_v35, %v1590_v32  ;;  %v1657_v42 = vcombine.low %v1649_v21, %v1656_v60 }
 0x19d   : > { %v1698_v15 = vrot.slane %v1690_v5, %v2982_v58 }
 0x19e   : > { %v1661_v2 = vcombine.low %v1585_v34, %v1592_v49  ;;  %v1709_v50 = vadd.f32 %v1657_v42, %v1463_v37 }
 0x1a0   : > { %v1689_v6 = vrot.slane %v1661_v2, %v2982_v58  ;;  %1711 = vst [vmem:[#allocation3] sm:$0xff] %v1709_v50 }
 0x1a2   : > { %v1691_v1 = vcombine.low %v1682_v4, %v1689_v6 }
 0x1a4   : > { %v1705_v17 = vrot.slane %v1691_v1, %v2982_v58 }
 0x1a6   : > { %v1706_v51 = vcombine.low %v1698_v15, %v1705_v17 }
 0x1a8   : > { %v1710_v52 = vadd.f32 %v1706_v51, %v1464_v12 }
 0x1aa   : > { %1712 = vst [vmem:[#allocation3 + $0x8] sm:$0xff] %v1710_v52 }
 0x1ab PF: > { %1714 = sbr.rel (!%p1216_p4) target bundleno = 496 (0x1f0), region = 48  ;;  %v1715_v13 = vld [vmem:[#allocation2] sm:$0xff] (%p1216_p4)  ;;  %v1717_v10 = vld [vmem:[#allocation3] sm:$0xff] (%p1216_p4)  ;;  %v1716_v16 = vld [vmem:[#allocation2 + $0x8] sm:$0xff] (%p1216_p4) }
 0x1ac   : > { %v1720_v7 = vrot.slane (%p1216_p4), %v1715_v13, 1  ;;  %v1724_v11 = vrot.slane (%p1216_p4), %v1717_v10, 1  ;;  %v1727_v14 = vrot.slane (%p1216_p4), %v1715_v13, 2  ;;  %v1730_v8 = vrot.slane (%p1216_p4), %v1717_v10, 2 }
 0x1ad   : > { %v1733_v22 = vrot.slane (%p1216_p4), %v1715_v13, 3  ;;  %v1736_v9 = vrot.slane (%p1216_p4), %v1717_v10, 3  ;;  %v1739_v24 = vrot.slane (%p1216_p4), %v1715_v13, 4  ;;  %v1742_v18 = vrot.slane (%p1216_p4), %v1717_v10, 4 }
 0x1ae   : > { %v1722_v19 = vadd.f32 (%p1216_p4), %v1720_v7, %v1715_v13  ;;  %v1726_v20 = vadd.f32 (%p1216_p4), %v1724_v11, %v1717_v10  ;;  %v1745_v31 = vrot.slane (%p1216_p4), %v1715_v13, 5  ;;  %v1748_v28 = vrot.slane (%p1216_p4), %v1717_v10, 5 }
 0x1af   : > { %v1751_v44 = vrot.slane (%p1216_p4), %v1715_v13, 6  ;;  %v1754_v59 = vrot.slane (%p1216_p4), %v1717_v10, 6  ;;  %v1757_v30 = vrot.slane (%p1216_p4), %v1715_v13, 7  ;;  %v1760_v32 = vrot.slane (%p1216_p4), %v1717_v10, 7 }
 0x1b0   : > { %v1729_v23 = vadd.f32 (%p1216_p4), %v1727_v14, %v1722_v19  ;;  %v1732_v58 = vadd.f32 (%p1216_p4), %v1730_v8, %v1726_v20  ;;  %v1766_v60 = vrot.slane (%p1216_p4), %v1716_v16, 1  ;;  %v1773_v42 = vrot.slane (%p1216_p4), %v1716_v16, 2 }
 0x1b1   : > { %v1718_v21 = vld [vmem:[#allocation3 + $0x8] sm:$0xff] (%p1216_p4)  ;;  %v1779_v50 = vrot.slane (%p1216_p4), %v1716_v16, 3  ;;  %v1785_v17 = vrot.slane (%p1216_p4), %v1716_v16, 4  ;;  %v1791_v13 = vrot.slane (%p1216_p4), %v1716_v16, 5  ;;  %v1797_v14 = vrot.slane (%p1216_p4), %v1716_v16, 6 }
 0x1b2   : > { %v1735_v57 = vadd.f32 %v1733_v22, %v1729_v23  ;;  %v1738_v26 = vadd.f32 %v1736_v9, %v1732_v58  ;;  %v1770_v36 = vrot.slane %v1718_v21, 1  ;;  %v1776_v2 = vrot.slane %v1718_v21, 2 }
 0x1b3   : > { %v1782_v6 = vrot.slane %v1718_v21, 3  ;;  %v1788_v12 = vrot.slane %v1718_v21, 4  ;;  %v1794_v10 = vrot.slane %v1718_v21, 5  ;;  %v1800_v8 = vrot.slane %v1718_v21, 6 }
 0x1b4   : > { %v1741_v29 = vadd.f32 %v1739_v24, %v1735_v57  ;;  %v1744_v43 = vadd.f32 %v1742_v18, %v1738_v26  ;;  %v1803_v22 = vrot.slane %v1716_v16, 7  ;;  %v1806_v9 = vrot.slane %v1718_v21, 7 }
 0x1b6   : > { %v1747_v27 = vadd.f32 %v1745_v31, %v1741_v29  ;;  %v1750_v45 = vadd.f32 %v1748_v28, %v1744_v43  ;;  %v2456_v43 = vmov 1966171168  }
 0x1b8   : > { %v1753_v25 = vadd.f32 %v1751_v44, %v1747_v27  ;;  %v1756_v33 = vadd.f32 %v1754_v59, %v1750_v45  ;;  %v1823_v44 = vunpack.c.l.s4 %v2456_v43  ;;  %v1825_v59 = vlaneseq }
 0x1ba   : > { %v1759_v34 = vadd.f32 %v1757_v30, %v1753_v25  ;;  %v1762_v35 = vadd.f32 %v1760_v32, %v1756_v33  ;;  %v1824_v27 = vunpack.c.0.s8 %v1823_v44  ;;  %v1826_v45 = vshrl.u32 %v1825_v59, 7  ;;  %v1815_v30 = vld [vmem:[%s3174_s2] sm:$0x1] }
 0x1bb   : > { %v1817_v25 = vld [vmem:[%s3175_s3] sm:$0x1] }
 0x1bc   : > { %v1763_v37 = vadd.f32 %v1759_v34, %v1716_v16  ;;  %v1764_v49 = vadd.f32 %v1762_v35, %v1718_v21  ;;  %v1827_v21 = vsub.s32 %v1824_v27, %v1826_v45 }
 0x1be   : > { %v1768_v4 = vadd.f32 %v1766_v60, %v1763_v37  ;;  %v1772_v5 = vadd.f32 %v1770_v36, %v1764_v49 }
 0x1c0   : > { %v1775_v1 = vadd.f32 %v1773_v42, %v1768_v4  ;;  %v1778_v15 = vadd.f32 %v1776_v2, %v1772_v5 }
 0x1c2   : > { %v1781_v51 = vadd.f32 %v1779_v50, %v1775_v1  ;;  %v1784_v52 = vadd.f32 %v1782_v6, %v1778_v15 }
 0x1c4   : > { %v1787_v7 = vadd.f32 %v1785_v17, %v1781_v51  ;;  %v1790_v11 = vadd.f32 %v1788_v12, %v1784_v52 }
 0x1c6   : > { %v1793_v19 = vadd.f32 %v1791_v13, %v1787_v7  ;;  %v1796_v20 = vadd.f32 %v1794_v10, %v1790_v11 }
 0x1c8   : > { %v1799_v23 = vadd.f32 %v1797_v14, %v1793_v19  ;;  %v1802_v58 = vadd.f32 %v1800_v8, %v1796_v20 }
 0x1ca   : > { %v1805_v24 = vadd.f32 %v1803_v22, %v1799_v23  ;;  %v1808_v18 = vadd.f32 %v1806_v9, %v1802_v58 }
 0x1cc   : > { %v1809_v57 = vmul.f32 0.03125, %v1805_v24  ;;  %v1810_v26 = vmul.f32 0.03125, %v1808_v18 }
 0x1ce   : > { %v1811_v31 = vmul.f32 %v1809_v57, %v1809_v57 }
 0x1d0   : > { %v1812_v28 = vsub.f32 %v1810_v26, %v1811_v31 }
 0x1d2   : > { %v1813_v29 = vadd.f32 1e-05, %v1812_v28 }
 0x1d4   : > { %2427 = vrsqrt.f32 %v1813_v29 }
 0x1de   : > { %v2428_v32 = vpop.eup %2427 }
 0x1df   : > { %v1816_v16 = vmul.f32 %v2428_v32, %v1815_v30 }
 0x1e1   : > { %v1821_v33 = vcombine.low %v1816_v16, %v1816_v16  ;;  %v1818_v34 = vmul.f32 %v1816_v16, %v1809_v57 }
 0x1e3   : > { %v1828_v35 = vrot.slane %v1821_v33, %v1827_v21  ;;  %v1819_v60 = vsub.f32 %v1817_v25, %v1818_v34 }
 0x1e5   : > { %v1829_v36 = vcombine.low %v1828_v35, %v1828_v35  ;;  %v1842_v37 = vcombine.low %v1819_v60, %v1819_v60 }
 0x1e7   : > { %v1836_v49 = vrot.slane %v1829_v36, %v1827_v21  ;;  %v1849_v42 = vrot.slane %v1842_v37, %v1827_v21 }
 0x1e9   : > { %v1837_v2 = vcombine.low %v1836_v49, %v1836_v49  ;;  %v1850_v4 = vcombine.low %v1849_v42, %v1849_v42 }
 0x1eb   : > { %1839 = vst [vmem:[#allocation4] sm:$0xff] %v1837_v2  ;;  %1840 = vst [vmem:[#allocation4 + $0x8] sm:$0xff] %v1837_v2  ;;  %v1857_v5 = vrot.slane %v1850_v4, %v1827_v21 }
 0x1ed   : > { %v1858_v50 = vcombine.low %v1857_v5, %v1857_v5 }
 0x1ef   : > { %1860 = vst [vmem:[#allocation5] sm:$0xff] %v1858_v50  ;;  %1861 = vst [vmem:[#allocation5 + $0x8] sm:$0xff] %v1858_v50 }
 0x1f0 PF: > { %p2376_p6 = scmp.ne.s32.totalorder %s2443_s15, 1 }
 0x1f1   : > { %v1870_v6 = vlaneseq (!%p2376_p6)  ;;  %v2457_v1 = vmov (!%p2376_p6), 1983009808  }
 0x1f2   : > { %1865 = sbr.rel (%p2376_p6) target bundleno = 537 (0x219), region = 52  ;;  %v2101_v15 = vunpack.c.l.s4 (!%p2376_p6), %v2457_v1  ;;  %v1866_v12 = vld [vmem:[#allocation4] sm:$0xff] (!%p2376_p6)  ;;  %v1867_v25 = vld [vmem:[#allocation4 + $0x8] sm:$0xff] (!%p2376_p6) }
 0x1f3   : > { %v1871_v17 = vshrl.u32 (!%p2376_p6), %v1870_v6, 7 }
 0x1f4   : > { %v2102_v51 = vunpack.c.0.s8 (!%p2376_p6), %v2101_v15 }
 0x1f5   : > { %v3077_v52 = vsub.s32 (!%p2376_p6), 0, %v1871_v17  ;;  %v3079_v13 = vsub.s32 (!%p2376_p6), 1, %v1871_v17  ;;  %v3081_v10 = vsub.s32 (!%p2376_p6), 2, %v1871_v17  ;;  %v3083_v7 = vsub.s32 (!%p2376_p6), 3, %v1871_v17 }
 0x1f6   : > { %v1966_v11 = vld [vmem:[#allocation5] sm:$0xff] (!%p2376_p6)  ;;  %v3085_v14 = vsub.s32 (!%p2376_p6), %v2102_v51, %v1871_v17  ;;  %v3087_v8 = vsub.s32 (!%p2376_p6), 4, %v1871_v17  ;;  %v3089_v19 = vsub.s32 (!%p2376_p6), 5, %v1871_v17  ;;  %v3091_v20 = vsub.s32 (!%p2376_p6), 6, %v1871_v17 }
 0x1f7   : > { %v1873_v22 = vrot.slane (!%p2376_p6), %v1866_v12, %v3077_v52  ;;  %v1877_v9 = vrot.slane (!%p2376_p6), %v1866_v12, %v3079_v13  ;;  %v1881_v23 = vrot.slane (!%p2376_p6), %v1866_v12, %v3081_v10  ;;  %v1885_v58 = vrot.slane (!%p2376_p6), %v1866_v12, %v3083_v7 }
 0x1f8   : > { %v1973_v24 = vrot.slane (!%p2376_p6), %v1966_v11, %v3077_v52  ;;  %v1977_v18 = vrot.slane (!%p2376_p6), %v1966_v11, %v3079_v13  ;;  %v1981_v57 = vrot.slane (!%p2376_p6), %v1966_v11, %v3081_v10  ;;  %v1985_v26 = vrot.slane (!%p2376_p6), %v1966_v11, %v3083_v7 }
 0x1f9   : > { %v1950_v31 = vmul.f32 %v1873_v22, %v2861_v38  ;;  %v1951_v28 = vmul.f32 %v1877_v9, %v2865_v40  ;;  %v1952_v29 = vmul.f32 %v1881_v23, %v2863_v39  ;;  %v1953_v43 = vmul.f32 %v1885_v58, %v2867_v41 }
 0x1fa   : > { %v1889_v44 = vrot.slane %v1866_v12, %v3087_v8  ;;  %v1893_v59 = vrot.slane %v1866_v12, %v3089_v19  ;;  %v1897_v27 = vrot.slane %v1866_v12, %v3091_v20  ;;  %v3108_v45 = vsub.s32 7, %v1871_v17 }
 0x1fb   : > { %v2050_v30 = vadd.f32 %v1973_v24, %v1950_v31  ;;  %v2051_v32 = vadd.f32 %v1977_v18, %v1951_v28  ;;  %v2052_v16 = vadd.f32 %v1981_v57, %v1952_v29  ;;  %v2053_v21 = vadd.f32 %v1985_v26, %v1953_v43 }
 0x1fc   : > { %v1901_v38 = vrot.slane %v1866_v12, %v3108_v45  ;;  %v1954_v40 = vmul.f32 %v1889_v44, %v2869_v46  ;;  %v1955_v39 = vmul.f32 %v1893_v59, %v2873_v48  ;;  %v1956_v41 = vmul.f32 %v1897_v27, %v2871_v47  ;;  %v1967_v12 = vld [vmem:[#allocation5 + $0x8] sm:$0xff] }
 0x1fd   : > { %v2066_v33 = vmax.f32 %v2050_v30, 0.0  ;;  %v2067_v34 = vmax.f32 %v2051_v32, 0.0  ;;  %v2068_v35 = vmax.f32 %v2052_v16, 0.0  ;;  %v2069_v60 = vmax.f32 %v2053_v21, 0.0 }
 0x1fe   : > { %v1957_v36 = vmul.f32 %v1901_v38, %v2875_v3  ;;  %v1989_v37 = vrot.slane %v1966_v11, %v3087_v8  ;;  %v1993_v49 = vrot.slane %v1966_v11, %v3089_v19  ;;  %v1997_v42 = vrot.slane %v1966_v11, %v3091_v20 }
 0x1ff   : > { %v2098_v2 = vcombine.low %v2066_v33, %v2067_v34  ;;  %v2099_v4 = vcombine.low %v2068_v35, %v2069_v60  ;;  %v2001_v46 = vrot.slane %v1966_v11, %v3108_v45  ;;  %v1905_v48 = vrot.slane %v1867_v25, %v3077_v52 }
 0x200   : > { %v2054_v47 = vadd.f32 %v1989_v37, %v1954_v40  ;;  %v2055_v5 = vadd.f32 %v1993_v49, %v1955_v39  ;;  %v2056_v50 = vadd.f32 %v1997_v42, %v1956_v41  ;;  %v1909_v6 = vrot.slane %v1867_v25, %v3079_v13 }
 0x201   : > { %v2106_v1 = vrot.slane %v2098_v2, %v3085_v14  ;;  %v2113_v3 = vrot.slane %v2099_v4, %v3085_v14  ;;  %v2057_v15 = vadd.f32 %v2001_v46, %v1957_v36  ;;  %v1913_v17 = vrot.slane %v1867_v25, %v3081_v10 }
 0x202   : > { %v2070_v51 = vmax.f32 %v2054_v47, 0.0  ;;  %v2071_v22 = vmax.f32 %v2055_v5, 0.0  ;;  %v2072_v9 = vmax.f32 %v2056_v50, 0.0  ;;  %v1917_v11 = vrot.slane %v1867_v25, %v3083_v7 }
 0x203   : > { %v2114_v23 = vcombine.low %v2106_v1, %v2113_v3  ;;  %v2073_v58 = vmax.f32 %v2057_v15, 0.0  ;;  %v1958_v24 = vmul.f32 %v1905_v48, %v2877_v53  ;;  %v1959_v18 = vmul.f32 %v1909_v6, %v2881_v55 }
 0x204   : > { %v2115_v57 = vcombine.low %v2070_v51, %v2071_v22  ;;  %v1960_v26 = vmul.f32 %v1913_v17, %v2879_v54  ;;  %v1961_v31 = vmul.f32 %v1917_v11, %v2883_v56  ;;  %v2005_v28 = vrot.slane %v1967_v12, %v3077_v52 }
 0x205   : > { %2170 = vst [vmem:[%s3176_s4] sm:$0xff] %v2114_v23  ;;  %v2116_v29 = vcombine.low %v2072_v9, %v2073_v58  ;;  %v2009_v43 = vrot.slane %v1967_v12, %v3079_v13  ;;  %v2013_v44 = vrot.slane %v1967_v12, %v3081_v10  ;;  %v2017_v53 = vrot.slane %v1967_v12, %v3083_v7 }
 0x206   : > { %v2123_v55 = vrot.slane %v2115_v57, %v3085_v14  ;;  %v2058_v59 = vadd.f32 %v2005_v28, %v1958_v24  ;;  %v1921_v54 = vrot.slane %v1867_v25, %v3087_v8  ;;  %v1925_v56 = vrot.slane %v1867_v25, %v3089_v19 }
 0x207   : > { %v2130_v52 = vrot.slane %v2116_v29, %v3085_v14  ;;  %v2059_v27 = vadd.f32 %v2009_v43, %v1959_v18  ;;  %v2060_v30 = vadd.f32 %v2013_v44, %v1960_v26  ;;  %v2061_v32 = vadd.f32 %v2017_v53, %v1961_v31 }
 0x208   : > { %v2074_v16 = vmax.f32 %v2058_v59, 0.0  ;;  %v1929_v21 = vrot.slane %v1867_v25, %v3091_v20  ;;  %v1933_v13 = vrot.slane %v1867_v25, %v3108_v45  ;;  %v1962_v10 = vmul.f32 %v1921_v54, %v2885_v61 }
 0x209   : > { %v2131_v7 = vcombine.low %v2123_v55, %v2130_v52  ;;  %v2075_v38 = vmax.f32 %v2059_v27, 0.0  ;;  %v2076_v40 = vmax.f32 %v2060_v30, 0.0  ;;  %v2077_v39 = vmax.f32 %v2061_v32, 0.0 }
 0x20a   : > { %v1963_v41 = vmul.f32 %v1925_v56, %v2889_v63  ;;  %v1964_v33 = vmul.f32 %v1929_v21, %v2887_v62  ;;  %v1965_v34 = vmul.f32 %v1933_v13, %v2891_v0  ;;  %v2021_v35 = vrot.slane %v1967_v12, %v3087_v8 }
 0x20b   : > { %2171 = vst [vmem:[%s3176_s4 + $0x8] sm:$0xff] %v2131_v7  ;;  %v2132_v60 = vcombine.low %v2074_v16, %v2075_v38  ;;  %v2133_v25 = vcombine.low %v2076_v40, %v2077_v39  ;;  %v2025_v61 = vrot.slane %v1967_v12, %v3089_v19  ;;  %v2029_v36 = vrot.slane %v1967_v12, %v3091_v20 }
 0x20c   : > { %v2033_v37 = vrot.slane %v1967_v12, %v3108_v45  ;;  %v2062_v49 = vadd.f32 %v2021_v35, %v1962_v10 }
 0x20d   : > { %v2140_v63 = vrot.slane %v2132_v60, %v3085_v14  ;;  %v2147_v62 = vrot.slane %v2133_v25, %v3085_v14  ;;  %v2063_v0 = vadd.f32 %v2025_v61, %v1963_v41  ;;  %v2064_v42 = vadd.f32 %v2029_v36, %v1964_v33 }
 0x20e   : > { %v2065_v8 = vadd.f32 %v2033_v37, %v1965_v34  ;;  %v2078_v2 = vmax.f32 %v2062_v49, 0.0 }
 0x20f   : > { %v2148_v4 = vcombine.low %v2140_v63, %v2147_v62  ;;  %v2079_v46 = vmax.f32 %v2063_v0, 0.0  ;;  %v2080_v48 = vmax.f32 %v2064_v42, 0.0 }
 0x210   : > { %v2081_v47 = vmax.f32 %v2065_v8, 0.0 }
 0x211   : > { %2172 = vst [vmem:[%s3176_s4 + $0x10] sm:$0xff] %v2148_v4  ;;  %v2149_v19 = vcombine.low %v2078_v2, %v2079_v46 }
 0x212   : > { %v2150_v20 = vcombine.low %v2080_v48, %v2081_v47 }
 0x213   : > { %v2157_v45 = vrot.slane %v2149_v19, %v3085_v14 }
 0x214   : > { %v2164_v5 = vrot.slane %v2150_v20, %v3085_v14 }
 0x216   : > { %v2165_v50 = vcombine.low %v2157_v45, %v2164_v5 }
 0x218   : > { %2173 = vst [vmem:[%s3176_s4 + $0x18] sm:$0xff] %v2165_v50 }
 0x219 PF: > { %s14_s17 = sadd.s32 1, %s2451_s17   ;;  %s3177_s15 = smov %s2447_s16 }
 0x21a   : > { %p11_p7 = scmp.ge.s32.totalorder %s14_s17, 4   ;;  %s3178_s16 = smov %s3180_s18 }
 0x21c   :  { %13 = sbr.rel (!%p11_p7) target bundleno = 2 (0x2), region = 82 }

// kernel: generator_forward.6
= control target key start
LH: loop header
LB: loop body
LE: loop exit
PB: predicated region body
PF: predicated region fallthrough
CT: control target
= control target key end

     0   :  { %s2349_s15 = smov 0   ;;  %s2351_s16 = smov 0   ;;  %s2953_s0 = inlined_call_operand.vmem [shape: bf16[32,1152], index: 0, kind: input, shape index: {}]   ;;  %s2954_s1 = inlined_call_operand.vmem [shape: bf16[1152,256], index: 1, kind: input, shape index: {}]   ;;  %s2955_s2 = inlined_call_operand.vmem [shape: f32[1,64], index: 2, kind: input, shape index: {}]   ;;  %s2956_s3 = inlined_call_operand.vmem [shape: f32[1,64], index: 3, kind: input, shape index: {}]   ;;  %s2957_s4 = inlined_call_operand.vmem [shape: f32[32,256], index: 4, kind: output, shape index: {}]  }
   0x1   :  { %s2353_s17 = smov 0  }
   0x2 LB: > { %s26_s18 = sadd.s32 1, %s2313_s16  ;;  %p1803_p0 = scmp.ge.s32.totalorder %s2317_s17, 1  ;;  %s2317_s17 = sphi %s2353_s17, %s14_s17   ;;  %s2313_s16 = sphi %s2351_s16, %s2959_s16   ;;  %s2309_s15 = sphi %s2349_s15, %s2958_s15  }
   0x3   : > { %p28_p1 = scmp.ge.s32.totalorder %s26_s18, 2  ;;  %p178_p2 = scmp.lt.s32.totalorder %s2317_s17, 3 }
   0x5   : > { %s2961_s18 = smov (%p28_p1, %s26_s18), 0  ;;  %p179_p3 = pnand %p1803_p0, %p178_p2 }
   0x6   : > { %v2051_v0 = vld [vmem:[%s2954_s1 + $0x4] ss:$8 sps:$4 sm:$0xff] (!%p179_p3)   ;;  %v2055_v2 = vld [vmem:[%s2954_s1] ss:$8 sps:$4 sm:$0xff] (!%p179_p3)   ;;  %v2057_v4 = vld [vmem:[%s2954_s1 + $0x14] ss:$8 sps:$4 sm:$0xff] (!%p179_p3)  }
   0x7   : > { %182 = sbr.rel (%p179_p3) target bundleno = 711 (0x2c7), region = 36  ;;  %v2053_v1 = vld [vmem:[%s2954_s1 + $0x204] ss:$8 sps:$4 sm:$0xff] (!%p179_p3)   ;;  %1200 = vmatprep.subr.bf16.mxu1 (!%p179_p3), %v2051_v0  ;;  %v2056_v3 = vld [vmem:[%s2954_s1 + $0x200] ss:$8 sps:$4 sm:$0xff] (!%p179_p3)   ;;  %p1465_p4 = scmp.eq.s32.totalorder (!%p179_p3), %s2309_s15, 0 }
   0x8   : > { %1306 = vmatprep.subr.bf16.mxu0 (!%p179_p3), %v2053_v1  ;;  %1201 = vmatpush1.bf16.msra.mxu1 (!%p179_p3), %v2055_v2  ;;  %v2059_v5 = vld [vmem:[%s2954_s1 + $0x214] ss:$8 sps:$4 sm:$0xff] (!%p179_p3)   ;;  %v2061_v6 = vld [vmem:[%s2954_s1 + $0x10] ss:$8 sps:$4 sm:$0xff] (!%p179_p3)   ;;  %v2063_v8 = vld [vmem:[%s2954_s1 + $0x24] ss:$8 sps:$4 sm:$0xff] (!%p179_p3)  }
   0x9   : > { %1307 = vmatpush1.bf16.msra.mxu0 (!%p179_p3), %v2056_v3  ;;  %1202 = vmatprep.subr.bf16.mxu1 (!%p179_p3), %v2057_v4  ;;  %v2062_v7 = vld [vmem:[%s2954_s1 + $0x210] ss:$8 sps:$4 sm:$0xff] (!%p179_p3)   ;;  %v2065_v9 = vld [vmem:[%s2954_s1 + $0x224] ss:$8 sps:$4 sm:$0xff] (!%p179_p3)   ;;  %v2067_v10 = vld [vmem:[%s2954_s1 + $0x20] ss:$8 sps:$4 sm:$0xff] (!%p179_p3)  }
   0xa   : > { %1308 = vmatprep.subr.bf16.mxu0 (!%p179_p3), %v2059_v5  ;;  %v2068_v11 = vld [vmem:[%s2954_s1 + $0x220] ss:$8 sps:$4 sm:$0xff] (!%p179_p3)   ;;  %v2069_v12 = vld [vmem:[%s2954_s1 + $0x34] ss:$8 sps:$4 sm:$0xff] (!%p179_p3)   ;;  %v2073_v14 = vld [vmem:[%s2954_s1 + $0x30] ss:$8 sps:$4 sm:$0xff] (!%p179_p3)  }
   0xb   : > { %v2071_v13 = vld [vmem:[%s2954_s1 + $0x234] ss:$8 sps:$4 sm:$0xff] (!%p179_p3)   ;;  %v2074_v15 = vld [vmem:[%s2954_s1 + $0x230] ss:$8 sps:$4 sm:$0xff] (!%p179_p3)   ;;  %v2075_v16 = vld [vmem:[%s2954_s1 + $0x44] ss:$8 sps:$4 sm:$0xff] (!%p179_p3)  }
   0xc   : > { %1203 = vmatpush1.bf16.msra.mxu1 (!%p179_p3), %v2061_v6  ;;  %v2077_v17 = vld [vmem:[%s2954_s1 + $0x244] ss:$8 sps:$4 sm:$0xff] (!%p179_p3)   ;;  %v2079_v18 = vld [vmem:[%s2954_s1 + $0x40] ss:$8 sps:$4 sm:$0xff] (!%p179_p3)   ;;  %v2081_v20 = vld [vmem:[%s2954_s1 + $0x54] ss:$8 sps:$4 sm:$0xff] (!%p179_p3)  }
   0xd   : > { %1309 = vmatpush1.bf16.msra.mxu0 (!%p179_p3), %v2062_v7  ;;  %1204 = vmatprep.subr.bf16.mxu1 (!%p179_p3), %v2063_v8  ;;  %v2080_v19 = vld [vmem:[%s2954_s1 + $0x240] ss:$8 sps:$4 sm:$0xff] (!%p179_p3)   ;;  %v2083_v21 = vld [vmem:[%s2954_s1 + $0x254] ss:$8 sps:$4 sm:$0xff] (!%p179_p3)   ;;  %v2085_v22 = vld [vmem:[%s2954_s1 + $0x50] ss:$8 sps:$4 sm:$0xff] (!%p179_p3)  }
   0xe   : > { %1310 = vmatprep.subr.bf16.mxu0 %v2065_v9  ;;  %v2086_v23 = vld [vmem:[%s2954_s1 + $0x250] ss:$8 sps:$4 sm:$0xff]   ;;  %v2087_v24 = vld [vmem:[%s2954_s1 + $0x64] ss:$8 sps:$4 sm:$0xff]   ;;  %v2091_v26 = vld [vmem:[%s2954_s1 + $0x60] ss:$8 sps:$4 sm:$0xff]  }
   0xf   : > { %v2089_v25 = vld [vmem:[%s2954_s1 + $0x264] ss:$8 sps:$4 sm:$0xff]   ;;  %v2092_v27 = vld [vmem:[%s2954_s1 + $0x260] ss:$8 sps:$4 sm:$0xff]   ;;  %v2093_v28 = vld [vmem:[%s2954_s1 + $0x74] ss:$8 sps:$4 sm:$0xff]  }
  0x10   : > { %1205 = vmatpush1.bf16.msra.mxu1 %v2067_v10  ;;  %v2095_v29 = vld [vmem:[%s2954_s1 + $0x274] ss:$8 sps:$4 sm:$0xff]   ;;  %v2097_v30 = vld [vmem:[%s2954_s1 + $0x70] ss:$8 sps:$4 sm:$0xff]   ;;  %v2099_v32 = vld [vmem:[%s2954_s1 + $0x84] ss:$8 sps:$4 sm:$0xff]  }
  0x11   : > { %1311 = vmatpush1.bf16.msra.mxu0 %v2068_v11  ;;  %1206 = vmatprep.subr.bf16.mxu1 %v2069_v12  ;;  %v2098_v31 = vld [vmem:[%s2954_s1 + $0x270] ss:$8 sps:$4 sm:$0xff]   ;;  %v2101_v33 = vld [vmem:[%s2954_s1 + $0x284] ss:$8 sps:$4 sm:$0xff]   ;;  %v2103_v34 = vld [vmem:[%s2954_s1 + $0x80] ss:$8 sps:$4 sm:$0xff]  }
  0x12   : > { %1312 = vmatprep.subr.bf16.mxu0 %v2071_v13  ;;  %v2104_v35 = vld [vmem:[%s2954_s1 + $0x280] ss:$8 sps:$4 sm:$0xff]   ;;  %v2105_v36 = vld [vmem:[%s2954_s1 + $0x94] ss:$8 sps:$4 sm:$0xff]   ;;  %v2109_v38 = vld [vmem:[%s2954_s1 + $0x90] ss:$8 sps:$4 sm:$0xff]  }
  0x13   : > { %v2107_v37 = vld [vmem:[%s2954_s1 + $0x294] ss:$8 sps:$4 sm:$0xff]   ;;  %v2110_v39 = vld [vmem:[%s2954_s1 + $0x290] ss:$8 sps:$4 sm:$0xff]   ;;  %v2111_v40 = vld [vmem:[%s2954_s1 + $0xa4] ss:$8 sps:$4 sm:$0xff]  }
  0x14   : > { %1207 = vmatpush1.bf16.msra.mxu1 %v2073_v14  ;;  %v2113_v41 = vld [vmem:[%s2954_s1 + $0x2a4] ss:$8 sps:$4 sm:$0xff]   ;;  %v2115_v42 = vld [vmem:[%s2954_s1 + $0xa0] ss:$8 sps:$4 sm:$0xff]   ;;  %v2117_v44 = vld [vmem:[%s2954_s1 + $0xb4] ss:$8 sps:$4 sm:$0xff]  }
  0x15   : > { %1313 = vmatpush1.bf16.msra.mxu0 %v2074_v15  ;;  %1208 = vmatprep.subr.bf16.mxu1 %v2075_v16  ;;  %v2116_v43 = vld [vmem:[%s2954_s1 + $0x2a0] ss:$8 sps:$4 sm:$0xff]   ;;  %v2119_v45 = vld [vmem:[%s2954_s1 + $0x2b4] ss:$8 sps:$4 sm:$0xff]   ;;  %v2121_v46 = vld [vmem:[%s2954_s1 + $0xb0] ss:$8 sps:$4 sm:$0xff]  }
  0x16   : > { %1314 = vmatprep.subr.bf16.mxu0 %v2077_v17  ;;  %v2122_v47 = vld [vmem:[%s2954_s1 + $0x2b0] ss:$8 sps:$4 sm:$0xff]   ;;  %v2149_v48 = vld [vmem:[%s2953_s0 + $0x4] ss:$36 sps:$4 sm:$0xff]   ;;  %v2129_v54 = vld [vmem:[%s2954_s1 + $0xd4] ss:$8 sps:$4 sm:$0xff]  }
  0x17   : > { %v2123_v49 = vld [vmem:[%s2954_s1 + $0xc4] ss:$8 sps:$4 sm:$0xff]   ;;  %1232 = vmatprep.mubr.bf16.mxu1 %v2149_v48  ;;  %v2155_v51 = vld [vmem:[%s2953_s0 + $0x14] ss:$36 sps:$4 sm:$0xff]   ;;  %v2127_v52 = vld [vmem:[%s2954_s1 + $0xc0] ss:$8 sps:$4 sm:$0xff]  }
  0x18   : > { %1209 = vmatpush1.bf16.msra.mxu1 %v2079_v18  ;;  %v2125_v50 = vld [vmem:[%s2954_s1 + $0x2c4] ss:$8 sps:$4 sm:$0xff]   ;;  %v2128_v53 = vld [vmem:[%s2954_s1 + $0x2c0] ss:$8 sps:$4 sm:$0xff]   ;;  %v2131_v55 = vld [vmem:[%s2954_s1 + $0x2d4] ss:$8 sps:$4 sm:$0xff]   ;;  %1338 = vmatprep.mubr.bf16.mxu0 %v2155_v51 }
  0x19   : > { %1315 = vmatpush1.bf16.msra.mxu0 %v2080_v19  ;;  %1210 = vmatprep.subr.bf16.mxu1 %v2081_v20  ;;  %v2133_v56 = vld [vmem:[%s2954_s1 + $0xd0] ss:$8 sps:$4 sm:$0xff]   ;;  %v2135_v58 = vld [vmem:[%s2954_s1 + $0xe4] ss:$8 sps:$4 sm:$0xff]   ;;  %v2139_v60 = vld [vmem:[%s2954_s1 + $0xe0] ss:$8 sps:$4 sm:$0xff]  }
  0x1a   : > { %1316 = vmatprep.subr.bf16.mxu0 %v2083_v21  ;;  %v2134_v57 = vld [vmem:[%s2954_s1 + $0x2d0] ss:$8 sps:$4 sm:$0xff]   ;;  %v2137_v59 = vld [vmem:[%s2954_s1 + $0x2e4] ss:$8 sps:$4 sm:$0xff]   ;;  %v2140_v61 = vld [vmem:[%s2954_s1 + $0x2e0] ss:$8 sps:$4 sm:$0xff]  }
  0x1b   : > { %v2141_v62 = vld [vmem:[%s2954_s1 + $0xf4] ss:$8 sps:$4 sm:$0xff]   ;;  %v2145_v0 = vld [vmem:[%s2954_s1 + $0xf0] ss:$8 sps:$4 sm:$0xff]   ;;  %v2152_v2 = vld [vmem:[%s2954_s1 + $0x104] ss:$8 sps:$4 sm:$0xff]  }
  0x1c   : > { %1211 = vmatpush1.bf16.msra.mxu1 %v2085_v22  ;;  %v2143_v63 = vld [vmem:[%s2954_s1 + $0x2f4] ss:$8 sps:$4 sm:$0xff]   ;;  %v2146_v1 = vld [vmem:[%s2954_s1 + $0x2f0] ss:$8 sps:$4 sm:$0xff]   ;;  %v2158_v3 = vld [vmem:[%s2954_s1 + $0x304] ss:$8 sps:$4 sm:$0xff]  }
  0x1d   : > { %1317 = vmatpush1.bf16.msra.mxu0 %v2086_v23  ;;  %1212 = vmatprep.subr.bf16.mxu1 %v2087_v24  ;;  %v2147_v4 = vld [vmem:[%s2953_s0] ss:$36 sps:$4 sm:$0xff]   ;;  %v2153_v6 = vld [vmem:[%s2953_s0 + $0x10] ss:$36 sps:$4 sm:$0xff]  }
  0x1e   : > { %1318 = vmatprep.subr.bf16.mxu0 %v2089_v25  ;;  %v2150_v5 = vld [vmem:[%s2954_s1 + $0x100] ss:$8 sps:$4 sm:$0xff]   ;;  %v2161_v8 = vld [vmem:[%s2954_s1 + $0x114] ss:$8 sps:$4 sm:$0xff]   ;;  %v2159_v10 = vld [vmem:[%s2954_s1 + $0x110] ss:$8 sps:$4 sm:$0xff]  }
  0x1f   : > { %v2156_v7 = vld [vmem:[%s2954_s1 + $0x300] ss:$8 sps:$4 sm:$0xff]   ;;  %v2164_v9 = vld [vmem:[%s2954_s1 + $0x314] ss:$8 sps:$4 sm:$0xff]   ;;  %v2162_v11 = vld [vmem:[%s2954_s1 + $0x310] ss:$8 sps:$4 sm:$0xff]  }
  0x20   : > { %1213 = vmatpush1.bf16.msra.mxu1 %v2091_v26  ;;  %v2167_v12 = vld [vmem:[%s2954_s1 + $0x124] ss:$8 sps:$4 sm:$0xff]   ;;  %v2165_v14 = vld [vmem:[%s2954_s1 + $0x120] ss:$8 sps:$4 sm:$0xff]   ;;  %v2173_v16 = vld [vmem:[%s2954_s1 + $0x134] ss:$8 sps:$4 sm:$0xff]  }
  0x21   : > { %1319 = vmatpush1.bf16.msra.mxu0 %v2092_v27  ;;  %1214 = vmatprep.subr.bf16.mxu1 %v2093_v28  ;;  %v2170_v13 = vld [vmem:[%s2954_s1 + $0x324] ss:$8 sps:$4 sm:$0xff]   ;;  %v2168_v15 = vld [vmem:[%s2954_s1 + $0x320] ss:$8 sps:$4 sm:$0xff]   ;;  %v2176_v17 = vld [vmem:[%s2954_s1 + $0x334] ss:$8 sps:$4 sm:$0xff]  }
  0x22   : > { %1320 = vmatprep.subr.bf16.mxu0 %v2095_v29  ;;  %v2171_v18 = vld [vmem:[%s2954_s1 + $0x130] ss:$8 sps:$4 sm:$0xff]   ;;  %v2179_v20 = vld [vmem:[%s2954_s1 + $0x144] ss:$8 sps:$4 sm:$0xff]   ;;  %v2177_v22 = vld [vmem:[%s2954_s1 + $0x140] ss:$8 sps:$4 sm:$0xff]  }
  0x23   : > { %v2174_v19 = vld [vmem:[%s2954_s1 + $0x330] ss:$8 sps:$4 sm:$0xff]   ;;  %v2182_v21 = vld [vmem:[%s2954_s1 + $0x344] ss:$8 sps:$4 sm:$0xff]   ;;  %v2180_v23 = vld [vmem:[%s2954_s1 + $0x340] ss:$8 sps:$4 sm:$0xff]  }
  0x24   : > { %1215 = vmatpush1.bf16.msra.mxu1 %v2097_v30  ;;  %v2185_v24 = vld [vmem:[%s2954_s1 + $0x154] ss:$8 sps:$4 sm:$0xff]   ;;  %v2183_v26 = vld [vmem:[%s2954_s1 + $0x150] ss:$8 sps:$4 sm:$0xff]   ;;  %v2191_v28 = vld [vmem:[%s2954_s1 + $0x164] ss:$8 sps:$4 sm:$0xff]  }
  0x25   : > { %1321 = vmatpush1.bf16.msra.mxu0 %v2098_v31  ;;  %1216 = vmatprep.subr.bf16.mxu1 %v2099_v32  ;;  %v2188_v25 = vld [vmem:[%s2954_s1 + $0x354] ss:$8 sps:$4 sm:$0xff]   ;;  %v2186_v27 = vld [vmem:[%s2954_s1 + $0x350] ss:$8 sps:$4 sm:$0xff]   ;;  %v2241_v31 = vld [vmem:[%s2953_s0 + $0x48] ss:$36 sps:$4 sm:$0xff]  }
  0x26   : > { %1322 = vmatprep.subr.bf16.mxu0 %v2101_v33  ;;  %v2237_v29 = vld [vmem:[%s2953_s0 + $0x4c] ss:$36 sps:$4 sm:$0xff]   ;;  %v2239_v30 = vld [vmem:[%s2953_s0 + $0x5c] ss:$36 sps:$4 sm:$0xff]  }
  0x27   : > { %v2194_v32 = vld [vmem:[%s2954_s1 + $0x364] ss:$8 sps:$4 sm:$0xff]   ;;  %v2245_v33 = vld [vmem:[%s2953_s0 + $0x58] ss:$36 sps:$4 sm:$0xff]  }
  0x28   : > { %1217 = vmatpush1.bf16.msra.mxu1 %v2103_v34  ;;  %v2189_v34 = vld [vmem:[%s2954_s1 + $0x160] ss:$8 sps:$4 sm:$0xff]   ;;  %v2207_v48 = vld [vmem:[%s2954_s1 + $0x190] ss:$8 sps:$4 sm:$0xff]   ;;  %v2218_v51 = vld [vmem:[%s2954_s1 + $0x3a4] ss:$8 sps:$4 sm:$0xff]  }
  0x29   : > { %1323 = vmatpush1.bf16.msra.mxu0 %v2104_v35  ;;  %1218 = vmatprep.subr.bf16.mxu1 %v2105_v36  ;;  %v2192_v35 = vld [vmem:[%s2954_s1 + $0x360] ss:$8 sps:$4 sm:$0xff]   ;;  %v2197_v36 = vld [vmem:[%s2954_s1 + $0x174] ss:$8 sps:$4 sm:$0xff]  }
  0x2a   : > { %1324 = vmatprep.subr.bf16.mxu0 %v2107_v37  ;;  %v2200_v37 = vld [vmem:[%s2954_s1 + $0x374] ss:$8 sps:$4 sm:$0xff]  }
  0x2c   : > { %1219 = vmatpush1.bf16.msra.mxu1 %v2109_v38  ;;  %v2195_v38 = vld [vmem:[%s2954_s1 + $0x170] ss:$8 sps:$4 sm:$0xff]  }
  0x2d   : > { %1325 = vmatpush1.bf16.msra.mxu0 %v2110_v39  ;;  %1220 = vmatprep.subr.bf16.mxu1 %v2111_v40  ;;  %v2198_v39 = vld [vmem:[%s2954_s1 + $0x370] ss:$8 sps:$4 sm:$0xff]   ;;  %v2203_v40 = vld [vmem:[%s2954_s1 + $0x184] ss:$8 sps:$4 sm:$0xff]  }
  0x2e   : > { %1326 = vmatprep.subr.bf16.mxu0 %v2113_v41  ;;  %v2257_v41 = vld [vmem:[%s2953_s0 + $0xc] ss:$36 sps:$4 sm:$0xff]  }
  0x30   : > { %1221 = vmatpush1.bf16.msra.mxu1 %v2115_v42  ;;  %v2206_v42 = vld [vmem:[%s2954_s1 + $0x384] ss:$8 sps:$4 sm:$0xff]  }
  0x31   : > { %1327 = vmatpush1.bf16.msra.mxu0 %v2116_v43  ;;  %1222 = vmatprep.subr.bf16.mxu1 %v2117_v44  ;;  %v2260_v43 = vld [vmem:[%s2953_s0 + $0x1c] ss:$36 sps:$4 sm:$0xff]  }
  0x32   : > { %1328 = vmatprep.subr.bf16.mxu0 %v2119_v45  ;;  %v2201_v44 = vld [vmem:[%s2954_s1 + $0x180] ss:$8 sps:$4 sm:$0xff]  }
  0x33   : > { %v2204_v45 = vld [vmem:[%s2954_s1 + $0x380] ss:$8 sps:$4 sm:$0xff]  }
  0x34   : > { %1223 = vmatpush1.bf16.msra.mxu1 %v2121_v46  ;;  %v2209_v46 = vld [vmem:[%s2954_s1 + $0x194] ss:$8 sps:$4 sm:$0xff]  }
  0x35   : > { %1329 = vmatpush1.bf16.msra.mxu0 %v2122_v47  ;;  %1224 = vmatprep.subr.bf16.mxu1 %v2123_v49  ;;  %v2212_v47 = vld [vmem:[%s2954_s1 + $0x394] ss:$8 sps:$4 sm:$0xff]   ;;  %v2210_v49 = vld [vmem:[%s2954_s1 + $0x390] ss:$8 sps:$4 sm:$0xff]  }
  0x36   : > { %1330 = vmatprep.subr.bf16.mxu0 %v2125_v50  ;;  %v2215_v50 = vld [vmem:[%s2954_s1 + $0x1a4] ss:$8 sps:$4 sm:$0xff]  }
  0x38   : > { %1225 = vmatpush1.bf16.msra.mxu1 %v2127_v52  ;;  %v2213_v52 = vld [vmem:[%s2954_s1 + $0x1a0] ss:$8 sps:$4 sm:$0xff]  }
  0x39   : > { %1331 = vmatpush1.bf16.msra.mxu0 %v2128_v53  ;;  %1226 = vmatprep.subr.bf16.mxu1 %v2129_v54  ;;  %v2216_v53 = vld [vmem:[%s2954_s1 + $0x3a0] ss:$8 sps:$4 sm:$0xff]   ;;  %v2221_v54 = vld [vmem:[%s2954_s1 + $0x1b4] ss:$8 sps:$4 sm:$0xff]  }
  0x3a   : > { %1332 = vmatprep.subr.bf16.mxu0 %v2131_v55  ;;  %v2224_v55 = vld [vmem:[%s2954_s1 + $0x3b4] ss:$8 sps:$4 sm:$0xff]  }
  0x3c   : > { %1227 = vmatpush1.bf16.msra.mxu1 %v2133_v56  ;;  %v2219_v56 = vld [vmem:[%s2954_s1 + $0x1b0] ss:$8 sps:$4 sm:$0xff]  }
  0x3d   : > { %1333 = vmatpush1.bf16.msra.mxu0 %v2134_v57  ;;  %1228 = vmatprep.subr.bf16.mxu1 %v2135_v58  ;;  %v2222_v57 = vld [vmem:[%s2954_s1 + $0x3b0] ss:$8 sps:$4 sm:$0xff]   ;;  %v2227_v58 = vld [vmem:[%s2954_s1 + $0x1c4] ss:$8 sps:$4 sm:$0xff]  }
  0x3e   : > { %1334 = vmatprep.subr.bf16.mxu0 %v2137_v59  ;;  %v2230_v59 = vld [vmem:[%s2954_s1 + $0x3c4] ss:$8 sps:$4 sm:$0xff]  }
  0x40   : > { %1229 = vmatpush1.bf16.msra.mxu1 %v2139_v60  ;;  %v2225_v60 = vld [vmem:[%s2954_s1 + $0x1c0] ss:$8 sps:$4 sm:$0xff]  }
  0x41   : > { %1335 = vmatpush1.bf16.msra.mxu0 %v2140_v61  ;;  %1230 = vmatprep.subr.bf16.mxu1 %v2141_v62  ;;  %v2228_v61 = vld [vmem:[%s2954_s1 + $0x3c0] ss:$8 sps:$4 sm:$0xff]   ;;  %v2233_v62 = vld [vmem:[%s2954_s1 + $0x1d4] ss:$8 sps:$4 sm:$0xff]  }
  0x42   : > { %1336 = vmatprep.subr.bf16.mxu0 %v2143_v63  ;;  %v2236_v63 = vld [vmem:[%s2954_s1 + $0x3d4] ss:$8 sps:$4 sm:$0xff]  }
  0x44   : > { %1231 = vmatpush1.bf16.msra.mxu1 %v2145_v0  ;;  %v2231_v0 = vld [vmem:[%s2954_s1 + $0x1d0] ss:$8 sps:$4 sm:$0xff]  }
  0x45   : > { %1337 = vmatpush1.bf16.msra.mxu0 %v2146_v1  ;;  %1253 = vmatprep.subr.bf16.mxu1 %v2152_v2  ;;  %v2234_v1 = vld [vmem:[%s2954_s1 + $0x3d0] ss:$8 sps:$4 sm:$0xff]   ;;  %v2244_v2 = vld [vmem:[%s2954_s1 + $0x1e4] ss:$8 sps:$4 sm:$0xff]  }
  0x46   : > { %1359 = vmatprep.subr.bf16.mxu0 %v2158_v3  ;;  %v2248_v3 = vld [vmem:[%s2954_s1 + $0x3e4] ss:$8 sps:$4 sm:$0xff]  }
  0x47   : > { %1233 = vmatmul.mubr.bf16.vlgmr.msra.gmra.mrb[0].mxu1 %v2147_v4  ;;  %v2242_v4 = vld [vmem:[%s2954_s1 + $0x1e0] ss:$8 sps:$4 sm:$0xff]  }
  0x48   : > { %1339 = vmatmul.mubr.bf16.vlgmr.msra.gmra.mrb[0].mxu0 %v2153_v6  ;;  %1254 = vmatpush1.bf16.msra.mxu1 %v2150_v5  ;;  %v2246_v5 = vld [vmem:[%s2954_s1 + $0x3e0] ss:$8 sps:$4 sm:$0xff]   ;;  %v2251_v6 = vld [vmem:[%s2954_s1 + $0x1f4] ss:$8 sps:$4 sm:$0xff]  }
  0x49   : > { %1360 = vmatpush1.bf16.msra.mxu0 %v2156_v7  ;;  %1255 = vmatprep.subr.bf16.mxu1 %v2161_v8  ;;  %v2254_v7 = vld [vmem:[%s2954_s1 + $0x3f4] ss:$8 sps:$4 sm:$0xff]   ;;  %v2249_v8 = vld [vmem:[%s2954_s1 + $0x1f0] ss:$8 sps:$4 sm:$0xff]  }
  0x4a   : > { %1361 = vmatprep.subr.bf16.mxu0 %v2164_v9  ;;  %1242 = vmatprep.mubr.bf16.mxu1 %v2237_v29  ;;  %v2252_v9 = vld [vmem:[%s2954_s1 + $0x3f0] ss:$8 sps:$4 sm:$0xff]   ;;  %v2287_v29 = vld [vmem:[%s2954_s1 + $0x464] ss:$8 sps:$4 sm:$0xff]  }
  0x4b   : > { %1348 = vmatprep.mubr.bf16.mxu0 %v2239_v30  ;;  %v2285_v30 = vld [vmem:[%s2954_s1 + $0x460] ss:$8 sps:$4 sm:$0xff]  }
  0x4c   : > { %1256 = vmatpush1.bf16.msra.mxu1 %v2159_v10  ;;  %v2263_v10 = vld [vmem:[%s2954_s1 + $0x404] ss:$8 sps:$4 sm:$0xff]  }
  0x4d   : > { %1362 = vmatpush1.bf16.msra.mxu0 %v2162_v11  ;;  %1257 = vmatprep.subr.bf16.mxu1 %v2167_v12  ;;  %v2255_v11 = vld [vmem:[%s2953_s0 + $0x8] ss:$36 sps:$4 sm:$0xff]   ;;  %v2258_v12 = vld [vmem:[%s2953_s0 + $0x18] ss:$36 sps:$4 sm:$0xff]  }
  0x4e   : > { %1363 = vmatprep.subr.bf16.mxu0 %v2170_v13  ;;  %v2261_v13 = vld [vmem:[%s2954_s1 + $0x400] ss:$8 sps:$4 sm:$0xff]  }
  0x4f   : > { %1243 = vmatmul.mubr.bf16.gmra.mrb[4].mxu1 %v2241_v31  ;;  %v2290_v31 = vld [vmem:[%s2954_s1 + $0x474] ss:$8 sps:$4 sm:$0xff]  }
  0x50   : > { %1258 = vmatpush1.bf16.msra.mxu1 %v2165_v14  ;;  %1349 = vmatmul.mubr.bf16.gmra.mrb[4].mxu0 %v2245_v33  ;;  %v2266_v14 = vld [vmem:[%s2954_s1 + $0x414] ss:$8 sps:$4 sm:$0xff]   ;;  %v2291_v33 = vld [vmem:[%s2953_s0 + $0x20] ss:$36 sps:$4 sm:$0xff]  }
  0x51   : > { %1364 = vmatpush1.bf16.msra.mxu0 %v2168_v15  ;;  %1259 = vmatprep.subr.bf16.mxu1 %v2173_v16  ;;  %v2267_v15 = vld [vmem:[%s2953_s0 + $0x54] ss:$36 sps:$4 sm:$0xff]   ;;  %v2269_v16 = vld [vmem:[%s2953_s0 + $0x64] ss:$36 sps:$4 sm:$0xff]  }
  0x52   : > { %1365 = vmatprep.subr.bf16.mxu0 %v2176_v17  ;;  %1285 = vmatprep.mubr.bf16.mxu1 %v2257_v41  ;;  %v2264_v17 = vld [vmem:[%s2954_s1 + $0x410] ss:$8 sps:$4 sm:$0xff]  }
  0x53   : > { %1391 = vmatprep.mubr.bf16.mxu0 %v2260_v43 }
  0x54   : > { %1260 = vmatpush1.bf16.msra.mxu1 %v2171_v18  ;;  %v2275_v18 = vld [vmem:[%s2954_s1 + $0x424] ss:$8 sps:$4 sm:$0xff]  }
  0x55   : > { %1366 = vmatpush1.bf16.msra.mxu0 %v2174_v19  ;;  %1261 = vmatprep.subr.bf16.mxu1 %v2179_v20  ;;  %v2271_v19 = vld [vmem:[%s2953_s0 + $0x50] ss:$36 sps:$4 sm:$0xff]   ;;  %v2272_v20 = vld [vmem:[%s2953_s0 + $0x60] ss:$36 sps:$4 sm:$0xff]  }
  0x56   : > { %1367 = vmatprep.subr.bf16.mxu0 %v2182_v21  ;;  %v2273_v21 = vld [vmem:[%s2954_s1 + $0x420] ss:$8 sps:$4 sm:$0xff]  }
  0x58   : > { %1262 = vmatpush1.bf16.msra.mxu1 %v2177_v22  ;;  %v2278_v22 = vld [vmem:[%s2954_s1 + $0x434] ss:$8 sps:$4 sm:$0xff]  }
  0x59   : > { %1368 = vmatpush1.bf16.msra.mxu0 %v2180_v23  ;;  %1263 = vmatprep.subr.bf16.mxu1 %v2185_v24  ;;  %v2276_v23 = vld [vmem:[%s2954_s1 + $0x430] ss:$8 sps:$4 sm:$0xff]   ;;  %v2281_v24 = vld [vmem:[%s2954_s1 + $0x444] ss:$8 sps:$4 sm:$0xff]  }
  0x5a   : > { %1369 = vmatprep.subr.bf16.mxu0 %v2188_v25  ;;  %v2319_v25 = vmov 0  }
  0x5c   : > { %1264 = vmatpush1.bf16.msra.mxu1 %v2183_v26  ;;  %v2279_v26 = vld [vmem:[%s2954_s1 + $0x440] ss:$8 sps:$4 sm:$0xff]  }
  0x5d   : > { %1370 = vmatpush1.bf16.msra.mxu0 %v2186_v27  ;;  %1265 = vmatprep.subr.bf16.mxu1 %v2191_v28  ;;  %v2284_v27 = vld [vmem:[%s2954_s1 + $0x454] ss:$8 sps:$4 sm:$0xff]   ;;  %v2282_v28 = vld [vmem:[%s2954_s1 + $0x450] ss:$8 sps:$4 sm:$0xff]  }
  0x5e   : > { %1371 = vmatprep.subr.bf16.mxu0 %v2194_v32  ;;  %v2288_v32 = vld [vmem:[%s2954_s1 + $0x470] ss:$8 sps:$4 sm:$0xff]  }
  0x60   : > { %1266 = vmatpush1.bf16.msra.mxu1 %v2189_v34  ;;  %v2292_v34 = vld [vmem:[%s2953_s0 + $0x68] ss:$36 sps:$4 sm:$0xff]  }
  0x61   : > { %1372 = vmatpush1.bf16.msra.mxu0 %v2192_v35  ;;  %1267 = vmatprep.subr.bf16.mxu1 %v2197_v36 }
  0x62   : > { %1373 = vmatprep.subr.bf16.mxu0 %v2200_v37 }
  0x64   : > { %1268 = vmatpush1.bf16.msra.mxu1 %v2195_v38 }
  0x65   : > { %1374 = vmatpush1.bf16.msra.mxu0 %v2198_v39  ;;  %1269 = vmatprep.subr.bf16.mxu1 %v2203_v40 }
  0x66   : > { %1375 = vmatprep.subr.bf16.mxu0 %v2206_v42 }
  0x68   : > { %1270 = vmatpush1.bf16.msra.mxu1 %v2201_v44 }
  0x69   : > { %1376 = vmatpush1.bf16.msra.mxu0 %v2204_v45  ;;  %1271 = vmatprep.subr.bf16.mxu1 %v2209_v46 }
  0x6a   : > { %1377 = vmatprep.subr.bf16.mxu0 %v2212_v47 }
  0x6c   : > { %1272 = vmatpush1.bf16.msra.mxu1 %v2207_v48 }
  0x6d   : > { %1378 = vmatpush1.bf16.msra.mxu0 %v2210_v49  ;;  %1273 = vmatprep.subr.bf16.mxu1 %v2215_v50 }
  0x6e   : > { %1379 = vmatprep.subr.bf16.mxu0 %v2218_v51 }
  0x70   : > { %1274 = vmatpush1.bf16.msra.mxu1 %v2213_v52 }
  0x71   : > { %1380 = vmatpush1.bf16.msra.mxu0 %v2216_v53  ;;  %1275 = vmatprep.subr.bf16.mxu1 %v2221_v54 }
  0x72   : > { %1381 = vmatprep.subr.bf16.mxu0 %v2224_v55 }
  0x74   : > { %1276 = vmatpush1.bf16.msra.mxu1 %v2219_v56 }
  0x75   : > { %1382 = vmatpush1.bf16.msra.mxu0 %v2222_v57  ;;  %1277 = vmatprep.subr.bf16.mxu1 %v2227_v58 }
  0x76   : > { %1383 = vmatprep.subr.bf16.mxu0 %v2230_v59 }
  0x78   : > { %1278 = vmatpush1.bf16.msra.mxu1 %v2225_v60 }
  0x79   : > { %1384 = vmatpush1.bf16.msra.mxu0 %v2228_v61  ;;  %1279 = vmatprep.subr.bf16.mxu1 %v2233_v62 }
  0x7a   : > { %1385 = vmatprep.subr.bf16.mxu0 %v2236_v63 }
  0x7c   : > { %1280 = vmatpush1.bf16.msra.mxu1 %v2231_v0 }
  0x7d   : > { %1386 = vmatpush1.bf16.msra.mxu0 %v2234_v1  ;;  %1281 = vmatprep.subr.bf16.mxu1 %v2244_v2 }
  0x7e   : > { %1387 = vmatprep.subr.bf16.mxu0 %v2248_v3  ;;  %v1471_v3 = vlaneseq (%p1465_p4) }
  0x80   : > { %1282 = vmatpush1.bf16.msra.mxu1 %v2242_v4  ;;  %vm1473_vm0 = vcmp.lt.s32.totalorder (%p1465_p4), %v1471_v3, 256  ;;  %v2320_v4 = vmov (%p1465_p4), 0.0  }
  0x81   : > { %1388 = vmatpush1.bf16.msra.mxu0 %v2246_v5  ;;  %1283 = vmatprep.subr.bf16.mxu1 %v2251_v6  ;;  %1475 = vst.msk [vmem:[#allocation2] sm:$0x3] (%p1465_p4), %vm1473_vm0, %v2320_v4  ;;  %1476 = vst.msk [vmem:[#allocation3] sm:$0x3] (%p1465_p4), %vm1473_vm0, %v2320_v4 }
  0x82   : > { %1389 = vmatprep.subr.bf16.mxu0 %v2254_v7 }
  0x84   : > { %1284 = vmatpush1.bf16.msra.mxu1 %v2249_v8 }
  0x85   : > { %1390 = vmatpush1.bf16.msra.mxu0 %v2252_v9  ;;  %1974 = vmatprep.subr.bf16.mxu1 %v2263_v10 }
  0x86   : > { %1412 = vmatprep.subr.bf16.mxu0 %v2263_v10 }
  0x87   : > { %1286 = vmatmul.mubr.bf16.vlgmr.msra.gmra.mrb[0].mxu1 %v2255_v11 }
  0x88   : > { %1392 = vmatmul.mubr.bf16.vlgmr.msra.gmra.mrb[0].mxu0 %v2258_v12  ;;  %1982 = vmatpush1.bf16.msra.mxu1 %v2261_v13 }
  0x89   : > { %1413 = vmatpush1.bf16.msra.mxu0 %v2261_v13  ;;  %1975 = vmatprep.subr.bf16.mxu1 %v2266_v14 }
  0x8a   : > { %1414 = vmatprep.subr.bf16.mxu0 %v2266_v14  ;;  %1295 = vmatprep.mubr.bf16.mxu1 %v2267_v15 }
  0x8b   : > { %1401 = vmatprep.mubr.bf16.mxu0 %v2269_v16 }
  0x8c   : > { %1983 = vmatpush1.bf16.msra.mxu1 %v2264_v17 }
  0x8d   : > { %1415 = vmatpush1.bf16.msra.mxu0 %v2264_v17  ;;  %1976 = vmatprep.subr.bf16.mxu1 %v2275_v18 }
  0x8e   : > { %1416 = vmatprep.subr.bf16.mxu0 %v2275_v18 }
  0x8f   : > { %1296 = vmatmul.mubr.bf16.gmra.mrb[4].mxu1 %v2271_v19 }
  0x90   : > { %1402 = vmatmul.mubr.bf16.gmra.mrb[4].mxu0 %v2272_v20  ;;  %1984 = vmatpush1.bf16.msra.mxu1 %v2273_v21 }
  0x91   : > { %1417 = vmatpush1.bf16.msra.mxu0 %v2273_v21  ;;  %1977 = vmatprep.subr.bf16.mxu1 %v2278_v22 }
  0x92   : > { %1418 = vmatprep.subr.bf16.mxu0 %v2278_v22  ;;  %1444 = vmatprep.mubr.bf16.mxu0 %v2319_v25 }
  0x93   : > { %1454 = vmatprep.mubr.bf16.mxu1 %v2319_v25 }
  0x94   : > { %1985 = vmatpush1.bf16.msra.mxu1 %v2276_v23 }
  0x95   : > { %1419 = vmatpush1.bf16.msra.mxu0 %v2276_v23  ;;  %1978 = vmatprep.subr.bf16.mxu1 %v2281_v24 }
  0x96   : > { %1420 = vmatprep.subr.bf16.mxu0 %v2281_v24 }
  0x98   : > { %1986 = vmatpush1.bf16.msra.mxu1 %v2279_v26 }
  0x99   : > { %1421 = vmatpush1.bf16.msra.mxu0 %v2279_v26  ;;  %1979 = vmatprep.subr.bf16.mxu1 %v2284_v27 }
  0x9a   : > { %1422 = vmatprep.subr.bf16.mxu0 %v2284_v27 }
  0x9c   : > { %1987 = vmatpush1.bf16.msra.mxu1 %v2282_v28 }
  0x9d   : > { %1423 = vmatpush1.bf16.msra.mxu0 %v2282_v28  ;;  %1980 = vmatprep.subr.bf16.mxu1 %v2287_v29 }
  0x9e   : > { %1424 = vmatprep.subr.bf16.mxu0 %v2287_v29 }
  0xa0   : > { %1988 = vmatpush1.bf16.msra.mxu1 %v2285_v30 }
  0xa1   : > { %1425 = vmatpush1.bf16.msra.mxu0 %v2285_v30  ;;  %1981 = vmatprep.subr.bf16.mxu1 %v2290_v31 }
  0xa2   : > { %1426 = vmatprep.subr.bf16.mxu0 %v2290_v31 }
  0xa4   : > { %1989 = vmatpush1.bf16.msra.mxu1 %v2288_v32 }
  0xa5   : > { %1427 = vmatpush1.bf16.msra.mxu0 %v2288_v32 }
  0xa7   : > { %1455 = vmatmul.mubr.bf16.vlgmr.msra.gmra.mrb[8].mxu1 %v2292_v34 }
  0xa8   : > { %1445 = vmatmul.mubr.bf16.vlgmr.msra.gmra.mrb[0].mxu0 %v2291_v33 }
 0x15a   : > { %v1287_v35 = vpop.f32.mrb[0].mxu1 }
 0x15b   : > { %v1289_v36 = vpop.f32.mrb[1].mxu1 }
 0x15c   : > { %v1291_v37 = vpop.f32.mrb[2].mxu1 }
 0x15d   : > { %v1293_v38 = vpop.f32.mrb[3].mxu1 }
 0x162   : > { %v1297_v39 = vpop.f32.mrb[4].mxu1 }
 0x163   : > { %v1403_v40 = vpop.f32.mrb[4].mxu0  ;;  %v1299_v42 = vpop.f32.mrb[5].mxu1 }
 0x164   : > { %v1994_v41 = vadd.f32 %v1403_v40, %v1297_v39  ;;  %v1405_v43 = vpop.f32.mrb[5].mxu0  ;;  %v1301_v45 = vpop.f32.mrb[6].mxu1 }
 0x165   : > { %v1996_v44 = vadd.f32 %v1405_v43, %v1299_v42  ;;  %v1407_v46 = vpop.f32.mrb[6].mxu0  ;;  %v1303_v48 = vpop.f32.mrb[7].mxu1 }
 0x166   : > { %v1998_v47 = vadd.f32 %v1407_v46, %v1301_v45  ;;  %v1409_v49 = vpop.f32.mrb[7].mxu0 }
 0x167   : > { %v2000_v50 = vadd.f32 %v1409_v49, %v1303_v48 }
 0x179   : > { %1470 = sbr.rel (!%p1465_p4) target bundleno = 384 (0x180), region = 40 }
 0x17a   : > { %v1456_v52 = vpop.f32.mrb[8].mxu1 }
 0x17b   : > { %v1446_v51 = vpop.f32.mrb[0].mxu0  ;;  %v2858_v54 = vadd.f32 %v1994_v41, %v1456_v52  ;;  %v1458_v56 = vpop.f32.mrb[9].mxu1 }
 0x17c   : > { %v2856_v53 = vadd.f32 %v1446_v51, %v1287_v35  ;;  %v1448_v55 = vpop.f32.mrb[1].mxu0  ;;  %v2862_v58 = vadd.f32 %v1996_v44, %v1458_v56  ;;  %v1460_v60 = vpop.f32.mrb[10].mxu1 }
 0x17d   : > { %v2860_v57 = vadd.f32 %v1448_v55, %v1289_v36  ;;  %v1450_v59 = vpop.f32.mrb[2].mxu0  ;;  %v2866_v62 = vadd.f32 %v1998_v47, %v1460_v60  ;;  %v1462_v0 = vpop.f32.mrb[11].mxu1 }
 0x17e   : > { %v2864_v61 = vadd.f32 %v1450_v59, %v1291_v37  ;;  %v1452_v63 = vpop.f32.mrb[3].mxu0  ;;  %v2870_v2 = vadd.f32 %v2000_v50, %v1462_v0 }
 0x17f   : > { %v2868_v1 = vadd.f32 %v1452_v63, %v1293_v38 }
 0x180 PF: > { %p1967_p5 = scmp.ne.s32.totalorder %s2309_s15, 0 }
 0x181   : > { %v1481_v5 = vadd.f32 (!%p1967_p5), %v2864_v61, %v2856_v53  ;;  %v1490_v6 = vadd.f32 (!%p1967_p5), %v2868_v1, %v2860_v57  ;;  %v1524_v7 = vmul.f32 (!%p1967_p5), %v2856_v53, %v2856_v53  ;;  %v1525_v8 = vmul.f32 (!%p1967_p5), %v2860_v57, %v2860_v57  ;;  %v1480_v59 = vld [vmem:[#allocation2] sm:$0x3] (!%p1967_p5) }
 0x182   : > { %1479 = sbr.rel (%p1967_p5) target bundleno = 415 (0x19f), region = 44  ;;  %v1526_v9 = vmul.f32 (!%p1967_p5), %v2864_v61, %v2864_v61  ;;  %v1527_v12 = vmul.f32 (!%p1967_p5), %v2868_v1, %v2868_v1  ;;  %v1528_v13 = vmul.f32 (!%p1967_p5), %v2858_v54, %v2858_v54  ;;  %v1529_v14 = vmul.f32 (!%p1967_p5), %v2862_v58, %v2862_v58 }
 0x183   : > { %v1482_v10 = vadd.f32 (!%p1967_p5), %v2858_v54, %v1481_v5  ;;  %v1491_v11 = vadd.f32 (!%p1967_p5), %v2862_v58, %v1490_v6  ;;  %v1530_v17 = vmul.f32 (!%p1967_p5), %v2866_v62, %v2866_v62  ;;  %v1531_v18 = vmul.f32 (!%p1967_p5), %v2870_v2, %v2870_v2  ;;  %v1523_v6 = vld [vmem:[#allocation3] sm:$0x3] (!%p1967_p5) }
 0x184   : > { %v1532_v19 = vadd.f32 (!%p1967_p5), %v1526_v9, %v1524_v7  ;;  %v1541_v20 = vadd.f32 (!%p1967_p5), %v1527_v12, %v1525_v8  ;;  %v2321_v27 = vmov (!%p1967_p5), 1966171168   ;;  %v1505_v29 = vlaneseq (!%p1967_p5) }
 0x185   : > { %v1483_v15 = vadd.f32 (!%p1967_p5), %v2866_v62, %v1482_v10  ;;  %v1492_v16 = vadd.f32 (!%p1967_p5), %v2870_v2, %v1491_v11  ;;  %v1503_v28 = vunpack.c.l.s4 (!%p1967_p5), %v2321_v27 }
 0x186   : > { %v1533_v23 = vadd.f32 (!%p1967_p5), %v1532_v19, %v1528_v13  ;;  %v1542_v24 = vadd.f32 (!%p1967_p5), %v1541_v20, %v1529_v14  ;;  %v1506_v39 = vshrl.u32 (!%p1967_p5), %v1505_v29, 7  ;;  %vm1520_vm1 = vcmp.lt.s32.totalorder (!%p1967_p5), %v1505_v29, 256 }
 0x187   : > { %v1484_v21 = vrot.slane (!%p1967_p5), %v1483_v15, 4  ;;  %v1493_v22 = vrot.slane (!%p1967_p5), %v1492_v16, 4  ;;  %v1504_v38 = vunpack.c.0.s8 (!%p1967_p5), %v1503_v28 }
 0x188   : > { %v1534_v30 = vadd.f32 (!%p1967_p5), %v1533_v23, %v1530_v17  ;;  %v1543_v31 = vadd.f32 (!%p1967_p5), %v1542_v24, %v1531_v18 }
 0x189   : > { %v1485_v25 = vadd.f32 %v1484_v21, %v1483_v15  ;;  %v1494_v26 = vadd.f32 %v1493_v22, %v1492_v16  ;;  %v1507_v48 = vsub.s32 %v1504_v38, %v1506_v39 }
 0x18a   : > { %v1535_v34 = vrot.slane %v1534_v30, 4  ;;  %v1544_v35 = vrot.slane %v1543_v31, 4 }
 0x18b   : > { %v1486_v32 = vrot.slane %v1485_v25, 2  ;;  %v1495_v33 = vrot.slane %v1494_v26, 2 }
 0x18c   : > { %v1536_v40 = vadd.f32 %v1535_v34, %v1534_v30  ;;  %v1545_v41 = vadd.f32 %v1544_v35, %v1543_v31 }
 0x18d   : > { %v1487_v36 = vadd.f32 %v1486_v32, %v1485_v25  ;;  %v1496_v37 = vadd.f32 %v1495_v33, %v1494_v26 }
 0x18e   : > { %v1537_v44 = vrot.slane %v1536_v40, 2  ;;  %v1546_v45 = vrot.slane %v1545_v41, 2 }
 0x18f   : > { %v1488_v42 = vrot.slane %v1487_v36, 1  ;;  %v1497_v43 = vrot.slane %v1496_v37, 1 }
 0x190   : > { %v1538_v49 = vadd.f32 %v1537_v44, %v1536_v40  ;;  %v1547_v50 = vadd.f32 %v1546_v45, %v1545_v41 }
 0x191   : > { %v1489_v46 = vadd.f32 %v1488_v42, %v1487_v36  ;;  %v1498_v47 = vadd.f32 %v1497_v43, %v1496_v37 }
 0x192   : > { %v1539_v52 = vrot.slane %v1538_v49, 1  ;;  %v1548_v55 = vrot.slane %v1547_v50, 1 }
 0x193   : > { %v1501_v51 = vcombine.low %v1489_v46, %v1498_v47 }
 0x194   : > { %v1540_v60 = vadd.f32 %v1539_v52, %v1538_v49  ;;  %v1549_v63 = vadd.f32 %v1548_v55, %v1547_v50 }
 0x195   : > { %v1508_v56 = vrot.slane %v1501_v51, %v1507_v48 }
 0x196   : > { %v1552_v3 = vcombine.low %v1540_v60, %v1549_v63 }
 0x197   : > { %v1515_v0 = vrot.slane %v1508_v56, %v1507_v48 }
 0x198   : > { %v1559_v5 = vrot.slane %v1552_v3, %v1507_v48 }
 0x199   : > { %v1517_v4 = vadd.f32 %v1515_v0, %v1480_v59 }
 0x19a   : > { %v1566_v7 = vrot.slane %v1559_v5, %v1507_v48 }
 0x19b   : > { %1522 = vst.msk [vmem:[#allocation2] sm:$0x3] %vm1520_vm1, %v1517_v4 }
 0x19c   : > { %v1568_v8 = vadd.f32 %v1566_v7, %v1523_v6 }
 0x19e   : > { %1569 = vst.msk [vmem:[#allocation3] sm:$0x3] %vm1520_vm1, %v1568_v8 }
 0x19f PF: > { %1571 = sbr.rel (!%p1465_p4) target bundleno = 692 (0x2b4), region = 48  ;;  %s2322_s9 = smov (%p1465_p4), 64   ;;  %v1608_v28 = vlaneseq (%p1465_p4)  ;;  %v1602_v30 = vld [vmem:[%s2955_s2] sm:$0x1] (%p1465_p4)  ;;  %v2323_v39 = vmov (%p1465_p4), 1966171168  }
 0x1a0   : > { %v1604_v34 = vld [vmem:[%s2956_s3] sm:$0x1] (%p1465_p4)  ;;  %v1620_v40 = vunpack.c.l.s4 (%p1465_p4), %v2323_v39  ;;  %vm1615_vm2 = vcmask (%p1465_p4), 523264  }
 0x1a1   : > { %v1609_v29 = vshrl.u32 (%p1465_p4), %v1608_v28, 7  ;;  %vm1636_vm3 = vcmp.lt.s32.totalorder (%p1465_p4), %v1608_v28, 256 }
 0x1a2   : > { %v1572_v9 = vld [vmem:[#allocation2] sm:$0x3] (%p1465_p4)  ;;  %v1621_v41 = vunpack.c.0.s8 (%p1465_p4), %v1620_v40 }
 0x1a3   : > { %1575 = vrot.lane.b32.xlu0 (%p1465_p4), %v1572_v9, %s2322_s9  ;;  %v1584_v11 = vrot.slane (%p1465_p4), %v1572_v9, 1  ;;  %v1610_v31 = vsub.s32 (%p1465_p4), 0, %v1609_v29 }
 0x1a4   : > { %v1624_v42 = vsub.s32 (%p1465_p4), %v1621_v41, %v1609_v29 }
 0x1a5   : > { %v1573_v10 = vld [vmem:[#allocation3] sm:$0x3] (%p1465_p4) }
 0x1a6   : > { %v1587_v14 = vrot.slane %v1573_v10, 1 }
 0x1a7   : > { %1580 = vrot.lane.b32.xlu0 %v1573_v10, %s2322_s9 }
 0x215   : > { %v1576_v12 = vpop.permute.xlu0 %1575 }
 0x216   : > { %v1578_v13 = vadd.f32 %v1576_v12, %v1572_v9  ;;  %v1590_v16 = vrot.slane %v1576_v12, 1 }
 0x218   : > { %v1586_v15 = vadd.f32 %v1584_v11, %v1578_v13 }
 0x219   : > { %v1581_v17 = vpop.permute.xlu0 %1580 }
 0x21a   : > { %v1592_v18 = vadd.f32 %v1590_v16, %v1586_v15  ;;  %v1583_v19 = vadd.f32 %v1581_v17, %v1573_v10  ;;  %v1593_v22 = vrot.slane %v1581_v17, 1 }
 0x21c   : > { %v1596_v20 = vmul.f32 0.0078125, %v1592_v18  ;;  %v1589_v21 = vadd.f32 %v1587_v14, %v1583_v19 }
 0x21e   : > { %v1595_v23 = vadd.f32 %v1593_v22, %v1589_v21  ;;  %v1598_v24 = vmul.f32 %v1596_v20, %v1596_v20 }
 0x220   : > { %v1597_v25 = vmul.f32 0.0078125, %v1595_v23 }
 0x222   : > { %v1599_v26 = vsub.f32 %v1597_v25, %v1598_v24 }
 0x224   : > { %v1600_v27 = vadd.f32 1e-05, %v1599_v26 }
 0x226   : > { %2293 = vrsqrt.f32 %v1600_v27 }
 0x230   : > { %v2294_v32 = vpop.eup %2293 }
 0x231   : > { %v1603_v33 = vmul.f32 %v2294_v32, %v1602_v30 }
 0x233   : > { %v1611_v35 = vrot.slane %v1603_v33, %v1610_v31  ;;  %v1605_v36 = vmul.f32 %v1603_v33, %v1596_v20 }
 0x235   : > { %1612 = vrot.lane.b32.xlu1 %v1611_v35, %s2322_s9  ;;  %v1606_v37 = vsub.f32 %v1604_v34, %v1605_v36 }
 0x237   : > { %v1643_v38 = vrot.slane %v1606_v37, %v1610_v31 }
 0x239   : > { %1644 = vrot.lane.b32.xlu1 %v1643_v38, %s2322_s9 }
 0x2a7   : > { %v1613_v43 = vpop.permute.xlu1 %1612 }
 0x2a8   : > { %v1616_v44 = vsel %vm1615_vm2, %v1603_v33, %v1613_v43 }
 0x2a9   : > { %v1618_v45 = vcombine.low %v1616_v44, %v1616_v44 }
 0x2ab   : > { %v1625_v46 = vrot.slane %v1618_v45, %v1624_v42  ;;  %v1645_v47 = vpop.permute.xlu1 %1644 }
 0x2ac   : > { %v1647_v48 = vsel %vm1615_vm2, %v1606_v37, %v1645_v47 }
 0x2ad   : > { %v1632_v49 = vrot.slane %v1625_v46, %v1624_v42  ;;  %v1649_v50 = vcombine.low %v1647_v48, %v1647_v48 }
 0x2af   : > { %1638 = vst.msk [vmem:[#allocation4] sm:$0x3] %vm1636_vm3, %v1632_v49  ;;  %v1656_v51 = vrot.slane %v1649_v50, %v1624_v42 }
 0x2b1   : > { %v1663_v52 = vrot.slane %v1656_v51, %v1624_v42 }
 0x2b3   : > { %1665 = vst.msk [vmem:[#allocation5] sm:$0x3] %vm1636_vm3, %v1663_v52 }
 0x2b4 PF: > { %p1968_p6 = scmp.ne.s32.totalorder %s2309_s15, 1 }
 0x2b5   : > { %v1672_v55 = vlaneseq (!%p1968_p6) }
 0x2b6   : > { %1669 = sbr.rel (%p1968_p6) target bundleno = 711 (0x2c7), region = 52  ;;  %v1670_v59 = vld [vmem:[#allocation4] sm:$0x3] (!%p1968_p6) }
 0x2b7   : > { %v1673_v56 = vshrl.u32 (!%p1968_p6), %v1672_v55, 7 }
 0x2b9   : > { %v1674_v63 = vsub.s32 (!%p1968_p6), 0, %v1673_v56  ;;  %v1678_v0 = vsub.s32 (!%p1968_p6), 1, %v1673_v56 }
 0x2ba   : > { %v1690_v60 = vld [vmem:[#allocation5] sm:$0x3] (!%p1968_p6) }
 0x2bb   : > { %v1675_v3 = vrot.slane (!%p1968_p6), %v1670_v59, %v1674_v63  ;;  %v1695_v4 = vrot.slane (!%p1968_p6), %v1690_v60, %v1674_v63  ;;  %v1679_v5 = vrot.slane (!%p1968_p6), %v1670_v59, %v1678_v0  ;;  %v1699_v6 = vrot.slane (!%p1968_p6), %v1690_v60, %v1678_v0 }
 0x2bd   : > { %v1682_v7 = vmul.f32 %v2856_v53, %v1675_v3  ;;  %v1683_v8 = vmul.f32 %v2860_v57, %v1679_v5  ;;  %v1684_v9 = vmul.f32 %v2864_v61, %v1675_v3  ;;  %v1685_v10 = vmul.f32 %v2868_v1, %v1679_v5 }
 0x2be   : > { %v1686_v11 = vmul.f32 %v2858_v54, %v1675_v3  ;;  %v1687_v12 = vmul.f32 %v2862_v58, %v1679_v5  ;;  %v1688_v13 = vmul.f32 %v2866_v62, %v1675_v3  ;;  %v1689_v14 = vmul.f32 %v2870_v2, %v1679_v5 }
 0x2bf   : > { %v1702_v15 = vadd.f32 %v1695_v4, %v1682_v7  ;;  %v1703_v16 = vadd.f32 %v1699_v6, %v1683_v8  ;;  %v1704_v17 = vadd.f32 %v1695_v4, %v1684_v9  ;;  %v1705_v18 = vadd.f32 %v1699_v6, %v1685_v10 }
 0x2c0   : > { %v1706_v19 = vadd.f32 %v1695_v4, %v1686_v11  ;;  %v1707_v53 = vadd.f32 %v1699_v6, %v1687_v12  ;;  %v1708_v20 = vadd.f32 %v1695_v4, %v1688_v13  ;;  %v1709_v57 = vadd.f32 %v1699_v6, %v1689_v14 }
 0x2c1   : > { %v1710_v21 = vmax.f32 %v1702_v15, 0.0  ;;  %v1711_v61 = vmax.f32 %v1703_v16, 0.0  ;;  %v1712_v22 = vmax.f32 %v1704_v17, 0.0  ;;  %v1713_v1 = vmax.f32 %v1705_v18, 0.0 }
 0x2c2   : > { %v1714_v23 = vmax.f32 %v1706_v19, 0.0  ;;  %v1715_v54 = vmax.f32 %v1707_v53, 0.0  ;;  %v1716_v24 = vmax.f32 %v1708_v20, 0.0  ;;  %v1717_v58 = vmax.f32 %v1709_v57, 0.0 }
 0x2c3   : > { %1718 = vst [vmem:[%s2957_s4] sm:$0xff] %v1710_v21  ;;  %1719 = vst [vmem:[%s2957_s4 + $0x8] sm:$0xff] %v1711_v61 }
 0x2c4   : > { %1720 = vst [vmem:[%s2957_s4 + $0x10] sm:$0xff] %v1712_v22  ;;  %1721 = vst [vmem:[%s2957_s4 + $0x18] sm:$0xff] %v1713_v1 }
 0x2c5   : > { %1722 = vst [vmem:[%s2957_s4 + $0x20] sm:$0xff] %v1714_v23  ;;  %1723 = vst [vmem:[%s2957_s4 + $0x28] sm:$0xff] %v1715_v54 }
 0x2c6   : > { %1724 = vst [vmem:[%s2957_s4 + $0x30] sm:$0xff] %v1716_v24  ;;  %1725 = vst [vmem:[%s2957_s4 + $0x38] sm:$0xff] %v1717_v58 }
 0x2c7 PF: > { %s14_s17 = sadd.s32 1, %s2317_s17   ;;  %s2958_s15 = smov %s2313_s16 }
 0x2c8   : > { %p11_p7 = scmp.ge.s32.totalorder %s14_s17, 4   ;;  %s2959_s16 = smov %s2961_s18 }
 0x2ca   :  { %13 = sbr.rel (!%p11_p7) target bundleno = 2 (0x2), region = 82 }

// kernel: generator_forward.7
= control target key start
LH: loop header
LB: loop body
LE: loop exit
PB: predicated region body
PF: predicated region fallthrough
CT: control target
= control target key end

     0   :  { %s1827_s15 = smov 0   ;;  %s1829_s16 = smov 0   ;;  %s2287_s0 = inlined_call_operand.vmem [shape: bf16[128,576], index: 0, kind: input, shape index: {}]   ;;  %s2288_s1 = inlined_call_operand.vmem [shape: bf16[576,128], index: 1, kind: input, shape index: {}]   ;;  %s2289_s2 = inlined_call_operand.vmem [shape: f32[1,32], index: 2, kind: input, shape index: {}]   ;;  %s2290_s3 = inlined_call_operand.vmem [shape: f32[1,32], index: 3, kind: input, shape index: {}]   ;;  %s2291_s4 = inlined_call_operand.vmem [shape: f32[128,128], index: 4, kind: output, shape index: {}]  }
   0x1   :  { %s1831_s17 = smov 0  }
   0x2 LB: > { %s26_s18 = sadd.s32 1, %s1792_s16  ;;  %p1385_p0 = scmp.ge.s32.totalorder %s1796_s17, 1  ;;  %s1796_s17 = sphi %s1831_s17, %s14_s17   ;;  %s1792_s16 = sphi %s1829_s16, %s2293_s16   ;;  %s1788_s15 = sphi %s1827_s15, %s2292_s15  }
   0x3   : > { %p28_p1 = scmp.ge.s32.totalorder %s26_s18, 2  ;;  %p178_p2 = scmp.lt.s32.totalorder %s1796_s17, 3 }
   0x5   : > { %s2295_s18 = smov (%p28_p1, %s26_s18), 0  ;;  %p179_p3 = pnand %p1385_p0, %p178_p2 }
   0x6   : > { %v1680_v0 = vld [vmem:[%s2288_s1 + $0x40] sm:$0xff] (!%p179_p3)   ;;  %v1684_v4 = vld [vmem:[%s2288_s1 + $0x48] sm:$0xff] (!%p179_p3)   ;;  %v1688_v8 = vld [vmem:[%s2288_s1 + $0x50] sm:$0xff] (!%p179_p3)   ;;  %vm758_vm0 = vcmask (!%p179_p3), 523264   ;;  %p1074_p4 = scmp.eq.s32.totalorder (!%p179_p3), %s1788_s15, 0 }
   0x7   : > { %182 = sbr.rel (%p179_p3) target bundleno = 678 (0x2a6), region = 36  ;;  %v1681_v1 = vld [vmem:[%s2288_s1 + $0xc0] sm:$0xff] (!%p179_p3)   ;;  %1480 = vmatprep.subr.bf16.mxu0 (!%p179_p3), %v1680_v0  ;;  %v1685_v5 = vld [vmem:[%s2288_s1 + $0xc8] sm:$0xff] (!%p179_p3)   ;;  %v1689_v9 = vld [vmem:[%s2288_s1 + $0xd0] sm:$0xff] (!%p179_p3)  }
   0x8   : > { %v1682_v2 = vld [vmem:[%s2288_s1] sm:$0xff] (!%p179_p3)   ;;  %1544 = vmatprep.subr.bf16.mxu1 (!%p179_p3), %v1681_v1  ;;  %v1686_v6 = vld [vmem:[%s2288_s1 + $0x8] sm:$0xff] (!%p179_p3)   ;;  %v1690_v10 = vld [vmem:[%s2288_s1 + $0x10] sm:$0xff] (!%p179_p3)  }
   0x9   : > { %v1683_v3 = vld [vmem:[%s2288_s1 + $0x80] sm:$0xff] (!%p179_p3)   ;;  %1481 = vmatpush3.bf16.msra.mxu0 (!%p179_p3), %v1682_v2  ;;  %v1687_v7 = vld [vmem:[%s2288_s1 + $0x88] sm:$0xff] (!%p179_p3)   ;;  %v1691_v11 = vld [vmem:[%s2288_s1 + $0x90] sm:$0xff] (!%p179_p3)  }
   0xa   : > { %1545 = vmatpush3.bf16.msra.mxu1 (!%p179_p3), %v1683_v3  ;;  %1482 = vmatprep.subr.bf16.mxu0 (!%p179_p3), %v1684_v4  ;;  %v1692_v12 = vld [vmem:[%s2288_s1 + $0x58] sm:$0xff] (!%p179_p3)   ;;  %v1696_v16 = vld [vmem:[%s2288_s1 + $0x60] sm:$0xff] (!%p179_p3)   ;;  %v1700_v20 = vld [vmem:[%s2288_s1 + $0x68] sm:$0xff] (!%p179_p3)  }
   0xb   : > { %1546 = vmatprep.subr.bf16.mxu1 (!%p179_p3), %v1685_v5  ;;  %v1693_v13 = vld [vmem:[%s2288_s1 + $0xd8] sm:$0xff] (!%p179_p3)   ;;  %v1697_v17 = vld [vmem:[%s2288_s1 + $0xe0] sm:$0xff] (!%p179_p3)   ;;  %v1701_v21 = vld [vmem:[%s2288_s1 + $0xe8] sm:$0xff] (!%p179_p3)  }
   0xc   : > { %v1694_v14 = vld [vmem:[%s2288_s1 + $0x18] sm:$0xff] (!%p179_p3)   ;;  %v1698_v18 = vld [vmem:[%s2288_s1 + $0x20] sm:$0xff] (!%p179_p3)   ;;  %v1702_v22 = vld [vmem:[%s2288_s1 + $0x28] sm:$0xff] (!%p179_p3)  }
   0xd   : > { %1483 = vmatpush3.bf16.msra.mxu0 (!%p179_p3), %v1686_v6  ;;  %v1695_v15 = vld [vmem:[%s2288_s1 + $0x98] sm:$0xff] (!%p179_p3)   ;;  %v1699_v19 = vld [vmem:[%s2288_s1 + $0xa0] sm:$0xff] (!%p179_p3)   ;;  %v1703_v23 = vld [vmem:[%s2288_s1 + $0xa8] sm:$0xff] (!%p179_p3)  }
   0xe   : > { %1547 = vmatpush3.bf16.msra.mxu1 %v1687_v7  ;;  %1484 = vmatprep.subr.bf16.mxu0 %v1688_v8  ;;  %v1704_v24 = vld [vmem:[%s2288_s1 + $0x70] sm:$0xff]   ;;  %v1708_v28 = vld [vmem:[%s2288_s1 + $0x78] sm:$0xff]   ;;  %v1717_v35 = vld [vmem:[%s2287_s0 + $0xc] ss:$20 sps:$4 sm:$0xff]  }
   0xf   : > { %1548 = vmatprep.subr.bf16.mxu1 %v1689_v9  ;;  %v1705_v25 = vld [vmem:[%s2288_s1 + $0xf0] sm:$0xff]   ;;  %v1709_v29 = vld [vmem:[%s2288_s1 + $0xf8] sm:$0xff]   ;;  %v1718_v36 = vld [vmem:[%s2288_s1 + $0x100] sm:$0xff]   ;;  %912 = vmatprep.mubr.bf16.mxu1 %v1717_v35 }
  0x10   : > { %v1706_v26 = vld [vmem:[%s2288_s1 + $0x30] sm:$0xff]   ;;  %v1710_v30 = vld [vmem:[%s2288_s1 + $0x38] sm:$0xff]   ;;  %v1719_v37 = vld [vmem:[%s2287_s0 + $0x2c] ss:$20 sps:$4 sm:$0xff]  }
  0x11   : > { %1485 = vmatpush3.bf16.msra.mxu0 %v1690_v10  ;;  %v1707_v27 = vld [vmem:[%s2288_s1 + $0xb0] sm:$0xff]   ;;  %v1711_v31 = vld [vmem:[%s2288_s1 + $0xb8] sm:$0xff]   ;;  %v1731_v42 = vld [vmem:[%s2288_s1 + $0x108] sm:$0xff]  }
  0x12   : > { %1549 = vmatpush3.bf16.msra.mxu1 %v1691_v11  ;;  %1486 = vmatprep.subr.bf16.mxu0 %v1692_v12  ;;  %v1712_v32 = vld [vmem:[%s2287_s0] ss:$20 sps:$4 sm:$0xff]   ;;  %v1714_v33 = vld [vmem:[%s2287_s0 + $0x4] ss:$20 sps:$4 sm:$0xff]   ;;  %v1715_v34 = vld [vmem:[%s2287_s0 + $0x8] ss:$20 sps:$4 sm:$0xff]  }
  0x13   : > { %1550 = vmatprep.subr.bf16.mxu1 %v1693_v13  ;;  %815 = vmatprep.mubr.bf16.mxu0 %v1714_v33  ;;  %v1721_v38 = vld [vmem:[%s2287_s0 + $0x34] ss:$20 sps:$4 sm:$0xff]   ;;  %v1724_v40 = vld [vmem:[%s2287_s0 + $0x30] ss:$20 sps:$4 sm:$0xff]   ;;  %v1730_v45 = vld [vmem:[%s2287_s0 + $0x58] ss:$20 sps:$4 sm:$0xff]  }
  0x14   : > { %v1723_v39 = vld [vmem:[%s2287_s0 + $0x28] ss:$20 sps:$4 sm:$0xff]   ;;  %v1729_v44 = vld [vmem:[%s2287_s0 + $0x50] ss:$20 sps:$4 sm:$0xff]   ;;  %v1736_v50 = vld [vmem:[%s2287_s0 + $0x78] ss:$20 sps:$4 sm:$0xff]  }
  0x15   : > { %1487 = vmatpush3.bf16.msra.mxu0 %v1694_v14  ;;  %v1725_v41 = vld [vmem:[%s2287_s0 + $0x54] ss:$20 sps:$4 sm:$0xff]   ;;  %v1727_v43 = vld [vmem:[%s2287_s0 + $0x5c] ss:$20 sps:$4 sm:$0xff]   ;;  %v1734_v48 = vld [vmem:[%s2287_s0 + $0x84] ss:$20 sps:$4 sm:$0xff]  }
  0x16   : > { %1551 = vmatpush3.bf16.msra.mxu1 %v1695_v15  ;;  %1488 = vmatprep.subr.bf16.mxu0 %v1696_v16  ;;  %v1744_v46 = vld [vmem:[%s2288_s1 + $0x110] sm:$0xff]   ;;  %v1757_v49 = vld [vmem:[%s2288_s1 + $0x118] sm:$0xff]   ;;  %v1740_v53 = vld [vmem:[%s2287_s0 + $0xac] ss:$20 sps:$4 sm:$0xff]  }
  0x17   : > { %1552 = vmatprep.subr.bf16.mxu1 %v1697_v17  ;;  %v1732_v47 = vld [vmem:[%s2287_s0 + $0x7c] ss:$20 sps:$4 sm:$0xff]   ;;  %v1737_v51 = vld [vmem:[%s2287_s0 + $0x80] ss:$20 sps:$4 sm:$0xff]   ;;  %v1738_v52 = vld [vmem:[%s2287_s0 + $0xa4] ss:$20 sps:$4 sm:$0xff]  }
  0x18   : > { %v1742_v54 = vld [vmem:[%s2287_s0 + $0xa0] ss:$20 sps:$4 sm:$0xff]   ;;  %v1743_v55 = vld [vmem:[%s2287_s0 + $0xa8] ss:$20 sps:$4 sm:$0xff]   ;;  %v1750_v59 = vld [vmem:[%s2287_s0 + $0xd0] ss:$20 sps:$4 sm:$0xff]  }
  0x19   : > { %1489 = vmatpush3.bf16.msra.mxu0 %v1698_v18  ;;  %v1745_v56 = vld [vmem:[%s2287_s0 + $0xcc] ss:$20 sps:$4 sm:$0xff]   ;;  %v1747_v57 = vld [vmem:[%s2287_s0 + $0xd4] ss:$20 sps:$4 sm:$0xff]   ;;  %v1753_v61 = vld [vmem:[%s2287_s0 + $0xfc] ss:$20 sps:$4 sm:$0xff]  }
  0x1a   : > { %1553 = vmatpush3.bf16.msra.mxu1 %v1699_v19  ;;  %1490 = vmatprep.subr.bf16.mxu0 %v1700_v20  ;;  %v1749_v58 = vld [vmem:[%s2287_s0 + $0xc8] ss:$20 sps:$4 sm:$0xff]   ;;  %v1755_v62 = vld [vmem:[%s2287_s0 + $0xf0] ss:$20 sps:$4 sm:$0xff]   ;;  %v1756_v63 = vld [vmem:[%s2287_s0 + $0xf8] ss:$20 sps:$4 sm:$0xff]  }
  0x1b   : > { %1554 = vmatprep.subr.bf16.mxu1 %v1701_v21  ;;  %v1751_v60 = vld [vmem:[%s2287_s0 + $0xf4] ss:$20 sps:$4 sm:$0xff]   ;;  %v1758_v0 = vld [vmem:[%s2287_s0 + $0x11c] ss:$20 sps:$4 sm:$0xff]   ;;  %v1760_v1 = vld [vmem:[%s2287_s0 + $0x124] ss:$20 sps:$4 sm:$0xff]  }
  0x1c   : > { %v1762_v2 = vld [vmem:[%s2287_s0 + $0x118] ss:$20 sps:$4 sm:$0xff]   ;;  %v1763_v3 = vld [vmem:[%s2287_s0 + $0x120] ss:$20 sps:$4 sm:$0xff]   ;;  %v1764_v4 = vld [vmem:[%s2287_s0 + $0x10] ss:$20 sps:$4 sm:$0xff]  }
  0x1d   : > { %1491 = vmatpush3.bf16.msra.mxu0 %v1702_v22  ;;  %v1765_v5 = vld [vmem:[%s2287_s0 + $0xb0] ss:$20 sps:$4 sm:$0xff]   ;;  %v1766_v6 = vld [vmem:[%s2287_s0 + $0x38] ss:$20 sps:$4 sm:$0xff]   ;;  %v1768_v8 = vld [vmem:[%s2287_s0 + $0x60] ss:$20 sps:$4 sm:$0xff]  }
  0x1e   : > { %1555 = vmatpush3.bf16.msra.mxu1 %v1703_v23  ;;  %1492 = vmatprep.subr.bf16.mxu0 %v1704_v24  ;;  %v1767_v7 = vld [vmem:[%s2287_s0 + $0xd8] ss:$20 sps:$4 sm:$0xff]   ;;  %v1769_v9 = vld [vmem:[%s2287_s0 + $0x100] ss:$20 sps:$4 sm:$0xff]   ;;  %v1770_v10 = vld [vmem:[%s2287_s0 + $0x88] ss:$20 sps:$4 sm:$0xff]  }
  0x1f   : > { %1556 = vmatprep.subr.bf16.mxu1 %v1705_v25  ;;  %v1771_v11 = vld [vmem:[%s2287_s0 + $0x128] ss:$20 sps:$4 sm:$0xff]  }
  0x21   : > { %1493 = vmatpush3.bf16.msra.mxu0 %v1706_v26 }
  0x22   : > { %1557 = vmatpush3.bf16.msra.mxu1 %v1707_v27  ;;  %1494 = vmatprep.subr.bf16.mxu0 %v1708_v28 }
  0x23   : > { %1558 = vmatprep.subr.bf16.mxu1 %v1709_v29 }
  0x25   : > { %1495 = vmatpush3.bf16.msra.mxu0 %v1710_v30 }
  0x26   : > { %1559 = vmatpush3.bf16.msra.mxu1 %v1711_v31  ;;  %1620 = vmatprep.subr.bf16.mxu0 %v1718_v36 }
  0x27   : > { %1644 = vmatprep.subr.bf16.mxu1 %v1718_v36 }
  0x28   : > { %816 = vmatmul.mubr.bf16.vlgmr.msra.gmra.mrb[0].mxu0 %v1712_v32 }
  0x29   : > { %913 = vmatmul.mubr.bf16.vlgmr.msra.gmra.mrb[0].mxu1 %v1715_v34  ;;  %1621 = vmatpush3.bf16.msra.mxu0 %v1718_v36 }
  0x2a   : > { %1648 = vmatpush3.bf16.msra.mxu1 %v1718_v36  ;;  %823 = vmatprep.mubr.bf16.mxu0 %v1719_v37 }
  0x2b   : > { %920 = vmatprep.mubr.bf16.mxu1 %v1721_v38  ;;  %1622 = vmatprep.subr.bf16.mxu0 %v1731_v42 }
  0x2c   : > { %1645 = vmatprep.subr.bf16.mxu1 %v1731_v42 }
  0x2d   : > { %1623 = vmatpush3.bf16.msra.mxu0 %v1731_v42 }
  0x2e   : > { %1649 = vmatpush3.bf16.msra.mxu1 %v1731_v42  ;;  %1624 = vmatprep.subr.bf16.mxu0 %v1744_v46 }
  0x2f   : > { %1646 = vmatprep.subr.bf16.mxu1 %v1744_v46 }
  0x30   : > { %824 = vmatmul.mubr.bf16.gmra.mrb[4].mxu0 %v1723_v39 }
  0x31   : > { %921 = vmatmul.mubr.bf16.gmra.mrb[4].mxu1 %v1724_v40  ;;  %831 = vmatprep.mubr.bf16.mxu0 %v1725_v41 }
  0x32   : > { %928 = vmatprep.mubr.bf16.mxu1 %v1727_v43  ;;  %1625 = vmatpush3.bf16.msra.mxu0 %v1744_v46 }
  0x33   : > { %1650 = vmatpush3.bf16.msra.mxu1 %v1744_v46  ;;  %1626 = vmatprep.subr.bf16.mxu0 %v1757_v49 }
  0x34   : > { %1647 = vmatprep.subr.bf16.mxu1 %v1757_v49 }
  0x36   : > { %1627 = vmatpush3.bf16.msra.mxu0 %v1757_v49 }
  0x37   : > { %1651 = vmatpush3.bf16.msra.mxu1 %v1757_v49 }
  0x38   : > { %832 = vmatmul.mubr.bf16.gmra.mrb[8].mxu0 %v1729_v44 }
  0x39   : > { %929 = vmatmul.mubr.bf16.gmra.mrb[8].mxu1 %v1730_v45  ;;  %839 = vmatprep.mubr.bf16.mxu0 %v1732_v47 }
  0x3a   : > { %936 = vmatprep.mubr.bf16.mxu1 %v1734_v48 }
  0x40   : > { %840 = vmatmul.mubr.bf16.gmra.mrb[12].mxu0 %v1736_v50 }
  0x41   : > { %937 = vmatmul.mubr.bf16.gmra.mrb[12].mxu1 %v1737_v51  ;;  %847 = vmatprep.mubr.bf16.mxu0 %v1738_v52 }
  0x42   : > { %944 = vmatprep.mubr.bf16.mxu1 %v1740_v53 }
  0x48   : > { %848 = vmatmul.mubr.bf16.gmra.mrb[16].mxu0 %v1742_v54 }
  0x49   : > { %945 = vmatmul.mubr.bf16.gmra.mrb[16].mxu1 %v1743_v55  ;;  %855 = vmatprep.mubr.bf16.mxu0 %v1745_v56 }
  0x4a   : > { %952 = vmatprep.mubr.bf16.mxu1 %v1747_v57 }
  0x50   : > { %856 = vmatmul.mubr.bf16.gmra.mrb[20].mxu0 %v1749_v58 }
  0x51   : > { %953 = vmatmul.mubr.bf16.gmra.mrb[20].mxu1 %v1750_v59  ;;  %863 = vmatprep.mubr.bf16.mxu0 %v1751_v60 }
  0x52   : > { %960 = vmatprep.mubr.bf16.mxu1 %v1753_v61 }
  0x58   : > { %864 = vmatmul.mubr.bf16.gmra.mrb[24].mxu0 %v1755_v62 }
  0x59   : > { %961 = vmatmul.mubr.bf16.gmra.mrb[24].mxu1 %v1756_v63  ;;  %871 = vmatprep.mubr.bf16.mxu0 %v1758_v0 }
  0x5a   : > { %968 = vmatprep.mubr.bf16.mxu1 %v1760_v1 }
  0x60   : > { %872 = vmatmul.mubr.bf16.gmra.mrb[28].mxu0 %v1762_v2 }
  0x61   : > { %969 = vmatmul.mubr.bf16.gmra.mrb[28].mxu1 %v1763_v3  ;;  %1628 = vmatprep.mubr.msk.bf16.mxu0 %vm758_vm0, %v1764_v4 }
  0x62   : > { %1636 = vmatprep.mubr.msk.bf16.mxu1 %vm758_vm0, %v1765_v5 }
  0x68   : > { %1629 = vmatmul.mubr.msk.bf16.vlgmr.msra.gmra.mrb[32].mxu0 %vm758_vm0, %v1766_v6 }
  0x69   : > { %1637 = vmatmul.mubr.msk.bf16.vlgmr.msra.gmra.mrb[32].mxu1 %vm758_vm0, %v1767_v7  ;;  %1632 = vmatprep.mubr.msk.bf16.mxu0 %vm758_vm0, %v1768_v8 }
  0x6a   : > { %1640 = vmatprep.mubr.msk.bf16.mxu1 %vm758_vm0, %v1769_v9 }
  0x70   : > { %1633 = vmatmul.mubr.msk.bf16.gmra.mrb[36].mxu0 %vm758_vm0, %v1770_v10 }
  0x71   : > { %1641 = vmatmul.mubr.msk.bf16.gmra.mrb[36].mxu1 %vm758_vm0, %v1771_v11 }
  0xfb   : > { %v1496_v12 = vpop.f32.mrb[0].mxu0 }
  0xfc   : > { %v1560_v13 = vpop.f32.mrb[0].mxu1  ;;  %v1497_v14 = vpop.f32.mrb[1].mxu0 }
  0xfd   : > { %v1498_v15 = vadd.f32 %v1497_v14, %v1496_v12  ;;  %v1561_v16 = vpop.f32.mrb[1].mxu1  ;;  %v1499_v17 = vpop.f32.mrb[2].mxu0 }
  0xfe   : > { %v1562_v18 = vadd.f32 %v1561_v16, %v1560_v13  ;;  %v1563_v19 = vpop.f32.mrb[2].mxu1  ;;  %v1500_v20 = vpop.f32.mrb[3].mxu0 }
  0xff   : > { %v1501_v21 = vadd.f32 %v1500_v20, %v1499_v17  ;;  %v1564_v22 = vpop.f32.mrb[3].mxu1 }
 0x100   : > { %v1565_v23 = vadd.f32 %v1564_v22, %v1563_v19  ;;  %v2084_v24 = vadd.f32 %v1562_v18, %v1498_v15 }
 0x102   : > { %v2086_v25 = vadd.f32 %v1565_v23, %v1501_v21 }
 0x103   : > { %v1502_v26 = vpop.f32.mrb[4].mxu0 }
 0x104   : > { %v1566_v27 = vpop.f32.mrb[4].mxu1  ;;  %v1503_v28 = vpop.f32.mrb[5].mxu0 }
 0x105   : > { %v1504_v29 = vadd.f32 %v1503_v28, %v1502_v26  ;;  %v1567_v30 = vpop.f32.mrb[5].mxu1  ;;  %v1505_v31 = vpop.f32.mrb[6].mxu0 }
 0x106   : > { %v1568_v32 = vadd.f32 %v1567_v30, %v1566_v27  ;;  %v1569_v33 = vpop.f32.mrb[6].mxu1  ;;  %v1506_v34 = vpop.f32.mrb[7].mxu0 }
 0x107   : > { %v1507_v35 = vadd.f32 %v1506_v34, %v1505_v31  ;;  %v1570_v36 = vpop.f32.mrb[7].mxu1 }
 0x108   : > { %v1571_v37 = vadd.f32 %v1570_v36, %v1569_v33  ;;  %v2088_v38 = vadd.f32 %v1568_v32, %v1504_v29 }
 0x10a   : > { %v2090_v39 = vadd.f32 %v1571_v37, %v1507_v35 }
 0x10b   : > { %v1508_v40 = vpop.f32.mrb[8].mxu0 }
 0x10c   : > { %v1572_v41 = vpop.f32.mrb[8].mxu1  ;;  %v1509_v42 = vpop.f32.mrb[9].mxu0 }
 0x10d   : > { %v1510_v43 = vadd.f32 %v1509_v42, %v1508_v40  ;;  %v1573_v44 = vpop.f32.mrb[9].mxu1  ;;  %v1511_v45 = vpop.f32.mrb[10].mxu0 }
 0x10e   : > { %v1574_v46 = vadd.f32 %v1573_v44, %v1572_v41  ;;  %v1575_v47 = vpop.f32.mrb[10].mxu1  ;;  %v1512_v48 = vpop.f32.mrb[11].mxu0 }
 0x10f   : > { %v1513_v49 = vadd.f32 %v1512_v48, %v1511_v45  ;;  %v1576_v50 = vpop.f32.mrb[11].mxu1 }
 0x110   : > { %v1577_v51 = vadd.f32 %v1576_v50, %v1575_v47  ;;  %v2092_v52 = vadd.f32 %v1574_v46, %v1510_v43 }
 0x112   : > { %v2094_v53 = vadd.f32 %v1577_v51, %v1513_v49 }
 0x113   : > { %v1514_v54 = vpop.f32.mrb[12].mxu0 }
 0x114   : > { %v1578_v55 = vpop.f32.mrb[12].mxu1  ;;  %v1515_v56 = vpop.f32.mrb[13].mxu0 }
 0x115   : > { %v1516_v57 = vadd.f32 %v1515_v56, %v1514_v54  ;;  %v1579_v58 = vpop.f32.mrb[13].mxu1  ;;  %v1517_v59 = vpop.f32.mrb[14].mxu0 }
 0x116   : > { %v1580_v60 = vadd.f32 %v1579_v58, %v1578_v55  ;;  %v1581_v61 = vpop.f32.mrb[14].mxu1  ;;  %v1518_v62 = vpop.f32.mrb[15].mxu0 }
 0x117   : > { %v1519_v63 = vadd.f32 %v1518_v62, %v1517_v59  ;;  %v1582_v0 = vpop.f32.mrb[15].mxu1 }
 0x118   : > { %v1583_v1 = vadd.f32 %v1582_v0, %v1581_v61  ;;  %v2096_v2 = vadd.f32 %v1580_v60, %v1516_v57 }
 0x11a   : > { %v2098_v3 = vadd.f32 %v1583_v1, %v1519_v63 }
 0x11b   : > { %v1520_v4 = vpop.f32.mrb[16].mxu0 }
 0x11c   : > { %v1584_v5 = vpop.f32.mrb[16].mxu1  ;;  %v1521_v6 = vpop.f32.mrb[17].mxu0 }
 0x11d   : > { %v1522_v7 = vadd.f32 %v1521_v6, %v1520_v4  ;;  %v1585_v8 = vpop.f32.mrb[17].mxu1  ;;  %v1523_v9 = vpop.f32.mrb[18].mxu0 }
 0x11e   : > { %v1586_v10 = vadd.f32 %v1585_v8, %v1584_v5  ;;  %v1587_v11 = vpop.f32.mrb[18].mxu1  ;;  %v1524_v12 = vpop.f32.mrb[19].mxu0 }
 0x11f   : > { %v1525_v13 = vadd.f32 %v1524_v12, %v1523_v9  ;;  %v1588_v14 = vpop.f32.mrb[19].mxu1 }
 0x120   : > { %v1589_v15 = vadd.f32 %v1588_v14, %v1587_v11  ;;  %v947_v16 = vadd.f32 %v1586_v10, %v1522_v7 }
 0x122   : > { %v950_v17 = vadd.f32 %v1589_v15, %v1525_v13 }
 0x123   : > { %v1526_v18 = vpop.f32.mrb[20].mxu0 }
 0x124   : > { %v1590_v19 = vpop.f32.mrb[20].mxu1  ;;  %v1527_v20 = vpop.f32.mrb[21].mxu0 }
 0x125   : > { %v1528_v21 = vadd.f32 %v1527_v20, %v1526_v18  ;;  %v1591_v22 = vpop.f32.mrb[21].mxu1  ;;  %v1529_v23 = vpop.f32.mrb[22].mxu0 }
 0x126   : > { %v1592_v26 = vadd.f32 %v1591_v22, %v1590_v19  ;;  %v1593_v27 = vpop.f32.mrb[22].mxu1  ;;  %v1530_v28 = vpop.f32.mrb[23].mxu0 }
 0x127   : > { %v1531_v29 = vadd.f32 %v1530_v28, %v1529_v23  ;;  %v1594_v30 = vpop.f32.mrb[23].mxu1 }
 0x128   : > { %v1595_v31 = vadd.f32 %v1594_v30, %v1593_v27  ;;  %v955_v32 = vadd.f32 %v1592_v26, %v1528_v21 }
 0x12a   : > { %v958_v33 = vadd.f32 %v1595_v31, %v1531_v29 }
 0x12b   : > { %v1532_v34 = vpop.f32.mrb[24].mxu0 }
 0x12c   : > { %v1596_v35 = vpop.f32.mrb[24].mxu1  ;;  %v1533_v36 = vpop.f32.mrb[25].mxu0 }
 0x12d   : > { %v1534_v37 = vadd.f32 %v1533_v36, %v1532_v34  ;;  %v1597_v40 = vpop.f32.mrb[25].mxu1  ;;  %v1535_v41 = vpop.f32.mrb[26].mxu0 }
 0x12e   : > { %v1598_v42 = vadd.f32 %v1597_v40, %v1596_v35  ;;  %v1599_v43 = vpop.f32.mrb[26].mxu1  ;;  %v1536_v44 = vpop.f32.mrb[27].mxu0 }
 0x12f   : > { %v1537_v45 = vadd.f32 %v1536_v44, %v1535_v41  ;;  %v1600_v46 = vpop.f32.mrb[27].mxu1 }
 0x130   : > { %v1601_v47 = vadd.f32 %v1600_v46, %v1599_v43  ;;  %v963_v48 = vadd.f32 %v1598_v42, %v1534_v37 }
 0x132   : > { %v966_v49 = vadd.f32 %v1601_v47, %v1537_v45 }
 0x133   : > { %v1538_v50 = vpop.f32.mrb[28].mxu0 }
 0x134   : > { %v1602_v51 = vpop.f32.mrb[28].mxu1  ;;  %v1539_v54 = vpop.f32.mrb[29].mxu0 }
 0x135   : > { %v1540_v55 = vadd.f32 %v1539_v54, %v1538_v50  ;;  %v1603_v56 = vpop.f32.mrb[29].mxu1  ;;  %v1541_v57 = vpop.f32.mrb[30].mxu0 }
 0x136   : > { %v1604_v58 = vadd.f32 %v1603_v56, %v1602_v51  ;;  %v1605_v59 = vpop.f32.mrb[30].mxu1  ;;  %v1542_v60 = vpop.f32.mrb[31].mxu0 }
 0x137   : > { %v1543_v61 = vadd.f32 %v1542_v60, %v1541_v57  ;;  %v1606_v62 = vpop.f32.mrb[31].mxu1 }
 0x138   : > { %v1607_v63 = vadd.f32 %v1606_v62, %v1605_v59  ;;  %v971_v0 = vadd.f32 %v1604_v58, %v1540_v55 }
 0x13a   : > { %v974_v1 = vadd.f32 %v1607_v63, %v1543_v61 }
 0x13b   : > { %v1630_v4 = vpop.f32.mrb[32].mxu0 }
 0x13c   : > { %v2101_v5 = vadd.f32 %v1630_v4, %v2088_v38  ;;  %v1638_v6 = vpop.f32.mrb[32].mxu1  ;;  %v1011_v7 = vpop.f32.mrb[33].mxu0 }
 0x13d   : > { %v2103_v8 = vadd.f32 %v1638_v6, %v955_v32  ;;  %v2106_v9 = vadd.f32 %v1011_v7, %v2084_v24  ;;  %v1043_v10 = vpop.f32.mrb[33].mxu1  ;;  %v1631_v11 = vpop.f32.mrb[34].mxu0 }
 0x13e   : > { %v2108_v12 = vadd.f32 %v1043_v10, %v947_v16  ;;  %v2111_v13 = vadd.f32 %v1631_v11, %v2090_v39  ;;  %v1639_v14 = vpop.f32.mrb[34].mxu1  ;;  %v1014_v15 = vpop.f32.mrb[35].mxu0 }
 0x13f   : > { %v2113_v18 = vadd.f32 %v1639_v14, %v958_v33  ;;  %v2116_v38 = vadd.f32 %v1014_v15, %v2086_v25  ;;  %v1046_v19 = vpop.f32.mrb[35].mxu1 }
 0x140   : > { %v2118_v20 = vadd.f32 %v1046_v19, %v950_v17 }
 0x142   : > { %1079 = sbr.rel (!%p1074_p4) target bundleno = 329 (0x149), region = 40 }
 0x143   : > { %v1634_v21 = vpop.f32.mrb[36].mxu0 }
 0x144   : > { %v2121_v24 = vadd.f32 %v1634_v21, %v2096_v2  ;;  %v1642_v22 = vpop.f32.mrb[36].mxu1  ;;  %v1027_v16 = vpop.f32.mrb[37].mxu0 }
 0x145   : > { %v2123_v23 = vadd.f32 %v1642_v22, %v971_v0  ;;  %v2126_v39 = vadd.f32 %v1027_v16, %v2092_v52  ;;  %v1059_v26 = vpop.f32.mrb[37].mxu1  ;;  %v1635_v27 = vpop.f32.mrb[38].mxu0  ;;  %v1798_v52 = vmov (%p1074_p4), 0.0  }
 0x146   : > { %v2128_v28 = vadd.f32 %v1059_v26, %v963_v48  ;;  %v2131_v25 = vadd.f32 %v1635_v27, %v2098_v3  ;;  %v1643_v17 = vpop.f32.mrb[38].mxu1  ;;  %v1030_v29 = vpop.f32.mrb[39].mxu0  ;;  %1080 = vst [vmem:[#allocation2] sm:$0x1] (%p1074_p4), %v1798_v52  ;;  %1081 = vst [vmem:[#allocation3] sm:$0x1] (%p1074_p4), %v1798_v52 }
 0x147   : > { %v2133_v30 = vadd.f32 %v1643_v17, %v974_v1  ;;  %v2136_v2 = vadd.f32 %v1030_v29, %v2094_v53  ;;  %v1062_v31 = vpop.f32.mrb[39].mxu1 }
 0x148   : > { %v2138_v32 = vadd.f32 %v1062_v31, %v966_v49 }
 0x149 PF: > { %p1471_p5 = scmp.ne.s32.totalorder %s1788_s15, 0 }
 0x14a   : > { %v1086_v3 = vadd.f32 (!%p1471_p5), %v2116_v38, %v2106_v9  ;;  %v1110_v53 = vmul.f32 (!%p1471_p5), %v2106_v9, %v2106_v9  ;;  %v1111_v33 = vmul.f32 (!%p1471_p5), %v2116_v38, %v2116_v38  ;;  %v1112_v35 = vmul.f32 (!%p1471_p5), %v2101_v5, %v2101_v5 }
 0x14b   : > { %1084 = sbr.rel (%p1471_p5) target bundleno = 377 (0x179), region = 44  ;;  %v1113_v37 = vmul.f32 (!%p1471_p5), %v2111_v13, %v2111_v13  ;;  %v1114_v42 = vmul.f32 (!%p1471_p5), %v2126_v39, %v2126_v39  ;;  %v1115_v45 = vmul.f32 (!%p1471_p5), %v2136_v2, %v2136_v2  ;;  %v1116_v48 = vmul.f32 (!%p1471_p5), %v2121_v24, %v2121_v24 }
 0x14c   : > { %v1087_v34 = vadd.f32 (!%p1471_p5), %v1086_v3, %v2101_v5  ;;  %v1126_v40 = vadd.f32 (!%p1471_p5), %v1111_v33, %v1110_v53  ;;  %v1117_v51 = vmul.f32 (!%p1471_p5), %v2131_v25, %v2131_v25  ;;  %v1118_v56 = vmul.f32 (!%p1471_p5), %v2108_v12, %v2108_v12 }
 0x14d   : > { %v1119_v59 = vmul.f32 (!%p1471_p5), %v2118_v20, %v2118_v20  ;;  %v1120_v62 = vmul.f32 (!%p1471_p5), %v2103_v8, %v2103_v8  ;;  %v1121_v1 = vmul.f32 (!%p1471_p5), %v2113_v18, %v2113_v18  ;;  %v1122_v7 = vmul.f32 (!%p1471_p5), %v2128_v28, %v2128_v28 }
 0x14e   : > { %v1088_v36 = vadd.f32 (!%p1471_p5), %v1087_v34, %v2111_v13  ;;  %v1127_v43 = vadd.f32 (!%p1471_p5), %v1126_v40, %v1112_v35  ;;  %v1123_v14 = vmul.f32 (!%p1471_p5), %v2138_v32, %v2138_v32  ;;  %v1124_v21 = vmul.f32 (!%p1471_p5), %v2123_v23, %v2123_v23 }
 0x14f   : > { %v1125_v26 = vmul.f32 (!%p1471_p5), %v2133_v30, %v2133_v30 }
 0x150   : > { %v1089_v41 = vadd.f32 (!%p1471_p5), %v1088_v36, %v2126_v39  ;;  %v1128_v46 = vadd.f32 (!%p1471_p5), %v1127_v43, %v1113_v37  ;;  %v1085_v37 = vld [vmem:[#allocation2] sm:$0x1] (!%p1471_p5) }
 0x152   : > { %v1090_v44 = vadd.f32 %v1089_v41, %v2136_v2  ;;  %v1129_v49 = vadd.f32 %v1128_v46, %v1114_v42 }
 0x154   : > { %v1091_v47 = vadd.f32 %v1090_v44, %v2121_v24  ;;  %v1130_v54 = vadd.f32 %v1129_v49, %v1115_v45  ;;  %v1109_v44 = vld [vmem:[#allocation3] sm:$0x1] }
 0x156   : > { %v1092_v50 = vadd.f32 %v1091_v47, %v2131_v25  ;;  %v1131_v57 = vadd.f32 %v1130_v54, %v1116_v48 }
 0x158   : > { %v1093_v55 = vadd.f32 %v1092_v50, %v2108_v12  ;;  %v1132_v60 = vadd.f32 %v1131_v57, %v1117_v51 }
 0x15a   : > { %v1094_v58 = vadd.f32 %v1093_v55, %v2118_v20  ;;  %v1133_v63 = vadd.f32 %v1132_v60, %v1118_v56 }
 0x15c   : > { %v1095_v61 = vadd.f32 %v1094_v58, %v2103_v8  ;;  %v1134_v4 = vadd.f32 %v1133_v63, %v1119_v59 }
 0x15e   : > { %v1096_v0 = vadd.f32 %v1095_v61, %v2113_v18  ;;  %v1135_v10 = vadd.f32 %v1134_v4, %v1120_v62 }
 0x160   : > { %v1097_v6 = vadd.f32 %v1096_v0, %v2128_v28  ;;  %v1136_v15 = vadd.f32 %v1135_v10, %v1121_v1 }
 0x162   : > { %v1098_v11 = vadd.f32 %v1097_v6, %v2138_v32  ;;  %v1137_v22 = vadd.f32 %v1136_v15, %v1122_v7 }
 0x164   : > { %v1099_v19 = vadd.f32 %v1098_v11, %v2123_v23  ;;  %v1138_v27 = vadd.f32 %v1137_v22, %v1123_v14 }
 0x166   : > { %v1100_v16 = vadd.f32 %v1099_v19, %v2133_v30  ;;  %v1139_v29 = vadd.f32 %v1138_v27, %v1124_v21 }
 0x168   : > { %v1101_v17 = vrot.slane %v1100_v16, 4  ;;  %v1140_v52 = vadd.f32 %v1139_v29, %v1125_v26 }
 0x16a   : > { %v1102_v31 = vadd.f32 %v1101_v17, %v1100_v16  ;;  %v1141_v53 = vrot.slane %v1140_v52, 4 }
 0x16c   : > { %v1103_v3 = vrot.slane %v1102_v31, 2  ;;  %v1142_v34 = vadd.f32 %v1141_v53, %v1140_v52 }
 0x16e   : > { %v1104_v33 = vadd.f32 %v1103_v3, %v1102_v31  ;;  %v1143_v36 = vrot.slane %v1142_v34, 2 }
 0x170   : > { %v1105_v35 = vrot.slane %v1104_v33, 1  ;;  %v1144_v41 = vadd.f32 %v1143_v36, %v1142_v34 }
 0x172   : > { %v1106_v40 = vadd.f32 %v1105_v35, %v1104_v33  ;;  %v1145_v43 = vrot.slane %v1144_v41, 1 }
 0x174   : > { %v1107_v42 = vadd.f32 %v1106_v40, %v1085_v37  ;;  %v1146_v45 = vadd.f32 %v1145_v43, %v1144_v41 }
 0x176   : > { %1108 = vst [vmem:[#allocation2] sm:$0x1] %v1107_v42  ;;  %v1147_v46 = vadd.f32 %v1146_v45, %v1109_v44 }
 0x178   : > { %1148 = vst [vmem:[#allocation3] sm:$0x1] %v1147_v46 }
 0x179 PF: > { %1150 = sbr.rel (!%p1074_p4) target bundleno = 659 (0x293), region = 48  ;;  %s1799_s13 = smov (%p1074_p4), 64   ;;  %v1191_v7 = vlaneseq (%p1074_p4)  ;;  %v1185_v11 = vld [vmem:[%s2289_s2] sm:$0x1] (%p1074_p4)  ;;  %vm1204_vm1 = vcmask (%p1074_p4), 261120   ;;  %vm1207_vm2 = vcmask (%p1074_p4), 785408  }
 0x17a   : > { %s1800_s14 = smov (%p1074_p4), 96   ;;  %s1801_s19 = smov (%p1074_p4), 32   ;;  %v1187_v21 = vld [vmem:[%s2290_s3] sm:$0x1] (%p1074_p4) }
 0x17b   : > { %v1192_v10 = vshrl.u32 (%p1074_p4), %v1191_v7, 7 }
 0x17d   : > { %v1151_v47 = vld [vmem:[#allocation2] sm:$0x1] (%p1074_p4)  ;;  %v1193_v14 = vsub.s32 (%p1074_p4), 0, %v1192_v10 }
 0x17e   : > { %1163 = vrot.lane.b32.xlu1 (%p1074_p4), %v1151_v47, %s1799_s13  ;;  %1154 = vrot.lane.b32.xlu0 (%p1074_p4), %v1151_v47, %s1800_s14 }
 0x17f   : > { %v1152_v48 = vld [vmem:[#allocation3] sm:$0x1] (%p1074_p4) }
 0x182   : > { %1167 = vrot.lane.b32.xlu1 %v1152_v48, %s1799_s13  ;;  %1159 = vrot.lane.b32.xlu0 %v1152_v48, %s1800_s14 }
 0x186   : > { %1175 = vrot.lane.b32.xlu1 %v1152_v48, %s1801_s19  ;;  %1171 = vrot.lane.b32.xlu0 %v1151_v47, %s1801_s19 }
 0x1f0   : > { %v1164_v49 = vpop.permute.xlu1 %1163  ;;  %v1155_v50 = vpop.permute.xlu0 %1154 }
 0x1f1   : > { %v1157_v51 = vadd.f32 %v1155_v50, %v1151_v47 }
 0x1f3   : > { %v1166_v58 = vadd.f32 %v1164_v49, %v1157_v51 }
 0x1f4   : > { %v1168_v54 = vpop.permute.xlu1 %1167  ;;  %v1160_v55 = vpop.permute.xlu0 %1159 }
 0x1f5   : > { %v1162_v56 = vadd.f32 %v1160_v55, %v1152_v48 }
 0x1f7   : > { %v1170_v57 = vadd.f32 %v1168_v54, %v1162_v56 }
 0x1f8   : > { %v1176_v59 = vpop.permute.xlu1 %1175  ;;  %v1172_v60 = vpop.permute.xlu0 %1171 }
 0x1f9   : > { %v1178_v61 = vadd.f32 %v1176_v59, %v1170_v57  ;;  %v1174_v62 = vadd.f32 %v1172_v60, %v1166_v58 }
 0x1fb   : > { %v1179_v63 = vmul.f32 0.001953125, %v1174_v62  ;;  %v1180_v0 = vmul.f32 0.001953125, %v1178_v61 }
 0x1fd   : > { %v1181_v1 = vmul.f32 %v1179_v63, %v1179_v63 }
 0x1ff   : > { %v1182_v4 = vsub.f32 %v1180_v0, %v1181_v1 }
 0x201   : > { %v1183_v6 = vadd.f32 1e-05, %v1182_v4 }
 0x203   : > { %1772 = vrsqrt.f32 %v1183_v6 }
 0x20d   : > { %v1773_v15 = vpop.eup %1772 }
 0x20e   : > { %v1186_v19 = vmul.f32 %v1773_v15, %v1185_v11 }
 0x210   : > { %v1188_v22 = vmul.f32 %v1186_v19, %v1179_v63  ;;  %v1194_v16 = vrot.slane %v1186_v19, %v1193_v14 }
 0x212   : > { %v1189_v26 = vsub.f32 %v1187_v21, %v1188_v22  ;;  %1195 = vrot.lane.b32.xlu0 %v1194_v16, %s1801_s19 }
 0x214   : > { %v1214_v27 = vrot.slane %v1189_v26, %v1193_v14 }
 0x216   : > { %1198 = vrot.lane.b32.xlu0 %v1194_v16, %s1799_s13  ;;  %1215 = vrot.lane.b32.xlu1 %v1214_v27, %s1801_s19 }
 0x21a   : > { %1201 = vrot.lane.b32.xlu0 %v1194_v16, %s1800_s14  ;;  %1218 = vrot.lane.b32.xlu1 %v1214_v27, %s1799_s13 }
 0x21e   : > { %1221 = vrot.lane.b32.xlu1 %v1214_v27, %s1800_s14 }
 0x284   : > { %v1196_v17 = vpop.permute.xlu0 %1195 }
 0x285   : > { %v1205_v52 = vsel %vm1204_vm1, %v1186_v19, %v1196_v17 }
 0x288   : > { %v1199_v29 = vpop.permute.xlu0 %1198  ;;  %v1216_v31 = vpop.permute.xlu1 %1215 }
 0x289   : > { %v1206_v3 = vsel %vm758_vm0, %v1205_v52, %v1199_v29  ;;  %v1224_v35 = vsel %vm1204_vm1, %v1189_v26, %v1216_v31 }
 0x28c   : > { %v1202_v53 = vpop.permute.xlu0 %1201  ;;  %v1219_v33 = vpop.permute.xlu1 %1218 }
 0x28d   : > { %v1208_v34 = vsel %vm1207_vm2, %v1206_v3, %v1202_v53  ;;  %v1225_v36 = vsel %vm758_vm0, %v1224_v35, %v1219_v33 }
 0x28e   : > { %1209 = vst [vmem:[#allocation4] sm:$0x1] %v1208_v34 }
 0x290   : > { %v1222_v37 = vpop.permute.xlu1 %1221 }
 0x291   : > { %v1226_v40 = vsel %vm1207_vm2, %v1225_v36, %v1222_v37 }
 0x292   : > { %1227 = vst [vmem:[#allocation5] sm:$0x1] %v1226_v40 }
 0x293 PF: > { %p1472_p6 = scmp.ne.s32.totalorder %s1788_s15, 1 }
 0x295   : > { %1231 = sbr.rel (%p1472_p6) target bundleno = 678 (0x2a6), region = 52  ;;  %v1473_v41 = vld [vmem:[#allocation4] ss:$0 sm:$0xff] (!%p1472_p6) }
 0x296   : > { %v1239_v43 = vmul.f32 (!%p1472_p6), %v1473_v41, %v2106_v9  ;;  %v1240_v44 = vmul.f32 (!%p1472_p6), %v1473_v41, %v2116_v38  ;;  %v1241_v45 = vmul.f32 (!%p1472_p6), %v1473_v41, %v2101_v5  ;;  %v1242_v46 = vmul.f32 (!%p1472_p6), %v1473_v41, %v2111_v13 }
 0x297   : > { %v1243_v47 = vmul.f32 (!%p1472_p6), %v1473_v41, %v2126_v39  ;;  %v1244_v48 = vmul.f32 (!%p1472_p6), %v1473_v41, %v2136_v2  ;;  %v1245_v49 = vmul.f32 (!%p1472_p6), %v1473_v41, %v2121_v24  ;;  %v1246_v50 = vmul.f32 (!%p1472_p6), %v1473_v41, %v2131_v25 }
 0x298   : > { %v1247_v24 = vmul.f32 (!%p1472_p6), %v1473_v41, %v2108_v12  ;;  %v1248_v25 = vmul.f32 (!%p1472_p6), %v1473_v41, %v2118_v20  ;;  %v1249_v63 = vmul.f32 (!%p1472_p6), %v1473_v41, %v2103_v8  ;;  %v1250_v0 = vmul.f32 (!%p1472_p6), %v1473_v41, %v2113_v18 }
 0x299   : > { %v1474_v42 = vld [vmem:[#allocation5] ss:$0 sm:$0xff] (!%p1472_p6)  ;;  %v1251_v8 = vmul.f32 (!%p1472_p6), %v1473_v41, %v2128_v28  ;;  %v1252_v12 = vmul.f32 (!%p1472_p6), %v1473_v41, %v2138_v32  ;;  %v1253_v18 = vmul.f32 (!%p1472_p6), %v1473_v41, %v2123_v23  ;;  %v1254_v20 = vmul.f32 (!%p1472_p6), %v1473_v41, %v2133_v30 }
 0x29a   : > { %v1262_v51 = vadd.f32 (!%p1472_p6), %v1474_v42, %v1239_v43  ;;  %v1263_v54 = vadd.f32 (!%p1472_p6), %v1474_v42, %v1240_v44  ;;  %v1264_v55 = vadd.f32 (!%p1472_p6), %v1474_v42, %v1241_v45  ;;  %v1265_v56 = vadd.f32 (!%p1472_p6), %v1474_v42, %v1242_v46 }
 0x29b   : > { %v1266_v57 = vadd.f32 (!%p1472_p6), %v1474_v42, %v1243_v47  ;;  %v1267_v9 = vadd.f32 (!%p1472_p6), %v1474_v42, %v1244_v48  ;;  %v1268_v58 = vadd.f32 (!%p1472_p6), %v1474_v42, %v1245_v49  ;;  %v1269_v38 = vadd.f32 (!%p1472_p6), %v1474_v42, %v1246_v50 }
 0x29c   : > { %v1278_v59 = vmax.f32 %v1262_v51, 0.0  ;;  %v1279_v5 = vmax.f32 %v1263_v54, 0.0  ;;  %v1280_v60 = vmax.f32 %v1264_v55, 0.0  ;;  %v1281_v13 = vmax.f32 %v1265_v56, 0.0 }
 0x29d   : > { %v1282_v61 = vmax.f32 %v1266_v57, 0.0  ;;  %v1283_v39 = vmax.f32 %v1267_v9, 0.0  ;;  %v1284_v62 = vmax.f32 %v1268_v58, 0.0  ;;  %v1285_v2 = vmax.f32 %v1269_v38, 0.0 }
 0x29e   : > { %1294 = vst [vmem:[%s2291_s4] sm:$0xff] %v1278_v59  ;;  %1295 = vst [vmem:[%s2291_s4 + $0x8] sm:$0xff] %v1279_v5  ;;  %v1270_v1 = vadd.f32 %v1474_v42, %v1247_v24  ;;  %v1271_v4 = vadd.f32 %v1474_v42, %v1248_v25  ;;  %v1272_v6 = vadd.f32 %v1474_v42, %v1249_v63 }
 0x29f   : > { %1296 = vst [vmem:[%s2291_s4 + $0x10] sm:$0xff] %v1280_v60  ;;  %1297 = vst [vmem:[%s2291_s4 + $0x18] sm:$0xff] %v1281_v13  ;;  %v1273_v7 = vadd.f32 %v1474_v42, %v1250_v0  ;;  %v1274_v10 = vadd.f32 %v1474_v42, %v1251_v8  ;;  %v1275_v11 = vadd.f32 %v1474_v42, %v1252_v12 }
 0x2a0   : > { %1298 = vst [vmem:[%s2291_s4 + $0x20] sm:$0xff] %v1282_v61  ;;  %1299 = vst [vmem:[%s2291_s4 + $0x28] sm:$0xff] %v1283_v39  ;;  %v1276_v14 = vadd.f32 %v1474_v42, %v1253_v18  ;;  %v1277_v15 = vadd.f32 %v1474_v42, %v1254_v20  ;;  %v1286_v19 = vmax.f32 %v1270_v1, 0.0  ;;  %v1287_v21 = vmax.f32 %v1271_v4, 0.0 }
 0x2a1   : > { %1300 = vst [vmem:[%s2291_s4 + $0x30] sm:$0xff] %v1284_v62  ;;  %1301 = vst [vmem:[%s2291_s4 + $0x38] sm:$0xff] %v1285_v2  ;;  %v1288_v22 = vmax.f32 %v1272_v6, 0.0  ;;  %v1289_v16 = vmax.f32 %v1273_v7, 0.0  ;;  %v1290_v26 = vmax.f32 %v1274_v10, 0.0  ;;  %v1291_v28 = vmax.f32 %v1275_v11, 0.0 }
 0x2a2   : > { %v1292_v27 = vmax.f32 %v1276_v14, 0.0  ;;  %v1293_v32 = vmax.f32 %v1277_v15, 0.0  ;;  %1302 = vst [vmem:[%s2291_s4 + $0x40] sm:$0xff] %v1286_v19  ;;  %1303 = vst [vmem:[%s2291_s4 + $0x48] sm:$0xff] %v1287_v21 }
 0x2a3   : > { %1304 = vst [vmem:[%s2291_s4 + $0x50] sm:$0xff] %v1288_v22  ;;  %1305 = vst [vmem:[%s2291_s4 + $0x58] sm:$0xff] %v1289_v16 }
 0x2a4   : > { %1306 = vst [vmem:[%s2291_s4 + $0x60] sm:$0xff] %v1290_v26  ;;  %1307 = vst [vmem:[%s2291_s4 + $0x68] sm:$0xff] %v1291_v28 }
 0x2a5   : > { %1308 = vst [vmem:[%s2291_s4 + $0x70] sm:$0xff] %v1292_v27  ;;  %1309 = vst [vmem:[%s2291_s4 + $0x78] sm:$0xff] %v1293_v32 }
 0x2a6 PF: > { %s14_s17 = sadd.s32 1, %s1796_s17   ;;  %s2292_s15 = smov %s1792_s16 }
 0x2a7   : > { %p11_p7 = scmp.ge.s32.totalorder %s14_s17, 4   ;;  %s2293_s16 = smov %s2295_s18 }
 0x2a9   :  { %13 = sbr.rel (!%p11_p7) target bundleno = 2 (0x2), region = 82 }

// kernel: generator_forward.8
= control target key start
LH: loop header
LB: loop body
LE: loop exit
PB: predicated region body
PF: predicated region fallthrough
CT: control target
= control target key end

     0   :  { %s2957_s15 = smov 0   ;;  %s2959_s16 = smov 0   ;;  %s4372_s0 = inlined_call_operand.vmem [shape: bf16[512,288], index: 0, kind: input, shape index: {}]   ;;  %s4373_s1 = inlined_call_operand.vmem [shape: bf16[288,64], index: 1, kind: input, shape index: {}]   ;;  %s4374_s2 = inlined_call_operand.vmem [shape: f32[1,16], index: 2, kind: input, shape index: {}]   ;;  %s4375_s3 = inlined_call_operand.vmem [shape: f32[1,16], index: 3, kind: input, shape index: {}]   ;;  %s4376_s4 = inlined_call_operand.vmem [shape: f32[512,64], index: 4, kind: output, shape index: {}]  }
   0x1   :  { %s2961_s17 = smov 0  }
   0x2 LB: > { %s26_s18 = sadd.s32 1, %s2918_s16  ;;  %p2429_p0 = scmp.ge.s32.totalorder %s2922_s17, 1  ;;  %s2922_s17 = sphi %s2961_s17, %s14_s17   ;;  %s2918_s16 = sphi %s2959_s16, %s4485_s16   ;;  %s2914_s15 = sphi %s2957_s15, %s4484_s15  }
   0x3   : > { %p28_p1 = scmp.ge.s32.totalorder %s26_s18, 2  ;;  %p178_p2 = scmp.lt.s32.totalorder %s2922_s17, 3 }
   0x5   : > { %s4487_s18 = smov (%p28_p1, %s26_s18), 0  ;;  %p179_p3 = pnand %p2429_p0, %p178_p2 }
   0x7   : > { %182 = sbr.rel (%p179_p3) target bundleno = 999 (0x3e7), region = 36 }
   0xe   : > { %v2752_v0 = vld [vmem:[%s4373_s1] sm:$0xff]   ;;  %v2924_v1 = vmov 0   ;;  %v2753_v2 = vld [vmem:[%s4373_s1 + $0x8] sm:$0xff]   ;;  %v2754_v3 = vld [vmem:[%s4373_s1 + $0x10] sm:$0xff]   ;;  %vm974_vm0 = vcmask 261120   ;;  %p1649_p4 = scmp.eq.s32.totalorder %s2914_s15, 0 }
   0xf   : > { %1071 = vmatprep.subr.bf16.mxu0 %v2924_v1  ;;  %2688 = vmatprep.subr.bf16.mxu1 %v2924_v1  ;;  %v2755_v4 = vld [vmem:[%s4373_s1 + $0x18] sm:$0xff]   ;;  %v2756_v5 = vld [vmem:[%s4373_s1 + $0x20] sm:$0xff]   ;;  %v2757_v7 = vld [vmem:[%s4373_s1 + $0x28] sm:$0xff]   ;;  %vm1655_vm1 = vcmask (%p1649_p4), 516096  }
  0x10   : > { %1072 = vmatpush1.bf16.msra.mxu0 %v2752_v0  ;;  %2704 = vmatpush1.bf16.msra.mxu1 %v2752_v0  ;;  %v2770_v6 = vld [vmem:[%s4372_s0 + $0x4] ss:$12 sps:$4 sm:$0xff]   ;;  %v2759_v10 = vld [vmem:[%s4373_s1 + $0x38] sm:$0xff]   ;;  %v2761_v12 = vld [vmem:[%s4373_s1 + $0x48] sm:$0xff]  }
  0x11   : > { %1073 = vmatprep.subr.bf16.mxu0 %v2924_v1  ;;  %2689 = vmatprep.subr.bf16.mxu1 %v2924_v1  ;;  %v2773_v8 = vld [vmem:[%s4372_s0 + $0x244] ss:$12 sps:$4 sm:$0xff]   ;;  %v2763_v14 = vld [vmem:[%s4373_s1 + $0x58] sm:$0xff]   ;;  %v2765_v16 = vld [vmem:[%s4373_s1 + $0x68] sm:$0xff]  }
  0x12   : > { %1103 = vmatprep.mubr.bf16.mxu0 %v2770_v6  ;;  %1295 = vmatprep.mubr.bf16.mxu1 %v2773_v8  ;;  %v2758_v9 = vld [vmem:[%s4373_s1 + $0x30] sm:$0xff]   ;;  %v2760_v11 = vld [vmem:[%s4373_s1 + $0x40] sm:$0xff]   ;;  %v2767_v18 = vld [vmem:[%s4373_s1 + $0x78] sm:$0xff]  }
  0x13   : > { %v2762_v13 = vld [vmem:[%s4373_s1 + $0x50] sm:$0xff]   ;;  %v2764_v15 = vld [vmem:[%s4373_s1 + $0x60] sm:$0xff]   ;;  %v2775_v22 = vld [vmem:[%s4372_s0 + $0x1c] ss:$12 sps:$4 sm:$0xff]  }
  0x14   : > { %1074 = vmatpush1.bf16.msra.mxu0 %v2753_v2  ;;  %2705 = vmatpush1.bf16.msra.mxu1 %v2753_v2  ;;  %v2766_v17 = vld [vmem:[%s4373_s1 + $0x70] sm:$0xff]   ;;  %v2774_v19 = vld [vmem:[%s4373_s1 + $0x80] sm:$0xff]   ;;  %v2777_v23 = vld [vmem:[%s4372_s0 + $0x25c] ss:$12 sps:$4 sm:$0xff]  }
  0x15   : > { %1075 = vmatprep.subr.bf16.mxu0 %v2924_v1  ;;  %2690 = vmatprep.subr.bf16.mxu1 %v2924_v1  ;;  %v2768_v20 = vld [vmem:[%s4372_s0] ss:$12 sps:$4 sm:$0xff]   ;;  %v2779_v25 = vld [vmem:[%s4372_s0 + $0x18] ss:$12 sps:$4 sm:$0xff]   ;;  %v2785_v29 = vld [vmem:[%s4372_s0 + $0x30] ss:$12 sps:$4 sm:$0xff]  }
  0x16   : > { %v2771_v21 = vld [vmem:[%s4372_s0 + $0x240] ss:$12 sps:$4 sm:$0xff]   ;;  %v2780_v26 = vld [vmem:[%s4372_s0 + $0x258] ss:$12 sps:$4 sm:$0xff]   ;;  %v2786_v30 = vld [vmem:[%s4372_s0 + $0x270] ss:$12 sps:$4 sm:$0xff]  }
  0x17   : > { %v2799_v24 = vld [vmem:[%s4373_s1 + $0x88] sm:$0xff]   ;;  %v2781_v27 = vld [vmem:[%s4372_s0 + $0x34] ss:$12 sps:$4 sm:$0xff]   ;;  %v2793_v35 = vld [vmem:[%s4372_s0 + $0x64] ss:$12 sps:$4 sm:$0xff]  }
  0x18   : > { %1076 = vmatpush1.bf16.msra.mxu0 %v2754_v3  ;;  %2706 = vmatpush1.bf16.msra.mxu1 %v2754_v3  ;;  %v2783_v28 = vld [vmem:[%s4372_s0 + $0x274] ss:$12 sps:$4 sm:$0xff]   ;;  %v2787_v31 = vld [vmem:[%s4372_s0 + $0x4c] ss:$12 sps:$4 sm:$0xff]   ;;  %v2795_v36 = vld [vmem:[%s4372_s0 + $0x2a4] ss:$12 sps:$4 sm:$0xff]  }
  0x19   : > { %1077 = vmatprep.subr.bf16.mxu0 %v2924_v1  ;;  %2691 = vmatprep.subr.bf16.mxu1 %v2924_v1  ;;  %v2789_v32 = vld [vmem:[%s4372_s0 + $0x28c] ss:$12 sps:$4 sm:$0xff]   ;;  %v2791_v33 = vld [vmem:[%s4372_s0 + $0x48] ss:$12 sps:$4 sm:$0xff]   ;;  %v2810_v45 = vld [vmem:[%s4372_s0 + $0x90] ss:$12 sps:$4 sm:$0xff]  }
  0x1a   : > { %v2792_v34 = vld [vmem:[%s4372_s0 + $0x288] ss:$12 sps:$4 sm:$0xff]   ;;  %v2797_v37 = vld [vmem:[%s4372_s0 + $0x60] ss:$12 sps:$4 sm:$0xff]   ;;  %v2804_v41 = vld [vmem:[%s4372_s0 + $0x78] ss:$12 sps:$4 sm:$0xff]  }
  0x1b   : > { %v2798_v38 = vld [vmem:[%s4372_s0 + $0x2a0] ss:$12 sps:$4 sm:$0xff]   ;;  %v2800_v39 = vld [vmem:[%s4372_s0 + $0x7c] ss:$12 sps:$4 sm:$0xff]   ;;  %v2805_v42 = vld [vmem:[%s4372_s0 + $0x2b8] ss:$12 sps:$4 sm:$0xff]  }
  0x1c   : > { %1078 = vmatpush1.bf16.msra.mxu0 %v2755_v4  ;;  %2707 = vmatpush1.bf16.msra.mxu1 %v2755_v4  ;;  %v2802_v40 = vld [vmem:[%s4372_s0 + $0x2bc] ss:$12 sps:$4 sm:$0xff]   ;;  %v2806_v43 = vld [vmem:[%s4372_s0 + $0x94] ss:$12 sps:$4 sm:$0xff]   ;;  %v2812_v47 = vld [vmem:[%s4372_s0 + $0xac] ss:$12 sps:$4 sm:$0xff]  }
  0x1d   : > { %1079 = vmatprep.subr.bf16.mxu0 %v2924_v1  ;;  %2692 = vmatprep.subr.bf16.mxu1 %v2924_v1  ;;  %v2808_v44 = vld [vmem:[%s4372_s0 + $0x2d4] ss:$12 sps:$4 sm:$0xff]   ;;  %v2811_v46 = vld [vmem:[%s4372_s0 + $0x2d0] ss:$12 sps:$4 sm:$0xff]   ;;  %v2814_v48 = vld [vmem:[%s4372_s0 + $0x2ec] ss:$12 sps:$4 sm:$0xff]  }
  0x1e   : > { %v2816_v49 = vld [vmem:[%s4372_s0 + $0xa8] ss:$12 sps:$4 sm:$0xff]   ;;  %v2818_v51 = vld [vmem:[%s4372_s0 + $0xc4] ss:$12 sps:$4 sm:$0xff]   ;;  %v2821_v53 = vld [vmem:[%s4372_s0 + $0xc0] ss:$12 sps:$4 sm:$0xff]  }
  0x1f   : > { %v2817_v50 = vld [vmem:[%s4372_s0 + $0x2e8] ss:$12 sps:$4 sm:$0xff]   ;;  %v2822_v54 = vld [vmem:[%s4372_s0 + $0x20] ss:$12 sps:$4 sm:$0xff]   ;;  %v2825_v56 = vld [vmem:[%s4372_s0 + $0x38] ss:$12 sps:$4 sm:$0xff]  }
  0x20   : > { %1080 = vmatpush1.bf16.msra.mxu0 %v2756_v5  ;;  %2708 = vmatpush1.bf16.msra.mxu1 %v2756_v5  ;;  %v2820_v52 = vld [vmem:[%s4372_s0 + $0x8] ss:$12 sps:$4 sm:$0xff]   ;;  %v2826_v57 = vld [vmem:[%s4372_s0 + $0xd8] ss:$12 sps:$4 sm:$0xff]   ;;  %v2827_v58 = vld [vmem:[%s4372_s0 + $0x50] ss:$12 sps:$4 sm:$0xff]  }
  0x21   : > { %1081 = vmatprep.subr.bf16.mxu0 %v2924_v1  ;;  %2693 = vmatprep.subr.bf16.mxu1 %v2924_v1  ;;  %v2823_v55 = vld [vmem:[%s4372_s0 + $0xdc] ss:$12 sps:$4 sm:$0xff]   ;;  %v2828_v59 = vld [vmem:[%s4372_s0 + $0xf4] ss:$12 sps:$4 sm:$0xff]   ;;  %v2833_v63 = vld [vmem:[%s4372_s0 + $0x10c] ss:$12 sps:$4 sm:$0xff]  }
  0x22   : > { %v2830_v60 = vld [vmem:[%s4372_s0 + $0x68] ss:$12 sps:$4 sm:$0xff]   ;;  %v2831_v61 = vld [vmem:[%s4372_s0 + $0xf0] ss:$12 sps:$4 sm:$0xff]   ;;  %v2832_v62 = vld [vmem:[%s4372_s0 + $0x80] ss:$12 sps:$4 sm:$0xff]  }
  0x23   : > { %v2835_v0 = vld [vmem:[%s4372_s0 + $0x98] ss:$12 sps:$4 sm:$0xff]   ;;  %v2837_v2 = vld [vmem:[%s4372_s0 + $0xb0] ss:$12 sps:$4 sm:$0xff]   ;;  %v2840_v4 = vld [vmem:[%s4372_s0 + $0xc8] ss:$12 sps:$4 sm:$0xff]  }
  0x24   : > { %1082 = vmatpush1.bf16.msra.mxu0 %v2757_v7  ;;  %2709 = vmatpush1.bf16.msra.mxu1 %v2757_v7  ;;  %v2838_v3 = vld [vmem:[%s4372_s0 + $0x124] ss:$12 sps:$4 sm:$0xff]   ;;  %v2841_v5 = vld [vmem:[%s4372_s0 + $0x120] ss:$12 sps:$4 sm:$0xff]   ;;  %v2843_v7 = vld [vmem:[%s4372_s0 + $0x13c] ss:$12 sps:$4 sm:$0xff]  }
  0x25   : > { %1083 = vmatprep.subr.bf16.mxu0 %v2924_v1  ;;  %2694 = vmatprep.subr.bf16.mxu1 %v2924_v1  ;;  %v2842_v6 = vld [vmem:[%s4372_s0 + $0xe0] ss:$12 sps:$4 sm:$0xff]   ;;  %v2845_v8 = vld [vmem:[%s4372_s0 + $0xf8] ss:$12 sps:$4 sm:$0xff]  }
  0x28   : > { %1084 = vmatpush1.bf16.msra.mxu0 %v2758_v9  ;;  %2710 = vmatpush1.bf16.msra.mxu1 %v2758_v9  ;;  %v2846_v9 = vld [vmem:[%s4372_s0 + $0x138] ss:$12 sps:$4 sm:$0xff]  }
  0x29   : > { %1085 = vmatprep.subr.bf16.mxu0 %v2924_v1  ;;  %2695 = vmatprep.subr.bf16.mxu1 %v2924_v1 }
  0x2c   : > { %1086 = vmatpush1.bf16.msra.mxu0 %v2759_v10  ;;  %2711 = vmatpush1.bf16.msra.mxu1 %v2759_v10  ;;  %v2847_v10 = vld [vmem:[%s4372_s0 + $0x110] ss:$12 sps:$4 sm:$0xff]  }
  0x2d   : > { %1087 = vmatprep.subr.bf16.mxu0 %v2924_v1  ;;  %2696 = vmatprep.subr.bf16.mxu1 %v2924_v1 }
  0x30   : > { %1088 = vmatpush1.bf16.msra.mxu0 %v2760_v11  ;;  %2712 = vmatpush1.bf16.msra.mxu1 %v2760_v11  ;;  %v2848_v11 = vld [vmem:[%s4372_s0 + $0x154] ss:$12 sps:$4 sm:$0xff]  }
  0x31   : > { %1089 = vmatprep.subr.bf16.mxu0 %v2924_v1  ;;  %2697 = vmatprep.subr.bf16.mxu1 %v2924_v1 }
  0x34   : > { %1090 = vmatpush1.bf16.msra.mxu0 %v2761_v12  ;;  %2713 = vmatpush1.bf16.msra.mxu1 %v2761_v12  ;;  %v2850_v12 = vld [vmem:[%s4372_s0 + $0x128] ss:$12 sps:$4 sm:$0xff]  }
  0x35   : > { %1091 = vmatprep.subr.bf16.mxu0 %v2924_v1  ;;  %2698 = vmatprep.subr.bf16.mxu1 %v2924_v1 }
  0x38   : > { %1092 = vmatpush1.bf16.msra.mxu0 %v2762_v13  ;;  %2714 = vmatpush1.bf16.msra.mxu1 %v2762_v13  ;;  %v2851_v13 = vld [vmem:[%s4372_s0 + $0x150] ss:$12 sps:$4 sm:$0xff]  }
  0x39   : > { %1093 = vmatprep.subr.bf16.mxu0 %v2924_v1  ;;  %2699 = vmatprep.subr.bf16.mxu1 %v2924_v1 }
  0x3c   : > { %1094 = vmatpush1.bf16.msra.mxu0 %v2763_v14  ;;  %2715 = vmatpush1.bf16.msra.mxu1 %v2763_v14  ;;  %v2852_v14 = vld [vmem:[%s4372_s0 + $0x140] ss:$12 sps:$4 sm:$0xff]  }
  0x3d   : > { %1095 = vmatprep.subr.bf16.mxu0 %v2924_v1  ;;  %2700 = vmatprep.subr.bf16.mxu1 %v2924_v1 }
  0x40   : > { %1096 = vmatpush1.bf16.msra.mxu0 %v2764_v15  ;;  %2716 = vmatpush1.bf16.msra.mxu1 %v2764_v15  ;;  %v2853_v15 = vld [vmem:[%s4372_s0 + $0x16c] ss:$12 sps:$4 sm:$0xff]  }
  0x41   : > { %1097 = vmatprep.subr.bf16.mxu0 %v2924_v1  ;;  %2701 = vmatprep.subr.bf16.mxu1 %v2924_v1 }
  0x44   : > { %1098 = vmatpush1.bf16.msra.mxu0 %v2765_v16  ;;  %2717 = vmatpush1.bf16.msra.mxu1 %v2765_v16  ;;  %v2855_v16 = vld [vmem:[%s4372_s0 + $0x158] ss:$12 sps:$4 sm:$0xff]  }
  0x45   : > { %1099 = vmatprep.subr.bf16.mxu0 %v2924_v1  ;;  %2702 = vmatprep.subr.bf16.mxu1 %v2924_v1 }
  0x48   : > { %1100 = vmatpush1.bf16.msra.mxu0 %v2766_v17  ;;  %2718 = vmatpush1.bf16.msra.mxu1 %v2766_v17  ;;  %v2856_v17 = vld [vmem:[%s4372_s0 + $0x168] ss:$12 sps:$4 sm:$0xff]  }
  0x49   : > { %1101 = vmatprep.subr.bf16.mxu0 %v2924_v1  ;;  %2703 = vmatprep.subr.bf16.mxu1 %v2924_v1  ;;  %v2836_v1 = vld [vmem:[%s4372_s0 + $0x108] ss:$12 sps:$4 sm:$0xff]  }
  0x4c   : > { %1102 = vmatpush1.bf16.msra.mxu0 %v2767_v18  ;;  %2719 = vmatpush1.bf16.msra.mxu1 %v2767_v18  ;;  %v2857_v18 = vld [vmem:[%s4372_s0 + $0x170] ss:$12 sps:$4 sm:$0xff]  }
  0x4d   : > { %2620 = vmatprep.subr.bf16.mxu1 %v2774_v19 }
  0x4f   : > { %1104 = vmatmul.mubr.bf16.vlgmr.msra.gmra.mrb[0].mxu0 %v2768_v20  ;;  %1296 = vmatmul.mubr.bf16.vlgmr.msra.gmra.mrb[0].mxu1 %v2771_v21  ;;  %v2860_v20 = vld [vmem:[%s4372_s0 + $0x188] ss:$12 sps:$4 sm:$0xff]   ;;  %v2861_v21 = vld [vmem:[%s4372_s0 + $0x180] ss:$12 sps:$4 sm:$0xff]  }
  0x50   : > { %2621 = vmatpush3.bf16.msra.mxu1 %v2774_v19  ;;  %1111 = vmatprep.mubr.bf16.mxu0 %v2775_v22  ;;  %v2858_v19 = vld [vmem:[%s4372_s0 + $0x184] ss:$12 sps:$4 sm:$0xff]   ;;  %v2862_v22 = vld [vmem:[%s4372_s0 + $0x1a0] ss:$12 sps:$4 sm:$0xff]  }
  0x51   : > { %1303 = vmatprep.mubr.bf16.mxu1 %v2777_v23  ;;  %2622 = vmatprep.subr.bf16.mxu1 %v2799_v24  ;;  %v2863_v23 = vld [vmem:[%s4372_s0 + $0x19c] ss:$12 sps:$4 sm:$0xff]  }
  0x54   : > { %2623 = vmatpush3.bf16.msra.mxu1 %v2799_v24  ;;  %v2865_v24 = vld [vmem:[%s4372_s0 + $0x1b8] ss:$12 sps:$4 sm:$0xff]  }
  0x57   : > { %1112 = vmatmul.mubr.bf16.gmra.mrb[4].mxu0 %v2779_v25  ;;  %1304 = vmatmul.mubr.bf16.gmra.mrb[4].mxu1 %v2780_v26  ;;  %v2866_v25 = vld [vmem:[%s4372_s0 + $0x198] ss:$12 sps:$4 sm:$0xff]   ;;  %v2867_v26 = vld [vmem:[%s4372_s0 + $0x1d0] ss:$12 sps:$4 sm:$0xff]  }
  0x58   : > { %1119 = vmatprep.mubr.bf16.mxu0 %v2781_v27  ;;  %1311 = vmatprep.mubr.bf16.mxu1 %v2783_v28  ;;  %v2868_v27 = vld [vmem:[%s4372_s0 + $0x1b4] ss:$12 sps:$4 sm:$0xff]  }
  0x59   : > { %v2870_v28 = vld [vmem:[%s4372_s0 + $0x1e8] ss:$12 sps:$4 sm:$0xff]  }
  0x5f   : > { %1120 = vmatmul.mubr.bf16.gmra.mrb[8].mxu0 %v2785_v29  ;;  %1312 = vmatmul.mubr.bf16.gmra.mrb[8].mxu1 %v2786_v30  ;;  %v2871_v29 = vld [vmem:[%s4372_s0 + $0x1b0] ss:$12 sps:$4 sm:$0xff]   ;;  %v2872_v30 = vld [vmem:[%s4372_s0 + $0x200] ss:$12 sps:$4 sm:$0xff]  }
  0x60   : > { %1127 = vmatprep.mubr.bf16.mxu0 %v2787_v31  ;;  %1319 = vmatprep.mubr.bf16.mxu1 %v2789_v32  ;;  %v2873_v31 = vld [vmem:[%s4372_s0 + $0x1cc] ss:$12 sps:$4 sm:$0xff]  }
  0x61   : > { %v2875_v32 = vld [vmem:[%s4372_s0 + $0x218] ss:$12 sps:$4 sm:$0xff]  }
  0x67   : > { %1128 = vmatmul.mubr.bf16.gmra.mrb[12].mxu0 %v2791_v33  ;;  %1320 = vmatmul.mubr.bf16.gmra.mrb[12].mxu1 %v2792_v34  ;;  %v2876_v33 = vld [vmem:[%s4372_s0 + $0x1c8] ss:$12 sps:$4 sm:$0xff]   ;;  %v2877_v34 = vld [vmem:[%s4372_s0 + $0x230] ss:$12 sps:$4 sm:$0xff]  }
  0x68   : > { %1135 = vmatprep.mubr.bf16.mxu0 %v2793_v35  ;;  %1327 = vmatprep.mubr.bf16.mxu1 %v2795_v36  ;;  %v2878_v35 = vld [vmem:[%s4372_s0 + $0x1e4] ss:$12 sps:$4 sm:$0xff]   ;;  %v2880_v36 = vld [vmem:[%s4372_s0 + $0x248] ss:$12 sps:$4 sm:$0xff]  }
  0x6f   : > { %1136 = vmatmul.mubr.bf16.gmra.mrb[16].mxu0 %v2797_v37  ;;  %1328 = vmatmul.mubr.bf16.gmra.mrb[16].mxu1 %v2798_v38  ;;  %v2881_v37 = vld [vmem:[%s4372_s0 + $0x1e0] ss:$12 sps:$4 sm:$0xff]  }
  0x70   : > { %1143 = vmatprep.mubr.bf16.mxu0 %v2800_v39  ;;  %1335 = vmatprep.mubr.bf16.mxu1 %v2802_v40  ;;  %v2882_v38 = vld [vmem:[%s4372_s0 + $0x260] ss:$12 sps:$4 sm:$0xff]   ;;  %v2883_v39 = vld [vmem:[%s4372_s0 + $0x1fc] ss:$12 sps:$4 sm:$0xff]   ;;  %v2885_v40 = vld [vmem:[%s4372_s0 + $0x278] ss:$12 sps:$4 sm:$0xff]  }
  0x77   : > { %1144 = vmatmul.mubr.bf16.gmra.mrb[20].mxu0 %v2804_v41  ;;  %1336 = vmatmul.mubr.bf16.gmra.mrb[20].mxu1 %v2805_v42  ;;  %v2886_v41 = vld [vmem:[%s4372_s0 + $0x1f8] ss:$12 sps:$4 sm:$0xff]   ;;  %v2887_v42 = vld [vmem:[%s4372_s0 + $0x290] ss:$12 sps:$4 sm:$0xff]  }
  0x78   : > { %1151 = vmatprep.mubr.bf16.mxu0 %v2806_v43  ;;  %1343 = vmatprep.mubr.bf16.mxu1 %v2808_v44  ;;  %v2888_v43 = vld [vmem:[%s4372_s0 + $0x214] ss:$12 sps:$4 sm:$0xff]  }
  0x79   : > { %v2890_v44 = vld [vmem:[%s4372_s0 + $0x2a8] ss:$12 sps:$4 sm:$0xff]  }
  0x7f   : > { %1152 = vmatmul.mubr.bf16.gmra.mrb[24].mxu0 %v2810_v45  ;;  %1344 = vmatmul.mubr.bf16.gmra.mrb[24].mxu1 %v2811_v46  ;;  %v2891_v45 = vld [vmem:[%s4372_s0 + $0x210] ss:$12 sps:$4 sm:$0xff]   ;;  %v2892_v46 = vld [vmem:[%s4372_s0 + $0x2c0] ss:$12 sps:$4 sm:$0xff]  }
  0x80   : > { %1159 = vmatprep.mubr.bf16.mxu0 %v2812_v47  ;;  %1351 = vmatprep.mubr.bf16.mxu1 %v2814_v48  ;;  %v2893_v47 = vld [vmem:[%s4372_s0 + $0x22c] ss:$12 sps:$4 sm:$0xff]  }
  0x81   : > { %v2895_v48 = vld [vmem:[%s4372_s0 + $0x2d8] ss:$12 sps:$4 sm:$0xff]  }
  0x87   : > { %1160 = vmatmul.mubr.bf16.gmra.mrb[28].mxu0 %v2816_v49  ;;  %1352 = vmatmul.mubr.bf16.gmra.mrb[28].mxu1 %v2817_v50  ;;  %v2896_v49 = vld [vmem:[%s4372_s0 + $0x228] ss:$12 sps:$4 sm:$0xff]   ;;  %v2897_v50 = vld [vmem:[%s4372_s0 + $0x2f0] ss:$12 sps:$4 sm:$0xff]  }
  0x88   : > { %1167 = vmatprep.mubr.bf16.mxu0 %v2818_v51  ;;  %2624 = vmatprep.mubr.msk.bf16.mxu1 %vm974_vm0, %v2820_v52 }
  0x8f   : > { %1168 = vmatmul.mubr.bf16.gmra.mrb[32].mxu0 %v2821_v53  ;;  %2625 = vmatmul.mubr.msk.bf16.vlgmr.msra.gmra.mrb[32].mxu1 %vm974_vm0, %v2822_v54 }
  0x90   : > { %1175 = vmatprep.mubr.bf16.mxu0 %v2823_v55  ;;  %2628 = vmatprep.mubr.msk.bf16.mxu1 %vm974_vm0, %v2825_v56 }
  0x97   : > { %1176 = vmatmul.mubr.bf16.gmra.mrb[36].mxu0 %v2826_v57  ;;  %2629 = vmatmul.mubr.msk.bf16.gmra.mrb[36].mxu1 %vm974_vm0, %v2827_v58 }
  0x98   : > { %1183 = vmatprep.mubr.bf16.mxu0 %v2828_v59  ;;  %2632 = vmatprep.mubr.msk.bf16.mxu1 %vm974_vm0, %v2830_v60 }
  0x9f   : > { %1184 = vmatmul.mubr.bf16.gmra.mrb[40].mxu0 %v2831_v61  ;;  %2633 = vmatmul.mubr.msk.bf16.gmra.mrb[40].mxu1 %vm974_vm0, %v2832_v62 }
  0xa0   : > { %1191 = vmatprep.mubr.bf16.mxu0 %v2833_v63  ;;  %2636 = vmatprep.mubr.msk.bf16.mxu1 %vm974_vm0, %v2835_v0 }
  0xa7   : > { %1192 = vmatmul.mubr.bf16.gmra.mrb[44].mxu0 %v2836_v1  ;;  %2637 = vmatmul.mubr.msk.bf16.gmra.mrb[44].mxu1 %vm974_vm0, %v2837_v2 }
  0xa8   : > { %1199 = vmatprep.mubr.bf16.mxu0 %v2838_v3  ;;  %2640 = vmatprep.mubr.msk.bf16.mxu1 %vm974_vm0, %v2840_v4 }
  0xaf   : > { %1200 = vmatmul.mubr.bf16.gmra.mrb[48].mxu0 %v2841_v5  ;;  %2641 = vmatmul.mubr.msk.bf16.gmra.mrb[48].mxu1 %vm974_vm0, %v2842_v6 }
  0xb0   : > { %1207 = vmatprep.mubr.bf16.mxu0 %v2843_v7  ;;  %2644 = vmatprep.mubr.msk.bf16.mxu1 %vm974_vm0, %v2845_v8 }
  0xb7   : > { %1208 = vmatmul.mubr.bf16.gmra.mrb[52].mxu0 %v2846_v9  ;;  %2645 = vmatmul.mubr.msk.bf16.gmra.mrb[52].mxu1 %vm974_vm0, %v2847_v10 }
  0xb8   : > { %1215 = vmatprep.mubr.bf16.mxu0 %v2848_v11  ;;  %2648 = vmatprep.mubr.msk.bf16.mxu1 %vm974_vm0, %v2850_v12 }
  0xbf   : > { %1216 = vmatmul.mubr.bf16.gmra.mrb[56].mxu0 %v2851_v13  ;;  %2649 = vmatmul.mubr.msk.bf16.gmra.mrb[56].mxu1 %vm974_vm0, %v2852_v14 }
  0xc0   : > { %1223 = vmatprep.mubr.bf16.mxu0 %v2853_v15  ;;  %2652 = vmatprep.mubr.msk.bf16.mxu1 %vm974_vm0, %v2855_v16 }
  0xc7   : > { %1224 = vmatmul.mubr.bf16.gmra.mrb[60].mxu0 %v2856_v17  ;;  %2653 = vmatmul.mubr.msk.bf16.gmra.mrb[60].mxu1 %vm974_vm0, %v2857_v18 }
  0xc8   : > { %1231 = vmatprep.mubr.bf16.mxu0 %v2858_v19  ;;  %2656 = vmatprep.mubr.msk.bf16.mxu1 %vm974_vm0, %v2860_v20 }
  0xcf   : > { %1232 = vmatmul.mubr.bf16.gmra.mrb[64].mxu0 %v2861_v21  ;;  %2657 = vmatmul.mubr.msk.bf16.gmra.mrb[64].mxu1 %vm974_vm0, %v2862_v22 }
  0xd0   : > { %1239 = vmatprep.mubr.bf16.mxu0 %v2863_v23  ;;  %2660 = vmatprep.mubr.msk.bf16.mxu1 %vm974_vm0, %v2865_v24 }
  0xd7   : > { %1240 = vmatmul.mubr.bf16.gmra.mrb[68].mxu0 %v2866_v25  ;;  %2661 = vmatmul.mubr.msk.bf16.gmra.mrb[68].mxu1 %vm974_vm0, %v2867_v26 }
  0xd8   : > { %1247 = vmatprep.mubr.bf16.mxu0 %v2868_v27  ;;  %2664 = vmatprep.mubr.msk.bf16.mxu1 %vm974_vm0, %v2870_v28 }
  0xdf   : > { %1248 = vmatmul.mubr.bf16.gmra.mrb[72].mxu0 %v2871_v29  ;;  %2665 = vmatmul.mubr.msk.bf16.gmra.mrb[72].mxu1 %vm974_vm0, %v2872_v30 }
  0xe0   : > { %1255 = vmatprep.mubr.bf16.mxu0 %v2873_v31  ;;  %2668 = vmatprep.mubr.msk.bf16.mxu1 %vm974_vm0, %v2875_v32 }
  0xe7   : > { %1256 = vmatmul.mubr.bf16.gmra.mrb[76].mxu0 %v2876_v33  ;;  %2669 = vmatmul.mubr.msk.bf16.gmra.mrb[76].mxu1 %vm974_vm0, %v2877_v34 }
  0xe8   : > { %1263 = vmatprep.mubr.bf16.mxu0 %v2878_v35  ;;  %2672 = vmatprep.mubr.msk.bf16.mxu1 %vm974_vm0, %v2880_v36 }
  0xef   : > { %1264 = vmatmul.mubr.bf16.gmra.mrb[80].mxu0 %v2881_v37  ;;  %2673 = vmatmul.mubr.msk.bf16.gmra.mrb[80].mxu1 %vm974_vm0, %v2882_v38 }
  0xf0   : > { %1271 = vmatprep.mubr.bf16.mxu0 %v2883_v39  ;;  %2676 = vmatprep.mubr.msk.bf16.mxu1 %vm974_vm0, %v2885_v40 }
  0xf7   : > { %1272 = vmatmul.mubr.bf16.gmra.mrb[84].mxu0 %v2886_v41  ;;  %2677 = vmatmul.mubr.msk.bf16.gmra.mrb[84].mxu1 %vm974_vm0, %v2887_v42 }
  0xf8   : > { %1279 = vmatprep.mubr.bf16.mxu0 %v2888_v43  ;;  %2680 = vmatprep.mubr.msk.bf16.mxu1 %vm974_vm0, %v2890_v44 }
  0xff   : > { %1280 = vmatmul.mubr.bf16.gmra.mrb[88].mxu0 %v2891_v45  ;;  %2681 = vmatmul.mubr.msk.bf16.gmra.mrb[88].mxu1 %vm974_vm0, %v2892_v46 }
 0x100   : > { %1287 = vmatprep.mubr.bf16.mxu0 %v2893_v47  ;;  %2684 = vmatprep.mubr.msk.bf16.mxu1 %vm974_vm0, %v2895_v48 }
 0x107   : > { %1288 = vmatmul.mubr.bf16.gmra.mrb[92].mxu0 %v2896_v49  ;;  %2685 = vmatmul.mubr.msk.bf16.gmra.mrb[92].mxu1 %vm974_vm0, %v2897_v50 }
 0x122   : > { %v3383_v51 = vpop.f32.mrb[0].mxu0  ;;  %v3385_v52 = vpop.f32.mrb[0].mxu1 }
 0x123   : > { %v1107_v53 = vpop.f32.mrb[1].mxu0  ;;  %v1299_v54 = vpop.f32.mrb[1].mxu1 }
 0x124   : > { %v3387_v55 = vpop.f32.mrb[2].mxu0  ;;  %v3389_v56 = vpop.f32.mrb[2].mxu1 }
 0x125   : > { %v1110_v57 = vpop.f32.mrb[3].mxu0  ;;  %v1302_v58 = vpop.f32.mrb[3].mxu1 }
 0x12a   : > { %v1113_v59 = vpop.f32.mrb[4].mxu0  ;;  %v3391_v60 = vpop.f32.mrb[4].mxu1 }
 0x12b   : > { %v1115_v61 = vpop.f32.mrb[5].mxu0  ;;  %v1307_v62 = vpop.f32.mrb[5].mxu1 }
 0x12c   : > { %v1116_v63 = vpop.f32.mrb[6].mxu0  ;;  %v3393_v0 = vpop.f32.mrb[6].mxu1 }
 0x12d   : > { %v1118_v1 = vpop.f32.mrb[7].mxu0  ;;  %v1310_v2 = vpop.f32.mrb[7].mxu1 }
 0x132   : > { %v3395_v3 = vpop.f32.mrb[8].mxu0  ;;  %v3397_v4 = vpop.f32.mrb[8].mxu1 }
 0x133   : > { %v1123_v5 = vpop.f32.mrb[9].mxu0  ;;  %v1315_v6 = vpop.f32.mrb[9].mxu1 }
 0x134   : > { %v3399_v7 = vpop.f32.mrb[10].mxu0  ;;  %v3401_v8 = vpop.f32.mrb[10].mxu1 }
 0x135   : > { %v1126_v9 = vpop.f32.mrb[11].mxu0  ;;  %v1318_v10 = vpop.f32.mrb[11].mxu1 }
 0x13a   : > { %v1129_v11 = vpop.f32.mrb[12].mxu0  ;;  %v3403_v12 = vpop.f32.mrb[12].mxu1 }
 0x13b   : > { %v1131_v13 = vpop.f32.mrb[13].mxu0  ;;  %v1323_v14 = vpop.f32.mrb[13].mxu1 }
 0x13c   : > { %v1132_v15 = vpop.f32.mrb[14].mxu0  ;;  %v3405_v16 = vpop.f32.mrb[14].mxu1 }
 0x13d   : > { %v1134_v17 = vpop.f32.mrb[15].mxu0  ;;  %v1326_v18 = vpop.f32.mrb[15].mxu1 }
 0x142   : > { %v1137_v19 = vpop.f32.mrb[16].mxu0  ;;  %v3407_v20 = vpop.f32.mrb[16].mxu1 }
 0x143   : > { %v1139_v21 = vpop.f32.mrb[17].mxu0  ;;  %v1331_v22 = vpop.f32.mrb[17].mxu1 }
 0x144   : > { %v3409_v23 = vpop.f32.mrb[18].mxu0  ;;  %v3411_v24 = vpop.f32.mrb[18].mxu1 }
 0x145   : > { %v1142_v25 = vpop.f32.mrb[19].mxu0  ;;  %v1334_v26 = vpop.f32.mrb[19].mxu1 }
 0x14a   : > { %v1145_v27 = vpop.f32.mrb[20].mxu0  ;;  %v3413_v28 = vpop.f32.mrb[20].mxu1 }
 0x14b   : > { %v1147_v29 = vpop.f32.mrb[21].mxu0  ;;  %v1339_v30 = vpop.f32.mrb[21].mxu1 }
 0x14c   : > { %v1148_v31 = vpop.f32.mrb[22].mxu0  ;;  %v3415_v32 = vpop.f32.mrb[22].mxu1 }
 0x14d   : > { %v1150_v33 = vpop.f32.mrb[23].mxu0  ;;  %v1342_v34 = vpop.f32.mrb[23].mxu1 }
 0x152   : > { %v1153_v35 = vpop.f32.mrb[24].mxu0  ;;  %v3417_v36 = vpop.f32.mrb[24].mxu1 }
 0x153   : > { %v1155_v37 = vpop.f32.mrb[25].mxu0  ;;  %v1347_v38 = vpop.f32.mrb[25].mxu1 }
 0x154   : > { %v1156_v39 = vpop.f32.mrb[26].mxu0  ;;  %v3419_v40 = vpop.f32.mrb[26].mxu1 }
 0x155   : > { %v1158_v41 = vpop.f32.mrb[27].mxu0  ;;  %v1350_v42 = vpop.f32.mrb[27].mxu1 }
 0x15a   : > { %v1161_v43 = vpop.f32.mrb[28].mxu0  ;;  %v3421_v44 = vpop.f32.mrb[28].mxu1 }
 0x15b   : > { %v1163_v45 = vpop.f32.mrb[29].mxu0  ;;  %v1355_v46 = vpop.f32.mrb[29].mxu1 }
 0x15c   : > { %v1164_v47 = vpop.f32.mrb[30].mxu0  ;;  %v3423_v48 = vpop.f32.mrb[30].mxu1 }
 0x15d   : > { %v1166_v49 = vpop.f32.mrb[31].mxu0  ;;  %v1358_v50 = vpop.f32.mrb[31].mxu1 }
 0x162   : > { %v1169_v53 = vpop.f32.mrb[32].mxu0  ;;  %v2626_v54 = vpop.f32.mrb[32].mxu1 }
 0x163   : > { %v3426_v57 = vadd.f32 %v2626_v54, %v1113_v59  ;;  %v1171_v58 = vpop.f32.mrb[33].mxu0  ;;  %v1394_v61 = vpop.f32.mrb[33].mxu1 }
 0x164   : > { %v3429_v62 = vadd.f32 %v1394_v61, %v3383_v51  ;;  %v1172_v1 = vpop.f32.mrb[34].mxu0  ;;  %v2627_v2 = vpop.f32.mrb[34].mxu1 }
 0x165   : > { %4408 = vst [vmem:[#allocation6_spill] sm:$0xff] %v3426_v57  ;;  %v3431_v5 = vadd.f32 %v2627_v2, %v1116_v63  ;;  %v1174_v6 = vpop.f32.mrb[35].mxu0  ;;  %v1397_v9 = vpop.f32.mrb[35].mxu1 }
 0x166   : > { %4409 = vst [vmem:[#allocation7_spill] sm:$0xff] %v3429_v62  ;;  %v3434_v10 = vadd.f32 %v1397_v9, %v3387_v55 }
 0x167   : > { %4410 = vst [vmem:[#allocation8_spill] sm:$0xff] %v3431_v5 }
 0x168   : > { %4411 = vst [vmem:[#allocation9_spill] sm:$0xff] %v3434_v10 }
 0x16a   : > { %v1177_v13 = vpop.f32.mrb[36].mxu0  ;;  %v2630_v14 = vpop.f32.mrb[36].mxu1 }
 0x16b   : > { %v3436_v17 = vadd.f32 %v2630_v14, %v1129_v11  ;;  %v1179_v59 = vpop.f32.mrb[37].mxu0  ;;  %v1410_v18 = vpop.f32.mrb[37].mxu1 }
 0x16c   : > { %v3439_v21 = vadd.f32 %v1410_v18, %v3395_v3  ;;  %v1180_v51 = vpop.f32.mrb[38].mxu0  ;;  %v2631_v22 = vpop.f32.mrb[38].mxu1 }
 0x16d   : > { %v3441_v25 = vadd.f32 %v2631_v22, %v1132_v15  ;;  %v1182_v63 = vpop.f32.mrb[39].mxu0  ;;  %v1413_v26 = vpop.f32.mrb[39].mxu1 }
 0x16e   : > { %4412 = vst [vmem:[#allocation10_spill] sm:$0xff] %v3439_v21  ;;  %v3444_v29 = vadd.f32 %v1413_v26, %v3399_v7 }
 0x172   : > { %v1185_v55 = vpop.f32.mrb[40].mxu0  ;;  %v2634_v30 = vpop.f32.mrb[40].mxu1 }
 0x173   : > { %v3446_v33 = vadd.f32 %v2634_v30, %v1145_v27  ;;  %v1187_v11 = vpop.f32.mrb[41].mxu0  ;;  %v1426_v34 = vpop.f32.mrb[41].mxu1 }
 0x174   : > { %v3448_v37 = vadd.f32 %v1426_v34, %v1137_v19  ;;  %v1188_v38 = vpop.f32.mrb[42].mxu0  ;;  %v2635_v3 = vpop.f32.mrb[42].mxu1 }
 0x175   : > { %4413 = vst [vmem:[#allocation11_spill] sm:$0xff] %v3446_v33  ;;  %v3450_v41 = vadd.f32 %v2635_v3, %v1148_v31  ;;  %v1190_v42 = vpop.f32.mrb[43].mxu0  ;;  %v1429_v15 = vpop.f32.mrb[43].mxu1 }
 0x176   : > { %4414 = vst [vmem:[#allocation12_spill] sm:$0xff] %v3448_v37  ;;  %v3453_v45 = vadd.f32 %v1429_v15, %v3409_v23 }
 0x177   : > { %4415 = vst [vmem:[#allocation13_spill] sm:$0xff] %v3450_v41 }
 0x178   : > { %4416 = vst [vmem:[#allocation14_spill] sm:$0xff] %v3453_v45 }
 0x17a   : > { %v1193_v46 = vpop.f32.mrb[44].mxu0  ;;  %v2638_v7 = vpop.f32.mrb[44].mxu1 }
 0x17b   : > { %v3455_v49 = vadd.f32 %v2638_v7, %v1161_v43  ;;  %v1195_v50 = vpop.f32.mrb[45].mxu0  ;;  %v1442_v27 = vpop.f32.mrb[45].mxu1 }
 0x17c   : > { %v3457_v54 = vadd.f32 %v1442_v27, %v1153_v35  ;;  %v1196_v58 = vpop.f32.mrb[46].mxu0  ;;  %v2639_v19 = vpop.f32.mrb[46].mxu1 }
 0x17d   : > { %4417 = vst [vmem:[#allocation15_spill] sm:$0xff] %v3455_v49  ;;  %v3459_v61 = vadd.f32 %v2639_v19, %v1164_v47  ;;  %v1198_v2 = vpop.f32.mrb[47].mxu0  ;;  %v1445_v31 = vpop.f32.mrb[47].mxu1 }
 0x17e   : > { %4418 = vst [vmem:[#allocation16_spill] sm:$0xff] %v3457_v54  ;;  %v3461_v6 = vadd.f32 %v1445_v31, %v1156_v39 }
 0x17f   : > { %4419 = vst [vmem:[#allocation17_spill] sm:$0xff] %v3459_v61 }
 0x180   : > { %4420 = vst [vmem:[#allocation18_spill] sm:$0xff] %v3461_v6 }
 0x182   : > { %v1201_v9 = vpop.f32.mrb[48].mxu0  ;;  %v2642_v14 = vpop.f32.mrb[48].mxu1 }
 0x183   : > { %v3463_v23 = vadd.f32 %v2642_v14, %v1177_v13  ;;  %v1203_v59 = vpop.f32.mrb[49].mxu0  ;;  %v1458_v18 = vpop.f32.mrb[49].mxu1 }
 0x184   : > { %v3465_v43 = vadd.f32 %v1458_v18, %v1169_v53  ;;  %v1204_v22 = vpop.f32.mrb[50].mxu0  ;;  %v2643_v63 = vpop.f32.mrb[50].mxu1 }
 0x185   : > { %4421 = vst [vmem:[#allocation19_spill] sm:$0xff] %v3463_v23  ;;  %v3467_v35 = vadd.f32 %v2643_v63, %v1180_v51  ;;  %v1206_v26 = vpop.f32.mrb[51].mxu0  ;;  %v1461_v30 = vpop.f32.mrb[51].mxu1 }
 0x186   : > { %4422 = vst [vmem:[#allocation20_spill] sm:$0xff] %v3465_v43  ;;  %v3469_v47 = vadd.f32 %v1461_v30, %v1172_v1 }
 0x188   : > { %4423 = vst [vmem:[#allocation21_spill] sm:$0xff] %v3469_v47 }
 0x18a   : > { %v1209_v11 = vpop.f32.mrb[52].mxu0  ;;  %v2646_v34 = vpop.f32.mrb[52].mxu1 }
 0x18b   : > { %v3471_v39 = vadd.f32 %v2646_v34, %v1193_v46  ;;  %v1211_v3 = vpop.f32.mrb[53].mxu0  ;;  %v1474_v42 = vpop.f32.mrb[53].mxu1 }
 0x18c   : > { %v3473_v13 = vadd.f32 %v1474_v42, %v1185_v55  ;;  %v1212_v15 = vpop.f32.mrb[54].mxu0  ;;  %v2647_v7 = vpop.f32.mrb[54].mxu1 }
 0x18d   : > { %v3475_v53 = vadd.f32 %v2647_v7, %v1196_v58  ;;  %v1214_v50 = vpop.f32.mrb[55].mxu0  ;;  %v1477_v27 = vpop.f32.mrb[55].mxu1 }
 0x18e   : > { %4424 = vst [vmem:[#allocation22_spill] sm:$0xff] %v3473_v13  ;;  %v3477_v51 = vadd.f32 %v1477_v27, %v1188_v38 }
 0x192   : > { %v1217_v19 = vpop.f32.mrb[56].mxu0  ;;  %v2650_v2 = vpop.f32.mrb[56].mxu1 }
 0x193   : > { %v3479_v1 = vadd.f32 %v2650_v2, %v1209_v11  ;;  %v1219_v31 = vpop.f32.mrb[57].mxu0  ;;  %v1490_v14 = vpop.f32.mrb[57].mxu1 }
 0x194   : > { %v3481_v46 = vadd.f32 %v1490_v14, %v1201_v9  ;;  %v1220_v59 = vpop.f32.mrb[58].mxu0  ;;  %v2651_v18 = vpop.f32.mrb[58].mxu1 }
 0x195   : > { %4425 = vst [vmem:[#allocation23_spill] sm:$0xff] %v3479_v1  ;;  %v3483_v55 = vadd.f32 %v2651_v18, %v1212_v15  ;;  %v1222_v63 = vpop.f32.mrb[59].mxu0  ;;  %v1493_v26 = vpop.f32.mrb[59].mxu1 }
 0x196   : > { %v3485_v58 = vadd.f32 %v1493_v26, %v1204_v22 }
 0x197   : > { %4426 = vst [vmem:[#allocation24_spill] sm:$0xff] %v3483_v55 }
 0x198   : > { %4427 = vst [vmem:[#allocation25_spill] sm:$0xff] %v3485_v58 }
 0x19a   : > { %v1225_v30 = vpop.f32.mrb[60].mxu0  ;;  %v2654_v34 = vpop.f32.mrb[60].mxu1 }
 0x19b   : > { %v3487_v38 = vadd.f32 %v2654_v34, %v1225_v30  ;;  %v1227_v3 = vpop.f32.mrb[61].mxu0  ;;  %v1506_v42 = vpop.f32.mrb[61].mxu1 }
 0x19c   : > { %v3489_v11 = vadd.f32 %v1506_v42, %v1217_v19  ;;  %v1228_v7 = vpop.f32.mrb[62].mxu0  ;;  %v2655_v50 = vpop.f32.mrb[62].mxu1 }
 0x19d   : > { %4428 = vst [vmem:[#allocation26_spill] sm:$0xff] %v3487_v38  ;;  %v3491_v9 = vadd.f32 %v2655_v50, %v1228_v7  ;;  %v1230_v27 = vpop.f32.mrb[63].mxu0  ;;  %v1509_v2 = vpop.f32.mrb[63].mxu1 }
 0x19e   : > { %4429 = vst [vmem:[#allocation27_spill] sm:$0xff] %v3489_v11  ;;  %v3493_v15 = vadd.f32 %v1509_v2, %v1220_v59 }
 0x19f   : > { %4430 = vst [vmem:[#allocation28_spill] sm:$0xff] %v3491_v9 }
 0x1a0   : > { %4431 = vst [vmem:[#allocation29_spill] sm:$0xff] %v3493_v15 }
 0x1a2   : > { %v1233_v31 = vpop.f32.mrb[64].mxu0  ;;  %v2658_v14 = vpop.f32.mrb[64].mxu1 }
 0x1a3   : > { %v1235_v22 = vpop.f32.mrb[65].mxu0  ;;  %v1522_v18 = vpop.f32.mrb[65].mxu1 }
 0x1a4   : > { %v3495_v63 = vadd.f32 %v1522_v18, %v1233_v31  ;;  %v1236_v26 = vpop.f32.mrb[66].mxu0  ;;  %v2659_v30 = vpop.f32.mrb[66].mxu1 }
 0x1a5   : > { %v1238_v34 = vpop.f32.mrb[67].mxu0  ;;  %v1525_v3 = vpop.f32.mrb[67].mxu1 }
 0x1a6   : > { %4432 = vst [vmem:[#allocation30_spill] sm:$0xff] %v3495_v63  ;;  %v3497_v19 = vadd.f32 %v1525_v3, %v1236_v26 }
 0x1a8   : > { %4433 = vst [vmem:[#allocation31_spill] sm:$0xff] %v3497_v19 }
 0x1aa   : > { %v1241_v42 = vpop.f32.mrb[68].mxu0  ;;  %v2662_v38 = vpop.f32.mrb[68].mxu1 }
 0x1ab   : > { %v3499_v7 = vadd.f32 %v2658_v14, %v1241_v42  ;;  %v1243_v50 = vpop.f32.mrb[69].mxu0  ;;  %v1538_v27 = vpop.f32.mrb[69].mxu1 }
 0x1ac   : > { %v1244_v59 = vpop.f32.mrb[70].mxu0  ;;  %v2663_v2 = vpop.f32.mrb[70].mxu1 }
 0x1ad   : > { %4434 = vst [vmem:[#allocation32_spill] sm:$0xff] %v3499_v7  ;;  %v3501_v9 = vadd.f32 %v2659_v30, %v1244_v59  ;;  %v1246_v22 = vpop.f32.mrb[71].mxu0  ;;  %v1541_v15 = vpop.f32.mrb[71].mxu1 }
 0x1af   : > { %4435 = vst [vmem:[#allocation33_spill] sm:$0xff] %v3501_v9 }
 0x1b2   : > { %v1249_v31 = vpop.f32.mrb[72].mxu0  ;;  %v2666_v18 = vpop.f32.mrb[72].mxu1 }
 0x1b3   : > { %v3503_v63 = vadd.f32 %v1538_v27, %v1249_v31  ;;  %v1251_v34 = vpop.f32.mrb[73].mxu0  ;;  %v1554_v11 = vpop.f32.mrb[73].mxu1 }
 0x1b4   : > { %v1252_v26 = vpop.f32.mrb[74].mxu0  ;;  %v2667_v3 = vpop.f32.mrb[74].mxu1 }
 0x1b5   : > { %4436 = vst [vmem:[#allocation34_spill] sm:$0xff] %v3503_v63  ;;  %v3505_v19 = vadd.f32 %v1541_v15, %v1252_v26  ;;  %v1254_v14 = vpop.f32.mrb[75].mxu0  ;;  %v1557_v42 = vpop.f32.mrb[75].mxu1 }
 0x1ba   : > { %v1257_v50 = vpop.f32.mrb[76].mxu0  ;;  %v2670_v7 = vpop.f32.mrb[76].mxu1 }
 0x1bb   : > { %v3507_v55 = vadd.f32 %v2662_v38, %v1257_v50  ;;  %v1259_v30 = vpop.f32.mrb[77].mxu0  ;;  %v1570_v59 = vpop.f32.mrb[77].mxu1 }
 0x1bc   : > { %v1260_v22 = vpop.f32.mrb[78].mxu0  ;;  %v2671_v9 = vpop.f32.mrb[78].mxu1 }
 0x1bd   : > { %4437 = vst [vmem:[#allocation35_spill] sm:$0xff] %v3507_v55  ;;  %v3509_v1 = vadd.f32 %v2663_v2, %v1260_v22  ;;  %v1262_v27 = vpop.f32.mrb[79].mxu0  ;;  %v1573_v31 = vpop.f32.mrb[79].mxu1 }
 0x1c2   : > { %v1265_v34 = vpop.f32.mrb[80].mxu0  ;;  %v2674_v63 = vpop.f32.mrb[80].mxu1 }
 0x1c3   : > { %v3511_v58 = vadd.f32 %v1554_v11, %v1265_v34  ;;  %v3514_v15 = vadd.f32 %v2674_v63, %v3391_v60  ;;  %v1267_v26 = vpop.f32.mrb[81].mxu0  ;;  %v1586_v14 = vpop.f32.mrb[81].mxu1 }
 0x1c4   : > { %v3517_v38 = vadd.f32 %v1586_v14, %v3385_v52  ;;  %v1268_v50 = vpop.f32.mrb[82].mxu0  ;;  %v2675_v30 = vpop.f32.mrb[82].mxu1 }
 0x1c5   : > { %v3519_v55 = vadd.f32 %v1557_v42, %v1268_v50  ;;  %v3522_v2 = vadd.f32 %v2675_v30, %v3393_v0  ;;  %v1270_v22 = vpop.f32.mrb[83].mxu0  ;;  %v1589_v27 = vpop.f32.mrb[83].mxu1 }
 0x1c6   : > { %v3525_v11 = vadd.f32 %v1589_v27, %v3389_v56 }
 0x1ca   : > { %v1273_v34 = vpop.f32.mrb[84].mxu0  ;;  %v2678_v60 = vpop.f32.mrb[84].mxu1 }
 0x1cb   : > { %v3527_v63 = vadd.f32 %v2666_v18, %v1273_v34  ;;  %v3530_v26 = vadd.f32 %v2678_v60, %v3403_v12  ;;  %v1275_v52 = vpop.f32.mrb[85].mxu0  ;;  %v1602_v14 = vpop.f32.mrb[85].mxu1 }
 0x1cc   : > { %v3533_v42 = vadd.f32 %v1602_v14, %v3397_v4  ;;  %v1276_v50 = vpop.f32.mrb[86].mxu0  ;;  %v2679_v0 = vpop.f32.mrb[86].mxu1 }
 0x1cd   : > { %v3535_v30 = vadd.f32 %v2667_v3, %v1276_v50  ;;  %v3538_v22 = vadd.f32 %v2679_v0, %v3405_v16  ;;  %v1278_v56 = vpop.f32.mrb[87].mxu0  ;;  %v1605_v27 = vpop.f32.mrb[87].mxu1 }
 0x1ce   : > { %v3541_v18 = vadd.f32 %v1605_v27, %v3401_v8 }
 0x1d2   : > { %v1281_v34 = vpop.f32.mrb[88].mxu0  ;;  %v2682_v12 = vpop.f32.mrb[88].mxu1 }
 0x1d3   : > { %v3543_v60 = vadd.f32 %v1570_v59, %v1281_v34  ;;  %v3546_v52 = vadd.f32 %v2682_v12, %v3413_v28  ;;  %v1283_v4 = vpop.f32.mrb[89].mxu0  ;;  %v1618_v14 = vpop.f32.mrb[89].mxu1 }
 0x1d4   : > { %v3549_v3 = vadd.f32 %v1618_v14, %v3407_v20  ;;  %v1284_v50 = vpop.f32.mrb[90].mxu0  ;;  %v2683_v16 = vpop.f32.mrb[90].mxu1 }
 0x1d5   : > { %v3551_v0 = vadd.f32 %v1573_v31, %v1284_v50  ;;  %v3554_v56 = vadd.f32 %v2683_v16, %v3415_v32  ;;  %v1286_v8 = vpop.f32.mrb[91].mxu0  ;;  %v1621_v27 = vpop.f32.mrb[91].mxu1 }
 0x1d6   : > { %v3557_v59 = vadd.f32 %v1621_v27, %v3411_v24 }
 0x1d9   : > { %1654 = sbr.rel (!%p1649_p4) target bundleno = 480 (0x1e0), region = 40 }
 0x1da   : > { %v1289_v34 = vpop.f32.mrb[92].mxu0  ;;  %v2686_v28 = vpop.f32.mrb[92].mxu1 }
 0x1db   : > { %v3559_v12 = vadd.f32 %v2670_v7, %v1289_v34  ;;  %v3562_v4 = vadd.f32 %v2686_v28, %v3421_v44  ;;  %v1291_v20 = vpop.f32.mrb[93].mxu0  ;;  %v1634_v14 = vpop.f32.mrb[93].mxu1  ;;  %v2925_v44 = vmov (%p1649_p4), 0.0  }
 0x1dc   : > { %v3565_v31 = vadd.f32 %v1634_v14, %v3417_v36  ;;  %v1292_v50 = vpop.f32.mrb[94].mxu0  ;;  %v2687_v32 = vpop.f32.mrb[94].mxu1  ;;  %1656 = vst.msk [vmem:[#allocation2] sm:$0x1] (%p1649_p4), %vm1655_vm1, %v2925_v44  ;;  %1657 = vst.msk [vmem:[#allocation3] sm:$0x1] (%p1649_p4), %vm1655_vm1, %v2925_v44 }
 0x1dd   : > { %v3567_v16 = vadd.f32 %v2671_v9, %v1292_v50  ;;  %v3570_v8 = vadd.f32 %v2687_v32, %v3423_v48  ;;  %v1294_v24 = vpop.f32.mrb[95].mxu0  ;;  %v1637_v27 = vpop.f32.mrb[95].mxu1 }
 0x1de   : > { %v3573_v7 = vadd.f32 %v1637_v27, %v3419_v40 }
 0x1df   : > { %4438 = vst [vmem:[#allocation36_spill] sm:$0xff] %v3570_v8 }
 0x1e0 PF: > { %p2577_p5 = scmp.ne.s32.totalorder %s2914_s15, 0 }
 0x1e1   : > { %vm1662_vm2 = vcmask (!%p2577_p5), 523264   ;;  %vm1797_vm3 = vcmask (!%p2577_p5), 516096  }
 0x1e2   : > { %1660 = sbr.rel (%p2577_p5) target bundleno = 656 (0x290), region = 44  ;;  %v1663_v36 = vsel (!%p2577_p5), %vm1662_vm2, %v3429_v62, 0.0  ;;  %v1664_v48 = vsel (!%p2577_p5), %vm1662_vm2, %v3434_v10, 0.0  ;;  %v1666_v40 = vsel (!%p2577_p5), %vm1662_vm2, %v3426_v57, 0.0  ;;  %v1668_v34 = vsel (!%p2577_p5), %vm1662_vm2, %v3431_v5, 0.0 }
 0x1e3   : > { %v1665_v9 = vadd.f32 (!%p2577_p5), %v1664_v48, %v1663_v36  ;;  %v1670_v20 = vsel (!%p2577_p5), %vm1662_vm2, %v3439_v21, 0.0  ;;  %v1672_v50 = vsel (!%p2577_p5), %vm1662_vm2, %v3444_v29, 0.0  ;;  %v1674_v24 = vsel (!%p2577_p5), %vm1662_vm2, %v3436_v17, 0.0 }
 0x1e4   : > { %v1676_v44 = vsel (!%p2577_p5), %vm1662_vm2, %v3441_v25, 0.0  ;;  %v1678_v48 = vsel (!%p2577_p5), %vm1662_vm2, %v3448_v37, 0.0 }
 0x1e5   : > { %v1667_v28 = vadd.f32 (!%p2577_p5), %v1666_v40, %v1665_v9  ;;  %v1680_v9 = vsel (!%p2577_p5), %vm1662_vm2, %v3453_v45, 0.0 }
 0x1e7   : > { %v1669_v14 = vadd.f32 (!%p2577_p5), %v1668_v34, %v1667_v28  ;;  %v1682_v28 = vsel (!%p2577_p5), %vm1662_vm2, %v3446_v33, 0.0 }
 0x1e9   : > { %v1671_v32 = vadd.f32 %v1670_v20, %v1669_v14  ;;  %v1684_v14 = vsel %vm1662_vm2, %v3450_v41, 0.0 }
 0x1eb   : > { %v1673_v27 = vadd.f32 %v1672_v50, %v1671_v32  ;;  %v1686_v32 = vsel %vm1662_vm2, %v3457_v54, 0.0 }
 0x1ed   : > { %v1675_v36 = vadd.f32 %v1674_v24, %v1673_v27  ;;  %v1688_v27 = vsel %vm1662_vm2, %v3461_v6, 0.0 }
 0x1ef   : > { %v1677_v40 = vadd.f32 %v1676_v44, %v1675_v36  ;;  %v1690_v36 = vsel %vm1662_vm2, %v3455_v49, 0.0 }
 0x1f1   : > { %v1679_v34 = vadd.f32 %v1678_v48, %v1677_v40  ;;  %v1692_v40 = vsel %vm1662_vm2, %v3459_v61, 0.0 }
 0x1f3   : > { %v1681_v20 = vadd.f32 %v1680_v9, %v1679_v34  ;;  %v1694_v34 = vsel %vm1662_vm2, %v3465_v43, 0.0 }
 0x1f5   : > { %v1683_v50 = vadd.f32 %v1682_v28, %v1681_v20  ;;  %v1696_v20 = vsel %vm1662_vm2, %v3469_v47, 0.0 }
 0x1f7   : > { %v1685_v24 = vadd.f32 %v1684_v14, %v1683_v50  ;;  %v1698_v50 = vsel %vm1662_vm2, %v3463_v23, 0.0 }
 0x1f9   : > { %v1687_v44 = vadd.f32 %v1686_v32, %v1685_v24  ;;  %v1800_v32 = vmul.f32 %v3429_v62, %v3429_v62  ;;  %v1801_v24 = vmul.f32 %v3434_v10, %v3434_v10  ;;  %v1704_v62 = vsel %vm1662_vm2, %v3477_v51, 0.0 }
 0x1fb   : > { %v1689_v48 = vadd.f32 %v1688_v27, %v1687_v44  ;;  %v1802_v27 = vmul.f32 %v3426_v57, %v3426_v57  ;;  %v1865_v10 = vsel %vm1662_vm2, %v1801_v24, 0.0 }
 0x1fd   : > { %v1691_v9 = vadd.f32 %v1690_v36, %v1689_v48  ;;  %v1700_v36 = vsel %vm1662_vm2, %v3467_v35, 0.0  ;;  %v1803_v48 = vmul.f32 %v3431_v5, %v3431_v5  ;;  %v1867_v57 = vsel %vm1662_vm2, %v1802_v27, 0.0 }
 0x1ff   : > { %v1693_v28 = vadd.f32 %v1692_v40, %v1691_v9  ;;  %v1702_v9 = vsel %vm1662_vm2, %v3473_v13, 0.0 }
 0x201   : > { %v1695_v14 = vadd.f32 %v1694_v34, %v1693_v28  ;;  %v1804_v34 = vmul.f32 %v3439_v21, %v3439_v21  ;;  %v1864_v28 = vsel %vm1662_vm2, %v1800_v32, 0.0  ;;  %v1706_v21 = vsel %vm1662_vm2, %v3471_v39, 0.0 }
 0x202   : > { %v1806_v32 = vmul.f32 %v3436_v17, %v3436_v17 }
 0x203   : > { %v1697_v44 = vadd.f32 %v1696_v20, %v1695_v14  ;;  %v1866_v14 = vadd.f32 %v1865_v10, %v1864_v28  ;;  %v1871_v24 = vsel %vm1662_vm2, %v1804_v34, 0.0  ;;  %v1710_v28 = vsel %vm1662_vm2, %v3481_v46, 0.0 }
 0x204   : > { %v1875_v34 = vsel %vm1662_vm2, %v1806_v32, 0.0 }
 0x205   : > { %v1699_v40 = vadd.f32 %v1698_v50, %v1697_v44  ;;  %v1805_v50 = vmul.f32 %v3444_v29, %v3444_v29  ;;  %v1869_v44 = vsel %vm1662_vm2, %v1803_v48, 0.0  ;;  %v1868_v8 = vadd.f32 %v1867_v57, %v1866_v14 }
 0x207   : > { %v1701_v20 = vadd.f32 %v1700_v36, %v1699_v40  ;;  %v1870_v10 = vadd.f32 %v1869_v44, %v1868_v8  ;;  %v1708_v36 = vsel %vm1662_vm2, %v3475_v53, 0.0  ;;  %v1807_v40 = vmul.f32 %v3441_v25, %v3441_v25  ;;  %v4439_v8 = vld [vmem:[#allocation25_spill] sm:$0xff] }
 0x208   : > { %v1873_v48 = vsel %vm1662_vm2, %v1805_v50, 0.0  ;;  %v1712_v14 = vsel %vm1662_vm2, %v4439_v8, 0.0  ;;  %v1809_v44 = vmul.f32 %v3453_v45, %v3453_v45  ;;  %v1811_v45 = vmul.f32 %v3450_v41, %v3450_v41 }
 0x209   : > { %v1703_v5 = vadd.f32 %v1702_v9, %v1701_v20  ;;  %v1872_v57 = vadd.f32 %v1871_v24, %v1870_v10  ;;  %v1808_v20 = vmul.f32 %v3448_v37, %v3448_v37  ;;  %v1877_v50 = vsel %vm1662_vm2, %v1807_v40, 0.0 }
 0x20a   : > { %v1810_v37 = vmul.f32 %v3446_v33, %v3446_v33  ;;  %v1881_v40 = vsel %vm1662_vm2, %v1809_v44, 0.0  ;;  %v1812_v33 = vmul.f32 %v3457_v54, %v3457_v54  ;;  %v1813_v41 = vmul.f32 %v3461_v6, %v3461_v6 }
 0x20b   : > { %v1705_v27 = vadd.f32 %v1704_v62, %v1703_v5  ;;  %v1874_v5 = vadd.f32 %v1873_v48, %v1872_v57  ;;  %v1879_v32 = vsel %vm1662_vm2, %v1808_v20, 0.0  ;;  %v1885_v44 = vsel %vm1662_vm2, %v1811_v45, 0.0 }
 0x20c   : > { %v1883_v20 = vsel %vm1662_vm2, %v1810_v37, 0.0  ;;  %v1814_v54 = vmul.f32 %v3455_v49, %v3455_v49  ;;  %v1887_v37 = vsel %vm1662_vm2, %v1812_v33, 0.0  ;;  %v1815_v6 = vmul.f32 %v3459_v61, %v3459_v61 }
 0x20d   : > { %v1707_v9 = vadd.f32 %v1706_v21, %v1705_v27  ;;  %v1876_v24 = vadd.f32 %v1875_v34, %v1874_v5  ;;  %v4440_v27 = vld [vmem:[#allocation23_spill] sm:$0xff]  ;;  %v1889_v45 = vsel %vm1662_vm2, %v1813_v41, 0.0  ;;  %v1816_v49 = vmul.f32 %v3465_v43, %v3465_v43 }
 0x20e   : > { %v1714_v10 = vsel %vm1662_vm2, %v4440_v27, 0.0  ;;  %v1891_v33 = vsel %vm1662_vm2, %v1814_v54, 0.0  ;;  %v1817_v61 = vmul.f32 %v3469_v47, %v3469_v47  ;;  %v1893_v41 = vsel %vm1662_vm2, %v1815_v6, 0.0 }
 0x20f   : > { %v1709_v62 = vadd.f32 %v1708_v36, %v1707_v9  ;;  %v1878_v48 = vadd.f32 %v1877_v50, %v1876_v24  ;;  %v4441_v9 = vld [vmem:[#allocation24_spill] sm:$0xff]  ;;  %v1818_v43 = vmul.f32 %v3463_v23, %v3463_v23  ;;  %v1895_v54 = vsel %vm1662_vm2, %v1816_v49, 0.0 }
 0x210   : > { %v1716_v57 = vsel %vm1662_vm2, %v4441_v9, 0.0  ;;  %v1819_v47 = vmul.f32 %v3467_v35, %v3467_v35  ;;  %v1897_v6 = vsel %vm1662_vm2, %v1817_v61, 0.0  ;;  %v1820_v23 = vmul.f32 %v3473_v13, %v3473_v13 }
 0x211   : > { %v1711_v21 = vadd.f32 %v1710_v28, %v1709_v62  ;;  %v1880_v34 = vadd.f32 %v1879_v32, %v1878_v48  ;;  %v4442_v62 = vld [vmem:[#allocation27_spill] sm:$0xff]  ;;  %v1899_v49 = vsel %vm1662_vm2, %v1818_v43, 0.0  ;;  %v1822_v13 = vmul.f32 %v3471_v39, %v3471_v39 }
 0x212   : > { %v1718_v5 = vsel %vm1662_vm2, %v4442_v62, 0.0  ;;  %v1901_v61 = vsel %vm1662_vm2, %v1819_v47, 0.0  ;;  %v1903_v43 = vsel %vm1662_vm2, %v1820_v23, 0.0 }
 0x213   : > { %v1713_v36 = vadd.f32 %v1712_v14, %v1711_v21  ;;  %v1882_v50 = vadd.f32 %v1881_v40, %v1880_v34  ;;  %v4443_v21 = vld [vmem:[#allocation29_spill] sm:$0xff]  ;;  %v1907_v23 = vsel %vm1662_vm2, %v1822_v13, 0.0 }
 0x214   : > { %v1720_v24 = vsel %vm1662_vm2, %v4443_v21, 0.0 }
 0x215   : > { %v1715_v28 = vadd.f32 %v1714_v10, %v1713_v36  ;;  %v1884_v32 = vadd.f32 %v1883_v20, %v1882_v50  ;;  %v4444_v36 = vld [vmem:[#allocation26_spill] sm:$0xff] }
 0x216   : > { %v1722_v48 = vsel %vm1662_vm2, %v4444_v36, 0.0 }
 0x217   : > { %v1717_v14 = vadd.f32 %v1716_v57, %v1715_v28  ;;  %v1886_v40 = vadd.f32 %v1885_v44, %v1884_v32  ;;  %v4445_v28 = vld [vmem:[#allocation28_spill] sm:$0xff] }
 0x218   : > { %v1724_v34 = vsel %vm1662_vm2, %v4445_v28, 0.0 }
 0x219   : > { %v1719_v10 = vadd.f32 %v1718_v5, %v1717_v14  ;;  %v1888_v20 = vadd.f32 %v1887_v37, %v1886_v40  ;;  %v4446_v14 = vld [vmem:[#allocation30_spill] sm:$0xff] }
 0x21a   : > { %v1726_v50 = vsel %vm1662_vm2, %v4446_v14, 0.0 }
 0x21b   : > { %v1721_v57 = vadd.f32 %v1720_v24, %v1719_v10  ;;  %v1890_v44 = vadd.f32 %v1889_v45, %v1888_v20  ;;  %v4447_v10 = vld [vmem:[#allocation31_spill] sm:$0xff] }
 0x21c   : > { %v1728_v32 = vsel %vm1662_vm2, %v4447_v10, 0.0 }
 0x21d   : > { %v1723_v5 = vadd.f32 %v1722_v48, %v1721_v57  ;;  %v1892_v37 = vadd.f32 %v1891_v33, %v1890_v44  ;;  %v4448_v57 = vld [vmem:[#allocation32_spill] sm:$0xff] }
 0x21e   : > { %v1730_v40 = vsel %vm1662_vm2, %v4448_v57, 0.0 }
 0x21f   : > { %v1725_v24 = vadd.f32 %v1724_v34, %v1723_v5  ;;  %v1894_v45 = vadd.f32 %v1893_v41, %v1892_v37  ;;  %v4449_v5 = vld [vmem:[#allocation33_spill] sm:$0xff]  ;;  %v1821_v37 = vmul.f32 %v3477_v51, %v3477_v51 }
 0x220   : > { %v1732_v20 = vsel %vm1662_vm2, %v4449_v5, 0.0 }
 0x221   : > { %v1727_v48 = vadd.f32 %v1726_v50, %v1725_v24  ;;  %v1896_v33 = vadd.f32 %v1895_v54, %v1894_v45  ;;  %v4450_v24 = vld [vmem:[#allocation34_spill] sm:$0xff]  ;;  %v1905_v47 = vsel %vm1662_vm2, %v1821_v37, 0.0 }
 0x222   : > { %v1734_v44 = vsel %vm1662_vm2, %v4450_v24, 0.0 }
 0x223   : > { %v1729_v34 = vadd.f32 %v1728_v32, %v1727_v48  ;;  %v1898_v41 = vadd.f32 %v1897_v6, %v1896_v33  ;;  %v1736_v48 = vsel %vm1662_vm2, %v3505_v19, 0.0  ;;  %v1823_v33 = vmul.f32 %v3475_v53, %v3475_v53 }
 0x225   : > { %v1731_v50 = vadd.f32 %v1730_v40, %v1729_v34  ;;  %v1900_v54 = vadd.f32 %v1899_v49, %v1898_v41  ;;  %v4451_v34 = vld [vmem:[#allocation35_spill] sm:$0xff]  ;;  %v1824_v41 = vmul.f32 %v3481_v46, %v3481_v46  ;;  %v1909_v37 = vsel %vm1662_vm2, %v1823_v33, 0.0 }
 0x226   : > { %v1738_v45 = vsel %vm1662_vm2, %v4451_v34, 0.0 }
 0x227   : > { %v1733_v32 = vadd.f32 %v1732_v20, %v1731_v50  ;;  %v1902_v6 = vadd.f32 %v1901_v61, %v1900_v54  ;;  %v1740_v50 = vsel %vm1662_vm2, %v3509_v1, 0.0  ;;  %v1825_v54 = vmul.f32 %v4439_v8, %v4439_v8 }
 0x228   : > { %v1911_v13 = vsel %vm1662_vm2, %v1824_v41, 0.0  ;;  %v1827_v8 = vmul.f32 %v4441_v9, %v4441_v9  ;;  %v1829_v9 = vmul.f32 %v4443_v21, %v4443_v21  ;;  %v1831_v21 = vmul.f32 %v4445_v28, %v4445_v28 }
 0x229   : > { %v1735_v40 = vadd.f32 %v1734_v44, %v1733_v32  ;;  %v1904_v49 = vadd.f32 %v1903_v43, %v1902_v6  ;;  %v1742_v32 = vsel %vm1662_vm2, %v3511_v58, 0.0  ;;  %v1826_v6 = vmul.f32 %v4440_v27, %v4440_v27 }
 0x22a   : > { %v1913_v33 = vsel %vm1662_vm2, %v1825_v54, 0.0  ;;  %v1828_v27 = vmul.f32 %v4442_v62, %v4442_v62  ;;  %v1917_v54 = vsel %vm1662_vm2, %v1827_v8, 0.0  ;;  %v1830_v62 = vmul.f32 %v4444_v36, %v4444_v36 }
 0x22b   : > { %v1737_v20 = vadd.f32 %v1736_v48, %v1735_v40  ;;  %v1906_v61 = vadd.f32 %v1905_v47, %v1904_v49  ;;  %v1744_v40 = vsel %vm1662_vm2, %v3519_v55, 0.0  ;;  %v1915_v41 = vsel %vm1662_vm2, %v1826_v6, 0.0 }
 0x22c   : > { %v1832_v36 = vmul.f32 %v4446_v14, %v4446_v14  ;;  %v1833_v28 = vmul.f32 %v4447_v10, %v4447_v10  ;;  %v1834_v14 = vmul.f32 %v4448_v57, %v4448_v57  ;;  %v1835_v10 = vmul.f32 %v4449_v5, %v4449_v5 }
 0x22d   : > { %v1739_v44 = vadd.f32 %v1738_v45, %v1737_v20  ;;  %v1908_v43 = vadd.f32 %v1907_v23, %v1906_v61  ;;  %v1746_v20 = vsel %vm1662_vm2, %v3527_v63, 0.0  ;;  %v1750_v23 = vsel %vm1662_vm2, %v3543_v60, 0.0 }
 0x22e   : > { %v1836_v57 = vmul.f32 %v4450_v24, %v4450_v24  ;;  %v1837_v5 = vmul.f32 %v3505_v19, %v3505_v19  ;;  %v1838_v24 = vmul.f32 %v4451_v34, %v4451_v34  ;;  %v1840_v34 = vmul.f32 %v3511_v58, %v3511_v58 }
 0x22f   : > { %v1741_v48 = vadd.f32 %v1740_v50, %v1739_v44  ;;  %v1910_v47 = vadd.f32 %v1909_v37, %v1908_v43  ;;  %v1748_v44 = vsel %vm1662_vm2, %v3535_v30, 0.0  ;;  %v1754_v43 = vsel %vm1662_vm2, %v3559_v12, 0.0 }
 0x231   : > { %v1743_v45 = vadd.f32 %v1742_v32, %v1741_v48  ;;  %v1912_v32 = vadd.f32 %v1911_v13, %v1910_v47  ;;  %v1921_v47 = vsel %vm1662_vm2, %v1829_v9, 0.0  ;;  %v1927_v9 = vsel %vm1662_vm2, %v1832_v36, 0.0 }
 0x232   : > { %v1770_v36 = vsel %vm1662_vm2, %v3530_v26, 0.0 }
 0x233   : > { %v1745_v50 = vadd.f32 %v1744_v40, %v1743_v45  ;;  %v1914_v61 = vadd.f32 %v1913_v33, %v1912_v32  ;;  %v1752_v40 = vsel %vm1662_vm2, %v3551_v0, 0.0  ;;  %v1758_v33 = vsel %vm1662_vm2, %v3517_v38, 0.0 }
 0x235   : > { %v1747_v49 = vadd.f32 %v1746_v20, %v1745_v50  ;;  %v1916_v45 = vadd.f32 %v1915_v41, %v1914_v61  ;;  %v1919_v20 = vsel %vm1662_vm2, %v1828_v27, 0.0  ;;  %v1756_v50 = vsel %vm1662_vm2, %v3567_v16, 0.0 }
 0x236   : > { %v1760_v27 = vsel %vm1662_vm2, %v3525_v11, 0.0  ;;  %v1925_v41 = vsel %vm1662_vm2, %v1831_v21, 0.0 }
 0x237   : > { %v1749_v48 = vadd.f32 %v1748_v44, %v1747_v49  ;;  %v1918_v13 = vadd.f32 %v1917_v54, %v1916_v45  ;;  %v1923_v49 = vsel %vm1662_vm2, %v1830_v62, 0.0  ;;  %v1764_v45 = vsel %vm1662_vm2, %v3522_v2, 0.0 }
 0x239   : > { %v1751_v37 = vadd.f32 %v1750_v23, %v1749_v48  ;;  %v1920_v8 = vadd.f32 %v1919_v20, %v1918_v13  ;;  %v1931_v13 = vsel %vm1662_vm2, %v1834_v14, 0.0  ;;  %v1939_v14 = vsel %vm1662_vm2, %v1838_v24, 0.0 }
 0x23b   : > { %v1753_v6 = vadd.f32 %v1752_v40, %v1751_v37  ;;  %v1922_v23 = vadd.f32 %v1921_v47, %v1920_v8  ;;  %v1762_v40 = vsel %vm1662_vm2, %v3514_v15, 0.0  ;;  %v1768_v47 = vsel %vm1662_vm2, %v3541_v18, 0.0 }
 0x23d   : > { %v1755_v44 = vadd.f32 %v1754_v43, %v1753_v6  ;;  %v1924_v61 = vadd.f32 %v1923_v49, %v1922_v23  ;;  %v1929_v43 = vsel %vm1662_vm2, %v1833_v28, 0.0  ;;  %v1766_v6 = vsel %vm1662_vm2, %v3533_v42, 0.0 }
 0x23e   : > { %v1935_v49 = vsel %vm1662_vm2, %v1836_v57, 0.0  ;;  %v1839_v28 = vmul.f32 %v3509_v1, %v3509_v1  ;;  %v1943_v57 = vsel %vm1662_vm2, %v1840_v34, 0.0 }
 0x23f   : > { %v1757_v32 = vadd.f32 %v1756_v50, %v1755_v44  ;;  %v1926_v37 = vadd.f32 %v1925_v41, %v1924_v61  ;;  %v1933_v44 = vsel %vm1662_vm2, %v1835_v10, 0.0  ;;  %v1937_v41 = vsel %vm1662_vm2, %v1837_v5, 0.0 }
 0x240   : > { %v1941_v10 = vsel %vm1662_vm2, %v1839_v28, 0.0 }
 0x241   : > { %v1759_v48 = vadd.f32 %v1758_v33, %v1757_v32  ;;  %v1928_v20 = vadd.f32 %v1927_v9, %v1926_v37  ;;  %v1776_v37 = vsel %vm1662_vm2, %v3557_v59, 0.0 }
 0x243   : > { %v1761_v54 = vadd.f32 %v1760_v27, %v1759_v48  ;;  %v1930_v21 = vadd.f32 %v1929_v43, %v1928_v20  ;;  %v1772_v27 = vsel %vm1662_vm2, %v3538_v22, 0.0  ;;  %v1778_v20 = vsel %vm1662_vm2, %v3546_v52, 0.0 }
 0x245   : > { %v1763_v62 = vadd.f32 %v1762_v40, %v1761_v54  ;;  %v1932_v33 = vadd.f32 %v1931_v13, %v1930_v21  ;;  %v1774_v40 = vsel %vm1662_vm2, %v3549_v3, 0.0  ;;  %v1780_v21 = vsel %vm1662_vm2, %v3554_v56, 0.0 }
 0x247   : > { %v1765_v50 = vadd.f32 %v1764_v45, %v1763_v62  ;;  %v1934_v23 = vadd.f32 %v1933_v44, %v1932_v33  ;;  %v1841_v45 = vmul.f32 %v3519_v55, %v3519_v55  ;;  %v1782_v33 = vsel %vm1662_vm2, %v3565_v31, 0.0 }
 0x249   : > { %v1767_v8 = vadd.f32 %v1766_v6, %v1765_v50  ;;  %v1936_v61 = vadd.f32 %v1935_v49, %v1934_v23  ;;  %v1842_v6 = vmul.f32 %v3527_v63, %v3527_v63  ;;  %v1945_v5 = vsel %vm1662_vm2, %v1841_v45, 0.0 }
 0x24a   : > { %v1784_v23 = vsel %vm1662_vm2, %v3573_v7, 0.0  ;;  %v1847_v45 = vmul.f32 %v3567_v16, %v3567_v16 }
 0x24b   : > { %v1769_v32 = vadd.f32 %v1768_v47, %v1767_v8  ;;  %v1938_v54 = vadd.f32 %v1937_v41, %v1936_v61  ;;  %v1843_v47 = vmul.f32 %v3535_v30, %v3535_v30  ;;  %v1947_v24 = vsel %vm1662_vm2, %v1842_v6, 0.0 }
 0x24c   : > { %v1786_v61 = vsel %vm1662_vm2, %v3562_v4, 0.0 }
 0x24d   : > { %v1771_v48 = vadd.f32 %v1770_v36, %v1769_v32  ;;  %v1940_v62 = vadd.f32 %v1939_v14, %v1938_v54  ;;  %v1844_v36 = vmul.f32 %v3543_v60, %v3543_v60  ;;  %v1949_v28 = vsel %vm1662_vm2, %v1843_v47, 0.0  ;;  %v4452_v54 = vld [vmem:[#allocation36_spill] sm:$0xff] }
 0x24f   : > { %v1773_v9 = vadd.f32 %v1772_v27, %v1771_v48  ;;  %v1942_v50 = vadd.f32 %v1941_v10, %v1940_v62  ;;  %v1845_v27 = vmul.f32 %v3551_v0, %v3551_v0  ;;  %v1951_v34 = vsel %vm1662_vm2, %v1844_v36, 0.0 }
 0x251   : > { %v1775_v43 = vadd.f32 %v1774_v40, %v1773_v9  ;;  %v1944_v8 = vadd.f32 %v1943_v57, %v1942_v50  ;;  %v1846_v40 = vmul.f32 %v3559_v12, %v3559_v12  ;;  %v1953_v10 = vsel %vm1662_vm2, %v1845_v27, 0.0 }
 0x252   : > { %v1849_v50 = vmul.f32 %v3525_v11, %v3525_v11  ;;  %v1852_v27 = vmul.f32 %v3533_v42, %v3533_v42 }
 0x253   : > { %v1777_v13 = vadd.f32 %v1776_v37, %v1775_v43  ;;  %v1946_v32 = vadd.f32 %v1945_v5, %v1944_v8  ;;  %v1788_v37 = vsel %vm1662_vm2, %v4452_v54, 0.0  ;;  %v1955_v6 = vsel %vm1662_vm2, %v1846_v40, 0.0 }
 0x255   : > { %v1779_v44 = vadd.f32 %v1778_v20, %v1777_v13  ;;  %v1948_v48 = vadd.f32 %v1947_v24, %v1946_v32  ;;  %v1848_v20 = vmul.f32 %v3517_v38, %v3517_v38  ;;  %v1851_v24 = vmul.f32 %v3522_v2, %v3522_v2 }
 0x257   : > { %v1781_v49 = vadd.f32 %v1780_v21, %v1779_v44  ;;  %v1950_v9 = vadd.f32 %v1949_v28, %v1948_v48  ;;  %v1957_v21 = vsel %vm1662_vm2, %v1847_v45, 0.0  ;;  %v1850_v44 = vmul.f32 %v3514_v15, %v3514_v15 }
 0x258   : > { %v1959_v8 = vsel %vm1662_vm2, %v1848_v20, 0.0  ;;  %v1965_v40 = vsel %vm1662_vm2, %v1851_v24, 0.0  ;;  %v1967_v45 = vsel %vm1662_vm2, %v1852_v27, 0.0  ;;  %v1859_v24 = vmul.f32 %v3554_v56, %v3554_v56 }
 0x259   : > { %v1783_v41 = vadd.f32 %v1782_v33, %v1781_v49  ;;  %v1952_v62 = vadd.f32 %v1951_v34, %v1950_v9  ;;  %v1961_v49 = vsel %vm1662_vm2, %v1849_v50, 0.0  ;;  %v1963_v28 = vsel %vm1662_vm2, %v1850_v44, 0.0  ;;  %v1661_v9 = vld [vmem:[#allocation2] sm:$0x1] }
 0x25b   : > { %v1785_v14 = vadd.f32 %v1784_v23, %v1783_v41  ;;  %v1954_v13 = vadd.f32 %v1953_v10, %v1952_v62  ;;  %v1855_v62 = vmul.f32 %v3538_v22, %v3538_v22 }
 0x25d   : > { %v1787_v43 = vadd.f32 %v1786_v61, %v1785_v14  ;;  %v1956_v5 = vadd.f32 %v1955_v6, %v1954_v13  ;;  %v1853_v61 = vmul.f32 %v3541_v18, %v3541_v18  ;;  %v1856_v13 = vmul.f32 %v3549_v3, %v3549_v3 }
 0x25f   : > { %v1789_v57 = vadd.f32 %v1788_v37, %v1787_v43  ;;  %v1958_v36 = vadd.f32 %v1957_v21, %v1956_v5  ;;  %v1854_v37 = vmul.f32 %v3530_v26, %v3530_v26  ;;  %v1969_v20 = vsel %vm1662_vm2, %v1853_v61, 0.0 }
 0x260   : > { %v1973_v5 = vsel %vm1662_vm2, %v1855_v62, 0.0 }
 0x261   : > { %v1790_v47 = vrot.slane %v1789_v57, 4  ;;  %v1960_v23 = vadd.f32 %v1959_v8, %v1958_v36  ;;  %v1971_v50 = vsel %vm1662_vm2, %v1854_v37, 0.0  ;;  %v1858_v8 = vmul.f32 %v3546_v52, %v3546_v52 }
 0x263   : > { %v1791_v33 = vadd.f32 %v1790_v47, %v1789_v57  ;;  %v1962_v48 = vadd.f32 %v1961_v49, %v1960_v23  ;;  %v1857_v47 = vmul.f32 %v3557_v59, %v3557_v59  ;;  %v1860_v23 = vmul.f32 %v3565_v31, %v3565_v31 }
 0x264   : > { %v1979_v27 = vsel %vm1662_vm2, %v1858_v8, 0.0 }
 0x265   : > { %v1792_v32 = vrot.slane %v1791_v33, 2  ;;  %v1964_v14 = vadd.f32 %v1963_v28, %v1962_v48  ;;  %v1977_v49 = vsel %vm1662_vm2, %v1857_v47, 0.0  ;;  %v1981_v48 = vsel %vm1662_vm2, %v1859_v24, 0.0 }
 0x267   : > { %v1793_v41 = vadd.f32 %v1792_v32, %v1791_v33  ;;  %v1966_v43 = vadd.f32 %v1965_v40, %v1964_v14  ;;  %v1975_v33 = vsel %vm1662_vm2, %v1856_v13, 0.0  ;;  %v1862_v40 = vmul.f32 %v3562_v4, %v3562_v4 }
 0x269   : > { %v1794_v34 = vrot.slane %v1793_v41, 1  ;;  %v1968_v57 = vadd.f32 %v1967_v45, %v1966_v43 }
 0x26b   : > { %v1795_v10 = vadd.f32 %v1794_v34, %v1793_v41  ;;  %v1970_v21 = vadd.f32 %v1969_v20, %v1968_v57  ;;  %v1861_v41 = vmul.f32 %v3573_v7, %v3573_v7  ;;  %v1983_v34 = vsel %vm1662_vm2, %v1860_v23, 0.0 }
 0x26d   : > { %v1796_v6 = vadd.f32 %v1795_v10, %v1661_v9  ;;  %v1972_v44 = vadd.f32 %v1971_v50, %v1970_v21  ;;  %v1863_v9 = vmul.f32 %v4452_v54, %v4452_v54  ;;  %v1985_v37 = vsel %vm1662_vm2, %v1861_v41, 0.0 }
 0x26e   : > { %v1987_v10 = vsel %vm1662_vm2, %v1862_v40, 0.0 }
 0x26f   : > { %1798 = vst.msk [vmem:[#allocation2] sm:$0x1] %vm1797_vm3, %v1796_v6  ;;  %v1974_v36 = vadd.f32 %v1973_v5, %v1972_v44  ;;  %v1989_v62 = vsel %vm1662_vm2, %v1863_v9, 0.0  ;;  %v1799_v5 = vld [vmem:[#allocation3] sm:$0x1] }
 0x271   : > { %v1976_v32 = vadd.f32 %v1975_v33, %v1974_v36 }
 0x273   : > { %v1978_v28 = vadd.f32 %v1977_v49, %v1976_v32 }
 0x275   : > { %v1980_v61 = vadd.f32 %v1979_v27, %v1978_v28 }
 0x277   : > { %v1982_v14 = vadd.f32 %v1981_v48, %v1980_v61 }
 0x279   : > { %v1984_v45 = vadd.f32 %v1983_v34, %v1982_v14 }
 0x27b   : > { %v1986_v43 = vadd.f32 %v1985_v37, %v1984_v45 }
 0x27d   : > { %v1988_v20 = vadd.f32 %v1987_v10, %v1986_v43 }
 0x27f   : > { %v1990_v6 = vadd.f32 %v1989_v62, %v1988_v20 }
 0x281   : > { %v1991_v57 = vrot.slane %v1990_v6, 4 }
 0x283   : > { %v1992_v13 = vadd.f32 %v1991_v57, %v1990_v6 }
 0x285   : > { %v1993_v50 = vrot.slane %v1992_v13, 2 }
 0x287   : > { %v1994_v21 = vadd.f32 %v1993_v50, %v1992_v13 }
 0x289   : > { %v1995_v47 = vrot.slane %v1994_v21, 1 }
 0x28b   : > { %v1996_v44 = vadd.f32 %v1995_v47, %v1994_v21 }
 0x28d   : > { %v1997_v8 = vadd.f32 %v1996_v44, %v1799_v5 }
 0x28f   : > { %1998 = vst.msk [vmem:[#allocation3] sm:$0x1] %vm1797_vm3, %v1997_v8 }
 0x290 PF: > { %2000 = sbr.rel (!%p1649_p4) target bundleno = 936 (0x3a8), region = 48  ;;  %v2001_v54 = vld [vmem:[#allocation2] sm:$0x1] (%p1649_p4)  ;;  %s2926_s27 = smov (%p1649_p4), 96   ;;  %v2041_v43 = vlaneseq (%p1649_p4)  ;;  %vm2054_vm4 = vcmask (%p1649_p4), 130048   ;;  %vm2057_vm5 = vcmask (%p1649_p4), 392192  }
 0x291   : > { %2013 = vrot.lane.b32.xlu1 (%p1649_p4), %v2001_v54, %s2926_s27  ;;  %s2927_s28 = smov (%p1649_p4), 112   ;;  %s2928_s29 = smov (%p1649_p4), 80   ;;  %v2035_v20 = vld [vmem:[%s4374_s2] sm:$0x1] (%p1649_p4)  ;;  %vm2059_vm6 = vcmask (%p1649_p4), 516096  }
 0x292   : > { %2004 = vrot.lane.b32.xlu0 (%p1649_p4), %v2001_v54, %s2927_s28  ;;  %v2042_v62 = vshrl.u32 (%p1649_p4), %v2041_v43, 7  ;;  %v2037_v50 = vld [vmem:[%s4375_s3] sm:$0x1] (%p1649_p4)  ;;  %s2929_s8 = smov (%p1649_p4), 16   ;;  %s2930_s9 = smov (%p1649_p4), 32  }
 0x293   : > { %s2931_s10 = smov (%p1649_p4), 48  }
 0x294   : > { %v2043_v6 = vsub.s32 (%p1649_p4), 0, %v2042_v62 }
 0x296   : > { %v2002_v33 = vld [vmem:[#allocation3] sm:$0x1] (%p1649_p4) }
 0x297   : > { %2017 = vrot.lane.b32.xlu1 %v2002_v33, %s2926_s27  ;;  %2009 = vrot.lane.b32.xlu0 %v2002_v33, %s2927_s28 }
 0x29b   : > { %2025 = vrot.lane.b32.xlu1 %v2002_v33, %s2928_s29  ;;  %2021 = vrot.lane.b32.xlu0 %v2001_v54, %s2928_s29 }
 0x303   : > { %v2014_v36 = vpop.permute.xlu1 %2013 }
 0x304   : > { %v2005_v24 = vpop.permute.xlu0 %2004 }
 0x305   : > { %v2007_v49 = vadd.f32 %v2005_v24, %v2001_v54 }
 0x307   : > { %v2016_v41 = vadd.f32 %v2014_v36, %v2007_v49 }
 0x309   : > { %v2018_v32 = vpop.permute.xlu1 %2017  ;;  %v2010_v23 = vpop.permute.xlu0 %2009 }
 0x30a   : > { %v2012_v27 = vadd.f32 %v2010_v23, %v2002_v33 }
 0x30c   : > { %v2020_v28 = vadd.f32 %v2018_v32, %v2012_v27 }
 0x30d   : > { %v2026_v48 = vpop.permute.xlu1 %2025  ;;  %v2022_v61 = vpop.permute.xlu0 %2021 }
 0x30e   : > { %v2028_v40 = vadd.f32 %v2026_v48, %v2020_v28  ;;  %v2024_v34 = vadd.f32 %v2022_v61, %v2016_v41 }
 0x310   : > { %v2029_v14 = vmul.f32 0.00048828125, %v2024_v34  ;;  %v2030_v9 = vmul.f32 0.00048828125, %v2028_v40 }
 0x312   : > { %v2031_v37 = vmul.f32 %v2029_v14, %v2029_v14 }
 0x314   : > { %v2032_v45 = vsub.f32 %v2030_v9, %v2031_v37 }
 0x316   : > { %v2033_v10 = vadd.f32 1e-05, %v2032_v45 }
 0x318   : > { %2898 = vrsqrt.f32 %v2033_v10 }
 0x322   : > { %v2899_v57 = vpop.eup %2898 }
 0x323   : > { %v2036_v13 = vmul.f32 %v2899_v57, %v2035_v20 }
 0x325   : > { %v2038_v21 = vmul.f32 %v2036_v13, %v2029_v14  ;;  %v2044_v47 = vrot.slane %v2036_v13, %v2043_v6 }
 0x327   : > { %v2039_v5 = vsub.f32 %v2037_v50, %v2038_v21  ;;  %2045 = vrot.lane.b32.xlu0 %v2044_v47, %s2929_s8 }
 0x329   : > { %v2065_v44 = vrot.slane %v2039_v5, %v2043_v6 }
 0x32b   : > { %2048 = vrot.lane.b32.xlu0 %v2044_v47, %s2930_s9  ;;  %2066 = vrot.lane.b32.xlu1 %v2065_v44, %s2929_s8 }
 0x32f   : > { %2051 = vrot.lane.b32.xlu0 %v2044_v47, %s2931_s10  ;;  %2069 = vrot.lane.b32.xlu1 %v2065_v44, %s2930_s9 }
 0x333   : > { %2072 = vrot.lane.b32.xlu1 %v2065_v44, %s2931_s10 }
 0x399   : > { %v2046_v8 = vpop.permute.xlu0 %2045 }
 0x39a   : > { %v2055_v36 = vsel %vm2054_vm4, %v2036_v13, %v2046_v8 }
 0x39d   : > { %v2049_v54 = vpop.permute.xlu0 %2048  ;;  %v2067_v33 = vpop.permute.xlu1 %2066 }
 0x39e   : > { %v2056_v24 = vsel %vm974_vm0, %v2055_v36, %v2049_v54  ;;  %v2075_v27 = vsel %vm2054_vm4, %v2039_v5, %v2067_v33 }
 0x3a1   : > { %v2052_v49 = vpop.permute.xlu0 %2051  ;;  %v2070_v32 = vpop.permute.xlu1 %2069 }
 0x3a2   : > { %v2058_v23 = vsel %vm2057_vm5, %v2056_v24, %v2052_v49  ;;  %v2076_v28 = vsel %vm974_vm0, %v2075_v27, %v2070_v32 }
 0x3a3   : > { %2060 = vst.msk [vmem:[#allocation4] sm:$0x1] %vm2059_vm6, %v2058_v23 }
 0x3a5   : > { %v2073_v41 = vpop.permute.xlu1 %2072 }
 0x3a6   : > { %v2077_v48 = vsel %vm2057_vm5, %v2076_v28, %v2073_v41 }
 0x3a7   : > { %2078 = vst.msk [vmem:[#allocation5] sm:$0x1] %vm2059_vm6, %v2077_v48 }
 0x3a8 PF: > { %p2578_p6 = scmp.ne.s32.totalorder %s2914_s15, 1 }
 0x3a9   : > { %vm2289_vm7 = vcmask (!%p2578_p6), 523264   ;;  %v4453_v34 = vld [vmem:[#allocation7_spill] sm:$0xff] (!%p2578_p6)  ;;  %v4454_v9 = vld [vmem:[#allocation9_spill] sm:$0xff] (!%p2578_p6)  ;;  %v4455_v45 = vld [vmem:[#allocation6_spill] sm:$0xff] (!%p2578_p6) }
 0x3aa   : > { %2082 = sbr.rel (%p2578_p6) target bundleno = 999 (0x3e7), region = 52  ;;  %v3911_v61 = vld [vmem:[#allocation4] ss:$0 sm:$0xff] (!%p2578_p6)  ;;  %v4456_v43 = vld [vmem:[#allocation8_spill] sm:$0xff] (!%p2578_p6)  ;;  %v4457_v20 = vld [vmem:[#allocation10_spill] sm:$0xff] (!%p2578_p6) }
 0x3ab   : > { %v2090_v14 = vmul.f32 (!%p2578_p6), %v3911_v61, %v4453_v34  ;;  %v2091_v37 = vmul.f32 (!%p2578_p6), %v3911_v61, %v4454_v9  ;;  %v2092_v10 = vmul.f32 (!%p2578_p6), %v3911_v61, %v4455_v45  ;;  %v2093_v62 = vmul.f32 (!%p2578_p6), %v3911_v61, %v4456_v43  ;;  %v4458_v28 = vld [vmem:[#allocation12_spill] sm:$0xff] (!%p2578_p6)  ;;  %v4459_v48 = vld [vmem:[#allocation14_spill] sm:$0xff] (!%p2578_p6) }
 0x3ac   : > { %v2094_v6 = vmul.f32 (!%p2578_p6), %v3911_v61, %v4457_v20  ;;  %v2095_v57 = vmul.f32 (!%p2578_p6), %v3911_v61, %v3444_v29  ;;  %v2096_v13 = vmul.f32 (!%p2578_p6), %v3911_v61, %v3436_v17  ;;  %v2097_v50 = vmul.f32 (!%p2578_p6), %v3911_v61, %v3441_v25 }
 0x3ad   : > { %v2098_v41 = vmul.f32 (!%p2578_p6), %v3911_v61, %v4458_v28  ;;  %v2099_v34 = vmul.f32 (!%p2578_p6), %v3911_v61, %v4459_v48  ;;  %v4466_v28 = vld [vmem:[#allocation20_spill] sm:$0xff] (!%p2578_p6)  ;;  %v4467_v48 = vld [vmem:[#allocation21_spill] sm:$0xff] (!%p2578_p6) }
 0x3ae   : > { %v3913_v40 = vld [vmem:[#allocation5] ss:$0 sm:$0xff] (!%p2578_p6) }
 0x3af   : > { %v2161_v21 = vadd.f32 (!%p2578_p6), %v3913_v40, %v2090_v14  ;;  %v2162_v47 = vadd.f32 (!%p2578_p6), %v3913_v40, %v2091_v37  ;;  %v2163_v5 = vadd.f32 (!%p2578_p6), %v3913_v40, %v2092_v10  ;;  %v2164_v44 = vadd.f32 (!%p2578_p6), %v3913_v40, %v2093_v62  ;;  %v4460_v14 = vld [vmem:[#allocation11_spill] sm:$0xff] (!%p2578_p6)  ;;  %v4461_v37 = vld [vmem:[#allocation13_spill] sm:$0xff] (!%p2578_p6)  ;;  %v4462_v10 = vld [vmem:[#allocation16_spill] sm:$0xff] (!%p2578_p6) }
 0x3b0   : > { %v2165_v8 = vadd.f32 (!%p2578_p6), %v3913_v40, %v2094_v6  ;;  %v2166_v54 = vadd.f32 (!%p2578_p6), %v3913_v40, %v2095_v57  ;;  %v2167_v29 = vadd.f32 (!%p2578_p6), %v3913_v40, %v2096_v13  ;;  %v2168_v33 = vadd.f32 (!%p2578_p6), %v3913_v40, %v2097_v50  ;;  %v4463_v62 = vld [vmem:[#allocation18_spill] sm:$0xff] (!%p2578_p6)  ;;  %v4464_v6 = vld [vmem:[#allocation15_spill] sm:$0xff] (!%p2578_p6)  ;;  %v4465_v13 = vld [vmem:[#allocation17_spill] sm:$0xff] (!%p2578_p6) }
 0x3b1   : > { %v2225_v17 = vmax.f32 %v2161_v21, 0.0  ;;  %v2226_v36 = vmax.f32 %v2162_v47, 0.0  ;;  %v2227_v24 = vmax.f32 %v2163_v5, 0.0  ;;  %v2228_v25 = vmax.f32 %v2164_v44, 0.0 }
 0x3b2   : > { %v2229_v49 = vmax.f32 %v2165_v8, 0.0  ;;  %v2230_v32 = vmax.f32 %v2166_v54, 0.0  ;;  %v2231_v23 = vmax.f32 %v2167_v29, 0.0  ;;  %v2232_v27 = vmax.f32 %v2168_v33, 0.0 }
 0x3b3   : > { %2290 = vst.msk [vmem:[%s4376_s4] sm:$0xff] %vm2289_vm7, %v2225_v17  ;;  %2291 = vst.msk [vmem:[%s4376_s4 + $0x8] sm:$0xff] %vm2289_vm7, %v2226_v36  ;;  %v2100_v9 = vmul.f32 %v3911_v61, %v4460_v14  ;;  %v2101_v45 = vmul.f32 %v3911_v61, %v4461_v37  ;;  %v2102_v43 = vmul.f32 %v3911_v61, %v4462_v10  ;;  %v4468_v14 = vld [vmem:[#allocation19_spill] sm:$0xff] }
 0x3b4   : > { %2292 = vst.msk [vmem:[%s4376_s4 + $0x10] sm:$0xff] %vm2289_vm7, %v2227_v24  ;;  %2293 = vst.msk [vmem:[%s4376_s4 + $0x18] sm:$0xff] %vm2289_vm7, %v2228_v25  ;;  %v2103_v20 = vmul.f32 %v3911_v61, %v4463_v62  ;;  %v2104_v57 = vmul.f32 %v3911_v61, %v4464_v6  ;;  %v2105_v50 = vmul.f32 %v3911_v61, %v4465_v13 }
 0x3b5   : > { %2294 = vst.msk [vmem:[%s4376_s4 + $0x20] sm:$0xff] %vm2289_vm7, %v2229_v49  ;;  %2295 = vst.msk [vmem:[%s4376_s4 + $0x28] sm:$0xff] %vm2289_vm7, %v2230_v32  ;;  %v2169_v21 = vadd.f32 %v3913_v40, %v2098_v41  ;;  %v2170_v47 = vadd.f32 %v3913_v40, %v2099_v34  ;;  %v2171_v5 = vadd.f32 %v3913_v40, %v2100_v9 }
 0x3b6   : > { %2296 = vst.msk [vmem:[%s4376_s4 + $0x30] sm:$0xff] %vm2289_vm7, %v2231_v23  ;;  %2297 = vst.msk [vmem:[%s4376_s4 + $0x38] sm:$0xff] %vm2289_vm7, %v2232_v27  ;;  %v2172_v44 = vadd.f32 %v3913_v40, %v2101_v45  ;;  %v2173_v8 = vadd.f32 %v3913_v40, %v2102_v43  ;;  %v2174_v54 = vadd.f32 %v3913_v40, %v2103_v20 }
 0x3b7   : > { %v2175_v29 = vadd.f32 %v3913_v40, %v2104_v57  ;;  %v2176_v33 = vadd.f32 %v3913_v40, %v2105_v50  ;;  %v2233_v17 = vmax.f32 %v2169_v21, 0.0  ;;  %v2234_v36 = vmax.f32 %v2170_v47, 0.0 }
 0x3b8   : > { %v2235_v24 = vmax.f32 %v2171_v5, 0.0  ;;  %v2236_v25 = vmax.f32 %v2172_v44, 0.0  ;;  %v2237_v49 = vmax.f32 %v2173_v8, 0.0  ;;  %v2238_v32 = vmax.f32 %v2174_v54, 0.0 }
 0x3b9   : > { %v2239_v23 = vmax.f32 %v2175_v29, 0.0  ;;  %v2240_v27 = vmax.f32 %v2176_v33, 0.0  ;;  %2298 = vst.msk [vmem:[%s4376_s4 + $0x40] sm:$0xff] %vm2289_vm7, %v2233_v17  ;;  %2299 = vst.msk [vmem:[%s4376_s4 + $0x48] sm:$0xff] %vm2289_vm7, %v2234_v36  ;;  %v2106_v41 = vmul.f32 %v3911_v61, %v4466_v28  ;;  %v2107_v34 = vmul.f32 %v3911_v61, %v4467_v48  ;;  %v4470_v36 = vld [vmem:[#allocation25_spill] sm:$0xff]  ;;  %v4475_v48 = vld [vmem:[#allocation26_spill] sm:$0xff] }
 0x3ba   : > { %2300 = vst.msk [vmem:[%s4376_s4 + $0x50] sm:$0xff] %vm2289_vm7, %v2235_v24  ;;  %2301 = vst.msk [vmem:[%s4376_s4 + $0x58] sm:$0xff] %vm2289_vm7, %v2236_v25  ;;  %v2108_v9 = vmul.f32 %v3911_v61, %v4468_v14  ;;  %v2109_v37 = vmul.f32 %v3911_v61, %v3467_v35  ;;  %v4469_v35 = vld [vmem:[#allocation22_spill] sm:$0xff]  ;;  %v2111_v10 = vmul.f32 %v3911_v61, %v3477_v51  ;;  %v4471_v25 = vld [vmem:[#allocation23_spill] sm:$0xff] }
 0x3bb   : > { %2302 = vst.msk [vmem:[%s4376_s4 + $0x60] sm:$0xff] %vm2289_vm7, %v2237_v49  ;;  %2303 = vst.msk [vmem:[%s4376_s4 + $0x68] sm:$0xff] %vm2289_vm7, %v2238_v32  ;;  %v2110_v45 = vmul.f32 %v3911_v61, %v4469_v35  ;;  %v2112_v43 = vmul.f32 %v3911_v61, %v3471_v39  ;;  %v2113_v62 = vmul.f32 %v3911_v61, %v3475_v53  ;;  %v4472_v32 = vld [vmem:[#allocation24_spill] sm:$0xff]  ;;  %v4474_v28 = vld [vmem:[#allocation29_spill] sm:$0xff] }
 0x3bc   : > { %2304 = vst.msk [vmem:[%s4376_s4 + $0x70] sm:$0xff] %vm2289_vm7, %v2239_v23  ;;  %2305 = vst.msk [vmem:[%s4376_s4 + $0x78] sm:$0xff] %vm2289_vm7, %v2240_v27  ;;  %v2177_v20 = vadd.f32 %v3913_v40, %v2106_v41  ;;  %v2178_v6 = vadd.f32 %v3913_v40, %v2107_v34  ;;  %v2179_v57 = vadd.f32 %v3913_v40, %v2108_v9  ;;  %v4476_v14 = vld [vmem:[#allocation28_spill] sm:$0xff] }
 0x3bd   : > { %v2180_v13 = vadd.f32 %v3913_v40, %v2109_v37  ;;  %v2181_v50 = vadd.f32 %v3913_v40, %v2110_v45  ;;  %v2182_v21 = vadd.f32 %v3913_v40, %v2111_v10  ;;  %v2183_v51 = vadd.f32 %v3913_v40, %v2112_v43 }
 0x3be   : > { %v2184_v47 = vadd.f32 %v3913_v40, %v2113_v62  ;;  %v2241_v39 = vmax.f32 %v2177_v20, 0.0  ;;  %v2242_v5 = vmax.f32 %v2178_v6, 0.0  ;;  %v2243_v44 = vmax.f32 %v2179_v57, 0.0 }
 0x3bf   : > { %v2244_v53 = vmax.f32 %v2180_v13, 0.0  ;;  %v2245_v8 = vmax.f32 %v2181_v50, 0.0  ;;  %v2246_v54 = vmax.f32 %v2182_v21, 0.0  ;;  %v2247_v29 = vmax.f32 %v2183_v51, 0.0 }
 0x3c0   : > { %v2248_v33 = vmax.f32 %v2184_v47, 0.0  ;;  %2306 = vst.msk [vmem:[%s4376_s4 + $0x80] sm:$0xff] %vm2289_vm7, %v2241_v39  ;;  %2307 = vst.msk [vmem:[%s4376_s4 + $0x88] sm:$0xff] %vm2289_vm7, %v2242_v5  ;;  %v2114_v17 = vmul.f32 %v3911_v61, %v3481_v46  ;;  %v2115_v24 = vmul.f32 %v3911_v61, %v4470_v36  ;;  %v2116_v49 = vmul.f32 %v3911_v61, %v4471_v25  ;;  %v4473_v46 = vld [vmem:[#allocation27_spill] sm:$0xff] }
 0x3c1   : > { %2308 = vst.msk [vmem:[%s4376_s4 + $0x90] sm:$0xff] %vm2289_vm7, %v2243_v44  ;;  %2309 = vst.msk [vmem:[%s4376_s4 + $0x98] sm:$0xff] %vm2289_vm7, %v2244_v53  ;;  %v2117_v23 = vmul.f32 %v3911_v61, %v4472_v32  ;;  %v2118_v27 = vmul.f32 %v3911_v61, %v4473_v46  ;;  %v2119_v41 = vmul.f32 %v3911_v61, %v4474_v28  ;;  %v4477_v44 = vld [vmem:[#allocation30_spill] sm:$0xff]  ;;  %v4482_v32 = vld [vmem:[#allocation35_spill] sm:$0xff] }
 0x3c2   : > { %2310 = vst.msk [vmem:[%s4376_s4 + $0xa0] sm:$0xff] %vm2289_vm7, %v2245_v8  ;;  %2311 = vst.msk [vmem:[%s4376_s4 + $0xa8] sm:$0xff] %vm2289_vm7, %v2246_v54  ;;  %v2120_v34 = vmul.f32 %v3911_v61, %v4475_v48  ;;  %v2121_v9 = vmul.f32 %v3911_v61, %v4476_v14  ;;  %v2185_v37 = vadd.f32 %v3913_v40, %v2114_v17  ;;  %v4478_v8 = vld [vmem:[#allocation31_spill] sm:$0xff]  ;;  %v4480_v17 = vld [vmem:[#allocation33_spill] sm:$0xff] }
 0x3c3   : > { %2312 = vst.msk [vmem:[%s4376_s4 + $0xb0] sm:$0xff] %vm2289_vm7, %v2247_v29  ;;  %2313 = vst.msk [vmem:[%s4376_s4 + $0xb8] sm:$0xff] %vm2289_vm7, %v2248_v33  ;;  %v2186_v35 = vadd.f32 %v3913_v40, %v2115_v24  ;;  %v2187_v45 = vadd.f32 %v3913_v40, %v2116_v49  ;;  %v2188_v10 = vadd.f32 %v3913_v40, %v2117_v23  ;;  %v4479_v29 = vld [vmem:[#allocation32_spill] sm:$0xff]  ;;  %v4481_v24 = vld [vmem:[#allocation34_spill] sm:$0xff] }
 0x3c4   : > { %v2189_v43 = vadd.f32 %v3913_v40, %v2118_v27  ;;  %v2190_v62 = vadd.f32 %v3913_v40, %v2119_v41  ;;  %v2191_v20 = vadd.f32 %v3913_v40, %v2120_v34  ;;  %v2192_v6 = vadd.f32 %v3913_v40, %v2121_v9 }
 0x3c5   : > { %v2249_v57 = vmax.f32 %v2185_v37, 0.0  ;;  %v2250_v13 = vmax.f32 %v2186_v35, 0.0  ;;  %v2251_v50 = vmax.f32 %v2187_v45, 0.0  ;;  %v2252_v21 = vmax.f32 %v2188_v10, 0.0 }
 0x3c6   : > { %v2253_v51 = vmax.f32 %v2189_v43, 0.0  ;;  %v2254_v47 = vmax.f32 %v2190_v62, 0.0  ;;  %v2255_v39 = vmax.f32 %v2191_v20, 0.0  ;;  %v2256_v5 = vmax.f32 %v2192_v6, 0.0 }
 0x3c7   : > { %2314 = vst.msk [vmem:[%s4376_s4 + $0xc0] sm:$0xff] %vm2289_vm7, %v2249_v57  ;;  %2315 = vst.msk [vmem:[%s4376_s4 + $0xc8] sm:$0xff] %vm2289_vm7, %v2250_v13  ;;  %v2122_v53 = vmul.f32 %v3911_v61, %v4477_v44  ;;  %v2123_v54 = vmul.f32 %v3911_v61, %v4478_v8  ;;  %v2124_v33 = vmul.f32 %v3911_v61, %v4479_v29 }
 0x3c8   : > { %2316 = vst.msk [vmem:[%s4376_s4 + $0xd0] sm:$0xff] %vm2289_vm7, %v2251_v50  ;;  %2317 = vst.msk [vmem:[%s4376_s4 + $0xd8] sm:$0xff] %vm2289_vm7, %v2252_v21  ;;  %v2125_v36 = vmul.f32 %v3911_v61, %v4480_v17  ;;  %v2126_v25 = vmul.f32 %v3911_v61, %v4481_v24  ;;  %v2127_v49 = vmul.f32 %v3911_v61, %v3505_v19 }
 0x3c9   : > { %2318 = vst.msk [vmem:[%s4376_s4 + $0xe0] sm:$0xff] %vm2289_vm7, %v2253_v51  ;;  %2319 = vst.msk [vmem:[%s4376_s4 + $0xe8] sm:$0xff] %vm2289_vm7, %v2254_v47  ;;  %v2128_v23 = vmul.f32 %v3911_v61, %v4482_v32  ;;  %v2129_v46 = vmul.f32 %v3911_v61, %v3509_v1  ;;  %v2193_v27 = vadd.f32 %v3913_v40, %v2122_v53 }
 0x3ca   : > { %2320 = vst.msk [vmem:[%s4376_s4 + $0xf0] sm:$0xff] %vm2289_vm7, %v2255_v39  ;;  %2321 = vst.msk [vmem:[%s4376_s4 + $0xf8] sm:$0xff] %vm2289_vm7, %v2256_v5  ;;  %v2194_v28 = vadd.f32 %v3913_v40, %v2123_v54  ;;  %v2195_v41 = vadd.f32 %v3913_v40, %v2124_v33  ;;  %v2196_v48 = vadd.f32 %v3913_v40, %v2125_v36 }
 0x3cb   : > { %v2197_v34 = vadd.f32 %v3913_v40, %v2126_v25  ;;  %v2198_v14 = vadd.f32 %v3913_v40, %v2127_v49  ;;  %v2199_v19 = vadd.f32 %v3913_v40, %v2128_v23  ;;  %v2200_v9 = vadd.f32 %v3913_v40, %v2129_v46 }
 0x3cc   : > { %v2257_v37 = vmax.f32 %v2193_v27, 0.0  ;;  %v2258_v35 = vmax.f32 %v2194_v28, 0.0  ;;  %v2259_v45 = vmax.f32 %v2195_v41, 0.0  ;;  %v2260_v1 = vmax.f32 %v2196_v48, 0.0 }
 0x3cd   : > { %v2261_v10 = vmax.f32 %v2197_v34, 0.0  ;;  %v2262_v43 = vmax.f32 %v2198_v14, 0.0  ;;  %v2263_v62 = vmax.f32 %v2199_v19, 0.0  ;;  %v2264_v20 = vmax.f32 %v2200_v9, 0.0 }
 0x3ce   : > { %2322 = vst.msk [vmem:[%s4376_s4 + $0x100] sm:$0xff] %vm2289_vm7, %v2257_v37  ;;  %2323 = vst.msk [vmem:[%s4376_s4 + $0x108] sm:$0xff] %vm2289_vm7, %v2258_v35  ;;  %v2130_v6 = vmul.f32 %v3911_v61, %v3511_v58  ;;  %v2131_v57 = vmul.f32 %v3911_v61, %v3519_v55  ;;  %v2132_v13 = vmul.f32 %v3911_v61, %v3527_v63 }
 0x3cf   : > { %2324 = vst.msk [vmem:[%s4376_s4 + $0x110] sm:$0xff] %vm2289_vm7, %v2259_v45  ;;  %2325 = vst.msk [vmem:[%s4376_s4 + $0x118] sm:$0xff] %vm2289_vm7, %v2260_v1  ;;  %v2133_v50 = vmul.f32 %v3911_v61, %v3535_v30  ;;  %v2134_v55 = vmul.f32 %v3911_v61, %v3543_v60  ;;  %v2135_v58 = vmul.f32 %v3911_v61, %v3551_v0 }
 0x3d0   : > { %2326 = vst.msk [vmem:[%s4376_s4 + $0x120] sm:$0xff] %vm2289_vm7, %v2261_v10  ;;  %2327 = vst.msk [vmem:[%s4376_s4 + $0x128] sm:$0xff] %vm2289_vm7, %v2262_v43  ;;  %v2136_v63 = vmul.f32 %v3911_v61, %v3559_v12  ;;  %v2137_v30 = vmul.f32 %v3911_v61, %v3567_v16  ;;  %v2201_v21 = vadd.f32 %v3913_v40, %v2130_v6 }
 0x3d1   : > { %2328 = vst.msk [vmem:[%s4376_s4 + $0x130] sm:$0xff] %vm2289_vm7, %v2263_v62  ;;  %2329 = vst.msk [vmem:[%s4376_s4 + $0x138] sm:$0xff] %vm2289_vm7, %v2264_v20  ;;  %v2202_v51 = vadd.f32 %v3913_v40, %v2131_v57  ;;  %v2203_v47 = vadd.f32 %v3913_v40, %v2132_v13  ;;  %v2204_v39 = vadd.f32 %v3913_v40, %v2133_v50 }
 0x3d2   : > { %v2205_v5 = vadd.f32 %v3913_v40, %v2134_v55  ;;  %v2206_v60 = vadd.f32 %v3913_v40, %v2135_v58  ;;  %v2207_v0 = vadd.f32 %v3913_v40, %v2136_v63  ;;  %v2208_v44 = vadd.f32 %v3913_v40, %v2137_v30 }
 0x3d3   : > { %v2265_v12 = vmax.f32 %v2201_v21, 0.0  ;;  %v2266_v53 = vmax.f32 %v2202_v51, 0.0  ;;  %v2267_v8 = vmax.f32 %v2203_v47, 0.0  ;;  %v2268_v16 = vmax.f32 %v2204_v39, 0.0 }
 0x3d4   : > { %v2269_v54 = vmax.f32 %v2205_v5, 0.0  ;;  %v2270_v29 = vmax.f32 %v2206_v60, 0.0  ;;  %v2271_v33 = vmax.f32 %v2207_v0, 0.0  ;;  %v2272_v17 = vmax.f32 %v2208_v44, 0.0 }
 0x3d5   : > { %2330 = vst.msk [vmem:[%s4376_s4 + $0x140] sm:$0xff] %vm2289_vm7, %v2265_v12  ;;  %2331 = vst.msk [vmem:[%s4376_s4 + $0x148] sm:$0xff] %vm2289_vm7, %v2266_v53  ;;  %v2138_v36 = vmul.f32 %v3911_v61, %v3517_v38  ;;  %v2139_v24 = vmul.f32 %v3911_v61, %v3525_v11  ;;  %v2140_v25 = vmul.f32 %v3911_v61, %v3514_v15 }
 0x3d6   : > { %2332 = vst.msk [vmem:[%s4376_s4 + $0x150] sm:$0xff] %vm2289_vm7, %v2267_v8  ;;  %2333 = vst.msk [vmem:[%s4376_s4 + $0x158] sm:$0xff] %vm2289_vm7, %v2268_v16  ;;  %v2141_v49 = vmul.f32 %v3911_v61, %v3522_v2  ;;  %v2142_v15 = vmul.f32 %v3911_v61, %v3533_v42  ;;  %v2143_v38 = vmul.f32 %v3911_v61, %v3541_v18 }
 0x3d7   : > { %2334 = vst.msk [vmem:[%s4376_s4 + $0x160] sm:$0xff] %vm2289_vm7, %v2269_v54  ;;  %2335 = vst.msk [vmem:[%s4376_s4 + $0x168] sm:$0xff] %vm2289_vm7, %v2270_v29  ;;  %v2144_v2 = vmul.f32 %v3911_v61, %v3530_v26  ;;  %v2145_v11 = vmul.f32 %v3911_v61, %v3538_v22  ;;  %v2209_v32 = vadd.f32 %v3913_v40, %v2138_v36 }
 0x3d8   : > { %2336 = vst.msk [vmem:[%s4376_s4 + $0x170] sm:$0xff] %vm2289_vm7, %v2271_v33  ;;  %2337 = vst.msk [vmem:[%s4376_s4 + $0x178] sm:$0xff] %vm2289_vm7, %v2272_v17  ;;  %v2210_v23 = vadd.f32 %v3913_v40, %v2139_v24  ;;  %v2211_v46 = vadd.f32 %v3913_v40, %v2140_v25  ;;  %v2212_v27 = vadd.f32 %v3913_v40, %v2141_v49 }
 0x3d9   : > { %v2213_v28 = vadd.f32 %v3913_v40, %v2142_v15  ;;  %v2214_v42 = vadd.f32 %v3913_v40, %v2143_v38  ;;  %v2215_v18 = vadd.f32 %v3913_v40, %v2144_v2  ;;  %v2216_v41 = vadd.f32 %v3913_v40, %v2145_v11 }
 0x3da   : > { %v2273_v26 = vmax.f32 %v2209_v32, 0.0  ;;  %v2274_v48 = vmax.f32 %v2210_v23, 0.0  ;;  %v2275_v34 = vmax.f32 %v2211_v46, 0.0  ;;  %v2276_v22 = vmax.f32 %v2212_v27, 0.0 }
 0x3db   : > { %v2277_v14 = vmax.f32 %v2213_v28, 0.0  ;;  %v2278_v19 = vmax.f32 %v2214_v42, 0.0  ;;  %v2279_v9 = vmax.f32 %v2215_v18, 0.0  ;;  %v2280_v37 = vmax.f32 %v2216_v41, 0.0 }
 0x3dc   : > { %2338 = vst.msk [vmem:[%s4376_s4 + $0x180] sm:$0xff] %vm2289_vm7, %v2273_v26  ;;  %2339 = vst.msk [vmem:[%s4376_s4 + $0x188] sm:$0xff] %vm2289_vm7, %v2274_v48  ;;  %v2146_v35 = vmul.f32 %v3911_v61, %v3549_v3  ;;  %v2147_v45 = vmul.f32 %v3911_v61, %v3557_v59  ;;  %v2148_v1 = vmul.f32 %v3911_v61, %v3546_v52  ;;  %v4483_v59 = vld [vmem:[#allocation36_spill] sm:$0xff] }
 0x3dd   : > { %2340 = vst.msk [vmem:[%s4376_s4 + $0x190] sm:$0xff] %vm2289_vm7, %v2275_v34  ;;  %2341 = vst.msk [vmem:[%s4376_s4 + $0x198] sm:$0xff] %vm2289_vm7, %v2276_v22  ;;  %v2149_v10 = vmul.f32 %v3911_v61, %v3554_v56  ;;  %v2150_v52 = vmul.f32 %v3911_v61, %v3565_v31  ;;  %v2151_v3 = vmul.f32 %v3911_v61, %v3573_v7 }
 0x3de   : > { %2342 = vst.msk [vmem:[%s4376_s4 + $0x1a0] sm:$0xff] %vm2289_vm7, %v2277_v14  ;;  %2343 = vst.msk [vmem:[%s4376_s4 + $0x1a8] sm:$0xff] %vm2289_vm7, %v2278_v19  ;;  %v2152_v56 = vmul.f32 %v3911_v61, %v3562_v4  ;;  %v2153_v43 = vmul.f32 %v3911_v61, %v4483_v59  ;;  %v2217_v62 = vadd.f32 %v3913_v40, %v2146_v35 }
 0x3df   : > { %2344 = vst.msk [vmem:[%s4376_s4 + $0x1b0] sm:$0xff] %vm2289_vm7, %v2279_v9  ;;  %2345 = vst.msk [vmem:[%s4376_s4 + $0x1b8] sm:$0xff] %vm2289_vm7, %v2280_v37  ;;  %v2218_v20 = vadd.f32 %v3913_v40, %v2147_v45  ;;  %v2219_v6 = vadd.f32 %v3913_v40, %v2148_v1  ;;  %v2220_v57 = vadd.f32 %v3913_v40, %v2149_v10 }
 0x3e0   : > { %v2221_v13 = vadd.f32 %v3913_v40, %v2150_v52  ;;  %v2222_v31 = vadd.f32 %v3913_v40, %v2151_v3  ;;  %v2223_v7 = vadd.f32 %v3913_v40, %v2152_v56  ;;  %v2224_v50 = vadd.f32 %v3913_v40, %v2153_v43 }
 0x3e1   : > { %v2281_v4 = vmax.f32 %v2217_v62, 0.0  ;;  %v2282_v55 = vmax.f32 %v2218_v20, 0.0  ;;  %v2283_v58 = vmax.f32 %v2219_v6, 0.0  ;;  %v2284_v61 = vmax.f32 %v2220_v57, 0.0 }
 0x3e2   : > { %v2285_v63 = vmax.f32 %v2221_v13, 0.0  ;;  %v2286_v30 = vmax.f32 %v2222_v31, 0.0  ;;  %v2287_v21 = vmax.f32 %v2223_v7, 0.0  ;;  %v2288_v51 = vmax.f32 %v2224_v50, 0.0 }
 0x3e3   : > { %2346 = vst.msk [vmem:[%s4376_s4 + $0x1c0] sm:$0xff] %vm2289_vm7, %v2281_v4  ;;  %2347 = vst.msk [vmem:[%s4376_s4 + $0x1c8] sm:$0xff] %vm2289_vm7, %v2282_v55 }
 0x3e4   : > { %2348 = vst.msk [vmem:[%s4376_s4 + $0x1d0] sm:$0xff] %vm2289_vm7, %v2283_v58  ;;  %2349 = vst.msk [vmem:[%s4376_s4 + $0x1d8] sm:$0xff] %vm2289_vm7, %v2284_v61 }
 0x3e5   : > { %2350 = vst.msk [vmem:[%s4376_s4 + $0x1e0] sm:$0xff] %vm2289_vm7, %v2285_v63  ;;  %2351 = vst.msk [vmem:[%s4376_s4 + $0x1e8] sm:$0xff] %vm2289_vm7, %v2286_v30 }
 0x3e6   : > { %2352 = vst.msk [vmem:[%s4376_s4 + $0x1f0] sm:$0xff] %vm2289_vm7, %v2287_v21  ;;  %2353 = vst.msk [vmem:[%s4376_s4 + $0x1f8] sm:$0xff] %vm2289_vm7, %v2288_v51 }
 0x3e7 PF: > { %s14_s17 = sadd.s32 1, %s2922_s17   ;;  %s4484_s15 = smov %s2918_s16 }
 0x3e8   : > { %p11_p7 = scmp.ge.s32.totalorder %s14_s17, 4   ;;  %s4485_s16 = smov %s4487_s18 }
 0x3ea   :  { %13 = sbr.rel (!%p11_p7) target bundleno = 2 (0x2), region = 82 }

// kernel: tile.8
= control target key start
LH: loop header
LB: loop body
LE: loop exit
PB: predicated region body
PF: predicated region fallthrough
CT: control target
= control target key end

     0   :  { %s22_s0 = inlined_call_operand.vmem [shape: f32[3], index: 0, kind: input, shape index: {}]   ;;  %s23_s1 = inlined_call_operand.vmem [shape: f32[4,3], index: 1, kind: output, shape index: {}]  }
   0x1   :  { %v4_v0 = vld [vmem:[%s22_s0] ss:$0 sm:$0xff] }
   0x2   :  { %5 = vst [vmem:[%s23_s1] sm:$0xf] %v4_v0 }

// kernel: tile.9
= control target key start
LH: loop header
LB: loop body
LE: loop exit
PB: predicated region body
PF: predicated region fallthrough
CT: control target
= control target key end

     0   :  { %vm7_vm0 = vcmask 23552   ;;  %s37_s8 = smov 3   ;;  %s38_s9 = smov 6   ;;  %vm13_vm1 = vcmask 97352   ;;  %vm19_vm2 = vcmask 72752   ;;  %vm25_vm3 = vcmask 48152   ;;  %s55_s0 = inlined_call_operand.vmem [shape: f32[4,3], index: 0, kind: input, shape index: {}]   ;;  %s56_s1 = inlined_call_operand.vmem [shape: f32[1,12], index: 1, kind: output, shape index: {}]  }
   0x1   :  { %v4_v0 = vld [vmem:[%s55_s0] sm:$0xf]  ;;  %s36_s0 = smov 9  }
   0x2   :  { %5 = vst [vmem:[#allocation1] sm:$0xf] %v4_v0 }
   0x9   :  { %v10_v1 = vld [vmem:[#allocation1 + $0x3] sm:$0x1]   ;;  %v22_v2 = vld [vmem:[#allocation1 + $0x1] sm:$0x1]   ;;  %v6_v3 = vld [vmem:[#allocation1] sm:$0x1]  }
   0xa   :  { %11 = vrot.lane.b32.xlu0 %v10_v1, %s36_s0  ;;  %23 = vrot.lane.b32.xlu1 %v22_v2, %s37_s8  ;;  %v16_v4 = vld [vmem:[#allocation1 + $0x2] sm:$0x1]   ;;  %8 = vst.msk [vmem:[#allocation0] sm:$0x1] %vm7_vm0, %v6_v3  }
   0xe   :  { %17 = vrot.lane.b32.xlu0 %v16_v4, %s38_s9 }
  0x7c   :  { %v12_v5 = vpop.permute.xlu0 %11   ;;  %v24_v6 = vpop.permute.xlu1 %23  }
  0x7d   :  { %14 = vst.msk [vmem:[#allocation0] sm:$0x1] %vm13_vm1, %v12_v5  }
  0x80   :  { %v18_v7 = vpop.permute.xlu0 %17  }
  0x81   :  { %20 = vst.msk [vmem:[#allocation0] sm:$0x1] %vm19_vm2, %v18_v7  }
  0x82   :  { %26 = vst.msk [vmem:[#allocation0] sm:$0x1] %vm25_vm3, %v24_v6  }
  0x89   :  { %v30_v8 = vld [vmem:[#allocation0] sm:$0x1] }
  0x8a   :  { %32 = vst [vmem:[%s56_s1] sm:$0x1] %v30_v8 }

// kernel: generator_forward.9
= control target key start
LH: loop header
LB: loop body
LE: loop exit
PB: predicated region body
PF: predicated region fallthrough
CT: control target
= control target key end

     0   :  { %v4782_v0 = vmov 0   ;;  %vm1502_vm0 = vcmask 130048   ;;  %vm3200_vm1 = vcmask 97280   ;;  %s7026_s1 = inlined_call_operand.vmem [shape: bf16[144,12], index: 1, kind: input, shape index: {}]   ;;  %s7027_s0 = inlined_call_operand.vmem [shape: bf16[2048,144], index: 0, kind: input, shape index: {}]   ;;  %s7028_s2 = inlined_call_operand.vmem [shape: f32[1,12], index: 2, kind: input, shape index: {}]   ;;  %s7029_s3 = inlined_call_operand.vmem [shape: f32[2048,12], index: 3, kind: output, shape index: {}]  }
   0x1   :  { %1887 = vmatprep.subr.bf16.mxu0 %v4782_v0  ;;  %3855 = vmatprep.subr.bf16.mxu1 %v4782_v0  ;;  %v3874_v1 = vld [vmem:[%s7026_s1] sm:$0xff]   ;;  %v3875_v2 = vld [vmem:[%s7026_s1 + $0x8] sm:$0xff]   ;;  %v3876_v3 = vld [vmem:[%s7026_s1 + $0x10] sm:$0xff]  }
   0x2   :  { %1888 = vmatpush1.bf16.msra.mxu0 %v3874_v1  ;;  %3864 = vmatpush1.bf16.msra.mxu1 %v3874_v1  ;;  %v3877_v4 = vld [vmem:[%s7026_s1 + $0x18] sm:$0xff]   ;;  %v3885_v5 = vld [vmem:[%s7027_s0 + $0x4] ss:$8 sps:$4 sm:$0xff]   ;;  %v3880_v9 = vld [vmem:[%s7026_s1 + $0x30] sm:$0xff]  }
   0x3   :  { %1889 = vmatprep.subr.bf16.mxu0 %v4782_v0  ;;  %3856 = vmatprep.subr.bf16.mxu1 %v4782_v0  ;;  %v3888_v6 = vld [vmem:[%s7027_s0 + $0x404] ss:$8 sps:$4 sm:$0xff]   ;;  %v3881_v10 = vld [vmem:[%s7026_s1 + $0x38] sm:$0xff]   ;;  %v3883_v12 = vld [vmem:[%s7027_s0] ss:$8 sps:$4 sm:$0xff]  }
   0x4   :  { %3727 = vmatprep.mubr.msk.bf16.mxu0 %vm1502_vm0, %v3885_v5  ;;  %3791 = vmatprep.mubr.msk.bf16.mxu1 %vm1502_vm0, %v3888_v6  ;;  %v3878_v7 = vld [vmem:[%s7026_s1 + $0x20] sm:$0xff]   ;;  %v3879_v8 = vld [vmem:[%s7026_s1 + $0x28] sm:$0xff]   ;;  %v3889_v14 = vld [vmem:[%s7027_s0 + $0x14] ss:$8 sps:$4 sm:$0xff]  }
   0x5   :  { %v3882_v11 = vld [vmem:[%s7026_s1 + $0x40] sm:$0xff]   ;;  %v3891_v15 = vld [vmem:[%s7027_s0 + $0x414] ss:$8 sps:$4 sm:$0xff]   ;;  %v3893_v16 = vld [vmem:[%s7027_s0 + $0x10] ss:$8 sps:$4 sm:$0xff]  }
   0x6   :  { %1890 = vmatpush1.bf16.msra.mxu0 %v3875_v2  ;;  %3865 = vmatpush1.bf16.msra.mxu1 %v3875_v2  ;;  %v3886_v13 = vld [vmem:[%s7027_s0 + $0x400] ss:$8 sps:$4 sm:$0xff]   ;;  %v3894_v17 = vld [vmem:[%s7027_s0 + $0x410] ss:$8 sps:$4 sm:$0xff]   ;;  %v3895_v18 = vld [vmem:[%s7027_s0 + $0x24] ss:$8 sps:$4 sm:$0xff]  }
   0x7   :  { %1891 = vmatprep.subr.bf16.mxu0 %v4782_v0  ;;  %3857 = vmatprep.subr.bf16.mxu1 %v4782_v0  ;;  %v3897_v19 = vld [vmem:[%s7027_s0 + $0x424] ss:$8 sps:$4 sm:$0xff]   ;;  %v3899_v20 = vld [vmem:[%s7027_s0 + $0x20] ss:$8 sps:$4 sm:$0xff]   ;;  %v3901_v22 = vld [vmem:[%s7027_s0 + $0x34] ss:$8 sps:$4 sm:$0xff]  }
   0x8   :  { %v3900_v21 = vld [vmem:[%s7027_s0 + $0x420] ss:$8 sps:$4 sm:$0xff]   ;;  %v3903_v23 = vld [vmem:[%s7027_s0 + $0x434] ss:$8 sps:$4 sm:$0xff]   ;;  %v3905_v24 = vld [vmem:[%s7027_s0 + $0x30] ss:$8 sps:$4 sm:$0xff]  }
   0x9   :  { %v3906_v25 = vld [vmem:[%s7027_s0 + $0x430] ss:$8 sps:$4 sm:$0xff]   ;;  %v3907_v26 = vld [vmem:[%s7027_s0 + $0x44] ss:$8 sps:$4 sm:$0xff]   ;;  %v3911_v28 = vld [vmem:[%s7027_s0 + $0x40] ss:$8 sps:$4 sm:$0xff]  }
   0xa   :  { %1892 = vmatpush1.bf16.msra.mxu0 %v3876_v3  ;;  %3866 = vmatpush1.bf16.msra.mxu1 %v3876_v3  ;;  %v3909_v27 = vld [vmem:[%s7027_s0 + $0x444] ss:$8 sps:$4 sm:$0xff]   ;;  %v3912_v29 = vld [vmem:[%s7027_s0 + $0x440] ss:$8 sps:$4 sm:$0xff]   ;;  %v3913_v30 = vld [vmem:[%s7027_s0 + $0x54] ss:$8 sps:$4 sm:$0xff]  }
   0xb   :  { %1893 = vmatprep.subr.bf16.mxu0 %v4782_v0  ;;  %3858 = vmatprep.subr.bf16.mxu1 %v4782_v0  ;;  %v3915_v31 = vld [vmem:[%s7027_s0 + $0x454] ss:$8 sps:$4 sm:$0xff]   ;;  %v3917_v32 = vld [vmem:[%s7027_s0 + $0x50] ss:$8 sps:$4 sm:$0xff]   ;;  %v3919_v34 = vld [vmem:[%s7027_s0 + $0x64] ss:$8 sps:$4 sm:$0xff]  }
   0xc   :  { %v3918_v33 = vld [vmem:[%s7027_s0 + $0x450] ss:$8 sps:$4 sm:$0xff]   ;;  %v3921_v35 = vld [vmem:[%s7027_s0 + $0x464] ss:$8 sps:$4 sm:$0xff]   ;;  %v3923_v36 = vld [vmem:[%s7027_s0 + $0x60] ss:$8 sps:$4 sm:$0xff]  }
   0xd   :  { %v3924_v37 = vld [vmem:[%s7027_s0 + $0x460] ss:$8 sps:$4 sm:$0xff]   ;;  %v3925_v38 = vld [vmem:[%s7027_s0 + $0x74] ss:$8 sps:$4 sm:$0xff]   ;;  %v3929_v40 = vld [vmem:[%s7027_s0 + $0x70] ss:$8 sps:$4 sm:$0xff]  }
   0xe   :  { %1894 = vmatpush1.bf16.msra.mxu0 %v3877_v4  ;;  %3867 = vmatpush1.bf16.msra.mxu1 %v3877_v4  ;;  %v3927_v39 = vld [vmem:[%s7027_s0 + $0x474] ss:$8 sps:$4 sm:$0xff]   ;;  %v3930_v41 = vld [vmem:[%s7027_s0 + $0x470] ss:$8 sps:$4 sm:$0xff]   ;;  %v3931_v42 = vld [vmem:[%s7027_s0 + $0x84] ss:$8 sps:$4 sm:$0xff]  }
   0xf   :  { %1895 = vmatprep.subr.bf16.mxu0 %v4782_v0  ;;  %3859 = vmatprep.subr.bf16.mxu1 %v4782_v0  ;;  %v3933_v43 = vld [vmem:[%s7027_s0 + $0x484] ss:$8 sps:$4 sm:$0xff]   ;;  %v3935_v44 = vld [vmem:[%s7027_s0 + $0x80] ss:$8 sps:$4 sm:$0xff]   ;;  %v3937_v46 = vld [vmem:[%s7027_s0 + $0x94] ss:$8 sps:$4 sm:$0xff]  }
  0x10   :  { %v3936_v45 = vld [vmem:[%s7027_s0 + $0x480] ss:$8 sps:$4 sm:$0xff]   ;;  %v3939_v47 = vld [vmem:[%s7027_s0 + $0x494] ss:$8 sps:$4 sm:$0xff]   ;;  %v3941_v48 = vld [vmem:[%s7027_s0 + $0x90] ss:$8 sps:$4 sm:$0xff]  }
  0x11   :  { %v3942_v49 = vld [vmem:[%s7027_s0 + $0x490] ss:$8 sps:$4 sm:$0xff]   ;;  %v3943_v50 = vld [vmem:[%s7027_s0 + $0xa4] ss:$8 sps:$4 sm:$0xff]   ;;  %v3947_v52 = vld [vmem:[%s7027_s0 + $0xa0] ss:$8 sps:$4 sm:$0xff]  }
  0x12   :  { %1896 = vmatpush1.bf16.msra.mxu0 %v3878_v7  ;;  %3868 = vmatpush1.bf16.msra.mxu1 %v3878_v7  ;;  %v3945_v51 = vld [vmem:[%s7027_s0 + $0x4a4] ss:$8 sps:$4 sm:$0xff]   ;;  %v3948_v53 = vld [vmem:[%s7027_s0 + $0x4a0] ss:$8 sps:$4 sm:$0xff]   ;;  %v3949_v54 = vld [vmem:[%s7027_s0 + $0xb4] ss:$8 sps:$4 sm:$0xff]  }
  0x13   :  { %1897 = vmatprep.subr.bf16.mxu0 %v4782_v0  ;;  %3860 = vmatprep.subr.bf16.mxu1 %v4782_v0  ;;  %v3951_v55 = vld [vmem:[%s7027_s0 + $0x4b4] ss:$8 sps:$4 sm:$0xff]   ;;  %v3953_v56 = vld [vmem:[%s7027_s0 + $0xb0] ss:$8 sps:$4 sm:$0xff]   ;;  %v3955_v58 = vld [vmem:[%s7027_s0 + $0xc4] ss:$8 sps:$4 sm:$0xff]  }
  0x14   :  { %v3954_v57 = vld [vmem:[%s7027_s0 + $0x4b0] ss:$8 sps:$4 sm:$0xff]   ;;  %v3957_v59 = vld [vmem:[%s7027_s0 + $0x4c4] ss:$8 sps:$4 sm:$0xff]   ;;  %v3959_v60 = vld [vmem:[%s7027_s0 + $0xc0] ss:$8 sps:$4 sm:$0xff]  }
  0x15   :  { %v3960_v61 = vld [vmem:[%s7027_s0 + $0x4c0] ss:$8 sps:$4 sm:$0xff]   ;;  %v3961_v62 = vld [vmem:[%s7027_s0 + $0xd4] ss:$8 sps:$4 sm:$0xff]   ;;  %v3966_v1 = vld [vmem:[%s7027_s0 + $0x4d0] ss:$8 sps:$4 sm:$0xff]  }
  0x16   :  { %1898 = vmatpush1.bf16.msra.mxu0 %v3879_v8  ;;  %3869 = vmatpush1.bf16.msra.mxu1 %v3879_v8  ;;  %v3963_v63 = vld [vmem:[%s7027_s0 + $0x4d4] ss:$8 sps:$4 sm:$0xff]   ;;  %v3967_v2 = vld [vmem:[%s7027_s0 + $0xe4] ss:$8 sps:$4 sm:$0xff]   ;;  %v3971_v4 = vld [vmem:[%s7027_s0 + $0xe0] ss:$8 sps:$4 sm:$0xff]  }
  0x17   :  { %1899 = vmatprep.subr.bf16.mxu0 %v4782_v0  ;;  %3861 = vmatprep.subr.bf16.mxu1 %v4782_v0  ;;  %v3969_v3 = vld [vmem:[%s7027_s0 + $0x4e4] ss:$8 sps:$4 sm:$0xff]   ;;  %v3972_v5 = vld [vmem:[%s7027_s0 + $0x4e0] ss:$8 sps:$4 sm:$0xff]   ;;  %v3973_v6 = vld [vmem:[%s7027_s0 + $0xf4] ss:$8 sps:$4 sm:$0xff]  }
  0x18   :  { %v3975_v7 = vld [vmem:[%s7027_s0 + $0x4f4] ss:$8 sps:$4 sm:$0xff]   ;;  %v3977_v8 = vld [vmem:[%s7027_s0 + $0xf0] ss:$8 sps:$4 sm:$0xff]  }
  0x1a   :  { %1900 = vmatpush1.bf16.msra.mxu0 %v3880_v9  ;;  %3870 = vmatpush1.bf16.msra.mxu1 %v3880_v9  ;;  %v3978_v9 = vld [vmem:[%s7027_s0 + $0x4f0] ss:$8 sps:$4 sm:$0xff]  }
  0x1b   :  { %1901 = vmatprep.subr.bf16.mxu0 %v4782_v0  ;;  %3862 = vmatprep.subr.bf16.mxu1 %v4782_v0 }
  0x1e   :  { %1902 = vmatpush1.bf16.msra.mxu0 %v3881_v10  ;;  %3871 = vmatpush1.bf16.msra.mxu1 %v3881_v10  ;;  %v3979_v10 = vld [vmem:[%s7027_s0 + $0x104] ss:$8 sps:$4 sm:$0xff]  }
  0x1f   :  { %1903 = vmatprep.subr.bf16.mxu0 %v4782_v0  ;;  %3863 = vmatprep.subr.bf16.mxu1 %v4782_v0  ;;  %v3965_v0 = vld [vmem:[%s7027_s0 + $0xd0] ss:$8 sps:$4 sm:$0xff]  }
  0x22   :  { %1904 = vmatpush1.bf16.msra.mxu0 %v3882_v11  ;;  %3872 = vmatpush1.bf16.msra.mxu1 %v3882_v11  ;;  %v3981_v11 = vld [vmem:[%s7027_s0 + $0x504] ss:$8 sps:$4 sm:$0xff]  }
  0x25   :  { %1920 = vmatmul.mubr.bf16.vlgmr.msra.gmra.mrb[0].mxu0 %v3883_v12  ;;  %2432 = vmatmul.mubr.bf16.vlgmr.msra.gmra.mrb[0].mxu1 %v3886_v13  ;;  %v3983_v12 = vld [vmem:[%s7027_s0 + $0x100] ss:$8 sps:$4 sm:$0xff]  }
  0x26   :  { %3728 = vmatprep.mubr.msk.bf16.mxu0 %vm1502_vm0, %v3889_v14  ;;  %3792 = vmatprep.mubr.msk.bf16.mxu1 %vm1502_vm0, %v3891_v15  ;;  %v3984_v13 = vld [vmem:[%s7027_s0 + $0x500] ss:$8 sps:$4 sm:$0xff]   ;;  %v3985_v14 = vld [vmem:[%s7027_s0 + $0x114] ss:$8 sps:$4 sm:$0xff]  }
  0x27   :  { %v3987_v15 = vld [vmem:[%s7027_s0 + $0x514] ss:$8 sps:$4 sm:$0xff]  }
  0x2d   :  { %1928 = vmatmul.mubr.bf16.gmra.mrb[4].mxu0 %v3893_v16  ;;  %2440 = vmatmul.mubr.bf16.gmra.mrb[4].mxu1 %v3894_v17  ;;  %v3989_v16 = vld [vmem:[%s7027_s0 + $0x110] ss:$8 sps:$4 sm:$0xff]  }
  0x2e   :  { %3729 = vmatprep.mubr.msk.bf16.mxu0 %vm1502_vm0, %v3895_v18  ;;  %3793 = vmatprep.mubr.msk.bf16.mxu1 %vm1502_vm0, %v3897_v19  ;;  %v3990_v17 = vld [vmem:[%s7027_s0 + $0x510] ss:$8 sps:$4 sm:$0xff]   ;;  %v3991_v18 = vld [vmem:[%s7027_s0 + $0x124] ss:$8 sps:$4 sm:$0xff]  }
  0x2f   :  { %v3993_v19 = vld [vmem:[%s7027_s0 + $0x524] ss:$8 sps:$4 sm:$0xff]  }
  0x35   :  { %1936 = vmatmul.mubr.bf16.gmra.mrb[8].mxu0 %v3899_v20  ;;  %2448 = vmatmul.mubr.bf16.gmra.mrb[8].mxu1 %v3900_v21  ;;  %v3995_v20 = vld [vmem:[%s7027_s0 + $0x120] ss:$8 sps:$4 sm:$0xff]  }
  0x36   :  { %3730 = vmatprep.mubr.msk.bf16.mxu0 %vm1502_vm0, %v3901_v22  ;;  %3794 = vmatprep.mubr.msk.bf16.mxu1 %vm1502_vm0, %v3903_v23  ;;  %v3996_v21 = vld [vmem:[%s7027_s0 + $0x520] ss:$8 sps:$4 sm:$0xff]   ;;  %v3997_v22 = vld [vmem:[%s7027_s0 + $0x134] ss:$8 sps:$4 sm:$0xff]  }
  0x37   :  { %v3999_v23 = vld [vmem:[%s7027_s0 + $0x534] ss:$8 sps:$4 sm:$0xff]  }
  0x3d   :  { %1944 = vmatmul.mubr.bf16.gmra.mrb[12].mxu0 %v3905_v24  ;;  %2456 = vmatmul.mubr.bf16.gmra.mrb[12].mxu1 %v3906_v25  ;;  %v4001_v24 = vld [vmem:[%s7027_s0 + $0x130] ss:$8 sps:$4 sm:$0xff]  }
  0x3e   :  { %3731 = vmatprep.mubr.msk.bf16.mxu0 %vm1502_vm0, %v3907_v26  ;;  %3795 = vmatprep.mubr.msk.bf16.mxu1 %vm1502_vm0, %v3909_v27  ;;  %v4002_v25 = vld [vmem:[%s7027_s0 + $0x530] ss:$8 sps:$4 sm:$0xff]   ;;  %v4003_v26 = vld [vmem:[%s7027_s0 + $0x144] ss:$8 sps:$4 sm:$0xff]  }
  0x3f   :  { %v4005_v27 = vld [vmem:[%s7027_s0 + $0x544] ss:$8 sps:$4 sm:$0xff]  }
  0x45   :  { %1952 = vmatmul.mubr.bf16.gmra.mrb[16].mxu0 %v3911_v28  ;;  %2464 = vmatmul.mubr.bf16.gmra.mrb[16].mxu1 %v3912_v29  ;;  %v4007_v28 = vld [vmem:[%s7027_s0 + $0x140] ss:$8 sps:$4 sm:$0xff]  }
  0x46   :  { %3732 = vmatprep.mubr.msk.bf16.mxu0 %vm1502_vm0, %v3913_v30  ;;  %3796 = vmatprep.mubr.msk.bf16.mxu1 %vm1502_vm0, %v3915_v31  ;;  %v4008_v29 = vld [vmem:[%s7027_s0 + $0x540] ss:$8 sps:$4 sm:$0xff]   ;;  %v4009_v30 = vld [vmem:[%s7027_s0 + $0x154] ss:$8 sps:$4 sm:$0xff]  }
  0x47   :  { %v4011_v31 = vld [vmem:[%s7027_s0 + $0x554] ss:$8 sps:$4 sm:$0xff]  }
  0x4d   :  { %1960 = vmatmul.mubr.bf16.gmra.mrb[20].mxu0 %v3917_v32  ;;  %2472 = vmatmul.mubr.bf16.gmra.mrb[20].mxu1 %v3918_v33  ;;  %v4013_v32 = vld [vmem:[%s7027_s0 + $0x150] ss:$8 sps:$4 sm:$0xff]  }
  0x4e   :  { %3733 = vmatprep.mubr.msk.bf16.mxu0 %vm1502_vm0, %v3919_v34  ;;  %3797 = vmatprep.mubr.msk.bf16.mxu1 %vm1502_vm0, %v3921_v35  ;;  %v4014_v33 = vld [vmem:[%s7027_s0 + $0x550] ss:$8 sps:$4 sm:$0xff]   ;;  %v4015_v34 = vld [vmem:[%s7027_s0 + $0x164] ss:$8 sps:$4 sm:$0xff]  }
  0x4f   :  { %v4017_v35 = vld [vmem:[%s7027_s0 + $0x564] ss:$8 sps:$4 sm:$0xff]  }
  0x55   :  { %1968 = vmatmul.mubr.bf16.gmra.mrb[24].mxu0 %v3923_v36  ;;  %2480 = vmatmul.mubr.bf16.gmra.mrb[24].mxu1 %v3924_v37  ;;  %v4019_v36 = vld [vmem:[%s7027_s0 + $0x160] ss:$8 sps:$4 sm:$0xff]  }
  0x56   :  { %3734 = vmatprep.mubr.msk.bf16.mxu0 %vm1502_vm0, %v3925_v38  ;;  %3798 = vmatprep.mubr.msk.bf16.mxu1 %vm1502_vm0, %v3927_v39  ;;  %v4020_v37 = vld [vmem:[%s7027_s0 + $0x560] ss:$8 sps:$4 sm:$0xff]   ;;  %v4021_v38 = vld [vmem:[%s7027_s0 + $0x174] ss:$8 sps:$4 sm:$0xff]  }
  0x57   :  { %v4023_v39 = vld [vmem:[%s7027_s0 + $0x574] ss:$8 sps:$4 sm:$0xff]  }
  0x5d   :  { %1976 = vmatmul.mubr.bf16.gmra.mrb[28].mxu0 %v3929_v40  ;;  %2488 = vmatmul.mubr.bf16.gmra.mrb[28].mxu1 %v3930_v41  ;;  %v4025_v40 = vld [vmem:[%s7027_s0 + $0x170] ss:$8 sps:$4 sm:$0xff]  }
  0x5e   :  { %3735 = vmatprep.mubr.msk.bf16.mxu0 %vm1502_vm0, %v3931_v42  ;;  %3799 = vmatprep.mubr.msk.bf16.mxu1 %vm1502_vm0, %v3933_v43  ;;  %v4026_v41 = vld [vmem:[%s7027_s0 + $0x570] ss:$8 sps:$4 sm:$0xff]   ;;  %v4027_v42 = vld [vmem:[%s7027_s0 + $0x184] ss:$8 sps:$4 sm:$0xff]  }
  0x5f   :  { %v4029_v43 = vld [vmem:[%s7027_s0 + $0x584] ss:$8 sps:$4 sm:$0xff]  }
  0x65   :  { %1984 = vmatmul.mubr.bf16.gmra.mrb[32].mxu0 %v3935_v44  ;;  %2496 = vmatmul.mubr.bf16.gmra.mrb[32].mxu1 %v3936_v45  ;;  %v4031_v44 = vld [vmem:[%s7027_s0 + $0x180] ss:$8 sps:$4 sm:$0xff]  }
  0x66   :  { %3736 = vmatprep.mubr.msk.bf16.mxu0 %vm1502_vm0, %v3937_v46  ;;  %3800 = vmatprep.mubr.msk.bf16.mxu1 %vm1502_vm0, %v3939_v47  ;;  %v4032_v45 = vld [vmem:[%s7027_s0 + $0x580] ss:$8 sps:$4 sm:$0xff]   ;;  %v4033_v46 = vld [vmem:[%s7027_s0 + $0x194] ss:$8 sps:$4 sm:$0xff]  }
  0x67   :  { %v4035_v47 = vld [vmem:[%s7027_s0 + $0x594] ss:$8 sps:$4 sm:$0xff]  }
  0x6d   :  { %1992 = vmatmul.mubr.bf16.gmra.mrb[36].mxu0 %v3941_v48  ;;  %2504 = vmatmul.mubr.bf16.gmra.mrb[36].mxu1 %v3942_v49  ;;  %v4037_v48 = vld [vmem:[%s7027_s0 + $0x190] ss:$8 sps:$4 sm:$0xff]  }
  0x6e   :  { %3737 = vmatprep.mubr.msk.bf16.mxu0 %vm1502_vm0, %v3943_v50  ;;  %3801 = vmatprep.mubr.msk.bf16.mxu1 %vm1502_vm0, %v3945_v51  ;;  %v4038_v49 = vld [vmem:[%s7027_s0 + $0x590] ss:$8 sps:$4 sm:$0xff]   ;;  %v4039_v50 = vld [vmem:[%s7027_s0 + $0x1a4] ss:$8 sps:$4 sm:$0xff]  }
  0x6f   :  { %v4041_v51 = vld [vmem:[%s7027_s0 + $0x5a4] ss:$8 sps:$4 sm:$0xff]  }
  0x75   :  { %2000 = vmatmul.mubr.bf16.gmra.mrb[40].mxu0 %v3947_v52  ;;  %2512 = vmatmul.mubr.bf16.gmra.mrb[40].mxu1 %v3948_v53  ;;  %v4043_v52 = vld [vmem:[%s7027_s0 + $0x1a0] ss:$8 sps:$4 sm:$0xff]  }
  0x76   :  { %3738 = vmatprep.mubr.msk.bf16.mxu0 %vm1502_vm0, %v3949_v54  ;;  %3802 = vmatprep.mubr.msk.bf16.mxu1 %vm1502_vm0, %v3951_v55  ;;  %v4044_v53 = vld [vmem:[%s7027_s0 + $0x5a0] ss:$8 sps:$4 sm:$0xff]   ;;  %v4045_v54 = vld [vmem:[%s7027_s0 + $0x1b4] ss:$8 sps:$4 sm:$0xff]  }
  0x77   :  { %v4047_v55 = vld [vmem:[%s7027_s0 + $0x5b4] ss:$8 sps:$4 sm:$0xff]  }
  0x7d   :  { %2008 = vmatmul.mubr.bf16.gmra.mrb[44].mxu0 %v3953_v56  ;;  %2520 = vmatmul.mubr.bf16.gmra.mrb[44].mxu1 %v3954_v57  ;;  %v5217_v56 = vld [vmem:[%s7028_s2] ss:$0 sm:$0xff] }
  0x7e   :  { %3739 = vmatprep.mubr.msk.bf16.mxu0 %vm1502_vm0, %v3955_v58  ;;  %3803 = vmatprep.mubr.msk.bf16.mxu1 %vm1502_vm0, %v3957_v59 }
  0x85   :  { %2016 = vmatmul.mubr.bf16.gmra.mrb[48].mxu0 %v3959_v60  ;;  %2528 = vmatmul.mubr.bf16.gmra.mrb[48].mxu1 %v3960_v61 }
  0x86   :  { %3740 = vmatprep.mubr.msk.bf16.mxu0 %vm1502_vm0, %v3961_v62  ;;  %3804 = vmatprep.mubr.msk.bf16.mxu1 %vm1502_vm0, %v3963_v63  ;;  %v4049_v63 = vld [vmem:[%s7027_s0 + $0x1b0] ss:$8 sps:$4 sm:$0xff]  }
  0x8d   :  { %2024 = vmatmul.mubr.bf16.gmra.mrb[52].mxu0 %v3965_v0  ;;  %2536 = vmatmul.mubr.bf16.gmra.mrb[52].mxu1 %v3966_v1  ;;  %v4050_v0 = vld [vmem:[%s7027_s0 + $0x5b0] ss:$8 sps:$4 sm:$0xff]  }
  0x8e   :  { %3741 = vmatprep.mubr.msk.bf16.mxu0 %vm1502_vm0, %v3967_v2  ;;  %3805 = vmatprep.mubr.msk.bf16.mxu1 %vm1502_vm0, %v3969_v3  ;;  %v4051_v3 = vld [vmem:[%s7027_s0 + $0x1c4] ss:$8 sps:$4 sm:$0xff]  }
  0x95   :  { %2032 = vmatmul.mubr.bf16.gmra.mrb[56].mxu0 %v3971_v4  ;;  %2544 = vmatmul.mubr.bf16.gmra.mrb[56].mxu1 %v3972_v5  ;;  %v4053_v4 = vld [vmem:[%s7027_s0 + $0x5c4] ss:$8 sps:$4 sm:$0xff]  }
  0x96   :  { %3742 = vmatprep.mubr.msk.bf16.mxu0 %vm1502_vm0, %v3973_v6  ;;  %3806 = vmatprep.mubr.msk.bf16.mxu1 %vm1502_vm0, %v3975_v7 }
  0x9d   :  { %2040 = vmatmul.mubr.bf16.gmra.mrb[60].mxu0 %v3977_v8  ;;  %2552 = vmatmul.mubr.bf16.gmra.mrb[60].mxu1 %v3978_v9 }
  0x9e   :  { %3743 = vmatprep.mubr.msk.bf16.mxu0 %vm1502_vm0, %v3979_v10  ;;  %3807 = vmatprep.mubr.msk.bf16.mxu1 %vm1502_vm0, %v3981_v11 }
  0xa5   :  { %2048 = vmatmul.mubr.bf16.gmra.mrb[64].mxu0 %v3983_v12  ;;  %2560 = vmatmul.mubr.bf16.gmra.mrb[64].mxu1 %v3984_v13 }
  0xa6   :  { %3744 = vmatprep.mubr.msk.bf16.mxu0 %vm1502_vm0, %v3985_v14  ;;  %3808 = vmatprep.mubr.msk.bf16.mxu1 %vm1502_vm0, %v3987_v15  ;;  %v4055_v15 = vld [vmem:[%s7027_s0 + $0x1c0] ss:$8 sps:$4 sm:$0xff]  }
  0xad   :  { %2056 = vmatmul.mubr.bf16.gmra.mrb[68].mxu0 %v3989_v16  ;;  %2568 = vmatmul.mubr.bf16.gmra.mrb[68].mxu1 %v3990_v17  ;;  %v4056_v16 = vld [vmem:[%s7027_s0 + $0x5c0] ss:$8 sps:$4 sm:$0xff]  }
  0xae   :  { %3745 = vmatprep.mubr.msk.bf16.mxu0 %vm1502_vm0, %v3991_v18  ;;  %3809 = vmatprep.mubr.msk.bf16.mxu1 %vm1502_vm0, %v3993_v19  ;;  %v4057_v19 = vld [vmem:[%s7027_s0 + $0x1d4] ss:$8 sps:$4 sm:$0xff]  }
  0xb5   :  { %2064 = vmatmul.mubr.bf16.gmra.mrb[72].mxu0 %v3995_v20  ;;  %2576 = vmatmul.mubr.bf16.gmra.mrb[72].mxu1 %v3996_v21  ;;  %v4059_v20 = vld [vmem:[%s7027_s0 + $0x5d4] ss:$8 sps:$4 sm:$0xff]  }
  0xb6   :  { %3746 = vmatprep.mubr.msk.bf16.mxu0 %vm1502_vm0, %v3997_v22  ;;  %3810 = vmatprep.mubr.msk.bf16.mxu1 %vm1502_vm0, %v3999_v23 }
  0xbd   :  { %2072 = vmatmul.mubr.bf16.gmra.mrb[76].mxu0 %v4001_v24  ;;  %2584 = vmatmul.mubr.bf16.gmra.mrb[76].mxu1 %v4002_v25 }
  0xbe   :  { %3747 = vmatprep.mubr.msk.bf16.mxu0 %vm1502_vm0, %v4003_v26  ;;  %3811 = vmatprep.mubr.msk.bf16.mxu1 %vm1502_vm0, %v4005_v27 }
  0xc5   :  { %2080 = vmatmul.mubr.bf16.gmra.mrb[80].mxu0 %v4007_v28  ;;  %2592 = vmatmul.mubr.bf16.gmra.mrb[80].mxu1 %v4008_v29 }
  0xc6   :  { %3748 = vmatprep.mubr.msk.bf16.mxu0 %vm1502_vm0, %v4009_v30  ;;  %3812 = vmatprep.mubr.msk.bf16.mxu1 %vm1502_vm0, %v4011_v31 }
  0xcd   :  { %2088 = vmatmul.mubr.bf16.gmra.mrb[84].mxu0 %v4013_v32  ;;  %2600 = vmatmul.mubr.bf16.gmra.mrb[84].mxu1 %v4014_v33 }
  0xce   :  { %3749 = vmatprep.mubr.msk.bf16.mxu0 %vm1502_vm0, %v4015_v34  ;;  %3813 = vmatprep.mubr.msk.bf16.mxu1 %vm1502_vm0, %v4017_v35  ;;  %v4061_v35 = vld [vmem:[%s7027_s0 + $0x1d0] ss:$8 sps:$4 sm:$0xff]  }
  0xd5   :  { %2096 = vmatmul.mubr.bf16.gmra.mrb[88].mxu0 %v4019_v36  ;;  %2608 = vmatmul.mubr.bf16.gmra.mrb[88].mxu1 %v4020_v37  ;;  %v4062_v36 = vld [vmem:[%s7027_s0 + $0x5d0] ss:$8 sps:$4 sm:$0xff]  }
  0xd6   :  { %3750 = vmatprep.mubr.msk.bf16.mxu0 %vm1502_vm0, %v4021_v38  ;;  %3814 = vmatprep.mubr.msk.bf16.mxu1 %vm1502_vm0, %v4023_v39  ;;  %v4063_v39 = vld [vmem:[%s7027_s0 + $0x1e4] ss:$8 sps:$4 sm:$0xff]  }
  0xdd   :  { %2104 = vmatmul.mubr.bf16.gmra.mrb[92].mxu0 %v4025_v40  ;;  %2616 = vmatmul.mubr.bf16.gmra.mrb[92].mxu1 %v4026_v41  ;;  %v4065_v40 = vld [vmem:[%s7027_s0 + $0x5e4] ss:$8 sps:$4 sm:$0xff]  }
  0xde   :  { %3751 = vmatprep.mubr.msk.bf16.mxu0 %vm1502_vm0, %v4027_v42  ;;  %3815 = vmatprep.mubr.msk.bf16.mxu1 %vm1502_vm0, %v4029_v43 }
  0xe5   :  { %2112 = vmatmul.mubr.bf16.gmra.mrb[96].mxu0 %v4031_v44  ;;  %2624 = vmatmul.mubr.bf16.gmra.mrb[96].mxu1 %v4032_v45 }
  0xe6   :  { %3752 = vmatprep.mubr.msk.bf16.mxu0 %vm1502_vm0, %v4033_v46  ;;  %3816 = vmatprep.mubr.msk.bf16.mxu1 %vm1502_vm0, %v4035_v47 }
  0xed   :  { %2120 = vmatmul.mubr.bf16.gmra.mrb[100].mxu0 %v4037_v48  ;;  %2632 = vmatmul.mubr.bf16.gmra.mrb[100].mxu1 %v4038_v49 }
  0xee   :  { %3753 = vmatprep.mubr.msk.bf16.mxu0 %vm1502_vm0, %v4039_v50  ;;  %3817 = vmatprep.mubr.msk.bf16.mxu1 %vm1502_vm0, %v4041_v51 }
  0xf5   :  { %2128 = vmatmul.mubr.bf16.gmra.mrb[104].mxu0 %v4043_v52  ;;  %2640 = vmatmul.mubr.bf16.gmra.mrb[104].mxu1 %v4044_v53 }
  0xf6   :  { %3754 = vmatprep.mubr.msk.bf16.mxu0 %vm1502_vm0, %v4045_v54  ;;  %3818 = vmatprep.mubr.msk.bf16.mxu1 %vm1502_vm0, %v4047_v55  ;;  %v4067_v55 = vld [vmem:[%s7027_s0 + $0x1e0] ss:$8 sps:$4 sm:$0xff]  }
  0xf8   :  { %v1921_v57 = vpop.f32.mrb[0].mxu0  ;;  %v2433_v58 = vpop.f32.mrb[0].mxu1 }
  0xf9   :  { %v1922_v59 = vadd.f32 %v5217_v56, %v1921_v57  ;;  %v2434_v60 = vadd.f32 %v5217_v56, %v2433_v58  ;;  %v1923_v61 = vpop.f32.mrb[1].mxu0  ;;  %v2435_v62 = vpop.f32.mrb[1].mxu1  ;;  %v4068_v57 = vld [vmem:[%s7027_s0 + $0x5e0] ss:$8 sps:$4 sm:$0xff]  }
  0xfa   :  { %v1924_v1 = vpop.f32.mrb[2].mxu0  ;;  %v2436_v2 = vpop.f32.mrb[2].mxu1  ;;  %v4071_v61 = vld [vmem:[%s7027_s0 + $0x5f4] ss:$8 sps:$4 sm:$0xff]  }
  0xfb   :  { %4267 = vtanh.f32 %v1922_v59  ;;  %v1925_v5 = vadd.f32 %v5217_v56, %v1924_v1  ;;  %v2437_v6 = vadd.f32 %v5217_v56, %v2436_v2  ;;  %v1926_v7 = vpop.f32.mrb[3].mxu0  ;;  %v2438_v8 = vpop.f32.mrb[3].mxu1 }
  0xfc   :  { %4269 = vtanh.f32 %v2434_v60  ;;  %v4069_v60 = vld [vmem:[%s7027_s0 + $0x1f4] ss:$8 sps:$4 sm:$0xff]  }
  0xfd   :  { %4271 = vtanh.f32 %v1925_v5  ;;  %2136 = vmatmul.mubr.bf16.gmra.mrb[108].mxu0 %v4049_v63  ;;  %2648 = vmatmul.mubr.bf16.gmra.mrb[108].mxu1 %v4050_v0 }
  0xfe   :  { %4273 = vtanh.f32 %v2437_v6  ;;  %3755 = vmatprep.mubr.msk.bf16.mxu0 %vm1502_vm0, %v4051_v3  ;;  %3819 = vmatprep.mubr.msk.bf16.mxu1 %vm1502_vm0, %v4053_v4 }
 0x100   :  { %v1929_v9 = vpop.f32.mrb[4].mxu0  ;;  %v2441_v10 = vpop.f32.mrb[4].mxu1 }
 0x101   :  { %v1930_v11 = vadd.f32 %v5217_v56, %v1929_v9  ;;  %v2442_v12 = vadd.f32 %v5217_v56, %v2441_v10  ;;  %v1931_v13 = vpop.f32.mrb[5].mxu0  ;;  %v2443_v14 = vpop.f32.mrb[5].mxu1 }
 0x102   :  { %v1932_v17 = vpop.f32.mrb[6].mxu0  ;;  %v2444_v18 = vpop.f32.mrb[6].mxu1  ;;  %v4074_v13 = vld [vmem:[%s7027_s0 + $0x5f0] ss:$8 sps:$4 sm:$0xff]  }
 0x103   :  { %4275 = vtanh.f32 %v1930_v11  ;;  %v1933_v21 = vadd.f32 %v5217_v56, %v1932_v17  ;;  %v2445_v22 = vadd.f32 %v5217_v56, %v2444_v18  ;;  %v1934_v23 = vpop.f32.mrb[7].mxu0  ;;  %v2446_v24 = vpop.f32.mrb[7].mxu1  ;;  %v4077_v17 = vld [vmem:[%s7027_s0 + $0x604] ss:$8 sps:$4 sm:$0xff]  }
 0x104   :  { %4277 = vtanh.f32 %v2442_v12  ;;  %v4073_v12 = vld [vmem:[%s7027_s0 + $0x1f0] ss:$8 sps:$4 sm:$0xff]  }
 0x105   :  { %v4268_v25 = vpop.eup %4267  ;;  %4279 = vtanh.f32 %v1933_v21  ;;  %2144 = vmatmul.mubr.bf16.gmra.mrb[112].mxu0 %v4055_v15  ;;  %2656 = vmatmul.mubr.bf16.gmra.mrb[112].mxu1 %v4056_v16  ;;  %v4075_v16 = vld [vmem:[%s7027_s0 + $0x204] ss:$8 sps:$4 sm:$0xff]  }
 0x106   :  { %v4270_v26 = vpop.eup %4269  ;;  %3201 = vst.msk [vmem:[%s7029_s3] sm:$0xff] %vm3200_vm1, %v4268_v25  ;;  %4281 = vtanh.f32 %v2445_v22  ;;  %3756 = vmatprep.mubr.msk.bf16.mxu0 %vm1502_vm0, %v4057_v19  ;;  %3820 = vmatprep.mubr.msk.bf16.mxu1 %vm1502_vm0, %v4059_v20 }
 0x107   :  { %v4272_v27 = vpop.eup %4271  ;;  %3329 = vst.msk [vmem:[%s7029_s3 + $0x400] sm:$0xff] %vm3200_vm1, %v4270_v26 }
 0x108   :  { %v4274_v28 = vpop.eup %4273  ;;  %3202 = vst.msk [vmem:[%s7029_s3 + $0x8] sm:$0xff] %vm3200_vm1, %v4272_v27  ;;  %v1937_v29 = vpop.f32.mrb[8].mxu0 }
 0x109   :  { %v2449_v30 = vpop.f32.mrb[8].mxu1  ;;  %3330 = vst.msk [vmem:[%s7029_s3 + $0x408] sm:$0xff] %vm3200_vm1, %v4274_v28  ;;  %v1938_v31 = vadd.f32 %v5217_v56, %v1937_v29  ;;  %v1939_v33 = vpop.f32.mrb[9].mxu0 }
 0x10a   :  { %v2450_v32 = vadd.f32 %v5217_v56, %v2449_v30  ;;  %v2451_v34 = vpop.f32.mrb[9].mxu1  ;;  %v1940_v37 = vpop.f32.mrb[10].mxu0  ;;  %v4080_v33 = vld [vmem:[%s7027_s0 + $0x600] ss:$8 sps:$4 sm:$0xff]  }
 0x10b   :  { %v2452_v38 = vpop.f32.mrb[10].mxu1  ;;  %4283 = vtanh.f32 %v1938_v31  ;;  %v1941_v41 = vadd.f32 %v5217_v56, %v1940_v37  ;;  %v1942_v43 = vpop.f32.mrb[11].mxu0  ;;  %v4083_v37 = vld [vmem:[%s7027_s0 + $0x614] ss:$8 sps:$4 sm:$0xff]  }
 0x10c   :  { %v2453_v42 = vadd.f32 %v5217_v56, %v2452_v38  ;;  %v2454_v44 = vpop.f32.mrb[11].mxu1  ;;  %4285 = vtanh.f32 %v2450_v32  ;;  %v4079_v32 = vld [vmem:[%s7027_s0 + $0x200] ss:$8 sps:$4 sm:$0xff]  }
 0x10d   :  { %v4276_v45 = vpop.eup %4275  ;;  %4287 = vtanh.f32 %v1941_v41  ;;  %2152 = vmatmul.mubr.bf16.gmra.mrb[116].mxu0 %v4061_v35  ;;  %2664 = vmatmul.mubr.bf16.gmra.mrb[116].mxu1 %v4062_v36  ;;  %v4081_v36 = vld [vmem:[%s7027_s0 + $0x214] ss:$8 sps:$4 sm:$0xff]  }
 0x10e   :  { %v4278_v46 = vpop.eup %4277  ;;  %3203 = vst.msk [vmem:[%s7029_s3 + $0x10] sm:$0xff] %vm3200_vm1, %v4276_v45  ;;  %4289 = vtanh.f32 %v2453_v42  ;;  %3757 = vmatprep.mubr.msk.bf16.mxu0 %vm1502_vm0, %v4063_v39  ;;  %3821 = vmatprep.mubr.msk.bf16.mxu1 %vm1502_vm0, %v4065_v40 }
 0x10f   :  { %v4280_v47 = vpop.eup %4279  ;;  %3331 = vst.msk [vmem:[%s7029_s3 + $0x410] sm:$0xff] %vm3200_vm1, %v4278_v46 }
 0x110   :  { %v4282_v48 = vpop.eup %4281  ;;  %3204 = vst.msk [vmem:[%s7029_s3 + $0x18] sm:$0xff] %vm3200_vm1, %v4280_v47  ;;  %v1945_v49 = vpop.f32.mrb[12].mxu0 }
 0x111   :  { %v2457_v50 = vpop.f32.mrb[12].mxu1  ;;  %3332 = vst.msk [vmem:[%s7029_s3 + $0x418] sm:$0xff] %vm3200_vm1, %v4282_v48  ;;  %v1946_v51 = vadd.f32 %v5217_v56, %v1945_v49  ;;  %v1947_v53 = vpop.f32.mrb[13].mxu0 }
 0x112   :  { %v2458_v52 = vadd.f32 %v5217_v56, %v2457_v50  ;;  %v2459_v54 = vpop.f32.mrb[13].mxu1  ;;  %v1948_v58 = vpop.f32.mrb[14].mxu0  ;;  %v4086_v53 = vld [vmem:[%s7027_s0 + $0x610] ss:$8 sps:$4 sm:$0xff]  }
 0x113   :  { %v2460_v59 = vpop.f32.mrb[14].mxu1  ;;  %4291 = vtanh.f32 %v1946_v51  ;;  %v1949_v62 = vadd.f32 %v5217_v56, %v1948_v58  ;;  %v1950_v0 = vpop.f32.mrb[15].mxu0  ;;  %v4089_v58 = vld [vmem:[%s7027_s0 + $0x624] ss:$8 sps:$4 sm:$0xff]  }
 0x114   :  { %v2461_v63 = vadd.f32 %v5217_v56, %v2460_v59  ;;  %v2462_v1 = vpop.f32.mrb[15].mxu1  ;;  %4293 = vtanh.f32 %v2458_v52  ;;  %v4085_v52 = vld [vmem:[%s7027_s0 + $0x210] ss:$8 sps:$4 sm:$0xff]  }
 0x115   :  { %v4284_v2 = vpop.eup %4283  ;;  %4295 = vtanh.f32 %v1949_v62  ;;  %2160 = vmatmul.mubr.bf16.gmra.mrb[120].mxu0 %v4067_v55  ;;  %2672 = vmatmul.mubr.bf16.gmra.mrb[120].mxu1 %v4068_v57  ;;  %v4087_v57 = vld [vmem:[%s7027_s0 + $0x224] ss:$8 sps:$4 sm:$0xff]  }
 0x116   :  { %v4286_v3 = vpop.eup %4285  ;;  %3205 = vst.msk [vmem:[%s7029_s3 + $0x20] sm:$0xff] %vm3200_vm1, %v4284_v2  ;;  %4297 = vtanh.f32 %v2461_v63  ;;  %3758 = vmatprep.mubr.msk.bf16.mxu0 %vm1502_vm0, %v4069_v60  ;;  %3822 = vmatprep.mubr.msk.bf16.mxu1 %vm1502_vm0, %v4071_v61 }
 0x117   :  { %v4288_v4 = vpop.eup %4287  ;;  %3333 = vst.msk [vmem:[%s7029_s3 + $0x420] sm:$0xff] %vm3200_vm1, %v4286_v3 }
 0x118   :  { %v4290_v5 = vpop.eup %4289  ;;  %3206 = vst.msk [vmem:[%s7029_s3 + $0x28] sm:$0xff] %vm3200_vm1, %v4288_v4  ;;  %v1953_v6 = vpop.f32.mrb[16].mxu0 }
 0x119   :  { %v2465_v7 = vpop.f32.mrb[16].mxu1  ;;  %3334 = vst.msk [vmem:[%s7029_s3 + $0x428] sm:$0xff] %vm3200_vm1, %v4290_v5  ;;  %v1954_v8 = vadd.f32 %v5217_v56, %v1953_v6  ;;  %v1955_v10 = vpop.f32.mrb[17].mxu0 }
 0x11a   :  { %v2466_v9 = vadd.f32 %v5217_v56, %v2465_v7  ;;  %v2467_v11 = vpop.f32.mrb[17].mxu1  ;;  %v1956_v14 = vpop.f32.mrb[18].mxu0  ;;  %v4092_v10 = vld [vmem:[%s7027_s0 + $0x620] ss:$8 sps:$4 sm:$0xff]  }
 0x11b   :  { %v2468_v15 = vpop.f32.mrb[18].mxu1  ;;  %4299 = vtanh.f32 %v1954_v8  ;;  %v1957_v18 = vadd.f32 %v5217_v56, %v1956_v14  ;;  %v1958_v20 = vpop.f32.mrb[19].mxu0  ;;  %v4095_v14 = vld [vmem:[%s7027_s0 + $0x634] ss:$8 sps:$4 sm:$0xff]  }
 0x11c   :  { %v2469_v19 = vadd.f32 %v5217_v56, %v2468_v15  ;;  %v2470_v21 = vpop.f32.mrb[19].mxu1  ;;  %4301 = vtanh.f32 %v2466_v9  ;;  %v4091_v9 = vld [vmem:[%s7027_s0 + $0x220] ss:$8 sps:$4 sm:$0xff]  }
 0x11d   :  { %v4292_v22 = vpop.eup %4291  ;;  %4303 = vtanh.f32 %v1957_v18  ;;  %2168 = vmatmul.mubr.bf16.gmra.mrb[124].mxu0 %v4073_v12  ;;  %2680 = vmatmul.mubr.bf16.gmra.mrb[124].mxu1 %v4074_v13  ;;  %v4093_v13 = vld [vmem:[%s7027_s0 + $0x234] ss:$8 sps:$4 sm:$0xff]  }
 0x11e   :  { %v4294_v23 = vpop.eup %4293  ;;  %3207 = vst.msk [vmem:[%s7029_s3 + $0x30] sm:$0xff] %vm3200_vm1, %v4292_v22  ;;  %4305 = vtanh.f32 %v2469_v19  ;;  %3759 = vmatprep.mubr.msk.bf16.mxu0 %vm1502_vm0, %v4075_v16  ;;  %3823 = vmatprep.mubr.msk.bf16.mxu1 %vm1502_vm0, %v4077_v17 }
 0x11f   :  { %v4296_v24 = vpop.eup %4295  ;;  %3335 = vst.msk [vmem:[%s7029_s3 + $0x430] sm:$0xff] %vm3200_vm1, %v4294_v23 }
 0x120   :  { %v4298_v25 = vpop.eup %4297  ;;  %3208 = vst.msk [vmem:[%s7029_s3 + $0x38] sm:$0xff] %vm3200_vm1, %v4296_v24  ;;  %v1961_v26 = vpop.f32.mrb[20].mxu0 }
 0x121   :  { %v2473_v27 = vpop.f32.mrb[20].mxu1  ;;  %3336 = vst.msk [vmem:[%s7029_s3 + $0x438] sm:$0xff] %vm3200_vm1, %v4298_v25  ;;  %v1962_v28 = vadd.f32 %v5217_v56, %v1961_v26  ;;  %v1963_v30 = vpop.f32.mrb[21].mxu0 }
 0x122   :  { %v2474_v29 = vadd.f32 %v5217_v56, %v2473_v27  ;;  %v2475_v31 = vpop.f32.mrb[21].mxu1  ;;  %v1964_v34 = vpop.f32.mrb[22].mxu0  ;;  %v4098_v30 = vld [vmem:[%s7027_s0 + $0x630] ss:$8 sps:$4 sm:$0xff]  }
 0x123   :  { %v2476_v35 = vpop.f32.mrb[22].mxu1  ;;  %4307 = vtanh.f32 %v1962_v28  ;;  %v1965_v38 = vadd.f32 %v5217_v56, %v1964_v34  ;;  %v1966_v40 = vpop.f32.mrb[23].mxu0  ;;  %v4101_v34 = vld [vmem:[%s7027_s0 + $0x644] ss:$8 sps:$4 sm:$0xff]  }
 0x124   :  { %v2477_v39 = vadd.f32 %v5217_v56, %v2476_v35  ;;  %v2478_v41 = vpop.f32.mrb[23].mxu1  ;;  %4309 = vtanh.f32 %v2474_v29  ;;  %v4097_v29 = vld [vmem:[%s7027_s0 + $0x230] ss:$8 sps:$4 sm:$0xff]  }
 0x125   :  { %v4300_v42 = vpop.eup %4299  ;;  %4311 = vtanh.f32 %v1965_v38  ;;  %2176 = vmatmul.mubr.bf16.gmra.mrb[128].mxu0 %v4079_v32  ;;  %2688 = vmatmul.mubr.bf16.gmra.mrb[128].mxu1 %v4080_v33  ;;  %v4099_v33 = vld [vmem:[%s7027_s0 + $0x244] ss:$8 sps:$4 sm:$0xff]  }
 0x126   :  { %v4302_v43 = vpop.eup %4301  ;;  %3209 = vst.msk [vmem:[%s7029_s3 + $0x40] sm:$0xff] %vm3200_vm1, %v4300_v42  ;;  %4313 = vtanh.f32 %v2477_v39  ;;  %3760 = vmatprep.mubr.msk.bf16.mxu0 %vm1502_vm0, %v4081_v36  ;;  %3824 = vmatprep.mubr.msk.bf16.mxu1 %vm1502_vm0, %v4083_v37 }
 0x127   :  { %v4304_v44 = vpop.eup %4303  ;;  %3337 = vst.msk [vmem:[%s7029_s3 + $0x440] sm:$0xff] %vm3200_vm1, %v4302_v43 }
 0x128   :  { %v4306_v45 = vpop.eup %4305  ;;  %3210 = vst.msk [vmem:[%s7029_s3 + $0x48] sm:$0xff] %vm3200_vm1, %v4304_v44  ;;  %v1969_v46 = vpop.f32.mrb[24].mxu0 }
 0x129   :  { %v2481_v47 = vpop.f32.mrb[24].mxu1  ;;  %3338 = vst.msk [vmem:[%s7029_s3 + $0x448] sm:$0xff] %vm3200_vm1, %v4306_v45  ;;  %v1970_v48 = vadd.f32 %v5217_v56, %v1969_v46  ;;  %v1971_v50 = vpop.f32.mrb[25].mxu0 }
 0x12a   :  { %v2482_v49 = vadd.f32 %v5217_v56, %v2481_v47  ;;  %v2483_v51 = vpop.f32.mrb[25].mxu1  ;;  %v1972_v54 = vpop.f32.mrb[26].mxu0  ;;  %v4104_v50 = vld [vmem:[%s7027_s0 + $0x640] ss:$8 sps:$4 sm:$0xff]  }
 0x12b   :  { %v2484_v55 = vpop.f32.mrb[26].mxu1  ;;  %4315 = vtanh.f32 %v1970_v48  ;;  %v1973_v59 = vadd.f32 %v5217_v56, %v1972_v54  ;;  %v1974_v61 = vpop.f32.mrb[27].mxu0  ;;  %v4107_v54 = vld [vmem:[%s7027_s0 + $0x654] ss:$8 sps:$4 sm:$0xff]  }
 0x12c   :  { %v2485_v60 = vadd.f32 %v5217_v56, %v2484_v55  ;;  %v2486_v62 = vpop.f32.mrb[27].mxu1  ;;  %4317 = vtanh.f32 %v2482_v49  ;;  %v4103_v49 = vld [vmem:[%s7027_s0 + $0x240] ss:$8 sps:$4 sm:$0xff]  }
 0x12d   :  { %v4308_v63 = vpop.eup %4307  ;;  %4319 = vtanh.f32 %v1973_v59  ;;  %2184 = vmatmul.mubr.bf16.gmra.mrb[132].mxu0 %v4085_v52  ;;  %2696 = vmatmul.mubr.bf16.gmra.mrb[132].mxu1 %v4086_v53  ;;  %v4105_v53 = vld [vmem:[%s7027_s0 + $0x254] ss:$8 sps:$4 sm:$0xff]  }
 0x12e   :  { %v4310_v0 = vpop.eup %4309  ;;  %3211 = vst.msk [vmem:[%s7029_s3 + $0x50] sm:$0xff] %vm3200_vm1, %v4308_v63  ;;  %4321 = vtanh.f32 %v2485_v60  ;;  %3761 = vmatprep.mubr.msk.bf16.mxu0 %vm1502_vm0, %v4087_v57  ;;  %3825 = vmatprep.mubr.msk.bf16.mxu1 %vm1502_vm0, %v4089_v58 }
 0x12f   :  { %v4312_v1 = vpop.eup %4311  ;;  %3339 = vst.msk [vmem:[%s7029_s3 + $0x450] sm:$0xff] %vm3200_vm1, %v4310_v0 }
 0x130   :  { %v4314_v2 = vpop.eup %4313  ;;  %3212 = vst.msk [vmem:[%s7029_s3 + $0x58] sm:$0xff] %vm3200_vm1, %v4312_v1  ;;  %v1977_v3 = vpop.f32.mrb[28].mxu0 }
 0x131   :  { %v2489_v4 = vpop.f32.mrb[28].mxu1  ;;  %3340 = vst.msk [vmem:[%s7029_s3 + $0x458] sm:$0xff] %vm3200_vm1, %v4314_v2  ;;  %v1978_v5 = vadd.f32 %v5217_v56, %v1977_v3  ;;  %v1979_v7 = vpop.f32.mrb[29].mxu0 }
 0x132   :  { %v2490_v6 = vadd.f32 %v5217_v56, %v2489_v4  ;;  %v2491_v8 = vpop.f32.mrb[29].mxu1  ;;  %v1980_v11 = vpop.f32.mrb[30].mxu0  ;;  %v4110_v7 = vld [vmem:[%s7027_s0 + $0x650] ss:$8 sps:$4 sm:$0xff]  }
 0x133   :  { %v2492_v12 = vpop.f32.mrb[30].mxu1  ;;  %4323 = vtanh.f32 %v1978_v5  ;;  %v1981_v15 = vadd.f32 %v5217_v56, %v1980_v11  ;;  %v1982_v17 = vpop.f32.mrb[31].mxu0  ;;  %v4113_v11 = vld [vmem:[%s7027_s0 + $0x664] ss:$8 sps:$4 sm:$0xff]  }
 0x134   :  { %v2493_v16 = vadd.f32 %v5217_v56, %v2492_v12  ;;  %v2494_v18 = vpop.f32.mrb[31].mxu1  ;;  %4325 = vtanh.f32 %v2490_v6  ;;  %v4109_v6 = vld [vmem:[%s7027_s0 + $0x250] ss:$8 sps:$4 sm:$0xff]  }
 0x135   :  { %v4316_v19 = vpop.eup %4315  ;;  %4327 = vtanh.f32 %v1981_v15  ;;  %2192 = vmatmul.mubr.bf16.gmra.mrb[136].mxu0 %v4091_v9  ;;  %2704 = vmatmul.mubr.bf16.gmra.mrb[136].mxu1 %v4092_v10  ;;  %v4111_v10 = vld [vmem:[%s7027_s0 + $0x264] ss:$8 sps:$4 sm:$0xff]  }
 0x136   :  { %v4318_v20 = vpop.eup %4317  ;;  %3213 = vst.msk [vmem:[%s7029_s3 + $0x60] sm:$0xff] %vm3200_vm1, %v4316_v19  ;;  %4329 = vtanh.f32 %v2493_v16  ;;  %3762 = vmatprep.mubr.msk.bf16.mxu0 %vm1502_vm0, %v4093_v13  ;;  %3826 = vmatprep.mubr.msk.bf16.mxu1 %vm1502_vm0, %v4095_v14 }
 0x137   :  { %v4320_v21 = vpop.eup %4319  ;;  %3341 = vst.msk [vmem:[%s7029_s3 + $0x460] sm:$0xff] %vm3200_vm1, %v4318_v20 }
 0x138   :  { %v4322_v22 = vpop.eup %4321  ;;  %3214 = vst.msk [vmem:[%s7029_s3 + $0x68] sm:$0xff] %vm3200_vm1, %v4320_v21  ;;  %v1985_v23 = vpop.f32.mrb[32].mxu0 }
 0x139   :  { %v2497_v24 = vpop.f32.mrb[32].mxu1  ;;  %3342 = vst.msk [vmem:[%s7029_s3 + $0x468] sm:$0xff] %vm3200_vm1, %v4322_v22  ;;  %v1986_v25 = vadd.f32 %v5217_v56, %v1985_v23  ;;  %v1987_v27 = vpop.f32.mrb[33].mxu0 }
 0x13a   :  { %v2498_v26 = vadd.f32 %v5217_v56, %v2497_v24  ;;  %v2499_v28 = vpop.f32.mrb[33].mxu1  ;;  %v1988_v31 = vpop.f32.mrb[34].mxu0  ;;  %v4116_v27 = vld [vmem:[%s7027_s0 + $0x660] ss:$8 sps:$4 sm:$0xff]  }
 0x13b   :  { %v2500_v32 = vpop.f32.mrb[34].mxu1  ;;  %4331 = vtanh.f32 %v1986_v25  ;;  %v1989_v35 = vadd.f32 %v5217_v56, %v1988_v31  ;;  %v1990_v37 = vpop.f32.mrb[35].mxu0  ;;  %v4119_v31 = vld [vmem:[%s7027_s0 + $0x674] ss:$8 sps:$4 sm:$0xff]  }
 0x13c   :  { %v2501_v36 = vadd.f32 %v5217_v56, %v2500_v32  ;;  %v2502_v38 = vpop.f32.mrb[35].mxu1  ;;  %4333 = vtanh.f32 %v2498_v26  ;;  %v4115_v26 = vld [vmem:[%s7027_s0 + $0x260] ss:$8 sps:$4 sm:$0xff]  }
 0x13d   :  { %v4324_v39 = vpop.eup %4323  ;;  %4335 = vtanh.f32 %v1989_v35  ;;  %2200 = vmatmul.mubr.bf16.gmra.mrb[140].mxu0 %v4097_v29  ;;  %2712 = vmatmul.mubr.bf16.gmra.mrb[140].mxu1 %v4098_v30  ;;  %v4117_v30 = vld [vmem:[%s7027_s0 + $0x274] ss:$8 sps:$4 sm:$0xff]  }
 0x13e   :  { %v4326_v40 = vpop.eup %4325  ;;  %3215 = vst.msk [vmem:[%s7029_s3 + $0x70] sm:$0xff] %vm3200_vm1, %v4324_v39  ;;  %4337 = vtanh.f32 %v2501_v36  ;;  %3763 = vmatprep.mubr.msk.bf16.mxu0 %vm1502_vm0, %v4099_v33  ;;  %3827 = vmatprep.mubr.msk.bf16.mxu1 %vm1502_vm0, %v4101_v34 }
 0x13f   :  { %v4328_v41 = vpop.eup %4327  ;;  %3343 = vst.msk [vmem:[%s7029_s3 + $0x470] sm:$0xff] %vm3200_vm1, %v4326_v40 }
 0x140   :  { %v4330_v42 = vpop.eup %4329  ;;  %3216 = vst.msk [vmem:[%s7029_s3 + $0x78] sm:$0xff] %vm3200_vm1, %v4328_v41  ;;  %v1993_v43 = vpop.f32.mrb[36].mxu0 }
 0x141   :  { %v2505_v44 = vpop.f32.mrb[36].mxu1  ;;  %3344 = vst.msk [vmem:[%s7029_s3 + $0x478] sm:$0xff] %vm3200_vm1, %v4330_v42  ;;  %v1994_v45 = vadd.f32 %v5217_v56, %v1993_v43  ;;  %v1995_v47 = vpop.f32.mrb[37].mxu0 }
 0x142   :  { %v2506_v46 = vadd.f32 %v5217_v56, %v2505_v44  ;;  %v2507_v48 = vpop.f32.mrb[37].mxu1  ;;  %v1996_v51 = vpop.f32.mrb[38].mxu0  ;;  %v4122_v47 = vld [vmem:[%s7027_s0 + $0x670] ss:$8 sps:$4 sm:$0xff]  }
 0x143   :  { %v2508_v52 = vpop.f32.mrb[38].mxu1  ;;  %4339 = vtanh.f32 %v1994_v45  ;;  %v1997_v55 = vadd.f32 %v5217_v56, %v1996_v51  ;;  %v1998_v58 = vpop.f32.mrb[39].mxu0  ;;  %v4125_v51 = vld [vmem:[%s7027_s0 + $0x684] ss:$8 sps:$4 sm:$0xff]  }
 0x144   :  { %v2509_v57 = vadd.f32 %v5217_v56, %v2508_v52  ;;  %v2510_v59 = vpop.f32.mrb[39].mxu1  ;;  %4341 = vtanh.f32 %v2506_v46  ;;  %v4121_v46 = vld [vmem:[%s7027_s0 + $0x270] ss:$8 sps:$4 sm:$0xff]  }
 0x145   :  { %v4332_v60 = vpop.eup %4331  ;;  %4343 = vtanh.f32 %v1997_v55  ;;  %2208 = vmatmul.mubr.bf16.gmra.mrb[144].mxu0 %v4103_v49  ;;  %2720 = vmatmul.mubr.bf16.gmra.mrb[144].mxu1 %v4104_v50  ;;  %v4123_v50 = vld [vmem:[%s7027_s0 + $0x284] ss:$8 sps:$4 sm:$0xff]  }
 0x146   :  { %v4334_v61 = vpop.eup %4333  ;;  %3217 = vst.msk [vmem:[%s7029_s3 + $0x80] sm:$0xff] %vm3200_vm1, %v4332_v60  ;;  %4345 = vtanh.f32 %v2509_v57  ;;  %3764 = vmatprep.mubr.msk.bf16.mxu0 %vm1502_vm0, %v4105_v53  ;;  %3828 = vmatprep.mubr.msk.bf16.mxu1 %vm1502_vm0, %v4107_v54 }
 0x147   :  { %v4336_v62 = vpop.eup %4335  ;;  %3345 = vst.msk [vmem:[%s7029_s3 + $0x480] sm:$0xff] %vm3200_vm1, %v4334_v61 }
 0x148   :  { %v4338_v63 = vpop.eup %4337  ;;  %3218 = vst.msk [vmem:[%s7029_s3 + $0x88] sm:$0xff] %vm3200_vm1, %v4336_v62  ;;  %v2001_v0 = vpop.f32.mrb[40].mxu0 }
 0x149   :  { %v2513_v1 = vpop.f32.mrb[40].mxu1  ;;  %3346 = vst.msk [vmem:[%s7029_s3 + $0x488] sm:$0xff] %vm3200_vm1, %v4338_v63  ;;  %v2002_v2 = vadd.f32 %v5217_v56, %v2001_v0  ;;  %v2003_v4 = vpop.f32.mrb[41].mxu0 }
 0x14a   :  { %v2514_v3 = vadd.f32 %v5217_v56, %v2513_v1  ;;  %v2515_v5 = vpop.f32.mrb[41].mxu1  ;;  %v2004_v8 = vpop.f32.mrb[42].mxu0  ;;  %v4128_v4 = vld [vmem:[%s7027_s0 + $0x680] ss:$8 sps:$4 sm:$0xff]  }
 0x14b   :  { %v2516_v9 = vpop.f32.mrb[42].mxu1  ;;  %4347 = vtanh.f32 %v2002_v2  ;;  %v2005_v12 = vadd.f32 %v5217_v56, %v2004_v8  ;;  %v2006_v14 = vpop.f32.mrb[43].mxu0  ;;  %v4131_v8 = vld [vmem:[%s7027_s0 + $0x694] ss:$8 sps:$4 sm:$0xff]  }
 0x14c   :  { %v2517_v13 = vadd.f32 %v5217_v56, %v2516_v9  ;;  %v2518_v15 = vpop.f32.mrb[43].mxu1  ;;  %4349 = vtanh.f32 %v2514_v3  ;;  %v4127_v3 = vld [vmem:[%s7027_s0 + $0x280] ss:$8 sps:$4 sm:$0xff]  }
 0x14d   :  { %v4340_v16 = vpop.eup %4339  ;;  %4351 = vtanh.f32 %v2005_v12  ;;  %2216 = vmatmul.mubr.bf16.gmra.mrb[148].mxu0 %v4109_v6  ;;  %2728 = vmatmul.mubr.bf16.gmra.mrb[148].mxu1 %v4110_v7  ;;  %v4129_v7 = vld [vmem:[%s7027_s0 + $0x294] ss:$8 sps:$4 sm:$0xff]  }
 0x14e   :  { %v4342_v17 = vpop.eup %4341  ;;  %3219 = vst.msk [vmem:[%s7029_s3 + $0x90] sm:$0xff] %vm3200_vm1, %v4340_v16  ;;  %4353 = vtanh.f32 %v2517_v13  ;;  %3765 = vmatprep.mubr.msk.bf16.mxu0 %vm1502_vm0, %v4111_v10  ;;  %3829 = vmatprep.mubr.msk.bf16.mxu1 %vm1502_vm0, %v4113_v11 }
 0x14f   :  { %v4344_v18 = vpop.eup %4343  ;;  %3347 = vst.msk [vmem:[%s7029_s3 + $0x490] sm:$0xff] %vm3200_vm1, %v4342_v17 }
 0x150   :  { %v4346_v19 = vpop.eup %4345  ;;  %3220 = vst.msk [vmem:[%s7029_s3 + $0x98] sm:$0xff] %vm3200_vm1, %v4344_v18  ;;  %v2009_v20 = vpop.f32.mrb[44].mxu0 }
 0x151   :  { %v2521_v21 = vpop.f32.mrb[44].mxu1  ;;  %3348 = vst.msk [vmem:[%s7029_s3 + $0x498] sm:$0xff] %vm3200_vm1, %v4346_v19  ;;  %v2010_v22 = vadd.f32 %v5217_v56, %v2009_v20  ;;  %v2011_v24 = vpop.f32.mrb[45].mxu0 }
 0x152   :  { %v2522_v23 = vadd.f32 %v5217_v56, %v2521_v21  ;;  %v2523_v25 = vpop.f32.mrb[45].mxu1  ;;  %v2012_v28 = vpop.f32.mrb[46].mxu0  ;;  %v4134_v24 = vld [vmem:[%s7027_s0 + $0x690] ss:$8 sps:$4 sm:$0xff]  }
 0x153   :  { %v2524_v29 = vpop.f32.mrb[46].mxu1  ;;  %4355 = vtanh.f32 %v2010_v22  ;;  %v2013_v32 = vadd.f32 %v5217_v56, %v2012_v28  ;;  %v2014_v34 = vpop.f32.mrb[47].mxu0  ;;  %v4137_v28 = vld [vmem:[%s7027_s0 + $0x6a4] ss:$8 sps:$4 sm:$0xff]  }
 0x154   :  { %v2525_v33 = vadd.f32 %v5217_v56, %v2524_v29  ;;  %v2526_v35 = vpop.f32.mrb[47].mxu1  ;;  %4357 = vtanh.f32 %v2522_v23  ;;  %v4133_v23 = vld [vmem:[%s7027_s0 + $0x290] ss:$8 sps:$4 sm:$0xff]  }
 0x155   :  { %v4348_v36 = vpop.eup %4347  ;;  %4359 = vtanh.f32 %v2013_v32  ;;  %2224 = vmatmul.mubr.bf16.gmra.mrb[152].mxu0 %v4115_v26  ;;  %2736 = vmatmul.mubr.bf16.gmra.mrb[152].mxu1 %v4116_v27  ;;  %v4135_v27 = vld [vmem:[%s7027_s0 + $0x2a4] ss:$8 sps:$4 sm:$0xff]  }
 0x156   :  { %v4350_v37 = vpop.eup %4349  ;;  %3221 = vst.msk [vmem:[%s7029_s3 + $0xa0] sm:$0xff] %vm3200_vm1, %v4348_v36  ;;  %4361 = vtanh.f32 %v2525_v33  ;;  %3766 = vmatprep.mubr.msk.bf16.mxu0 %vm1502_vm0, %v4117_v30  ;;  %3830 = vmatprep.mubr.msk.bf16.mxu1 %vm1502_vm0, %v4119_v31 }
 0x157   :  { %v4352_v38 = vpop.eup %4351  ;;  %3349 = vst.msk [vmem:[%s7029_s3 + $0x4a0] sm:$0xff] %vm3200_vm1, %v4350_v37 }
 0x158   :  { %v4354_v39 = vpop.eup %4353  ;;  %3222 = vst.msk [vmem:[%s7029_s3 + $0xa8] sm:$0xff] %vm3200_vm1, %v4352_v38  ;;  %v2017_v40 = vpop.f32.mrb[48].mxu0 }
 0x159   :  { %v2529_v41 = vpop.f32.mrb[48].mxu1  ;;  %3350 = vst.msk [vmem:[%s7029_s3 + $0x4a8] sm:$0xff] %vm3200_vm1, %v4354_v39  ;;  %v2018_v42 = vadd.f32 %v5217_v56, %v2017_v40  ;;  %v2019_v44 = vpop.f32.mrb[49].mxu0 }
 0x15a   :  { %v2530_v43 = vadd.f32 %v5217_v56, %v2529_v41  ;;  %v2531_v45 = vpop.f32.mrb[49].mxu1  ;;  %v2020_v48 = vpop.f32.mrb[50].mxu0  ;;  %v4140_v44 = vld [vmem:[%s7027_s0 + $0x6a0] ss:$8 sps:$4 sm:$0xff]  }
 0x15b   :  { %v2532_v49 = vpop.f32.mrb[50].mxu1  ;;  %4363 = vtanh.f32 %v2018_v42  ;;  %v2021_v52 = vadd.f32 %v5217_v56, %v2020_v48  ;;  %v2022_v54 = vpop.f32.mrb[51].mxu0  ;;  %v4143_v48 = vld [vmem:[%s7027_s0 + $0x6b4] ss:$8 sps:$4 sm:$0xff]  }
 0x15c   :  { %v2533_v53 = vadd.f32 %v5217_v56, %v2532_v49  ;;  %v2534_v55 = vpop.f32.mrb[51].mxu1  ;;  %4365 = vtanh.f32 %v2530_v43  ;;  %v4139_v43 = vld [vmem:[%s7027_s0 + $0x2a0] ss:$8 sps:$4 sm:$0xff]  }
 0x15d   :  { %v4356_v57 = vpop.eup %4355  ;;  %4367 = vtanh.f32 %v2021_v52  ;;  %2232 = vmatmul.mubr.bf16.gmra.mrb[156].mxu0 %v4121_v46  ;;  %2744 = vmatmul.mubr.bf16.gmra.mrb[156].mxu1 %v4122_v47  ;;  %v4141_v47 = vld [vmem:[%s7027_s0 + $0x2b4] ss:$8 sps:$4 sm:$0xff]  }
 0x15e   :  { %v4358_v58 = vpop.eup %4357  ;;  %3223 = vst.msk [vmem:[%s7029_s3 + $0xb0] sm:$0xff] %vm3200_vm1, %v4356_v57  ;;  %4369 = vtanh.f32 %v2533_v53  ;;  %3767 = vmatprep.mubr.msk.bf16.mxu0 %vm1502_vm0, %v4123_v50  ;;  %3831 = vmatprep.mubr.msk.bf16.mxu1 %vm1502_vm0, %v4125_v51 }
 0x15f   :  { %v4360_v59 = vpop.eup %4359  ;;  %3351 = vst.msk [vmem:[%s7029_s3 + $0x4b0] sm:$0xff] %vm3200_vm1, %v4358_v58 }
 0x160   :  { %v4362_v60 = vpop.eup %4361  ;;  %3224 = vst.msk [vmem:[%s7029_s3 + $0xb8] sm:$0xff] %vm3200_vm1, %v4360_v59  ;;  %v2025_v61 = vpop.f32.mrb[52].mxu0 }
 0x161   :  { %v2537_v62 = vpop.f32.mrb[52].mxu1  ;;  %3352 = vst.msk [vmem:[%s7029_s3 + $0x4b8] sm:$0xff] %vm3200_vm1, %v4362_v60  ;;  %v2026_v63 = vadd.f32 %v5217_v56, %v2025_v61  ;;  %v2027_v1 = vpop.f32.mrb[53].mxu0  ;;  %v5753_v61 = vld [vmem:[%s7028_s2] ss:$0 sm:$0xff] }
 0x162   :  { %v2538_v0 = vadd.f32 %v5217_v56, %v2537_v62  ;;  %v2539_v2 = vpop.f32.mrb[53].mxu1  ;;  %v2028_v5 = vpop.f32.mrb[54].mxu0  ;;  %v4145_v1 = vld [vmem:[%s7027_s0 + $0x2b0] ss:$8 sps:$4 sm:$0xff]  }
 0x163   :  { %v2540_v6 = vpop.f32.mrb[54].mxu1  ;;  %4371 = vtanh.f32 %v2026_v63  ;;  %v2029_v9 = vadd.f32 %v5217_v56, %v2028_v5  ;;  %v2030_v11 = vpop.f32.mrb[55].mxu0  ;;  %v4146_v2 = vld [vmem:[%s7027_s0 + $0x6b0] ss:$8 sps:$4 sm:$0xff]   ;;  %v4149_v5 = vld [vmem:[%s7027_s0 + $0x6c4] ss:$8 sps:$4 sm:$0xff]  }
 0x164   :  { %v2541_v10 = vadd.f32 %v5217_v56, %v2540_v6  ;;  %v2542_v12 = vpop.f32.mrb[55].mxu1  ;;  %4373 = vtanh.f32 %v2538_v0 }
 0x165   :  { %v4364_v13 = vpop.eup %4363  ;;  %4375 = vtanh.f32 %v2029_v9  ;;  %2240 = vmatmul.mubr.bf16.gmra.mrb[160].mxu0 %v4127_v3  ;;  %2752 = vmatmul.mubr.bf16.gmra.mrb[160].mxu1 %v4128_v4 }
 0x166   :  { %v4366_v14 = vpop.eup %4365  ;;  %3225 = vst.msk [vmem:[%s7029_s3 + $0xc0] sm:$0xff] %vm3200_vm1, %v4364_v13  ;;  %4377 = vtanh.f32 %v2541_v10  ;;  %3768 = vmatprep.mubr.msk.bf16.mxu0 %vm1502_vm0, %v4129_v7  ;;  %3832 = vmatprep.mubr.msk.bf16.mxu1 %vm1502_vm0, %v4131_v8 }
 0x167   :  { %v4368_v15 = vpop.eup %4367  ;;  %3353 = vst.msk [vmem:[%s7029_s3 + $0x4c0] sm:$0xff] %vm3200_vm1, %v4366_v14 }
 0x168   :  { %v4370_v16 = vpop.eup %4369  ;;  %3226 = vst.msk [vmem:[%s7029_s3 + $0xc8] sm:$0xff] %vm3200_vm1, %v4368_v15  ;;  %v2033_v17 = vpop.f32.mrb[56].mxu0 }
 0x169   :  { %v2545_v18 = vpop.f32.mrb[56].mxu1  ;;  %3354 = vst.msk [vmem:[%s7029_s3 + $0x4c8] sm:$0xff] %vm3200_vm1, %v4370_v16  ;;  %v2034_v19 = vadd.f32 %v5217_v56, %v2033_v17  ;;  %v2035_v21 = vpop.f32.mrb[57].mxu0 }
 0x16a   :  { %v2546_v20 = vadd.f32 %v5217_v56, %v2545_v18  ;;  %v2547_v22 = vpop.f32.mrb[57].mxu1  ;;  %v2036_v25 = vpop.f32.mrb[58].mxu0  ;;  %v4152_v21 = vld [vmem:[%s7027_s0 + $0x6c0] ss:$8 sps:$4 sm:$0xff]  }
 0x16b   :  { %v2548_v26 = vpop.f32.mrb[58].mxu1  ;;  %4379 = vtanh.f32 %v2034_v19  ;;  %v2037_v29 = vadd.f32 %v5217_v56, %v2036_v25  ;;  %v2038_v31 = vpop.f32.mrb[59].mxu0  ;;  %v4155_v25 = vld [vmem:[%s7027_s0 + $0x6d4] ss:$8 sps:$4 sm:$0xff]  }
 0x16c   :  { %v2549_v30 = vadd.f32 %v5217_v56, %v2548_v26  ;;  %v2550_v32 = vpop.f32.mrb[59].mxu1  ;;  %4381 = vtanh.f32 %v2546_v20  ;;  %v4151_v20 = vld [vmem:[%s7027_s0 + $0x2c0] ss:$8 sps:$4 sm:$0xff]  }
 0x16d   :  { %v4372_v33 = vpop.eup %4371  ;;  %4383 = vtanh.f32 %v2037_v29  ;;  %2248 = vmatmul.mubr.bf16.gmra.mrb[164].mxu0 %v4133_v23  ;;  %2760 = vmatmul.mubr.bf16.gmra.mrb[164].mxu1 %v4134_v24  ;;  %v4153_v24 = vld [vmem:[%s7027_s0 + $0x2d4] ss:$8 sps:$4 sm:$0xff]  }
 0x16e   :  { %v4374_v34 = vpop.eup %4373  ;;  %3227 = vst.msk [vmem:[%s7029_s3 + $0xd0] sm:$0xff] %vm3200_vm1, %v4372_v33  ;;  %4385 = vtanh.f32 %v2549_v30  ;;  %3769 = vmatprep.mubr.msk.bf16.mxu0 %vm1502_vm0, %v4135_v27  ;;  %3833 = vmatprep.mubr.msk.bf16.mxu1 %vm1502_vm0, %v4137_v28 }
 0x16f   :  { %v4376_v35 = vpop.eup %4375  ;;  %3355 = vst.msk [vmem:[%s7029_s3 + $0x4d0] sm:$0xff] %vm3200_vm1, %v4374_v34 }
 0x170   :  { %v4378_v36 = vpop.eup %4377  ;;  %3228 = vst.msk [vmem:[%s7029_s3 + $0xd8] sm:$0xff] %vm3200_vm1, %v4376_v35  ;;  %v2041_v37 = vpop.f32.mrb[60].mxu0 }
 0x171   :  { %v2553_v38 = vpop.f32.mrb[60].mxu1  ;;  %3356 = vst.msk [vmem:[%s7029_s3 + $0x4d8] sm:$0xff] %vm3200_vm1, %v4378_v36  ;;  %v2042_v39 = vadd.f32 %v5217_v56, %v2041_v37  ;;  %v2043_v41 = vpop.f32.mrb[61].mxu0 }
 0x172   :  { %v2554_v40 = vadd.f32 %v5217_v56, %v2553_v38  ;;  %v2555_v42 = vpop.f32.mrb[61].mxu1  ;;  %v2044_v45 = vpop.f32.mrb[62].mxu0  ;;  %v4158_v41 = vld [vmem:[%s7027_s0 + $0x6d0] ss:$8 sps:$4 sm:$0xff]  }
 0x173   :  { %v2556_v46 = vpop.f32.mrb[62].mxu1  ;;  %4387 = vtanh.f32 %v2042_v39  ;;  %v2045_v49 = vadd.f32 %v5217_v56, %v2044_v45  ;;  %v2046_v51 = vpop.f32.mrb[63].mxu0  ;;  %v4161_v45 = vld [vmem:[%s7027_s0 + $0x6e4] ss:$8 sps:$4 sm:$0xff]  }
 0x174   :  { %v2557_v50 = vadd.f32 %v5217_v56, %v2556_v46  ;;  %v2558_v52 = vpop.f32.mrb[63].mxu1  ;;  %4389 = vtanh.f32 %v2554_v40  ;;  %v4157_v40 = vld [vmem:[%s7027_s0 + $0x2d0] ss:$8 sps:$4 sm:$0xff]  }
 0x175   :  { %v4380_v53 = vpop.eup %4379  ;;  %4391 = vtanh.f32 %v2045_v49  ;;  %2256 = vmatmul.mubr.bf16.gmra.mrb[168].mxu0 %v4139_v43  ;;  %2768 = vmatmul.mubr.bf16.gmra.mrb[168].mxu1 %v4140_v44  ;;  %v4159_v44 = vld [vmem:[%s7027_s0 + $0x2e4] ss:$8 sps:$4 sm:$0xff]  }
 0x176   :  { %v4382_v54 = vpop.eup %4381  ;;  %3229 = vst.msk [vmem:[%s7029_s3 + $0xe0] sm:$0xff] %vm3200_vm1, %v4380_v53  ;;  %4393 = vtanh.f32 %v2557_v50  ;;  %3770 = vmatprep.mubr.msk.bf16.mxu0 %vm1502_vm0, %v4141_v47  ;;  %3834 = vmatprep.mubr.msk.bf16.mxu1 %vm1502_vm0, %v4143_v48 }
 0x177   :  { %v4384_v55 = vpop.eup %4383  ;;  %3357 = vst.msk [vmem:[%s7029_s3 + $0x4e0] sm:$0xff] %vm3200_vm1, %v4382_v54 }
 0x178   :  { %v4386_v57 = vpop.eup %4385  ;;  %3230 = vst.msk [vmem:[%s7029_s3 + $0xe8] sm:$0xff] %vm3200_vm1, %v4384_v55  ;;  %v2049_v58 = vpop.f32.mrb[64].mxu0 }
 0x179   :  { %v2561_v59 = vpop.f32.mrb[64].mxu1  ;;  %3358 = vst.msk [vmem:[%s7029_s3 + $0x4e8] sm:$0xff] %vm3200_vm1, %v4386_v57  ;;  %v2050_v60 = vadd.f32 %v5217_v56, %v2049_v58  ;;  %v2051_v63 = vpop.f32.mrb[65].mxu0  ;;  %v4147_v56 = vld [vmem:[%s7027_s0 + $0x2c4] ss:$8 sps:$4 sm:$0xff]  }
 0x17a   :  { %v2562_v62 = vadd.f32 %v5753_v61, %v2561_v59  ;;  %v2563_v0 = vpop.f32.mrb[65].mxu1  ;;  %v2052_v3 = vpop.f32.mrb[66].mxu0  ;;  %v4164_v63 = vld [vmem:[%s7027_s0 + $0x6e0] ss:$8 sps:$4 sm:$0xff]  }
 0x17b   :  { %v2564_v4 = vpop.f32.mrb[66].mxu1  ;;  %4395 = vtanh.f32 %v2050_v60  ;;  %v2053_v6 = vadd.f32 %v5753_v61, %v2052_v3  ;;  %v2054_v8 = vpop.f32.mrb[67].mxu0  ;;  %v4167_v3 = vld [vmem:[%s7027_s0 + $0x6f4] ss:$8 sps:$4 sm:$0xff]  }
 0x17c   :  { %v2565_v7 = vadd.f32 %v5753_v61, %v2564_v4  ;;  %v2566_v9 = vpop.f32.mrb[67].mxu1  ;;  %4397 = vtanh.f32 %v2562_v62  ;;  %v4163_v62 = vld [vmem:[%s7027_s0 + $0x2e0] ss:$8 sps:$4 sm:$0xff]  }
 0x17d   :  { %v4388_v10 = vpop.eup %4387  ;;  %4399 = vtanh.f32 %v2053_v6  ;;  %2264 = vmatmul.mubr.bf16.gmra.mrb[172].mxu0 %v4145_v1  ;;  %2776 = vmatmul.mubr.bf16.gmra.mrb[172].mxu1 %v4146_v2  ;;  %v4165_v2 = vld [vmem:[%s7027_s0 + $0x2f4] ss:$8 sps:$4 sm:$0xff]  }
 0x17e   :  { %v4390_v11 = vpop.eup %4389  ;;  %3231 = vst.msk [vmem:[%s7029_s3 + $0xf0] sm:$0xff] %vm3200_vm1, %v4388_v10  ;;  %4401 = vtanh.f32 %v2565_v7  ;;  %3771 = vmatprep.mubr.msk.bf16.mxu0 %vm1502_vm0, %v4147_v56  ;;  %3835 = vmatprep.mubr.msk.bf16.mxu1 %vm1502_vm0, %v4149_v5 }
 0x17f   :  { %v4392_v12 = vpop.eup %4391  ;;  %3359 = vst.msk [vmem:[%s7029_s3 + $0x4f0] sm:$0xff] %vm3200_vm1, %v4390_v11 }
 0x180   :  { %v4394_v13 = vpop.eup %4393  ;;  %3232 = vst.msk [vmem:[%s7029_s3 + $0xf8] sm:$0xff] %vm3200_vm1, %v4392_v12  ;;  %v2057_v14 = vpop.f32.mrb[68].mxu0 }
 0x181   :  { %v2569_v15 = vpop.f32.mrb[68].mxu1  ;;  %3360 = vst.msk [vmem:[%s7029_s3 + $0x4f8] sm:$0xff] %vm3200_vm1, %v4394_v13  ;;  %v2058_v16 = vadd.f32 %v5753_v61, %v2057_v14  ;;  %v2059_v18 = vpop.f32.mrb[69].mxu0 }
 0x182   :  { %v2570_v17 = vadd.f32 %v5753_v61, %v2569_v15  ;;  %v2571_v19 = vpop.f32.mrb[69].mxu1  ;;  %v2060_v22 = vpop.f32.mrb[70].mxu0  ;;  %v4170_v18 = vld [vmem:[%s7027_s0 + $0x6f0] ss:$8 sps:$4 sm:$0xff]  }
 0x183   :  { %v2572_v23 = vpop.f32.mrb[70].mxu1  ;;  %4403 = vtanh.f32 %v2058_v16  ;;  %v2061_v26 = vadd.f32 %v5753_v61, %v2060_v22  ;;  %v2062_v28 = vpop.f32.mrb[71].mxu0  ;;  %v4173_v22 = vld [vmem:[%s7027_s0 + $0x704] ss:$8 sps:$4 sm:$0xff]  }
 0x184   :  { %v2573_v27 = vadd.f32 %v5753_v61, %v2572_v23  ;;  %v2574_v29 = vpop.f32.mrb[71].mxu1  ;;  %4405 = vtanh.f32 %v2570_v17  ;;  %v4169_v17 = vld [vmem:[%s7027_s0 + $0x2f0] ss:$8 sps:$4 sm:$0xff]  }
 0x185   :  { %v4396_v30 = vpop.eup %4395  ;;  %4407 = vtanh.f32 %v2061_v26  ;;  %2272 = vmatmul.mubr.bf16.gmra.mrb[176].mxu0 %v4151_v20  ;;  %2784 = vmatmul.mubr.bf16.gmra.mrb[176].mxu1 %v4152_v21  ;;  %v4171_v21 = vld [vmem:[%s7027_s0 + $0x304] ss:$8 sps:$4 sm:$0xff]  }
 0x186   :  { %v4398_v31 = vpop.eup %4397  ;;  %3233 = vst.msk [vmem:[%s7029_s3 + $0x100] sm:$0xff] %vm3200_vm1, %v4396_v30  ;;  %4409 = vtanh.f32 %v2573_v27  ;;  %3772 = vmatprep.mubr.msk.bf16.mxu0 %vm1502_vm0, %v4153_v24  ;;  %3836 = vmatprep.mubr.msk.bf16.mxu1 %vm1502_vm0, %v4155_v25 }
 0x187   :  { %v4400_v32 = vpop.eup %4399  ;;  %3361 = vst.msk [vmem:[%s7029_s3 + $0x500] sm:$0xff] %vm3200_vm1, %v4398_v31 }
 0x188   :  { %v4402_v33 = vpop.eup %4401  ;;  %3234 = vst.msk [vmem:[%s7029_s3 + $0x108] sm:$0xff] %vm3200_vm1, %v4400_v32  ;;  %v2065_v34 = vpop.f32.mrb[72].mxu0 }
 0x189   :  { %v2577_v35 = vpop.f32.mrb[72].mxu1  ;;  %3362 = vst.msk [vmem:[%s7029_s3 + $0x508] sm:$0xff] %vm3200_vm1, %v4402_v33  ;;  %v2066_v36 = vadd.f32 %v5753_v61, %v2065_v34  ;;  %v2067_v38 = vpop.f32.mrb[73].mxu0 }
 0x18a   :  { %v2578_v37 = vadd.f32 %v5753_v61, %v2577_v35  ;;  %v2579_v39 = vpop.f32.mrb[73].mxu1  ;;  %v2068_v42 = vpop.f32.mrb[74].mxu0  ;;  %v4176_v38 = vld [vmem:[%s7027_s0 + $0x700] ss:$8 sps:$4 sm:$0xff]  }
 0x18b   :  { %v2580_v43 = vpop.f32.mrb[74].mxu1  ;;  %4411 = vtanh.f32 %v2066_v36  ;;  %v2069_v46 = vadd.f32 %v5753_v61, %v2068_v42  ;;  %v2070_v48 = vpop.f32.mrb[75].mxu0  ;;  %v4179_v42 = vld [vmem:[%s7027_s0 + $0x714] ss:$8 sps:$4 sm:$0xff]  }
 0x18c   :  { %v2581_v47 = vadd.f32 %v5753_v61, %v2580_v43  ;;  %v2582_v49 = vpop.f32.mrb[75].mxu1  ;;  %4413 = vtanh.f32 %v2578_v37  ;;  %v4175_v37 = vld [vmem:[%s7027_s0 + $0x300] ss:$8 sps:$4 sm:$0xff]  }
 0x18d   :  { %v4404_v50 = vpop.eup %4403  ;;  %4415 = vtanh.f32 %v2069_v46  ;;  %2280 = vmatmul.mubr.bf16.gmra.mrb[180].mxu0 %v4157_v40  ;;  %2792 = vmatmul.mubr.bf16.gmra.mrb[180].mxu1 %v4158_v41  ;;  %v4177_v41 = vld [vmem:[%s7027_s0 + $0x314] ss:$8 sps:$4 sm:$0xff]  }
 0x18e   :  { %v4406_v51 = vpop.eup %4405  ;;  %3235 = vst.msk [vmem:[%s7029_s3 + $0x110] sm:$0xff] %vm3200_vm1, %v4404_v50  ;;  %4417 = vtanh.f32 %v2581_v47  ;;  %3773 = vmatprep.mubr.msk.bf16.mxu0 %vm1502_vm0, %v4159_v44  ;;  %3837 = vmatprep.mubr.msk.bf16.mxu1 %vm1502_vm0, %v4161_v45 }
 0x18f   :  { %v4408_v52 = vpop.eup %4407  ;;  %3363 = vst.msk [vmem:[%s7029_s3 + $0x510] sm:$0xff] %vm3200_vm1, %v4406_v51 }
 0x190   :  { %v4410_v53 = vpop.eup %4409  ;;  %3236 = vst.msk [vmem:[%s7029_s3 + $0x118] sm:$0xff] %vm3200_vm1, %v4408_v52  ;;  %v2073_v54 = vpop.f32.mrb[76].mxu0 }
 0x191   :  { %v2585_v55 = vpop.f32.mrb[76].mxu1  ;;  %3364 = vst.msk [vmem:[%s7029_s3 + $0x518] sm:$0xff] %vm3200_vm1, %v4410_v53  ;;  %v2074_v57 = vadd.f32 %v5753_v61, %v2073_v54  ;;  %v2075_v59 = vpop.f32.mrb[77].mxu0 }
 0x192   :  { %v2586_v58 = vadd.f32 %v5753_v61, %v2585_v55  ;;  %v2587_v60 = vpop.f32.mrb[77].mxu1  ;;  %v2076_v0 = vpop.f32.mrb[78].mxu0  ;;  %v4182_v59 = vld [vmem:[%s7027_s0 + $0x710] ss:$8 sps:$4 sm:$0xff]  }
 0x193   :  { %v2588_v1 = vpop.f32.mrb[78].mxu1  ;;  %4419 = vtanh.f32 %v2074_v57  ;;  %v2077_v4 = vadd.f32 %v5753_v61, %v2076_v0  ;;  %v2078_v5 = vpop.f32.mrb[79].mxu0  ;;  %v4185_v0 = vld [vmem:[%s7027_s0 + $0x724] ss:$8 sps:$4 sm:$0xff]  }
 0x194   :  { %v2589_v56 = vadd.f32 %v5753_v61, %v2588_v1  ;;  %v2590_v6 = vpop.f32.mrb[79].mxu1  ;;  %4421 = vtanh.f32 %v2586_v58  ;;  %v4181_v58 = vld [vmem:[%s7027_s0 + $0x310] ss:$8 sps:$4 sm:$0xff]  }
 0x195   :  { %v4412_v7 = vpop.eup %4411  ;;  %4423 = vtanh.f32 %v2077_v4  ;;  %2288 = vmatmul.mubr.bf16.gmra.mrb[184].mxu0 %v4163_v62  ;;  %2800 = vmatmul.mubr.bf16.gmra.mrb[184].mxu1 %v4164_v63  ;;  %v4183_v63 = vld [vmem:[%s7027_s0 + $0x324] ss:$8 sps:$4 sm:$0xff]  }
 0x196   :  { %v4414_v8 = vpop.eup %4413  ;;  %3237 = vst.msk [vmem:[%s7029_s3 + $0x120] sm:$0xff] %vm3200_vm1, %v4412_v7  ;;  %4425 = vtanh.f32 %v2589_v56  ;;  %3774 = vmatprep.mubr.msk.bf16.mxu0 %vm1502_vm0, %v4165_v2  ;;  %3838 = vmatprep.mubr.msk.bf16.mxu1 %vm1502_vm0, %v4167_v3 }
 0x197   :  { %v4416_v9 = vpop.eup %4415  ;;  %3365 = vst.msk [vmem:[%s7029_s3 + $0x520] sm:$0xff] %vm3200_vm1, %v4414_v8 }
 0x198   :  { %v4418_v10 = vpop.eup %4417  ;;  %3238 = vst.msk [vmem:[%s7029_s3 + $0x128] sm:$0xff] %vm3200_vm1, %v4416_v9  ;;  %v2081_v11 = vpop.f32.mrb[80].mxu0 }
 0x199   :  { %v2593_v12 = vpop.f32.mrb[80].mxu1  ;;  %3366 = vst.msk [vmem:[%s7029_s3 + $0x528] sm:$0xff] %vm3200_vm1, %v4418_v10  ;;  %v2082_v13 = vadd.f32 %v5753_v61, %v2081_v11  ;;  %v2083_v15 = vpop.f32.mrb[81].mxu0 }
 0x19a   :  { %v2594_v14 = vadd.f32 %v5753_v61, %v2593_v12  ;;  %v2595_v16 = vpop.f32.mrb[81].mxu1  ;;  %v2084_v19 = vpop.f32.mrb[82].mxu0  ;;  %v4188_v15 = vld [vmem:[%s7027_s0 + $0x720] ss:$8 sps:$4 sm:$0xff]  }
 0x19b   :  { %v2596_v20 = vpop.f32.mrb[82].mxu1  ;;  %4427 = vtanh.f32 %v2082_v13  ;;  %v2085_v23 = vadd.f32 %v5753_v61, %v2084_v19  ;;  %v2086_v25 = vpop.f32.mrb[83].mxu0  ;;  %v4191_v19 = vld [vmem:[%s7027_s0 + $0x734] ss:$8 sps:$4 sm:$0xff]  }
 0x19c   :  { %v2597_v24 = vadd.f32 %v5753_v61, %v2596_v20  ;;  %v2598_v26 = vpop.f32.mrb[83].mxu1  ;;  %4429 = vtanh.f32 %v2594_v14  ;;  %v4187_v14 = vld [vmem:[%s7027_s0 + $0x320] ss:$8 sps:$4 sm:$0xff]  }
 0x19d   :  { %v4420_v27 = vpop.eup %4419  ;;  %4431 = vtanh.f32 %v2085_v23  ;;  %2296 = vmatmul.mubr.bf16.gmra.mrb[188].mxu0 %v4169_v17  ;;  %2808 = vmatmul.mubr.bf16.gmra.mrb[188].mxu1 %v4170_v18  ;;  %v4189_v18 = vld [vmem:[%s7027_s0 + $0x334] ss:$8 sps:$4 sm:$0xff]  }
 0x19e   :  { %v4422_v28 = vpop.eup %4421  ;;  %3239 = vst.msk [vmem:[%s7029_s3 + $0x130] sm:$0xff] %vm3200_vm1, %v4420_v27  ;;  %4433 = vtanh.f32 %v2597_v24  ;;  %3775 = vmatprep.mubr.msk.bf16.mxu0 %vm1502_vm0, %v4171_v21  ;;  %3839 = vmatprep.mubr.msk.bf16.mxu1 %vm1502_vm0, %v4173_v22 }
 0x19f   :  { %v4424_v29 = vpop.eup %4423  ;;  %3367 = vst.msk [vmem:[%s7029_s3 + $0x530] sm:$0xff] %vm3200_vm1, %v4422_v28 }
 0x1a0   :  { %v4426_v30 = vpop.eup %4425  ;;  %3240 = vst.msk [vmem:[%s7029_s3 + $0x138] sm:$0xff] %vm3200_vm1, %v4424_v29  ;;  %v2089_v31 = vpop.f32.mrb[84].mxu0 }
 0x1a1   :  { %v2601_v32 = vpop.f32.mrb[84].mxu1  ;;  %3368 = vst.msk [vmem:[%s7029_s3 + $0x538] sm:$0xff] %vm3200_vm1, %v4426_v30  ;;  %v2090_v33 = vadd.f32 %v5753_v61, %v2089_v31  ;;  %v2091_v35 = vpop.f32.mrb[85].mxu0 }
 0x1a2   :  { %v2602_v34 = vadd.f32 %v5753_v61, %v2601_v32  ;;  %v2603_v36 = vpop.f32.mrb[85].mxu1  ;;  %v2092_v39 = vpop.f32.mrb[86].mxu0  ;;  %v4194_v35 = vld [vmem:[%s7027_s0 + $0x730] ss:$8 sps:$4 sm:$0xff]  }
 0x1a3   :  { %v2604_v40 = vpop.f32.mrb[86].mxu1  ;;  %4435 = vtanh.f32 %v2090_v33  ;;  %v2093_v43 = vadd.f32 %v5753_v61, %v2092_v39  ;;  %v2094_v45 = vpop.f32.mrb[87].mxu0  ;;  %v4197_v39 = vld [vmem:[%s7027_s0 + $0x744] ss:$8 sps:$4 sm:$0xff]  }
 0x1a4   :  { %v2605_v44 = vadd.f32 %v5753_v61, %v2604_v40  ;;  %v2606_v46 = vpop.f32.mrb[87].mxu1  ;;  %4437 = vtanh.f32 %v2602_v34  ;;  %v4193_v34 = vld [vmem:[%s7027_s0 + $0x330] ss:$8 sps:$4 sm:$0xff]  }
 0x1a5   :  { %v4428_v47 = vpop.eup %4427  ;;  %4439 = vtanh.f32 %v2093_v43  ;;  %2304 = vmatmul.mubr.bf16.gmra.mrb[192].mxu0 %v4175_v37  ;;  %2816 = vmatmul.mubr.bf16.gmra.mrb[192].mxu1 %v4176_v38  ;;  %v4195_v38 = vld [vmem:[%s7027_s0 + $0x344] ss:$8 sps:$4 sm:$0xff]  }
 0x1a6   :  { %v4430_v48 = vpop.eup %4429  ;;  %3241 = vst.msk [vmem:[%s7029_s3 + $0x140] sm:$0xff] %vm3200_vm1, %v4428_v47  ;;  %4441 = vtanh.f32 %v2605_v44  ;;  %3776 = vmatprep.mubr.msk.bf16.mxu0 %vm1502_vm0, %v4177_v41  ;;  %3840 = vmatprep.mubr.msk.bf16.mxu1 %vm1502_vm0, %v4179_v42 }
 0x1a7   :  { %v4432_v49 = vpop.eup %4431  ;;  %3369 = vst.msk [vmem:[%s7029_s3 + $0x540] sm:$0xff] %vm3200_vm1, %v4430_v48 }
 0x1a8   :  { %v4434_v50 = vpop.eup %4433  ;;  %3242 = vst.msk [vmem:[%s7029_s3 + $0x148] sm:$0xff] %vm3200_vm1, %v4432_v49  ;;  %v2097_v51 = vpop.f32.mrb[88].mxu0 }
 0x1a9   :  { %v2609_v52 = vpop.f32.mrb[88].mxu1  ;;  %3370 = vst.msk [vmem:[%s7029_s3 + $0x548] sm:$0xff] %vm3200_vm1, %v4434_v50  ;;  %v2098_v53 = vadd.f32 %v5753_v61, %v2097_v51  ;;  %v2099_v55 = vpop.f32.mrb[89].mxu0 }
 0x1aa   :  { %v2610_v54 = vadd.f32 %v5753_v61, %v2609_v52  ;;  %v2611_v57 = vpop.f32.mrb[89].mxu1  ;;  %v2100_v60 = vpop.f32.mrb[90].mxu0  ;;  %v4200_v55 = vld [vmem:[%s7027_s0 + $0x740] ss:$8 sps:$4 sm:$0xff]  }
 0x1ab   :  { %v2612_v62 = vpop.f32.mrb[90].mxu1  ;;  %4443 = vtanh.f32 %v2098_v53  ;;  %v2101_v1 = vadd.f32 %v5753_v61, %v2100_v60  ;;  %v2102_v3 = vpop.f32.mrb[91].mxu0  ;;  %v4203_v60 = vld [vmem:[%s7027_s0 + $0x754] ss:$8 sps:$4 sm:$0xff]  }
 0x1ac   :  { %v2613_v2 = vadd.f32 %v5753_v61, %v2612_v62  ;;  %v2614_v4 = vpop.f32.mrb[91].mxu1  ;;  %4445 = vtanh.f32 %v2610_v54  ;;  %v4199_v54 = vld [vmem:[%s7027_s0 + $0x340] ss:$8 sps:$4 sm:$0xff]  }
 0x1ad   :  { %v4436_v56 = vpop.eup %4435  ;;  %4447 = vtanh.f32 %v2101_v1  ;;  %2312 = vmatmul.mubr.bf16.gmra.mrb[196].mxu0 %v4181_v58  ;;  %2824 = vmatmul.mubr.bf16.gmra.mrb[196].mxu1 %v4182_v59  ;;  %v4201_v59 = vld [vmem:[%s7027_s0 + $0x354] ss:$8 sps:$4 sm:$0xff]  }
 0x1ae   :  { %v4438_v5 = vpop.eup %4437  ;;  %3243 = vst.msk [vmem:[%s7029_s3 + $0x150] sm:$0xff] %vm3200_vm1, %v4436_v56  ;;  %4449 = vtanh.f32 %v2613_v2  ;;  %3777 = vmatprep.mubr.msk.bf16.mxu0 %vm1502_vm0, %v4183_v63  ;;  %3841 = vmatprep.mubr.msk.bf16.mxu1 %vm1502_vm0, %v4185_v0 }
 0x1af   :  { %v4440_v6 = vpop.eup %4439  ;;  %3371 = vst.msk [vmem:[%s7029_s3 + $0x550] sm:$0xff] %vm3200_vm1, %v4438_v5 }
 0x1b0   :  { %v4442_v7 = vpop.eup %4441  ;;  %3244 = vst.msk [vmem:[%s7029_s3 + $0x158] sm:$0xff] %vm3200_vm1, %v4440_v6  ;;  %v2105_v8 = vpop.f32.mrb[92].mxu0 }
 0x1b1   :  { %v2617_v9 = vpop.f32.mrb[92].mxu1  ;;  %3372 = vst.msk [vmem:[%s7029_s3 + $0x558] sm:$0xff] %vm3200_vm1, %v4442_v7  ;;  %v2106_v10 = vadd.f32 %v5753_v61, %v2105_v8  ;;  %v2107_v12 = vpop.f32.mrb[93].mxu0 }
 0x1b2   :  { %v2618_v11 = vadd.f32 %v5753_v61, %v2617_v9  ;;  %v2619_v13 = vpop.f32.mrb[93].mxu1  ;;  %v2108_v16 = vpop.f32.mrb[94].mxu0  ;;  %v4206_v12 = vld [vmem:[%s7027_s0 + $0x750] ss:$8 sps:$4 sm:$0xff]  }
 0x1b3   :  { %v2620_v17 = vpop.f32.mrb[94].mxu1  ;;  %4451 = vtanh.f32 %v2106_v10  ;;  %v2109_v20 = vadd.f32 %v5753_v61, %v2108_v16  ;;  %v2110_v22 = vpop.f32.mrb[95].mxu0  ;;  %v4209_v16 = vld [vmem:[%s7027_s0 + $0x764] ss:$8 sps:$4 sm:$0xff]  }
 0x1b4   :  { %v2621_v21 = vadd.f32 %v5753_v61, %v2620_v17  ;;  %v2622_v23 = vpop.f32.mrb[95].mxu1  ;;  %4453 = vtanh.f32 %v2618_v11  ;;  %v4205_v11 = vld [vmem:[%s7027_s0 + $0x350] ss:$8 sps:$4 sm:$0xff]  }
 0x1b5   :  { %v4444_v24 = vpop.eup %4443  ;;  %4455 = vtanh.f32 %v2109_v20  ;;  %2320 = vmatmul.mubr.bf16.gmra.mrb[200].mxu0 %v4187_v14  ;;  %2832 = vmatmul.mubr.bf16.gmra.mrb[200].mxu1 %v4188_v15  ;;  %v4207_v15 = vld [vmem:[%s7027_s0 + $0x364] ss:$8 sps:$4 sm:$0xff]  }
 0x1b6   :  { %v4446_v25 = vpop.eup %4445  ;;  %3245 = vst.msk [vmem:[%s7029_s3 + $0x160] sm:$0xff] %vm3200_vm1, %v4444_v24  ;;  %4457 = vtanh.f32 %v2621_v21  ;;  %3778 = vmatprep.mubr.msk.bf16.mxu0 %vm1502_vm0, %v4189_v18  ;;  %3842 = vmatprep.mubr.msk.bf16.mxu1 %vm1502_vm0, %v4191_v19 }
 0x1b7   :  { %v4448_v26 = vpop.eup %4447  ;;  %3373 = vst.msk [vmem:[%s7029_s3 + $0x560] sm:$0xff] %vm3200_vm1, %v4446_v25 }
 0x1b8   :  { %v4450_v27 = vpop.eup %4449  ;;  %3246 = vst.msk [vmem:[%s7029_s3 + $0x168] sm:$0xff] %vm3200_vm1, %v4448_v26  ;;  %v2113_v28 = vpop.f32.mrb[96].mxu0 }
 0x1b9   :  { %v2625_v29 = vpop.f32.mrb[96].mxu1  ;;  %3374 = vst.msk [vmem:[%s7029_s3 + $0x568] sm:$0xff] %vm3200_vm1, %v4450_v27  ;;  %v2114_v30 = vadd.f32 %v5753_v61, %v2113_v28  ;;  %v2115_v32 = vpop.f32.mrb[97].mxu0 }
 0x1ba   :  { %v2626_v31 = vadd.f32 %v5753_v61, %v2625_v29  ;;  %v2627_v33 = vpop.f32.mrb[97].mxu1  ;;  %v2116_v36 = vpop.f32.mrb[98].mxu0  ;;  %v4212_v32 = vld [vmem:[%s7027_s0 + $0x760] ss:$8 sps:$4 sm:$0xff]  }
 0x1bb   :  { %v2628_v37 = vpop.f32.mrb[98].mxu1  ;;  %4459 = vtanh.f32 %v2114_v30  ;;  %v2117_v40 = vadd.f32 %v5753_v61, %v2116_v36  ;;  %v2118_v42 = vpop.f32.mrb[99].mxu0  ;;  %v4215_v36 = vld [vmem:[%s7027_s0 + $0x774] ss:$8 sps:$4 sm:$0xff]  }
 0x1bc   :  { %v2629_v41 = vadd.f32 %v5753_v61, %v2628_v37  ;;  %v2630_v43 = vpop.f32.mrb[99].mxu1  ;;  %4461 = vtanh.f32 %v2626_v31  ;;  %v4211_v31 = vld [vmem:[%s7027_s0 + $0x360] ss:$8 sps:$4 sm:$0xff]  }
 0x1bd   :  { %v4452_v44 = vpop.eup %4451  ;;  %4463 = vtanh.f32 %v2117_v40  ;;  %2328 = vmatmul.mubr.bf16.gmra.mrb[204].mxu0 %v4193_v34  ;;  %2840 = vmatmul.mubr.bf16.gmra.mrb[204].mxu1 %v4194_v35  ;;  %v4213_v35 = vld [vmem:[%s7027_s0 + $0x374] ss:$8 sps:$4 sm:$0xff]  }
 0x1be   :  { %v4454_v45 = vpop.eup %4453  ;;  %3247 = vst.msk [vmem:[%s7029_s3 + $0x170] sm:$0xff] %vm3200_vm1, %v4452_v44  ;;  %4465 = vtanh.f32 %v2629_v41  ;;  %3779 = vmatprep.mubr.msk.bf16.mxu0 %vm1502_vm0, %v4195_v38  ;;  %3843 = vmatprep.mubr.msk.bf16.mxu1 %vm1502_vm0, %v4197_v39 }
 0x1bf   :  { %v4456_v46 = vpop.eup %4455  ;;  %3375 = vst.msk [vmem:[%s7029_s3 + $0x570] sm:$0xff] %vm3200_vm1, %v4454_v45 }
 0x1c0   :  { %v4458_v47 = vpop.eup %4457  ;;  %3248 = vst.msk [vmem:[%s7029_s3 + $0x178] sm:$0xff] %vm3200_vm1, %v4456_v46  ;;  %v2121_v48 = vpop.f32.mrb[100].mxu0 }
 0x1c1   :  { %v2633_v49 = vpop.f32.mrb[100].mxu1  ;;  %3376 = vst.msk [vmem:[%s7029_s3 + $0x578] sm:$0xff] %vm3200_vm1, %v4458_v47  ;;  %v2122_v50 = vadd.f32 %v5753_v61, %v2121_v48  ;;  %v2123_v52 = vpop.f32.mrb[101].mxu0 }
 0x1c2   :  { %v2634_v51 = vadd.f32 %v5753_v61, %v2633_v49  ;;  %v2635_v53 = vpop.f32.mrb[101].mxu1  ;;  %v2124_v57 = vpop.f32.mrb[102].mxu0  ;;  %v4218_v52 = vld [vmem:[%s7027_s0 + $0x770] ss:$8 sps:$4 sm:$0xff]  }
 0x1c3   :  { %v2636_v58 = vpop.f32.mrb[102].mxu1  ;;  %4467 = vtanh.f32 %v2122_v50  ;;  %v2125_v62 = vadd.f32 %v5753_v61, %v2124_v57  ;;  %v2126_v0 = vpop.f32.mrb[103].mxu0  ;;  %v4221_v57 = vld [vmem:[%s7027_s0 + $0x784] ss:$8 sps:$4 sm:$0xff]  }
 0x1c4   :  { %v2637_v63 = vadd.f32 %v5753_v61, %v2636_v58  ;;  %v2638_v1 = vpop.f32.mrb[103].mxu1  ;;  %4469 = vtanh.f32 %v2634_v51  ;;  %v4217_v51 = vld [vmem:[%s7027_s0 + $0x370] ss:$8 sps:$4 sm:$0xff]  }
 0x1c5   :  { %v4460_v2 = vpop.eup %4459  ;;  %4471 = vtanh.f32 %v2125_v62  ;;  %2336 = vmatmul.mubr.bf16.gmra.mrb[208].mxu0 %v4199_v54  ;;  %2848 = vmatmul.mubr.bf16.gmra.mrb[208].mxu1 %v4200_v55  ;;  %v4219_v55 = vld [vmem:[%s7027_s0 + $0x384] ss:$8 sps:$4 sm:$0xff]  }
 0x1c6   :  { %v4462_v3 = vpop.eup %4461  ;;  %3249 = vst.msk [vmem:[%s7029_s3 + $0x180] sm:$0xff] %vm3200_vm1, %v4460_v2  ;;  %4473 = vtanh.f32 %v2637_v63  ;;  %3780 = vmatprep.mubr.msk.bf16.mxu0 %vm1502_vm0, %v4201_v59  ;;  %3844 = vmatprep.mubr.msk.bf16.mxu1 %vm1502_vm0, %v4203_v60 }
 0x1c7   :  { %v4464_v4 = vpop.eup %4463  ;;  %3377 = vst.msk [vmem:[%s7029_s3 + $0x580] sm:$0xff] %vm3200_vm1, %v4462_v3 }
 0x1c8   :  { %v4466_v56 = vpop.eup %4465  ;;  %3250 = vst.msk [vmem:[%s7029_s3 + $0x188] sm:$0xff] %vm3200_vm1, %v4464_v4  ;;  %v2129_v5 = vpop.f32.mrb[104].mxu0 }
 0x1c9   :  { %v2641_v6 = vpop.f32.mrb[104].mxu1  ;;  %3378 = vst.msk [vmem:[%s7029_s3 + $0x588] sm:$0xff] %vm3200_vm1, %v4466_v56  ;;  %v2130_v7 = vadd.f32 %v5753_v61, %v2129_v5  ;;  %v2131_v9 = vpop.f32.mrb[105].mxu0 }
 0x1ca   :  { %v2642_v8 = vadd.f32 %v5753_v61, %v2641_v6  ;;  %v2643_v10 = vpop.f32.mrb[105].mxu1  ;;  %v2132_v13 = vpop.f32.mrb[106].mxu0  ;;  %v4224_v9 = vld [vmem:[%s7027_s0 + $0x780] ss:$8 sps:$4 sm:$0xff]  }
 0x1cb   :  { %v2644_v14 = vpop.f32.mrb[106].mxu1  ;;  %4475 = vtanh.f32 %v2130_v7  ;;  %v2133_v17 = vadd.f32 %v5753_v61, %v2132_v13  ;;  %v2134_v19 = vpop.f32.mrb[107].mxu0  ;;  %v4227_v13 = vld [vmem:[%s7027_s0 + $0x794] ss:$8 sps:$4 sm:$0xff]  }
 0x1cc   :  { %v2645_v18 = vadd.f32 %v5753_v61, %v2644_v14  ;;  %v2646_v20 = vpop.f32.mrb[107].mxu1  ;;  %4477 = vtanh.f32 %v2642_v8  ;;  %v4223_v8 = vld [vmem:[%s7027_s0 + $0x380] ss:$8 sps:$4 sm:$0xff]  }
 0x1cd   :  { %v4468_v21 = vpop.eup %4467  ;;  %4479 = vtanh.f32 %v2133_v17  ;;  %2344 = vmatmul.mubr.bf16.gmra.mrb[212].mxu0 %v4205_v11  ;;  %2856 = vmatmul.mubr.bf16.gmra.mrb[212].mxu1 %v4206_v12  ;;  %v4225_v12 = vld [vmem:[%s7027_s0 + $0x394] ss:$8 sps:$4 sm:$0xff]  }
 0x1ce   :  { %v4470_v22 = vpop.eup %4469  ;;  %3251 = vst.msk [vmem:[%s7029_s3 + $0x190] sm:$0xff] %vm3200_vm1, %v4468_v21  ;;  %4481 = vtanh.f32 %v2645_v18  ;;  %3781 = vmatprep.mubr.msk.bf16.mxu0 %vm1502_vm0, %v4207_v15  ;;  %3845 = vmatprep.mubr.msk.bf16.mxu1 %vm1502_vm0, %v4209_v16 }
 0x1cf   :  { %v4472_v23 = vpop.eup %4471  ;;  %3379 = vst.msk [vmem:[%s7029_s3 + $0x590] sm:$0xff] %vm3200_vm1, %v4470_v22 }
 0x1d0   :  { %v4474_v24 = vpop.eup %4473  ;;  %3252 = vst.msk [vmem:[%s7029_s3 + $0x198] sm:$0xff] %vm3200_vm1, %v4472_v23  ;;  %v2137_v25 = vpop.f32.mrb[108].mxu0 }
 0x1d1   :  { %v2649_v26 = vpop.f32.mrb[108].mxu1  ;;  %3380 = vst.msk [vmem:[%s7029_s3 + $0x598] sm:$0xff] %vm3200_vm1, %v4474_v24  ;;  %v2138_v27 = vadd.f32 %v5753_v61, %v2137_v25  ;;  %v2139_v29 = vpop.f32.mrb[109].mxu0 }
 0x1d2   :  { %v2650_v28 = vadd.f32 %v5753_v61, %v2649_v26  ;;  %v2651_v30 = vpop.f32.mrb[109].mxu1  ;;  %v2140_v33 = vpop.f32.mrb[110].mxu0  ;;  %v4230_v29 = vld [vmem:[%s7027_s0 + $0x790] ss:$8 sps:$4 sm:$0xff]  }
 0x1d3   :  { %v2652_v34 = vpop.f32.mrb[110].mxu1  ;;  %4483 = vtanh.f32 %v2138_v27  ;;  %v2141_v37 = vadd.f32 %v5753_v61, %v2140_v33  ;;  %v2142_v39 = vpop.f32.mrb[111].mxu0  ;;  %v4233_v33 = vld [vmem:[%s7027_s0 + $0x7a4] ss:$8 sps:$4 sm:$0xff]  }
 0x1d4   :  { %v2653_v38 = vadd.f32 %v5753_v61, %v2652_v34  ;;  %v2654_v40 = vpop.f32.mrb[111].mxu1  ;;  %4485 = vtanh.f32 %v2650_v28  ;;  %v4229_v28 = vld [vmem:[%s7027_s0 + $0x390] ss:$8 sps:$4 sm:$0xff]  }
 0x1d5   :  { %v4476_v41 = vpop.eup %4475  ;;  %4487 = vtanh.f32 %v2141_v37  ;;  %2352 = vmatmul.mubr.bf16.gmra.mrb[216].mxu0 %v4211_v31  ;;  %2864 = vmatmul.mubr.bf16.gmra.mrb[216].mxu1 %v4212_v32  ;;  %v4231_v32 = vld [vmem:[%s7027_s0 + $0x3a4] ss:$8 sps:$4 sm:$0xff]  }
 0x1d6   :  { %v4478_v42 = vpop.eup %4477  ;;  %3253 = vst.msk [vmem:[%s7029_s3 + $0x1a0] sm:$0xff] %vm3200_vm1, %v4476_v41  ;;  %4489 = vtanh.f32 %v2653_v38  ;;  %3782 = vmatprep.mubr.msk.bf16.mxu0 %vm1502_vm0, %v4213_v35  ;;  %3846 = vmatprep.mubr.msk.bf16.mxu1 %vm1502_vm0, %v4215_v36 }
 0x1d7   :  { %v4480_v43 = vpop.eup %4479  ;;  %3381 = vst.msk [vmem:[%s7029_s3 + $0x5a0] sm:$0xff] %vm3200_vm1, %v4478_v42 }
 0x1d8   :  { %v4482_v44 = vpop.eup %4481  ;;  %3254 = vst.msk [vmem:[%s7029_s3 + $0x1a8] sm:$0xff] %vm3200_vm1, %v4480_v43  ;;  %v2145_v45 = vpop.f32.mrb[112].mxu0 }
 0x1d9   :  { %v2657_v46 = vpop.f32.mrb[112].mxu1  ;;  %3382 = vst.msk [vmem:[%s7029_s3 + $0x5a8] sm:$0xff] %vm3200_vm1, %v4482_v44  ;;  %v2146_v47 = vadd.f32 %v5753_v61, %v2145_v45  ;;  %v2147_v49 = vpop.f32.mrb[113].mxu0 }
 0x1da   :  { %v2658_v48 = vadd.f32 %v5753_v61, %v2657_v46  ;;  %v2659_v50 = vpop.f32.mrb[113].mxu1  ;;  %v2148_v53 = vpop.f32.mrb[114].mxu0  ;;  %v4236_v49 = vld [vmem:[%s7027_s0 + $0x7a0] ss:$8 sps:$4 sm:$0xff]  }
 0x1db   :  { %v2660_v54 = vpop.f32.mrb[114].mxu1  ;;  %4491 = vtanh.f32 %v2146_v47  ;;  %v2149_v58 = vadd.f32 %v5753_v61, %v2148_v53  ;;  %v2150_v60 = vpop.f32.mrb[115].mxu0  ;;  %v4239_v53 = vld [vmem:[%s7027_s0 + $0x7b4] ss:$8 sps:$4 sm:$0xff]  }
 0x1dc   :  { %v2661_v59 = vadd.f32 %v5753_v61, %v2660_v54  ;;  %v2662_v62 = vpop.f32.mrb[115].mxu1  ;;  %4493 = vtanh.f32 %v2658_v48  ;;  %v4235_v48 = vld [vmem:[%s7027_s0 + $0x3a0] ss:$8 sps:$4 sm:$0xff]  }
 0x1dd   :  { %v4484_v63 = vpop.eup %4483  ;;  %4495 = vtanh.f32 %v2149_v58  ;;  %2360 = vmatmul.mubr.bf16.gmra.mrb[220].mxu0 %v4217_v51  ;;  %2872 = vmatmul.mubr.bf16.gmra.mrb[220].mxu1 %v4218_v52  ;;  %v4237_v52 = vld [vmem:[%s7027_s0 + $0x3b4] ss:$8 sps:$4 sm:$0xff]  }
 0x1de   :  { %v4486_v0 = vpop.eup %4485  ;;  %3255 = vst.msk [vmem:[%s7029_s3 + $0x1b0] sm:$0xff] %vm3200_vm1, %v4484_v63  ;;  %4497 = vtanh.f32 %v2661_v59  ;;  %3783 = vmatprep.mubr.msk.bf16.mxu0 %vm1502_vm0, %v4219_v55  ;;  %3847 = vmatprep.mubr.msk.bf16.mxu1 %vm1502_vm0, %v4221_v57 }
 0x1df   :  { %v4488_v1 = vpop.eup %4487  ;;  %3383 = vst.msk [vmem:[%s7029_s3 + $0x5b0] sm:$0xff] %vm3200_vm1, %v4486_v0 }
 0x1e0   :  { %v4490_v2 = vpop.eup %4489  ;;  %3256 = vst.msk [vmem:[%s7029_s3 + $0x1b8] sm:$0xff] %vm3200_vm1, %v4488_v1  ;;  %v2153_v3 = vpop.f32.mrb[116].mxu0 }
 0x1e1   :  { %v2665_v4 = vpop.f32.mrb[116].mxu1  ;;  %3384 = vst.msk [vmem:[%s7029_s3 + $0x5b8] sm:$0xff] %vm3200_vm1, %v4490_v2  ;;  %v2154_v56 = vadd.f32 %v5753_v61, %v2153_v3  ;;  %v2155_v6 = vpop.f32.mrb[117].mxu0  ;;  %v6302_v3 = vld [vmem:[%s7028_s2] ss:$0 sm:$0xff] }
 0x1e2   :  { %v2666_v5 = vadd.f32 %v5753_v61, %v2665_v4  ;;  %v2667_v7 = vpop.f32.mrb[117].mxu1  ;;  %v2156_v10 = vpop.f32.mrb[118].mxu0  ;;  %v4241_v6 = vld [vmem:[%s7027_s0 + $0x3b0] ss:$8 sps:$4 sm:$0xff]  }
 0x1e3   :  { %v2668_v11 = vpop.f32.mrb[118].mxu1  ;;  %4499 = vtanh.f32 %v2154_v56  ;;  %v2157_v14 = vadd.f32 %v5753_v61, %v2156_v10  ;;  %v2158_v16 = vpop.f32.mrb[119].mxu0  ;;  %v4242_v7 = vld [vmem:[%s7027_s0 + $0x7b0] ss:$8 sps:$4 sm:$0xff]   ;;  %v4245_v10 = vld [vmem:[%s7027_s0 + $0x7c4] ss:$8 sps:$4 sm:$0xff]  }
 0x1e4   :  { %v2669_v15 = vadd.f32 %v5753_v61, %v2668_v11  ;;  %v2670_v17 = vpop.f32.mrb[119].mxu1  ;;  %4501 = vtanh.f32 %v2666_v5 }
 0x1e5   :  { %v4492_v18 = vpop.eup %4491  ;;  %4503 = vtanh.f32 %v2157_v14  ;;  %2368 = vmatmul.mubr.bf16.gmra.mrb[224].mxu0 %v4223_v8  ;;  %2880 = vmatmul.mubr.bf16.gmra.mrb[224].mxu1 %v4224_v9 }
 0x1e6   :  { %v4494_v19 = vpop.eup %4493  ;;  %3257 = vst.msk [vmem:[%s7029_s3 + $0x1c0] sm:$0xff] %vm3200_vm1, %v4492_v18  ;;  %4505 = vtanh.f32 %v2669_v15  ;;  %3784 = vmatprep.mubr.msk.bf16.mxu0 %vm1502_vm0, %v4225_v12  ;;  %3848 = vmatprep.mubr.msk.bf16.mxu1 %vm1502_vm0, %v4227_v13 }
 0x1e7   :  { %v4496_v20 = vpop.eup %4495  ;;  %3385 = vst.msk [vmem:[%s7029_s3 + $0x5c0] sm:$0xff] %vm3200_vm1, %v4494_v19 }
 0x1e8   :  { %v4498_v21 = vpop.eup %4497  ;;  %3258 = vst.msk [vmem:[%s7029_s3 + $0x1c8] sm:$0xff] %vm3200_vm1, %v4496_v20  ;;  %v2161_v22 = vpop.f32.mrb[120].mxu0 }
 0x1e9   :  { %v2673_v23 = vpop.f32.mrb[120].mxu1  ;;  %3386 = vst.msk [vmem:[%s7029_s3 + $0x5c8] sm:$0xff] %vm3200_vm1, %v4498_v21  ;;  %v2162_v24 = vadd.f32 %v5753_v61, %v2161_v22  ;;  %v2163_v26 = vpop.f32.mrb[121].mxu0 }
 0x1ea   :  { %v2674_v25 = vadd.f32 %v5753_v61, %v2673_v23  ;;  %v2675_v27 = vpop.f32.mrb[121].mxu1  ;;  %v2164_v30 = vpop.f32.mrb[122].mxu0  ;;  %v4248_v26 = vld [vmem:[%s7027_s0 + $0x7c0] ss:$8 sps:$4 sm:$0xff]  }
 0x1eb   :  { %v2676_v31 = vpop.f32.mrb[122].mxu1  ;;  %4507 = vtanh.f32 %v2162_v24  ;;  %v2165_v34 = vadd.f32 %v5753_v61, %v2164_v30  ;;  %v2166_v36 = vpop.f32.mrb[123].mxu0  ;;  %v4251_v30 = vld [vmem:[%s7027_s0 + $0x7d4] ss:$8 sps:$4 sm:$0xff]  }
 0x1ec   :  { %v2677_v35 = vadd.f32 %v5753_v61, %v2676_v31  ;;  %v2678_v37 = vpop.f32.mrb[123].mxu1  ;;  %4509 = vtanh.f32 %v2674_v25  ;;  %v4247_v25 = vld [vmem:[%s7027_s0 + $0x3c0] ss:$8 sps:$4 sm:$0xff]  }
 0x1ed   :  { %v4500_v38 = vpop.eup %4499  ;;  %4511 = vtanh.f32 %v2165_v34  ;;  %2376 = vmatmul.mubr.bf16.gmra.mrb[228].mxu0 %v4229_v28  ;;  %2888 = vmatmul.mubr.bf16.gmra.mrb[228].mxu1 %v4230_v29  ;;  %v4249_v29 = vld [vmem:[%s7027_s0 + $0x3d4] ss:$8 sps:$4 sm:$0xff]  }
 0x1ee   :  { %v4502_v39 = vpop.eup %4501  ;;  %3259 = vst.msk [vmem:[%s7029_s3 + $0x1d0] sm:$0xff] %vm3200_vm1, %v4500_v38  ;;  %4513 = vtanh.f32 %v2677_v35  ;;  %3785 = vmatprep.mubr.msk.bf16.mxu0 %vm1502_vm0, %v4231_v32  ;;  %3849 = vmatprep.mubr.msk.bf16.mxu1 %vm1502_vm0, %v4233_v33 }
 0x1ef   :  { %v4504_v40 = vpop.eup %4503  ;;  %3387 = vst.msk [vmem:[%s7029_s3 + $0x5d0] sm:$0xff] %vm3200_vm1, %v4502_v39 }
 0x1f0   :  { %v4506_v41 = vpop.eup %4505  ;;  %3260 = vst.msk [vmem:[%s7029_s3 + $0x1d8] sm:$0xff] %vm3200_vm1, %v4504_v40  ;;  %v2169_v42 = vpop.f32.mrb[124].mxu0 }
 0x1f1   :  { %v2681_v43 = vpop.f32.mrb[124].mxu1  ;;  %3388 = vst.msk [vmem:[%s7029_s3 + $0x5d8] sm:$0xff] %vm3200_vm1, %v4506_v41  ;;  %v2170_v44 = vadd.f32 %v5753_v61, %v2169_v42  ;;  %v2171_v46 = vpop.f32.mrb[125].mxu0 }
 0x1f2   :  { %v2682_v45 = vadd.f32 %v5753_v61, %v2681_v43  ;;  %v2683_v47 = vpop.f32.mrb[125].mxu1  ;;  %v2172_v50 = vpop.f32.mrb[126].mxu0  ;;  %v4254_v46 = vld [vmem:[%s7027_s0 + $0x7d0] ss:$8 sps:$4 sm:$0xff]  }
 0x1f3   :  { %v2684_v51 = vpop.f32.mrb[126].mxu1  ;;  %4515 = vtanh.f32 %v2170_v44  ;;  %v2173_v54 = vadd.f32 %v5753_v61, %v2172_v50  ;;  %v2174_v57 = vpop.f32.mrb[127].mxu0  ;;  %v4257_v50 = vld [vmem:[%s7027_s0 + $0x7e4] ss:$8 sps:$4 sm:$0xff]  }
 0x1f4   :  { %v2685_v55 = vadd.f32 %v5753_v61, %v2684_v51  ;;  %v2686_v58 = vpop.f32.mrb[127].mxu1  ;;  %4517 = vtanh.f32 %v2682_v45  ;;  %v4253_v45 = vld [vmem:[%s7027_s0 + $0x3d0] ss:$8 sps:$4 sm:$0xff]  }
 0x1f5   :  { %v4508_v59 = vpop.eup %4507  ;;  %4519 = vtanh.f32 %v2173_v54  ;;  %2384 = vmatmul.mubr.bf16.gmra.mrb[232].mxu0 %v4235_v48  ;;  %2896 = vmatmul.mubr.bf16.gmra.mrb[232].mxu1 %v4236_v49  ;;  %v4255_v49 = vld [vmem:[%s7027_s0 + $0x3e4] ss:$8 sps:$4 sm:$0xff]  }
 0x1f6   :  { %v4510_v60 = vpop.eup %4509  ;;  %3261 = vst.msk [vmem:[%s7029_s3 + $0x1e0] sm:$0xff] %vm3200_vm1, %v4508_v59  ;;  %4521 = vtanh.f32 %v2685_v55  ;;  %3786 = vmatprep.mubr.msk.bf16.mxu0 %vm1502_vm0, %v4237_v52  ;;  %3850 = vmatprep.mubr.msk.bf16.mxu1 %vm1502_vm0, %v4239_v53 }
 0x1f7   :  { %v4512_v62 = vpop.eup %4511  ;;  %3389 = vst.msk [vmem:[%s7029_s3 + $0x5e0] sm:$0xff] %vm3200_vm1, %v4510_v60 }
 0x1f8   :  { %v4514_v63 = vpop.eup %4513  ;;  %3262 = vst.msk [vmem:[%s7029_s3 + $0x1e8] sm:$0xff] %vm3200_vm1, %v4512_v62  ;;  %v2177_v0 = vpop.f32.mrb[128].mxu0 }
 0x1f9   :  { %v2689_v1 = vpop.f32.mrb[128].mxu1  ;;  %3390 = vst.msk [vmem:[%s7029_s3 + $0x5e8] sm:$0xff] %vm3200_vm1, %v4514_v63  ;;  %v2178_v2 = vadd.f32 %v5753_v61, %v2177_v0  ;;  %v2179_v56 = vpop.f32.mrb[129].mxu0  ;;  %v4243_v61 = vld [vmem:[%s7027_s0 + $0x3c4] ss:$8 sps:$4 sm:$0xff]  }
 0x1fa   :  { %v2690_v4 = vadd.f32 %v6302_v3, %v2689_v1  ;;  %v2691_v5 = vpop.f32.mrb[129].mxu1  ;;  %v2180_v8 = vpop.f32.mrb[130].mxu0  ;;  %v4260_v56 = vld [vmem:[%s7027_s0 + $0x7e0] ss:$8 sps:$4 sm:$0xff]  }
 0x1fb   :  { %v2692_v9 = vpop.f32.mrb[130].mxu1  ;;  %4523 = vtanh.f32 %v2178_v2  ;;  %v2181_v11 = vadd.f32 %v6302_v3, %v2180_v8  ;;  %v2182_v13 = vpop.f32.mrb[131].mxu0  ;;  %v4263_v8 = vld [vmem:[%s7027_s0 + $0x7f4] ss:$8 sps:$4 sm:$0xff]  }
 0x1fc   :  { %v2693_v12 = vadd.f32 %v6302_v3, %v2692_v9  ;;  %v2694_v14 = vpop.f32.mrb[131].mxu1  ;;  %4525 = vtanh.f32 %v2690_v4  ;;  %v4259_v4 = vld [vmem:[%s7027_s0 + $0x3e0] ss:$8 sps:$4 sm:$0xff]  }
 0x1fd   :  { %v4516_v15 = vpop.eup %4515  ;;  %4527 = vtanh.f32 %v2181_v11  ;;  %2392 = vmatmul.mubr.bf16.gmra.mrb[236].mxu0 %v4241_v6  ;;  %2904 = vmatmul.mubr.bf16.gmra.mrb[236].mxu1 %v4242_v7  ;;  %v4261_v7 = vld [vmem:[%s7027_s0 + $0x3f4] ss:$8 sps:$4 sm:$0xff]  }
 0x1fe   :  { %v4518_v16 = vpop.eup %4517  ;;  %3263 = vst.msk [vmem:[%s7029_s3 + $0x1f0] sm:$0xff] %vm3200_vm1, %v4516_v15  ;;  %4529 = vtanh.f32 %v2693_v12  ;;  %3787 = vmatprep.mubr.msk.bf16.mxu0 %vm1502_vm0, %v4243_v61  ;;  %3851 = vmatprep.mubr.msk.bf16.mxu1 %vm1502_vm0, %v4245_v10 }
 0x1ff   :  { %v4520_v17 = vpop.eup %4519  ;;  %3391 = vst.msk [vmem:[%s7029_s3 + $0x5f0] sm:$0xff] %vm3200_vm1, %v4518_v16 }
 0x200   :  { %v4522_v18 = vpop.eup %4521  ;;  %3264 = vst.msk [vmem:[%s7029_s3 + $0x1f8] sm:$0xff] %vm3200_vm1, %v4520_v17  ;;  %v2185_v19 = vpop.f32.mrb[132].mxu0 }
 0x201   :  { %v2697_v20 = vpop.f32.mrb[132].mxu1  ;;  %3392 = vst.msk [vmem:[%s7029_s3 + $0x5f8] sm:$0xff] %vm3200_vm1, %v4522_v18  ;;  %v2186_v21 = vadd.f32 %v6302_v3, %v2185_v19  ;;  %v2187_v23 = vpop.f32.mrb[133].mxu0 }
 0x202   :  { %v2698_v22 = vadd.f32 %v6302_v3, %v2697_v20  ;;  %v2699_v24 = vpop.f32.mrb[133].mxu1  ;;  %v2188_v27 = vpop.f32.mrb[134].mxu0  ;;  %v4266_v23 = vld [vmem:[%s7027_s0 + $0x7f0] ss:$8 sps:$4 sm:$0xff]  }
 0x203   :  { %v2700_v28 = vpop.f32.mrb[134].mxu1  ;;  %4531 = vtanh.f32 %v2186_v21  ;;  %v2189_v31 = vadd.f32 %v6302_v3, %v2188_v27  ;;  %v2190_v33 = vpop.f32.mrb[135].mxu0 }
 0x204   :  { %v2701_v32 = vadd.f32 %v6302_v3, %v2700_v28  ;;  %v2702_v34 = vpop.f32.mrb[135].mxu1  ;;  %4533 = vtanh.f32 %v2698_v22  ;;  %v4265_v22 = vld [vmem:[%s7027_s0 + $0x3f0] ss:$8 sps:$4 sm:$0xff]  }
 0x205   :  { %v4524_v35 = vpop.eup %4523  ;;  %4535 = vtanh.f32 %v2189_v31  ;;  %2400 = vmatmul.mubr.bf16.gmra.mrb[240].mxu0 %v4247_v25  ;;  %2912 = vmatmul.mubr.bf16.gmra.mrb[240].mxu1 %v4248_v26 }
 0x206   :  { %v4526_v36 = vpop.eup %4525  ;;  %3265 = vst.msk [vmem:[%s7029_s3 + $0x200] sm:$0xff] %vm3200_vm1, %v4524_v35  ;;  %4537 = vtanh.f32 %v2701_v32  ;;  %3788 = vmatprep.mubr.msk.bf16.mxu0 %vm1502_vm0, %v4249_v29  ;;  %3852 = vmatprep.mubr.msk.bf16.mxu1 %vm1502_vm0, %v4251_v30 }
 0x207   :  { %v4528_v37 = vpop.eup %4527  ;;  %3393 = vst.msk [vmem:[%s7029_s3 + $0x600] sm:$0xff] %vm3200_vm1, %v4526_v36 }
 0x208   :  { %v4530_v38 = vpop.eup %4529  ;;  %3266 = vst.msk [vmem:[%s7029_s3 + $0x208] sm:$0xff] %vm3200_vm1, %v4528_v37  ;;  %v2193_v39 = vpop.f32.mrb[136].mxu0 }
 0x209   :  { %v2705_v40 = vpop.f32.mrb[136].mxu1  ;;  %3394 = vst.msk [vmem:[%s7029_s3 + $0x608] sm:$0xff] %vm3200_vm1, %v4530_v38  ;;  %v2194_v41 = vadd.f32 %v6302_v3, %v2193_v39  ;;  %v2195_v43 = vpop.f32.mrb[137].mxu0 }
 0x20a   :  { %v2706_v42 = vadd.f32 %v6302_v3, %v2705_v40  ;;  %v2707_v44 = vpop.f32.mrb[137].mxu1  ;;  %v2196_v47 = vpop.f32.mrb[138].mxu0 }
 0x20b   :  { %v2708_v48 = vpop.f32.mrb[138].mxu1  ;;  %4539 = vtanh.f32 %v2194_v41  ;;  %v2197_v51 = vadd.f32 %v6302_v3, %v2196_v47  ;;  %v2198_v53 = vpop.f32.mrb[139].mxu0 }
 0x20c   :  { %v2709_v52 = vadd.f32 %v6302_v3, %v2708_v48  ;;  %v2710_v54 = vpop.f32.mrb[139].mxu1  ;;  %4541 = vtanh.f32 %v2706_v42 }
 0x20d   :  { %v4532_v55 = vpop.eup %4531  ;;  %4543 = vtanh.f32 %v2197_v51  ;;  %2408 = vmatmul.mubr.bf16.gmra.mrb[244].mxu0 %v4253_v45  ;;  %2920 = vmatmul.mubr.bf16.gmra.mrb[244].mxu1 %v4254_v46 }
 0x20e   :  { %v4534_v57 = vpop.eup %4533  ;;  %3267 = vst.msk [vmem:[%s7029_s3 + $0x210] sm:$0xff] %vm3200_vm1, %v4532_v55  ;;  %4545 = vtanh.f32 %v2709_v52  ;;  %3789 = vmatprep.mubr.msk.bf16.mxu0 %vm1502_vm0, %v4255_v49  ;;  %3853 = vmatprep.mubr.msk.bf16.mxu1 %vm1502_vm0, %v4257_v50 }
 0x20f   :  { %v4536_v58 = vpop.eup %4535  ;;  %3395 = vst.msk [vmem:[%s7029_s3 + $0x610] sm:$0xff] %vm3200_vm1, %v4534_v57 }
 0x210   :  { %v4538_v59 = vpop.eup %4537  ;;  %3268 = vst.msk [vmem:[%s7029_s3 + $0x218] sm:$0xff] %vm3200_vm1, %v4536_v58  ;;  %v2201_v60 = vpop.f32.mrb[140].mxu0 }
 0x211   :  { %v2713_v62 = vpop.f32.mrb[140].mxu1  ;;  %3396 = vst.msk [vmem:[%s7029_s3 + $0x618] sm:$0xff] %vm3200_vm1, %v4538_v59  ;;  %v2202_v63 = vadd.f32 %v6302_v3, %v2201_v60  ;;  %v2203_v1 = vpop.f32.mrb[141].mxu0 }
 0x212   :  { %v2714_v0 = vadd.f32 %v6302_v3, %v2713_v62  ;;  %v2715_v2 = vpop.f32.mrb[141].mxu1  ;;  %v2204_v5 = vpop.f32.mrb[142].mxu0 }
 0x213   :  { %v2716_v6 = vpop.f32.mrb[142].mxu1  ;;  %4547 = vtanh.f32 %v2202_v63  ;;  %v2205_v9 = vadd.f32 %v6302_v3, %v2204_v5  ;;  %v2206_v10 = vpop.f32.mrb[143].mxu0 }
 0x214   :  { %v2717_v61 = vadd.f32 %v6302_v3, %v2716_v6  ;;  %v2718_v11 = vpop.f32.mrb[143].mxu1  ;;  %4549 = vtanh.f32 %v2714_v0 }
 0x215   :  { %v4540_v12 = vpop.eup %4539  ;;  %4551 = vtanh.f32 %v2205_v9  ;;  %2416 = vmatmul.mubr.bf16.gmra.mrb[248].mxu0 %v4259_v4  ;;  %2928 = vmatmul.mubr.bf16.gmra.mrb[248].mxu1 %v4260_v56 }
 0x216   :  { %v4542_v13 = vpop.eup %4541  ;;  %3269 = vst.msk [vmem:[%s7029_s3 + $0x220] sm:$0xff] %vm3200_vm1, %v4540_v12  ;;  %4553 = vtanh.f32 %v2717_v61  ;;  %3790 = vmatprep.mubr.msk.bf16.mxu0 %vm1502_vm0, %v4261_v7  ;;  %3854 = vmatprep.mubr.msk.bf16.mxu1 %vm1502_vm0, %v4263_v8 }
 0x217   :  { %v4544_v14 = vpop.eup %4543  ;;  %3397 = vst.msk [vmem:[%s7029_s3 + $0x620] sm:$0xff] %vm3200_vm1, %v4542_v13 }
 0x218   :  { %v4546_v15 = vpop.eup %4545  ;;  %3270 = vst.msk [vmem:[%s7029_s3 + $0x228] sm:$0xff] %vm3200_vm1, %v4544_v14  ;;  %v2209_v16 = vpop.f32.mrb[144].mxu0 }
 0x219   :  { %v2721_v17 = vpop.f32.mrb[144].mxu1  ;;  %3398 = vst.msk [vmem:[%s7029_s3 + $0x628] sm:$0xff] %vm3200_vm1, %v4546_v15  ;;  %v2210_v18 = vadd.f32 %v6302_v3, %v2209_v16  ;;  %v2211_v20 = vpop.f32.mrb[145].mxu0 }
 0x21a   :  { %v2722_v19 = vadd.f32 %v6302_v3, %v2721_v17  ;;  %v2723_v21 = vpop.f32.mrb[145].mxu1  ;;  %v2212_v24 = vpop.f32.mrb[146].mxu0 }
 0x21b   :  { %v2724_v25 = vpop.f32.mrb[146].mxu1  ;;  %4555 = vtanh.f32 %v2210_v18  ;;  %v2213_v26 = vadd.f32 %v6302_v3, %v2212_v24  ;;  %v2214_v28 = vpop.f32.mrb[147].mxu0 }
 0x21c   :  { %v2725_v27 = vadd.f32 %v6302_v3, %v2724_v25  ;;  %v2726_v29 = vpop.f32.mrb[147].mxu1  ;;  %4557 = vtanh.f32 %v2722_v19 }
 0x21d   :  { %v4548_v30 = vpop.eup %4547  ;;  %4559 = vtanh.f32 %v2213_v26  ;;  %2424 = vmatmul.mubr.bf16.gmra.mrb[252].mxu0 %v4265_v22  ;;  %2936 = vmatmul.mubr.bf16.gmra.mrb[252].mxu1 %v4266_v23 }
 0x21e   :  { %v4550_v31 = vpop.eup %4549  ;;  %3271 = vst.msk [vmem:[%s7029_s3 + $0x230] sm:$0xff] %vm3200_vm1, %v4548_v30  ;;  %4561 = vtanh.f32 %v2725_v27 }
 0x21f   :  { %v4552_v32 = vpop.eup %4551  ;;  %3399 = vst.msk [vmem:[%s7029_s3 + $0x630] sm:$0xff] %vm3200_vm1, %v4550_v31 }
 0x220   :  { %v4554_v33 = vpop.eup %4553  ;;  %3272 = vst.msk [vmem:[%s7029_s3 + $0x238] sm:$0xff] %vm3200_vm1, %v4552_v32  ;;  %v2217_v34 = vpop.f32.mrb[148].mxu0 }
 0x221   :  { %v2729_v35 = vpop.f32.mrb[148].mxu1  ;;  %3400 = vst.msk [vmem:[%s7029_s3 + $0x638] sm:$0xff] %vm3200_vm1, %v4554_v33  ;;  %v2218_v36 = vadd.f32 %v6302_v3, %v2217_v34  ;;  %v2219_v38 = vpop.f32.mrb[149].mxu0 }
 0x222   :  { %v2730_v37 = vadd.f32 %v6302_v3, %v2729_v35  ;;  %v2731_v39 = vpop.f32.mrb[149].mxu1  ;;  %v2220_v40 = vpop.f32.mrb[150].mxu0 }
 0x223   :  { %v2732_v41 = vpop.f32.mrb[150].mxu1  ;;  %4563 = vtanh.f32 %v2218_v36  ;;  %v2221_v42 = vadd.f32 %v6302_v3, %v2220_v40  ;;  %v2222_v44 = vpop.f32.mrb[151].mxu0 }
 0x224   :  { %v2733_v43 = vadd.f32 %v6302_v3, %v2732_v41  ;;  %v2734_v45 = vpop.f32.mrb[151].mxu1  ;;  %4565 = vtanh.f32 %v2730_v37 }
 0x225   :  { %v4556_v46 = vpop.eup %4555  ;;  %4567 = vtanh.f32 %v2221_v42 }
 0x226   :  { %v4558_v47 = vpop.eup %4557  ;;  %3273 = vst.msk [vmem:[%s7029_s3 + $0x240] sm:$0xff] %vm3200_vm1, %v4556_v46  ;;  %4569 = vtanh.f32 %v2733_v43 }
 0x227   :  { %v4560_v48 = vpop.eup %4559  ;;  %3401 = vst.msk [vmem:[%s7029_s3 + $0x640] sm:$0xff] %vm3200_vm1, %v4558_v47 }
 0x228   :  { %v4562_v49 = vpop.eup %4561  ;;  %3274 = vst.msk [vmem:[%s7029_s3 + $0x248] sm:$0xff] %vm3200_vm1, %v4560_v48  ;;  %v2225_v50 = vpop.f32.mrb[152].mxu0 }
 0x229   :  { %v2737_v51 = vpop.f32.mrb[152].mxu1  ;;  %3402 = vst.msk [vmem:[%s7029_s3 + $0x648] sm:$0xff] %vm3200_vm1, %v4562_v49  ;;  %v2226_v52 = vadd.f32 %v6302_v3, %v2225_v50  ;;  %v2227_v54 = vpop.f32.mrb[153].mxu0 }
 0x22a   :  { %v2738_v53 = vadd.f32 %v6302_v3, %v2737_v51  ;;  %v2739_v55 = vpop.f32.mrb[153].mxu1  ;;  %v2228_v57 = vpop.f32.mrb[154].mxu0 }
 0x22b   :  { %v2740_v58 = vpop.f32.mrb[154].mxu1  ;;  %4571 = vtanh.f32 %v2226_v52  ;;  %v2229_v59 = vadd.f32 %v6302_v3, %v2228_v57  ;;  %v2230_v62 = vpop.f32.mrb[155].mxu0 }
 0x22c   :  { %v2741_v60 = vadd.f32 %v6302_v3, %v2740_v58  ;;  %v2742_v63 = vpop.f32.mrb[155].mxu1  ;;  %4573 = vtanh.f32 %v2738_v53 }
 0x22d   :  { %v4564_v0 = vpop.eup %4563  ;;  %4575 = vtanh.f32 %v2229_v59 }
 0x22e   :  { %v4566_v1 = vpop.eup %4565  ;;  %3275 = vst.msk [vmem:[%s7029_s3 + $0x250] sm:$0xff] %vm3200_vm1, %v4564_v0  ;;  %4577 = vtanh.f32 %v2741_v60 }
 0x22f   :  { %v4568_v2 = vpop.eup %4567  ;;  %3403 = vst.msk [vmem:[%s7029_s3 + $0x650] sm:$0xff] %vm3200_vm1, %v4566_v1 }
 0x230   :  { %v4570_v4 = vpop.eup %4569  ;;  %3276 = vst.msk [vmem:[%s7029_s3 + $0x258] sm:$0xff] %vm3200_vm1, %v4568_v2  ;;  %v2233_v56 = vpop.f32.mrb[156].mxu0 }
 0x231   :  { %v2745_v5 = vpop.f32.mrb[156].mxu1  ;;  %3404 = vst.msk [vmem:[%s7029_s3 + $0x658] sm:$0xff] %vm3200_vm1, %v4570_v4  ;;  %v2234_v6 = vadd.f32 %v6302_v3, %v2233_v56  ;;  %v2235_v8 = vpop.f32.mrb[157].mxu0 }
 0x232   :  { %v2746_v7 = vadd.f32 %v6302_v3, %v2745_v5  ;;  %v2747_v9 = vpop.f32.mrb[157].mxu1  ;;  %v2236_v61 = vpop.f32.mrb[158].mxu0 }
 0x233   :  { %v2748_v10 = vpop.f32.mrb[158].mxu1  ;;  %4579 = vtanh.f32 %v2234_v6  ;;  %v2237_v11 = vadd.f32 %v6302_v3, %v2236_v61  ;;  %v2238_v13 = vpop.f32.mrb[159].mxu0 }
 0x234   :  { %v2749_v12 = vadd.f32 %v6302_v3, %v2748_v10  ;;  %v2750_v14 = vpop.f32.mrb[159].mxu1  ;;  %4581 = vtanh.f32 %v2746_v7 }
 0x235   :  { %v4572_v15 = vpop.eup %4571  ;;  %4583 = vtanh.f32 %v2237_v11 }
 0x236   :  { %v4574_v16 = vpop.eup %4573  ;;  %3277 = vst.msk [vmem:[%s7029_s3 + $0x260] sm:$0xff] %vm3200_vm1, %v4572_v15  ;;  %4585 = vtanh.f32 %v2749_v12 }
 0x237   :  { %v4576_v17 = vpop.eup %4575  ;;  %3405 = vst.msk [vmem:[%s7029_s3 + $0x660] sm:$0xff] %vm3200_vm1, %v4574_v16 }
 0x238   :  { %v4578_v18 = vpop.eup %4577  ;;  %3278 = vst.msk [vmem:[%s7029_s3 + $0x268] sm:$0xff] %vm3200_vm1, %v4576_v17  ;;  %v2241_v19 = vpop.f32.mrb[160].mxu0 }
 0x239   :  { %v2753_v20 = vpop.f32.mrb[160].mxu1  ;;  %3406 = vst.msk [vmem:[%s7029_s3 + $0x668] sm:$0xff] %vm3200_vm1, %v4578_v18  ;;  %v2242_v21 = vadd.f32 %v6302_v3, %v2241_v19  ;;  %v2243_v23 = vpop.f32.mrb[161].mxu0 }
 0x23a   :  { %v2754_v22 = vadd.f32 %v6302_v3, %v2753_v20  ;;  %v2755_v24 = vpop.f32.mrb[161].mxu1  ;;  %v2244_v25 = vpop.f32.mrb[162].mxu0 }
 0x23b   :  { %v2756_v26 = vpop.f32.mrb[162].mxu1  ;;  %4587 = vtanh.f32 %v2242_v21  ;;  %v2245_v27 = vadd.f32 %v6302_v3, %v2244_v25  ;;  %v2246_v29 = vpop.f32.mrb[163].mxu0 }
 0x23c   :  { %v2757_v28 = vadd.f32 %v6302_v3, %v2756_v26  ;;  %v2758_v30 = vpop.f32.mrb[163].mxu1  ;;  %4589 = vtanh.f32 %v2754_v22 }
 0x23d   :  { %v4580_v31 = vpop.eup %4579  ;;  %4591 = vtanh.f32 %v2245_v27 }
 0x23e   :  { %v4582_v32 = vpop.eup %4581  ;;  %3279 = vst.msk [vmem:[%s7029_s3 + $0x270] sm:$0xff] %vm3200_vm1, %v4580_v31  ;;  %4593 = vtanh.f32 %v2757_v28 }
 0x23f   :  { %v4584_v33 = vpop.eup %4583  ;;  %3407 = vst.msk [vmem:[%s7029_s3 + $0x670] sm:$0xff] %vm3200_vm1, %v4582_v32 }
 0x240   :  { %v4586_v34 = vpop.eup %4585  ;;  %3280 = vst.msk [vmem:[%s7029_s3 + $0x278] sm:$0xff] %vm3200_vm1, %v4584_v33  ;;  %v2249_v35 = vpop.f32.mrb[164].mxu0 }
 0x241   :  { %v2761_v36 = vpop.f32.mrb[164].mxu1  ;;  %3408 = vst.msk [vmem:[%s7029_s3 + $0x678] sm:$0xff] %vm3200_vm1, %v4586_v34  ;;  %v2250_v37 = vadd.f32 %v6302_v3, %v2249_v35  ;;  %v2251_v39 = vpop.f32.mrb[165].mxu0 }
 0x242   :  { %v2762_v38 = vadd.f32 %v6302_v3, %v2761_v36  ;;  %v2763_v40 = vpop.f32.mrb[165].mxu1  ;;  %v2252_v41 = vpop.f32.mrb[166].mxu0 }
 0x243   :  { %v2764_v42 = vpop.f32.mrb[166].mxu1  ;;  %4595 = vtanh.f32 %v2250_v37  ;;  %v2253_v43 = vadd.f32 %v6302_v3, %v2252_v41  ;;  %v2254_v45 = vpop.f32.mrb[167].mxu0 }
 0x244   :  { %v2765_v44 = vadd.f32 %v6302_v3, %v2764_v42  ;;  %v2766_v46 = vpop.f32.mrb[167].mxu1  ;;  %4597 = vtanh.f32 %v2762_v38 }
 0x245   :  { %v4588_v47 = vpop.eup %4587  ;;  %4599 = vtanh.f32 %v2253_v43 }
 0x246   :  { %v4590_v48 = vpop.eup %4589  ;;  %3281 = vst.msk [vmem:[%s7029_s3 + $0x280] sm:$0xff] %vm3200_vm1, %v4588_v47  ;;  %4601 = vtanh.f32 %v2765_v44 }
 0x247   :  { %v4592_v49 = vpop.eup %4591  ;;  %3409 = vst.msk [vmem:[%s7029_s3 + $0x680] sm:$0xff] %vm3200_vm1, %v4590_v48 }
 0x248   :  { %v4594_v50 = vpop.eup %4593  ;;  %3282 = vst.msk [vmem:[%s7029_s3 + $0x288] sm:$0xff] %vm3200_vm1, %v4592_v49  ;;  %v2257_v51 = vpop.f32.mrb[168].mxu0 }
 0x249   :  { %v2769_v52 = vpop.f32.mrb[168].mxu1  ;;  %3410 = vst.msk [vmem:[%s7029_s3 + $0x688] sm:$0xff] %vm3200_vm1, %v4594_v50  ;;  %v2258_v53 = vadd.f32 %v6302_v3, %v2257_v51  ;;  %v2259_v55 = vpop.f32.mrb[169].mxu0 }
 0x24a   :  { %v2770_v54 = vadd.f32 %v6302_v3, %v2769_v52  ;;  %v2771_v57 = vpop.f32.mrb[169].mxu1  ;;  %v2260_v58 = vpop.f32.mrb[170].mxu0 }
 0x24b   :  { %v2772_v59 = vpop.f32.mrb[170].mxu1  ;;  %4603 = vtanh.f32 %v2258_v53  ;;  %v2261_v60 = vadd.f32 %v6302_v3, %v2260_v58  ;;  %v2262_v63 = vpop.f32.mrb[171].mxu0 }
 0x24c   :  { %v2773_v62 = vadd.f32 %v6302_v3, %v2772_v59  ;;  %v2774_v0 = vpop.f32.mrb[171].mxu1  ;;  %4605 = vtanh.f32 %v2770_v54 }
 0x24d   :  { %v4596_v1 = vpop.eup %4595  ;;  %4607 = vtanh.f32 %v2261_v60 }
 0x24e   :  { %v4598_v2 = vpop.eup %4597  ;;  %3283 = vst.msk [vmem:[%s7029_s3 + $0x290] sm:$0xff] %vm3200_vm1, %v4596_v1  ;;  %4609 = vtanh.f32 %v2773_v62 }
 0x24f   :  { %v4600_v4 = vpop.eup %4599  ;;  %3411 = vst.msk [vmem:[%s7029_s3 + $0x690] sm:$0xff] %vm3200_vm1, %v4598_v2 }
 0x250   :  { %v4602_v56 = vpop.eup %4601  ;;  %3284 = vst.msk [vmem:[%s7029_s3 + $0x298] sm:$0xff] %vm3200_vm1, %v4600_v4  ;;  %v2265_v5 = vpop.f32.mrb[172].mxu0 }
 0x251   :  { %v2777_v6 = vpop.f32.mrb[172].mxu1  ;;  %3412 = vst.msk [vmem:[%s7029_s3 + $0x698] sm:$0xff] %vm3200_vm1, %v4602_v56  ;;  %v2266_v7 = vadd.f32 %v6302_v3, %v2265_v5  ;;  %v2267_v9 = vpop.f32.mrb[173].mxu0 }
 0x252   :  { %v2778_v8 = vadd.f32 %v6302_v3, %v2777_v6  ;;  %v2779_v61 = vpop.f32.mrb[173].mxu1  ;;  %v2268_v10 = vpop.f32.mrb[174].mxu0 }
 0x253   :  { %v2780_v11 = vpop.f32.mrb[174].mxu1  ;;  %4611 = vtanh.f32 %v2266_v7  ;;  %v2269_v12 = vadd.f32 %v6302_v3, %v2268_v10  ;;  %v2270_v14 = vpop.f32.mrb[175].mxu0 }
 0x254   :  { %v2781_v13 = vadd.f32 %v6302_v3, %v2780_v11  ;;  %v2782_v15 = vpop.f32.mrb[175].mxu1  ;;  %4613 = vtanh.f32 %v2778_v8 }
 0x255   :  { %v4604_v16 = vpop.eup %4603  ;;  %4615 = vtanh.f32 %v2269_v12 }
 0x256   :  { %v4606_v17 = vpop.eup %4605  ;;  %3285 = vst.msk [vmem:[%s7029_s3 + $0x2a0] sm:$0xff] %vm3200_vm1, %v4604_v16  ;;  %4617 = vtanh.f32 %v2781_v13 }
 0x257   :  { %v4608_v18 = vpop.eup %4607  ;;  %3413 = vst.msk [vmem:[%s7029_s3 + $0x6a0] sm:$0xff] %vm3200_vm1, %v4606_v17 }
 0x258   :  { %v4610_v19 = vpop.eup %4609  ;;  %3286 = vst.msk [vmem:[%s7029_s3 + $0x2a8] sm:$0xff] %vm3200_vm1, %v4608_v18  ;;  %v2273_v20 = vpop.f32.mrb[176].mxu0 }
 0x259   :  { %v2785_v21 = vpop.f32.mrb[176].mxu1  ;;  %3414 = vst.msk [vmem:[%s7029_s3 + $0x6a8] sm:$0xff] %vm3200_vm1, %v4610_v19  ;;  %v2274_v22 = vadd.f32 %v6302_v3, %v2273_v20  ;;  %v2275_v24 = vpop.f32.mrb[177].mxu0 }
 0x25a   :  { %v2786_v23 = vadd.f32 %v6302_v3, %v2785_v21  ;;  %v2787_v25 = vpop.f32.mrb[177].mxu1  ;;  %v2276_v26 = vpop.f32.mrb[178].mxu0 }
 0x25b   :  { %v2788_v27 = vpop.f32.mrb[178].mxu1  ;;  %4619 = vtanh.f32 %v2274_v22  ;;  %v2277_v28 = vadd.f32 %v6302_v3, %v2276_v26  ;;  %v2278_v30 = vpop.f32.mrb[179].mxu0 }
 0x25c   :  { %v2789_v29 = vadd.f32 %v6302_v3, %v2788_v27  ;;  %v2790_v31 = vpop.f32.mrb[179].mxu1  ;;  %4621 = vtanh.f32 %v2786_v23 }
 0x25d   :  { %v4612_v32 = vpop.eup %4611  ;;  %4623 = vtanh.f32 %v2277_v28 }
 0x25e   :  { %v4614_v33 = vpop.eup %4613  ;;  %3287 = vst.msk [vmem:[%s7029_s3 + $0x2b0] sm:$0xff] %vm3200_vm1, %v4612_v32  ;;  %4625 = vtanh.f32 %v2789_v29 }
 0x25f   :  { %v4616_v34 = vpop.eup %4615  ;;  %3415 = vst.msk [vmem:[%s7029_s3 + $0x6b0] sm:$0xff] %vm3200_vm1, %v4614_v33 }
 0x260   :  { %v4618_v35 = vpop.eup %4617  ;;  %3288 = vst.msk [vmem:[%s7029_s3 + $0x2b8] sm:$0xff] %vm3200_vm1, %v4616_v34  ;;  %v2281_v36 = vpop.f32.mrb[180].mxu0 }
 0x261   :  { %v2793_v37 = vpop.f32.mrb[180].mxu1  ;;  %3416 = vst.msk [vmem:[%s7029_s3 + $0x6b8] sm:$0xff] %vm3200_vm1, %v4618_v35  ;;  %v2282_v38 = vadd.f32 %v6302_v3, %v2281_v36  ;;  %v2283_v40 = vpop.f32.mrb[181].mxu0 }
 0x262   :  { %v2794_v39 = vadd.f32 %v6302_v3, %v2793_v37  ;;  %v2795_v41 = vpop.f32.mrb[181].mxu1  ;;  %v2284_v42 = vpop.f32.mrb[182].mxu0 }
 0x263   :  { %v2796_v43 = vpop.f32.mrb[182].mxu1  ;;  %4627 = vtanh.f32 %v2282_v38  ;;  %v2285_v44 = vadd.f32 %v6302_v3, %v2284_v42  ;;  %v2286_v46 = vpop.f32.mrb[183].mxu0 }
 0x264   :  { %v2797_v45 = vadd.f32 %v6302_v3, %v2796_v43  ;;  %v2798_v47 = vpop.f32.mrb[183].mxu1  ;;  %4629 = vtanh.f32 %v2794_v39 }
 0x265   :  { %v4620_v48 = vpop.eup %4619  ;;  %4631 = vtanh.f32 %v2285_v44 }
 0x266   :  { %v4622_v49 = vpop.eup %4621  ;;  %3289 = vst.msk [vmem:[%s7029_s3 + $0x2c0] sm:$0xff] %vm3200_vm1, %v4620_v48  ;;  %4633 = vtanh.f32 %v2797_v45 }
 0x267   :  { %v4624_v50 = vpop.eup %4623  ;;  %3417 = vst.msk [vmem:[%s7029_s3 + $0x6c0] sm:$0xff] %vm3200_vm1, %v4622_v49 }
 0x268   :  { %v4626_v51 = vpop.eup %4625  ;;  %3290 = vst.msk [vmem:[%s7029_s3 + $0x2c8] sm:$0xff] %vm3200_vm1, %v4624_v50  ;;  %v2289_v52 = vpop.f32.mrb[184].mxu0 }
 0x269   :  { %v2801_v53 = vpop.f32.mrb[184].mxu1  ;;  %3418 = vst.msk [vmem:[%s7029_s3 + $0x6c8] sm:$0xff] %vm3200_vm1, %v4626_v51  ;;  %v2290_v54 = vadd.f32 %v6302_v3, %v2289_v52  ;;  %v2291_v57 = vpop.f32.mrb[185].mxu0 }
 0x26a   :  { %v2802_v55 = vadd.f32 %v6302_v3, %v2801_v53  ;;  %v2803_v58 = vpop.f32.mrb[185].mxu1  ;;  %v2292_v59 = vpop.f32.mrb[186].mxu0 }
 0x26b   :  { %v2804_v60 = vpop.f32.mrb[186].mxu1  ;;  %4635 = vtanh.f32 %v2290_v54  ;;  %v2293_v62 = vadd.f32 %v6302_v3, %v2292_v59  ;;  %v2294_v0 = vpop.f32.mrb[187].mxu0 }
 0x26c   :  { %v2805_v63 = vadd.f32 %v6302_v3, %v2804_v60  ;;  %v2806_v1 = vpop.f32.mrb[187].mxu1  ;;  %4637 = vtanh.f32 %v2802_v55 }
 0x26d   :  { %v4628_v2 = vpop.eup %4627  ;;  %4639 = vtanh.f32 %v2293_v62 }
 0x26e   :  { %v4630_v4 = vpop.eup %4629  ;;  %3291 = vst.msk [vmem:[%s7029_s3 + $0x2d0] sm:$0xff] %vm3200_vm1, %v4628_v2  ;;  %4641 = vtanh.f32 %v2805_v63 }
 0x26f   :  { %v4632_v56 = vpop.eup %4631  ;;  %3419 = vst.msk [vmem:[%s7029_s3 + $0x6d0] sm:$0xff] %vm3200_vm1, %v4630_v4 }
 0x270   :  { %v4634_v5 = vpop.eup %4633  ;;  %3292 = vst.msk [vmem:[%s7029_s3 + $0x2d8] sm:$0xff] %vm3200_vm1, %v4632_v56  ;;  %v2297_v6 = vpop.f32.mrb[188].mxu0 }
 0x271   :  { %v2809_v7 = vpop.f32.mrb[188].mxu1  ;;  %3420 = vst.msk [vmem:[%s7029_s3 + $0x6d8] sm:$0xff] %vm3200_vm1, %v4634_v5  ;;  %v2298_v8 = vadd.f32 %v6302_v3, %v2297_v6  ;;  %v2299_v61 = vpop.f32.mrb[189].mxu0 }
 0x272   :  { %v2810_v9 = vadd.f32 %v6302_v3, %v2809_v7  ;;  %v2811_v10 = vpop.f32.mrb[189].mxu1  ;;  %v2300_v11 = vpop.f32.mrb[190].mxu0 }
 0x273   :  { %v2812_v12 = vpop.f32.mrb[190].mxu1  ;;  %4643 = vtanh.f32 %v2298_v8  ;;  %v2301_v13 = vadd.f32 %v6302_v3, %v2300_v11  ;;  %v2302_v15 = vpop.f32.mrb[191].mxu0 }
 0x274   :  { %v2813_v14 = vadd.f32 %v6302_v3, %v2812_v12  ;;  %v2814_v16 = vpop.f32.mrb[191].mxu1  ;;  %4645 = vtanh.f32 %v2810_v9 }
 0x275   :  { %v4636_v17 = vpop.eup %4635  ;;  %4647 = vtanh.f32 %v2301_v13 }
 0x276   :  { %v4638_v18 = vpop.eup %4637  ;;  %3293 = vst.msk [vmem:[%s7029_s3 + $0x2e0] sm:$0xff] %vm3200_vm1, %v4636_v17  ;;  %4649 = vtanh.f32 %v2813_v14 }
 0x277   :  { %v4640_v19 = vpop.eup %4639  ;;  %3421 = vst.msk [vmem:[%s7029_s3 + $0x6e0] sm:$0xff] %vm3200_vm1, %v4638_v18 }
 0x278   :  { %v4642_v20 = vpop.eup %4641  ;;  %3294 = vst.msk [vmem:[%s7029_s3 + $0x2e8] sm:$0xff] %vm3200_vm1, %v4640_v19  ;;  %v2305_v21 = vpop.f32.mrb[192].mxu0 }
 0x279   :  { %v2817_v22 = vpop.f32.mrb[192].mxu1  ;;  %3422 = vst.msk [vmem:[%s7029_s3 + $0x6e8] sm:$0xff] %vm3200_vm1, %v4642_v20  ;;  %v2306_v23 = vadd.f32 %v6302_v3, %v2305_v21  ;;  %v2307_v25 = vpop.f32.mrb[193].mxu0 }
 0x27a   :  { %v2818_v24 = vadd.f32 %v6302_v3, %v2817_v22  ;;  %v2819_v26 = vpop.f32.mrb[193].mxu1  ;;  %v2308_v27 = vpop.f32.mrb[194].mxu0 }
 0x27b   :  { %v2820_v28 = vpop.f32.mrb[194].mxu1  ;;  %4651 = vtanh.f32 %v2306_v23  ;;  %v2309_v29 = vadd.f32 %v6302_v3, %v2308_v27  ;;  %v2310_v31 = vpop.f32.mrb[195].mxu0  ;;  %v6768_v23 = vld [vmem:[%s7028_s2] ss:$0 sm:$0xff] }
 0x27c   :  { %v2821_v30 = vadd.f32 %v6302_v3, %v2820_v28  ;;  %v2822_v32 = vpop.f32.mrb[195].mxu1  ;;  %4653 = vtanh.f32 %v2818_v24 }
 0x27d   :  { %v4644_v33 = vpop.eup %4643  ;;  %4655 = vtanh.f32 %v2309_v29 }
 0x27e   :  { %v4646_v34 = vpop.eup %4645  ;;  %3295 = vst.msk [vmem:[%s7029_s3 + $0x2f0] sm:$0xff] %vm3200_vm1, %v4644_v33  ;;  %4657 = vtanh.f32 %v2821_v30 }
 0x27f   :  { %v4648_v35 = vpop.eup %4647  ;;  %3423 = vst.msk [vmem:[%s7029_s3 + $0x6f0] sm:$0xff] %vm3200_vm1, %v4646_v34 }
 0x280   :  { %v4650_v36 = vpop.eup %4649  ;;  %3296 = vst.msk [vmem:[%s7029_s3 + $0x2f8] sm:$0xff] %vm3200_vm1, %v4648_v35  ;;  %v2313_v37 = vpop.f32.mrb[196].mxu0 }
 0x281   :  { %v2825_v38 = vpop.f32.mrb[196].mxu1  ;;  %3424 = vst.msk [vmem:[%s7029_s3 + $0x6f8] sm:$0xff] %vm3200_vm1, %v4650_v36  ;;  %v2314_v39 = vadd.f32 %v6302_v3, %v2313_v37  ;;  %v2315_v41 = vpop.f32.mrb[197].mxu0 }
 0x282   :  { %v2826_v40 = vadd.f32 %v6302_v3, %v2825_v38  ;;  %v2827_v42 = vpop.f32.mrb[197].mxu1  ;;  %v2316_v43 = vpop.f32.mrb[198].mxu0 }
 0x283   :  { %v2828_v44 = vpop.f32.mrb[198].mxu1  ;;  %4659 = vtanh.f32 %v2314_v39  ;;  %v2317_v45 = vadd.f32 %v6302_v3, %v2316_v43  ;;  %v2318_v47 = vpop.f32.mrb[199].mxu0 }
 0x284   :  { %v2829_v46 = vadd.f32 %v6302_v3, %v2828_v44  ;;  %v2830_v48 = vpop.f32.mrb[199].mxu1  ;;  %4661 = vtanh.f32 %v2826_v40 }
 0x285   :  { %v4652_v49 = vpop.eup %4651  ;;  %4663 = vtanh.f32 %v2317_v45 }
 0x286   :  { %v4654_v50 = vpop.eup %4653  ;;  %3297 = vst.msk [vmem:[%s7029_s3 + $0x300] sm:$0xff] %vm3200_vm1, %v4652_v49  ;;  %4665 = vtanh.f32 %v2829_v46 }
 0x287   :  { %v4656_v51 = vpop.eup %4655  ;;  %3425 = vst.msk [vmem:[%s7029_s3 + $0x700] sm:$0xff] %vm3200_vm1, %v4654_v50 }
 0x288   :  { %v4658_v52 = vpop.eup %4657  ;;  %3298 = vst.msk [vmem:[%s7029_s3 + $0x308] sm:$0xff] %vm3200_vm1, %v4656_v51  ;;  %v2321_v53 = vpop.f32.mrb[200].mxu0 }
 0x289   :  { %v2833_v54 = vpop.f32.mrb[200].mxu1  ;;  %3426 = vst.msk [vmem:[%s7029_s3 + $0x708] sm:$0xff] %vm3200_vm1, %v4658_v52  ;;  %v2322_v55 = vadd.f32 %v6302_v3, %v2321_v53  ;;  %v2323_v58 = vpop.f32.mrb[201].mxu0 }
 0x28a   :  { %v2834_v57 = vadd.f32 %v6302_v3, %v2833_v54  ;;  %v2835_v59 = vpop.f32.mrb[201].mxu1  ;;  %v2324_v60 = vpop.f32.mrb[202].mxu0 }
 0x28b   :  { %v2836_v62 = vpop.f32.mrb[202].mxu1  ;;  %4667 = vtanh.f32 %v2322_v55  ;;  %v2325_v63 = vadd.f32 %v6302_v3, %v2324_v60  ;;  %v2326_v1 = vpop.f32.mrb[203].mxu0 }
 0x28c   :  { %v2837_v0 = vadd.f32 %v6302_v3, %v2836_v62  ;;  %v2838_v2 = vpop.f32.mrb[203].mxu1  ;;  %4669 = vtanh.f32 %v2834_v57 }
 0x28d   :  { %v4660_v4 = vpop.eup %4659  ;;  %4671 = vtanh.f32 %v2325_v63 }
 0x28e   :  { %v4662_v56 = vpop.eup %4661  ;;  %3299 = vst.msk [vmem:[%s7029_s3 + $0x310] sm:$0xff] %vm3200_vm1, %v4660_v4  ;;  %4673 = vtanh.f32 %v2837_v0 }
 0x28f   :  { %v4664_v5 = vpop.eup %4663  ;;  %3427 = vst.msk [vmem:[%s7029_s3 + $0x710] sm:$0xff] %vm3200_vm1, %v4662_v56 }
 0x290   :  { %v4666_v6 = vpop.eup %4665  ;;  %3300 = vst.msk [vmem:[%s7029_s3 + $0x318] sm:$0xff] %vm3200_vm1, %v4664_v5  ;;  %v2329_v7 = vpop.f32.mrb[204].mxu0 }
 0x291   :  { %v2841_v8 = vpop.f32.mrb[204].mxu1  ;;  %3428 = vst.msk [vmem:[%s7029_s3 + $0x718] sm:$0xff] %vm3200_vm1, %v4666_v6  ;;  %v2330_v9 = vadd.f32 %v6302_v3, %v2329_v7  ;;  %v2331_v10 = vpop.f32.mrb[205].mxu0 }
 0x292   :  { %v2842_v61 = vadd.f32 %v6302_v3, %v2841_v8  ;;  %v2843_v11 = vpop.f32.mrb[205].mxu1  ;;  %v2332_v12 = vpop.f32.mrb[206].mxu0 }
 0x293   :  { %v2844_v13 = vpop.f32.mrb[206].mxu1  ;;  %4675 = vtanh.f32 %v2330_v9  ;;  %v2333_v14 = vadd.f32 %v6302_v3, %v2332_v12  ;;  %v2334_v16 = vpop.f32.mrb[207].mxu0 }
 0x294   :  { %v2845_v15 = vadd.f32 %v6302_v3, %v2844_v13  ;;  %v2846_v17 = vpop.f32.mrb[207].mxu1  ;;  %4677 = vtanh.f32 %v2842_v61 }
 0x295   :  { %v4668_v18 = vpop.eup %4667  ;;  %4679 = vtanh.f32 %v2333_v14 }
 0x296   :  { %v4670_v19 = vpop.eup %4669  ;;  %3301 = vst.msk [vmem:[%s7029_s3 + $0x320] sm:$0xff] %vm3200_vm1, %v4668_v18  ;;  %4681 = vtanh.f32 %v2845_v15 }
 0x297   :  { %v4672_v20 = vpop.eup %4671  ;;  %3429 = vst.msk [vmem:[%s7029_s3 + $0x720] sm:$0xff] %vm3200_vm1, %v4670_v19 }
 0x298   :  { %v4674_v21 = vpop.eup %4673  ;;  %3302 = vst.msk [vmem:[%s7029_s3 + $0x328] sm:$0xff] %vm3200_vm1, %v4672_v20  ;;  %v2337_v3 = vpop.f32.mrb[208].mxu0 }
 0x299   :  { %v2849_v22 = vpop.f32.mrb[208].mxu1  ;;  %3430 = vst.msk [vmem:[%s7029_s3 + $0x728] sm:$0xff] %vm3200_vm1, %v4674_v21  ;;  %v2338_v24 = vadd.f32 %v6768_v23, %v2337_v3  ;;  %v2339_v26 = vpop.f32.mrb[209].mxu0 }
 0x29a   :  { %v2850_v25 = vadd.f32 %v6768_v23, %v2849_v22  ;;  %v2851_v27 = vpop.f32.mrb[209].mxu1  ;;  %v2340_v28 = vpop.f32.mrb[210].mxu0 }
 0x29b   :  { %v2852_v29 = vpop.f32.mrb[210].mxu1  ;;  %4683 = vtanh.f32 %v2338_v24  ;;  %v2341_v30 = vadd.f32 %v6768_v23, %v2340_v28  ;;  %v2342_v32 = vpop.f32.mrb[211].mxu0 }
 0x29c   :  { %v2853_v31 = vadd.f32 %v6768_v23, %v2852_v29  ;;  %v2854_v33 = vpop.f32.mrb[211].mxu1  ;;  %4685 = vtanh.f32 %v2850_v25 }
 0x29d   :  { %v4676_v34 = vpop.eup %4675  ;;  %4687 = vtanh.f32 %v2341_v30 }
 0x29e   :  { %v4678_v35 = vpop.eup %4677  ;;  %3303 = vst.msk [vmem:[%s7029_s3 + $0x330] sm:$0xff] %vm3200_vm1, %v4676_v34  ;;  %4689 = vtanh.f32 %v2853_v31 }
 0x29f   :  { %v4680_v36 = vpop.eup %4679  ;;  %3431 = vst.msk [vmem:[%s7029_s3 + $0x730] sm:$0xff] %vm3200_vm1, %v4678_v35 }
 0x2a0   :  { %v4682_v37 = vpop.eup %4681  ;;  %3304 = vst.msk [vmem:[%s7029_s3 + $0x338] sm:$0xff] %vm3200_vm1, %v4680_v36  ;;  %v2345_v38 = vpop.f32.mrb[212].mxu0 }
 0x2a1   :  { %v2857_v39 = vpop.f32.mrb[212].mxu1  ;;  %3432 = vst.msk [vmem:[%s7029_s3 + $0x738] sm:$0xff] %vm3200_vm1, %v4682_v37  ;;  %v2346_v40 = vadd.f32 %v6768_v23, %v2345_v38  ;;  %v2347_v42 = vpop.f32.mrb[213].mxu0 }
 0x2a2   :  { %v2858_v41 = vadd.f32 %v6768_v23, %v2857_v39  ;;  %v2859_v43 = vpop.f32.mrb[213].mxu1  ;;  %v2348_v44 = vpop.f32.mrb[214].mxu0 }
 0x2a3   :  { %v2860_v45 = vpop.f32.mrb[214].mxu1  ;;  %4691 = vtanh.f32 %v2346_v40  ;;  %v2349_v46 = vadd.f32 %v6768_v23, %v2348_v44  ;;  %v2350_v48 = vpop.f32.mrb[215].mxu0 }
 0x2a4   :  { %v2861_v47 = vadd.f32 %v6768_v23, %v2860_v45  ;;  %v2862_v49 = vpop.f32.mrb[215].mxu1  ;;  %4693 = vtanh.f32 %v2858_v41 }
 0x2a5   :  { %v4684_v50 = vpop.eup %4683  ;;  %4695 = vtanh.f32 %v2349_v46 }
 0x2a6   :  { %v4686_v51 = vpop.eup %4685  ;;  %3305 = vst.msk [vmem:[%s7029_s3 + $0x340] sm:$0xff] %vm3200_vm1, %v4684_v50  ;;  %4697 = vtanh.f32 %v2861_v47 }
 0x2a7   :  { %v4688_v52 = vpop.eup %4687  ;;  %3433 = vst.msk [vmem:[%s7029_s3 + $0x740] sm:$0xff] %vm3200_vm1, %v4686_v51 }
 0x2a8   :  { %v4690_v53 = vpop.eup %4689  ;;  %3306 = vst.msk [vmem:[%s7029_s3 + $0x348] sm:$0xff] %vm3200_vm1, %v4688_v52  ;;  %v2353_v54 = vpop.f32.mrb[216].mxu0 }
 0x2a9   :  { %v2865_v55 = vpop.f32.mrb[216].mxu1  ;;  %3434 = vst.msk [vmem:[%s7029_s3 + $0x748] sm:$0xff] %vm3200_vm1, %v4690_v53  ;;  %v2354_v57 = vadd.f32 %v6768_v23, %v2353_v54  ;;  %v2355_v59 = vpop.f32.mrb[217].mxu0 }
 0x2aa   :  { %v2866_v58 = vadd.f32 %v6768_v23, %v2865_v55  ;;  %v2867_v60 = vpop.f32.mrb[217].mxu1  ;;  %v2356_v62 = vpop.f32.mrb[218].mxu0 }
 0x2ab   :  { %v2868_v63 = vpop.f32.mrb[218].mxu1  ;;  %4699 = vtanh.f32 %v2354_v57  ;;  %v2357_v0 = vadd.f32 %v6768_v23, %v2356_v62  ;;  %v2358_v2 = vpop.f32.mrb[219].mxu0 }
 0x2ac   :  { %v2869_v1 = vadd.f32 %v6768_v23, %v2868_v63  ;;  %v2870_v4 = vpop.f32.mrb[219].mxu1  ;;  %4701 = vtanh.f32 %v2866_v58 }
 0x2ad   :  { %v4692_v56 = vpop.eup %4691  ;;  %4703 = vtanh.f32 %v2357_v0 }
 0x2ae   :  { %v4694_v5 = vpop.eup %4693  ;;  %3307 = vst.msk [vmem:[%s7029_s3 + $0x350] sm:$0xff] %vm3200_vm1, %v4692_v56  ;;  %4705 = vtanh.f32 %v2869_v1 }
 0x2af   :  { %v4696_v6 = vpop.eup %4695  ;;  %3435 = vst.msk [vmem:[%s7029_s3 + $0x750] sm:$0xff] %vm3200_vm1, %v4694_v5 }
 0x2b0   :  { %v4698_v7 = vpop.eup %4697  ;;  %3308 = vst.msk [vmem:[%s7029_s3 + $0x358] sm:$0xff] %vm3200_vm1, %v4696_v6  ;;  %v2361_v8 = vpop.f32.mrb[220].mxu0 }
 0x2b1   :  { %v2873_v9 = vpop.f32.mrb[220].mxu1  ;;  %3436 = vst.msk [vmem:[%s7029_s3 + $0x758] sm:$0xff] %vm3200_vm1, %v4698_v7  ;;  %v2362_v61 = vadd.f32 %v6768_v23, %v2361_v8  ;;  %v2363_v11 = vpop.f32.mrb[221].mxu0 }
 0x2b2   :  { %v2874_v10 = vadd.f32 %v6768_v23, %v2873_v9  ;;  %v2875_v12 = vpop.f32.mrb[221].mxu1  ;;  %v2364_v13 = vpop.f32.mrb[222].mxu0 }
 0x2b3   :  { %v2876_v14 = vpop.f32.mrb[222].mxu1  ;;  %4707 = vtanh.f32 %v2362_v61  ;;  %v2365_v15 = vadd.f32 %v6768_v23, %v2364_v13  ;;  %v2366_v17 = vpop.f32.mrb[223].mxu0 }
 0x2b4   :  { %v2877_v16 = vadd.f32 %v6768_v23, %v2876_v14  ;;  %v2878_v18 = vpop.f32.mrb[223].mxu1  ;;  %4709 = vtanh.f32 %v2874_v10 }
 0x2b5   :  { %v4700_v19 = vpop.eup %4699  ;;  %4711 = vtanh.f32 %v2365_v15 }
 0x2b6   :  { %v4702_v20 = vpop.eup %4701  ;;  %3309 = vst.msk [vmem:[%s7029_s3 + $0x360] sm:$0xff] %vm3200_vm1, %v4700_v19  ;;  %4713 = vtanh.f32 %v2877_v16 }
 0x2b7   :  { %v4704_v21 = vpop.eup %4703  ;;  %3437 = vst.msk [vmem:[%s7029_s3 + $0x760] sm:$0xff] %vm3200_vm1, %v4702_v20 }
 0x2b8   :  { %v4706_v3 = vpop.eup %4705  ;;  %3310 = vst.msk [vmem:[%s7029_s3 + $0x368] sm:$0xff] %vm3200_vm1, %v4704_v21  ;;  %v2369_v22 = vpop.f32.mrb[224].mxu0 }
 0x2b9   :  { %v2881_v24 = vpop.f32.mrb[224].mxu1  ;;  %3438 = vst.msk [vmem:[%s7029_s3 + $0x768] sm:$0xff] %vm3200_vm1, %v4706_v3  ;;  %v2370_v25 = vadd.f32 %v6768_v23, %v2369_v22  ;;  %v2371_v27 = vpop.f32.mrb[225].mxu0 }
 0x2ba   :  { %v2882_v26 = vadd.f32 %v6768_v23, %v2881_v24  ;;  %v2883_v28 = vpop.f32.mrb[225].mxu1  ;;  %v2372_v29 = vpop.f32.mrb[226].mxu0 }
 0x2bb   :  { %v2884_v30 = vpop.f32.mrb[226].mxu1  ;;  %4715 = vtanh.f32 %v2370_v25  ;;  %v2373_v31 = vadd.f32 %v6768_v23, %v2372_v29  ;;  %v2374_v33 = vpop.f32.mrb[227].mxu0 }
 0x2bc   :  { %v2885_v32 = vadd.f32 %v6768_v23, %v2884_v30  ;;  %v2886_v34 = vpop.f32.mrb[227].mxu1  ;;  %4717 = vtanh.f32 %v2882_v26 }
 0x2bd   :  { %v4708_v35 = vpop.eup %4707  ;;  %4719 = vtanh.f32 %v2373_v31 }
 0x2be   :  { %v4710_v36 = vpop.eup %4709  ;;  %3311 = vst.msk [vmem:[%s7029_s3 + $0x370] sm:$0xff] %vm3200_vm1, %v4708_v35  ;;  %4721 = vtanh.f32 %v2885_v32 }
 0x2bf   :  { %v4712_v37 = vpop.eup %4711  ;;  %3439 = vst.msk [vmem:[%s7029_s3 + $0x770] sm:$0xff] %vm3200_vm1, %v4710_v36 }
 0x2c0   :  { %v4714_v38 = vpop.eup %4713  ;;  %3312 = vst.msk [vmem:[%s7029_s3 + $0x378] sm:$0xff] %vm3200_vm1, %v4712_v37  ;;  %v2377_v39 = vpop.f32.mrb[228].mxu0 }
 0x2c1   :  { %v2889_v40 = vpop.f32.mrb[228].mxu1  ;;  %3440 = vst.msk [vmem:[%s7029_s3 + $0x778] sm:$0xff] %vm3200_vm1, %v4714_v38  ;;  %v2378_v41 = vadd.f32 %v6768_v23, %v2377_v39  ;;  %v2379_v43 = vpop.f32.mrb[229].mxu0 }
 0x2c2   :  { %v2890_v42 = vadd.f32 %v6768_v23, %v2889_v40  ;;  %v2891_v44 = vpop.f32.mrb[229].mxu1  ;;  %v2380_v45 = vpop.f32.mrb[230].mxu0 }
 0x2c3   :  { %v2892_v46 = vpop.f32.mrb[230].mxu1  ;;  %4723 = vtanh.f32 %v2378_v41  ;;  %v2381_v47 = vadd.f32 %v6768_v23, %v2380_v45  ;;  %v2382_v49 = vpop.f32.mrb[231].mxu0 }
 0x2c4   :  { %v2893_v48 = vadd.f32 %v6768_v23, %v2892_v46  ;;  %v2894_v50 = vpop.f32.mrb[231].mxu1  ;;  %4725 = vtanh.f32 %v2890_v42 }
 0x2c5   :  { %v4716_v51 = vpop.eup %4715  ;;  %4727 = vtanh.f32 %v2381_v47 }
 0x2c6   :  { %v4718_v52 = vpop.eup %4717  ;;  %3313 = vst.msk [vmem:[%s7029_s3 + $0x380] sm:$0xff] %vm3200_vm1, %v4716_v51  ;;  %4729 = vtanh.f32 %v2893_v48 }
 0x2c7   :  { %v4720_v53 = vpop.eup %4719  ;;  %3441 = vst.msk [vmem:[%s7029_s3 + $0x780] sm:$0xff] %vm3200_vm1, %v4718_v52 }
 0x2c8   :  { %v4722_v54 = vpop.eup %4721  ;;  %3314 = vst.msk [vmem:[%s7029_s3 + $0x388] sm:$0xff] %vm3200_vm1, %v4720_v53  ;;  %v2385_v55 = vpop.f32.mrb[232].mxu0 }
 0x2c9   :  { %v2897_v57 = vpop.f32.mrb[232].mxu1  ;;  %3442 = vst.msk [vmem:[%s7029_s3 + $0x788] sm:$0xff] %vm3200_vm1, %v4722_v54  ;;  %v2386_v58 = vadd.f32 %v6768_v23, %v2385_v55  ;;  %v2387_v60 = vpop.f32.mrb[233].mxu0 }
 0x2ca   :  { %v2898_v59 = vadd.f32 %v6768_v23, %v2897_v57  ;;  %v2899_v62 = vpop.f32.mrb[233].mxu1  ;;  %v2388_v63 = vpop.f32.mrb[234].mxu0 }
 0x2cb   :  { %v2900_v0 = vpop.f32.mrb[234].mxu1  ;;  %4731 = vtanh.f32 %v2386_v58  ;;  %v2389_v1 = vadd.f32 %v6768_v23, %v2388_v63  ;;  %v2390_v4 = vpop.f32.mrb[235].mxu0 }
 0x2cc   :  { %v2901_v2 = vadd.f32 %v6768_v23, %v2900_v0  ;;  %v2902_v56 = vpop.f32.mrb[235].mxu1  ;;  %4733 = vtanh.f32 %v2898_v59 }
 0x2cd   :  { %v4724_v5 = vpop.eup %4723  ;;  %4735 = vtanh.f32 %v2389_v1 }
 0x2ce   :  { %v4726_v6 = vpop.eup %4725  ;;  %3315 = vst.msk [vmem:[%s7029_s3 + $0x390] sm:$0xff] %vm3200_vm1, %v4724_v5  ;;  %4737 = vtanh.f32 %v2901_v2 }
 0x2cf   :  { %v4728_v7 = vpop.eup %4727  ;;  %3443 = vst.msk [vmem:[%s7029_s3 + $0x790] sm:$0xff] %vm3200_vm1, %v4726_v6 }
 0x2d0   :  { %v4730_v8 = vpop.eup %4729  ;;  %3316 = vst.msk [vmem:[%s7029_s3 + $0x398] sm:$0xff] %vm3200_vm1, %v4728_v7  ;;  %v2393_v9 = vpop.f32.mrb[236].mxu0 }
 0x2d1   :  { %v2905_v61 = vpop.f32.mrb[236].mxu1  ;;  %3444 = vst.msk [vmem:[%s7029_s3 + $0x798] sm:$0xff] %vm3200_vm1, %v4730_v8  ;;  %v2394_v10 = vadd.f32 %v6768_v23, %v2393_v9  ;;  %v2395_v12 = vpop.f32.mrb[237].mxu0 }
 0x2d2   :  { %v2906_v11 = vadd.f32 %v6768_v23, %v2905_v61  ;;  %v2907_v13 = vpop.f32.mrb[237].mxu1  ;;  %v2396_v14 = vpop.f32.mrb[238].mxu0 }
 0x2d3   :  { %v2908_v15 = vpop.f32.mrb[238].mxu1  ;;  %4739 = vtanh.f32 %v2394_v10  ;;  %v2397_v16 = vadd.f32 %v6768_v23, %v2396_v14  ;;  %v2398_v18 = vpop.f32.mrb[239].mxu0 }
 0x2d4   :  { %v2909_v17 = vadd.f32 %v6768_v23, %v2908_v15  ;;  %v2910_v19 = vpop.f32.mrb[239].mxu1  ;;  %4741 = vtanh.f32 %v2906_v11 }
 0x2d5   :  { %v4732_v20 = vpop.eup %4731  ;;  %4743 = vtanh.f32 %v2397_v16 }
 0x2d6   :  { %v4734_v21 = vpop.eup %4733  ;;  %3317 = vst.msk [vmem:[%s7029_s3 + $0x3a0] sm:$0xff] %vm3200_vm1, %v4732_v20  ;;  %4745 = vtanh.f32 %v2909_v17 }
 0x2d7   :  { %v4736_v3 = vpop.eup %4735  ;;  %3445 = vst.msk [vmem:[%s7029_s3 + $0x7a0] sm:$0xff] %vm3200_vm1, %v4734_v21 }
 0x2d8   :  { %v4738_v22 = vpop.eup %4737  ;;  %3318 = vst.msk [vmem:[%s7029_s3 + $0x3a8] sm:$0xff] %vm3200_vm1, %v4736_v3  ;;  %v2401_v24 = vpop.f32.mrb[240].mxu0 }
 0x2d9   :  { %v2913_v25 = vpop.f32.mrb[240].mxu1  ;;  %3446 = vst.msk [vmem:[%s7029_s3 + $0x7a8] sm:$0xff] %vm3200_vm1, %v4738_v22  ;;  %v2402_v26 = vadd.f32 %v6768_v23, %v2401_v24  ;;  %v2403_v28 = vpop.f32.mrb[241].mxu0 }
 0x2da   :  { %v2914_v27 = vadd.f32 %v6768_v23, %v2913_v25  ;;  %v2915_v29 = vpop.f32.mrb[241].mxu1  ;;  %v2404_v30 = vpop.f32.mrb[242].mxu0 }
 0x2db   :  { %v2916_v31 = vpop.f32.mrb[242].mxu1  ;;  %4747 = vtanh.f32 %v2402_v26  ;;  %v2405_v32 = vadd.f32 %v6768_v23, %v2404_v30  ;;  %v2406_v34 = vpop.f32.mrb[243].mxu0 }
 0x2dc   :  { %v2917_v33 = vadd.f32 %v6768_v23, %v2916_v31  ;;  %v2918_v35 = vpop.f32.mrb[243].mxu1  ;;  %4749 = vtanh.f32 %v2914_v27 }
 0x2dd   :  { %v4740_v36 = vpop.eup %4739  ;;  %4751 = vtanh.f32 %v2405_v32 }
 0x2de   :  { %v4742_v37 = vpop.eup %4741  ;;  %3319 = vst.msk [vmem:[%s7029_s3 + $0x3b0] sm:$0xff] %vm3200_vm1, %v4740_v36  ;;  %4753 = vtanh.f32 %v2917_v33 }
 0x2df   :  { %v4744_v38 = vpop.eup %4743  ;;  %3447 = vst.msk [vmem:[%s7029_s3 + $0x7b0] sm:$0xff] %vm3200_vm1, %v4742_v37 }
 0x2e0   :  { %v4746_v39 = vpop.eup %4745  ;;  %3320 = vst.msk [vmem:[%s7029_s3 + $0x3b8] sm:$0xff] %vm3200_vm1, %v4744_v38  ;;  %v2409_v40 = vpop.f32.mrb[244].mxu0 }
 0x2e1   :  { %v2921_v41 = vpop.f32.mrb[244].mxu1  ;;  %3448 = vst.msk [vmem:[%s7029_s3 + $0x7b8] sm:$0xff] %vm3200_vm1, %v4746_v39  ;;  %v2410_v42 = vadd.f32 %v6768_v23, %v2409_v40  ;;  %v2411_v44 = vpop.f32.mrb[245].mxu0 }
 0x2e2   :  { %v2922_v43 = vadd.f32 %v6768_v23, %v2921_v41  ;;  %v2923_v45 = vpop.f32.mrb[245].mxu1  ;;  %v2412_v46 = vpop.f32.mrb[246].mxu0 }
 0x2e3   :  { %v2924_v47 = vpop.f32.mrb[246].mxu1  ;;  %4755 = vtanh.f32 %v2410_v42  ;;  %v2413_v48 = vadd.f32 %v6768_v23, %v2412_v46  ;;  %v2414_v50 = vpop.f32.mrb[247].mxu0 }
 0x2e4   :  { %v2925_v49 = vadd.f32 %v6768_v23, %v2924_v47  ;;  %v2926_v51 = vpop.f32.mrb[247].mxu1  ;;  %4757 = vtanh.f32 %v2922_v43 }
 0x2e5   :  { %v4748_v52 = vpop.eup %4747  ;;  %4759 = vtanh.f32 %v2413_v48 }
 0x2e6   :  { %v4750_v53 = vpop.eup %4749  ;;  %3321 = vst.msk [vmem:[%s7029_s3 + $0x3c0] sm:$0xff] %vm3200_vm1, %v4748_v52  ;;  %4761 = vtanh.f32 %v2925_v49 }
 0x2e7   :  { %v4752_v54 = vpop.eup %4751  ;;  %3449 = vst.msk [vmem:[%s7029_s3 + $0x7c0] sm:$0xff] %vm3200_vm1, %v4750_v53 }
 0x2e8   :  { %v4754_v55 = vpop.eup %4753  ;;  %3322 = vst.msk [vmem:[%s7029_s3 + $0x3c8] sm:$0xff] %vm3200_vm1, %v4752_v54  ;;  %v2417_v57 = vpop.f32.mrb[248].mxu0 }
 0x2e9   :  { %v2929_v58 = vpop.f32.mrb[248].mxu1  ;;  %3450 = vst.msk [vmem:[%s7029_s3 + $0x7c8] sm:$0xff] %vm3200_vm1, %v4754_v55  ;;  %v2418_v59 = vadd.f32 %v6768_v23, %v2417_v57  ;;  %v2419_v62 = vpop.f32.mrb[249].mxu0 }
 0x2ea   :  { %v2930_v60 = vadd.f32 %v6768_v23, %v2929_v58  ;;  %v2931_v63 = vpop.f32.mrb[249].mxu1  ;;  %v2420_v0 = vpop.f32.mrb[250].mxu0 }
 0x2eb   :  { %v2932_v1 = vpop.f32.mrb[250].mxu1  ;;  %4763 = vtanh.f32 %v2418_v59  ;;  %v2421_v2 = vadd.f32 %v6768_v23, %v2420_v0  ;;  %v2422_v56 = vpop.f32.mrb[251].mxu0 }
 0x2ec   :  { %v2933_v4 = vadd.f32 %v6768_v23, %v2932_v1  ;;  %v2934_v5 = vpop.f32.mrb[251].mxu1  ;;  %4765 = vtanh.f32 %v2930_v60 }
 0x2ed   :  { %v4756_v6 = vpop.eup %4755  ;;  %4767 = vtanh.f32 %v2421_v2 }
 0x2ee   :  { %v4758_v7 = vpop.eup %4757  ;;  %3323 = vst.msk [vmem:[%s7029_s3 + $0x3d0] sm:$0xff] %vm3200_vm1, %v4756_v6  ;;  %4769 = vtanh.f32 %v2933_v4 }
 0x2ef   :  { %v4760_v8 = vpop.eup %4759  ;;  %3451 = vst.msk [vmem:[%s7029_s3 + $0x7d0] sm:$0xff] %vm3200_vm1, %v4758_v7 }
 0x2f0   :  { %v4762_v9 = vpop.eup %4761  ;;  %3324 = vst.msk [vmem:[%s7029_s3 + $0x3d8] sm:$0xff] %vm3200_vm1, %v4760_v8  ;;  %v2425_v61 = vpop.f32.mrb[252].mxu0 }
 0x2f1   :  { %v2937_v10 = vpop.f32.mrb[252].mxu1  ;;  %3452 = vst.msk [vmem:[%s7029_s3 + $0x7d8] sm:$0xff] %vm3200_vm1, %v4762_v9  ;;  %v2426_v11 = vadd.f32 %v6768_v23, %v2425_v61  ;;  %v2427_v13 = vpop.f32.mrb[253].mxu0 }
 0x2f2   :  { %v2938_v12 = vadd.f32 %v6768_v23, %v2937_v10  ;;  %v2939_v14 = vpop.f32.mrb[253].mxu1  ;;  %v2428_v15 = vpop.f32.mrb[254].mxu0 }
 0x2f3   :  { %v2940_v16 = vpop.f32.mrb[254].mxu1  ;;  %4771 = vtanh.f32 %v2426_v11  ;;  %v2429_v17 = vadd.f32 %v6768_v23, %v2428_v15  ;;  %v2430_v19 = vpop.f32.mrb[255].mxu0 }
 0x2f4   :  { %v2941_v18 = vadd.f32 %v6768_v23, %v2940_v16  ;;  %v2942_v20 = vpop.f32.mrb[255].mxu1  ;;  %4773 = vtanh.f32 %v2938_v12 }
 0x2f5   :  { %v4764_v21 = vpop.eup %4763  ;;  %4775 = vtanh.f32 %v2429_v17 }
 0x2f6   :  { %v4766_v3 = vpop.eup %4765  ;;  %3325 = vst.msk [vmem:[%s7029_s3 + $0x3e0] sm:$0xff] %vm3200_vm1, %v4764_v21  ;;  %4777 = vtanh.f32 %v2941_v18 }
 0x2f7   :  { %v4768_v22 = vpop.eup %4767  ;;  %3453 = vst.msk [vmem:[%s7029_s3 + $0x7e0] sm:$0xff] %vm3200_vm1, %v4766_v3 }
 0x2f8   :  { %v4770_v24 = vpop.eup %4769  ;;  %3326 = vst.msk [vmem:[%s7029_s3 + $0x3e8] sm:$0xff] %vm3200_vm1, %v4768_v22 }
 0x2f9   :  { %3454 = vst.msk [vmem:[%s7029_s3 + $0x7e8] sm:$0xff] %vm3200_vm1, %v4770_v24 }
 0x2fd   :  { %v4772_v23 = vpop.eup %4771 }
 0x2fe   :  { %v4774_v25 = vpop.eup %4773  ;;  %3327 = vst.msk [vmem:[%s7029_s3 + $0x3f0] sm:$0xff] %vm3200_vm1, %v4772_v23 }
 0x2ff   :  { %v4776_v26 = vpop.eup %4775  ;;  %3455 = vst.msk [vmem:[%s7029_s3 + $0x7f0] sm:$0xff] %vm3200_vm1, %v4774_v25 }
 0x300   :  { %v4778_v27 = vpop.eup %4777  ;;  %3328 = vst.msk [vmem:[%s7029_s3 + $0x3f8] sm:$0xff] %vm3200_vm1, %v4776_v26 }
 0x301   :  { %3456 = vst.msk [vmem:[%s7029_s3 + $0x7f8] sm:$0xff] %vm3200_vm1, %v4778_v27 }

</bundles_post_ra>
